<compile_context>
chip_gen: v7x
topology: tpu7x:2x2x1
jax: 0.10.0
libtpu: 0.0.40
codegen_flags: <defaults>
</compile_context>

<pallas_src>
import functools

import jax
import jax.numpy as jnp
from jax.experimental import pallas as pl
from jax.experimental.pallas import tpu as pltpu


# ---------------------------------------------------------------------------
# Fused conv1 -> conv2 -> conv3(col-chunked) -> max-over-points -> fc1/fc2/fc3
# ---------------------------------------------------------------------------
def _fused_branch_kernel(
    x_ref, w1_ref, s1_ref, t1_ref,
    w2_ref, s2_ref, t2_ref,
    w3_ref, s3_ref, t3_ref,
    f1w_ref, f1b_ref, f2w_ref, f2b_ref, f3w_ref, f3b_ref,
    o_ref,
    acc_ref,
    *, relu3: bool, n_points: int, col_chunk: int,
):
    t = pl.program_id(1)
    tp = x_ref.shape[1]
    c3 = w3_ref.shape[1]

    # Per-batch init of the resident (1, C3) max accumulator (scratch persists
    # across grid steps; the point-tile axis is innermost).
    @pl.when(t == 0)
    def _():
        acc_ref[...] = jnp.full(acc_ref.shape, -jnp.inf, dtype=acc_ref.dtype)

    x = x_ref[0]          # (TP, 3)  f32
    w1 = w1_ref[0]        # (3, 64)  f32 (per-batch when the 3x3 transform is folded in)

    # conv1: K=3 contraction as VPU broadcast-FMAs (too small for the MXU).
    h = x[:, 0:1] * w1[0:1, :]
    h = h + x[:, 1:2] * w1[1:2, :]
    h = h + x[:, 2:3] * w1[2:3, :]
    h = jnp.maximum(h * s1_ref[...] + t1_ref[...], 0.0)                # (TP, 64) f32

    # conv2: bf16 MXU matmul, f32 accumulate, f32 epilogue.
    h = jnp.dot(h.astype(jnp.bfloat16), w2_ref[...],
                preferred_element_type=jnp.float32)
    h = jnp.maximum(h * s2_ref[...] + t2_ref[...], 0.0)                # (TP, 128) f32
    hb = h.astype(jnp.bfloat16)

    ragged = (n_points % tp) != 0
    if ragged:
        pidx = t * tp + jax.lax.broadcasted_iota(jnp.int32, (tp, 1), 0)
        row_valid = pidx < n_points                                    # (TP, 1)

    # conv3, column-chunked: per slab do matmul -> scale/shift/(relu)/row-max
    # while the slab is hot, accumulating into the resident (1, C3) max.
    for c in range(0, c3, col_chunk):
        h3 = jnp.dot(hb, w3_ref[:, c:c + col_chunk],
                     preferred_element_type=jnp.float32)               # (TP, chunk) f32
        h3 = h3 * s3_ref[:, c:c + col_chunk] + t3_ref[:, c:c + col_chunk]
        if relu3:
            h3 = jnp.maximum(h3, 0.0)
        if ragged:
            h3 = jnp.where(row_valid, h3, -jnp.inf)
        slab_max = jnp.max(h3, axis=0, keepdims=True)                  # (1, chunk)
        acc_ref[:, c:c + col_chunk] = jnp.maximum(
            acc_ref[:, c:c + col_chunk], slab_max)

    # fc1 -> relu -> fc2 -> relu -> fc3, fused into the final point tile of each
    # batch; operates on the resident global-max feature, writes (1, Cout).
    @pl.when(t == pl.num_programs(1) - 1)
    def _():
        g = acc_ref[...]                                               # (1, C3) f32
        z = jnp.dot(g.astype(jnp.bfloat16), f1w_ref[...],
                    preferred_element_type=jnp.float32) + f1b_ref[...]
        z = jnp.maximum(z, 0.0)
        z = jnp.dot(z.astype(jnp.bfloat16), f2w_ref[...],
                    preferred_element_type=jnp.float32) + f2b_ref[...]
        z = jnp.maximum(z, 0.0)
        # fc3 output width (9 or 1) is lane-unaligned and tiny -> keep it f32.
        z = jnp.dot(z, f3w_ref[...],
                    preferred_element_type=jnp.float32) + f3b_ref[...]
        o_ref[0] = z


def fused_branch(
    x, w1, s1, t1, w2, s2, t2, w3, s3, t3,
    f1w, f1b, f2w, f2b, f3w, f3b,
    *, relu3, point_tile=1024, col_chunk=256,
):
    """x: (B, N, 3) -> (B, Cout).

    Computes fc3(relu(fc2(relu(fc1( max_n( conv3(conv2(conv1(x))) ))))))
    with BN folded into per-channel scale/shift of each conv.
    """
    B, N, Cin = x.shape
    per_batch_w1 = w1.ndim == 3
    if not per_batch_w1:
        w1 = w1.reshape(1, Cin, -1)
    C1, C2, C3 = w1.shape[2], w2.shape[1], w3.shape[1]
    F1, F2, Cout = f1w.shape[1], f2w.shape[1], f3w.shape[1]

    assert C3 % col_chunk == 0 and col_chunk % 128 == 0
    TP = N if N <= point_tile else point_tile
    if N > point_tile:
        assert TP % 8 == 0, "point_tile must be a multiple of 8 when N > point_tile"
    n_tiles = pl.cdiv(N, TP)

    # bf16 for MXU operands (f32 accumulation in-kernel); epilogues/biases stay f32.
    w2 = w2.astype(jnp.bfloat16)
    w3 = w3.astype(jnp.bfloat16)
    f1w = f1w.astype(jnp.bfloat16)
    f2w = f2w.astype(jnp.bfloat16)

    w1_idx = (lambda b, t: (b, 0, 0)) if per_batch_w1 else (lambda b, t: (0, 0, 0))

    def const2(shape):
        return pl.BlockSpec(shape, lambda b, t: (0, 0))

    out = pl.pallas_call(
        functools.partial(_fused_branch_kernel, relu3=relu3, n_points=N,
                          col_chunk=col_chunk),
        out_shape=jax.ShapeDtypeStruct((B, 1, Cout), jnp.float32),
        grid=(B, n_tiles),
        in_specs=[
            pl.BlockSpec((1, TP, Cin), lambda b, t: (b, t, 0)),
            pl.BlockSpec((1, Cin, C1), w1_idx),
            const2((1, C1)), const2((1, C1)),
            const2((C1, C2)), const2((1, C2)), const2((1, C2)),
            const2((C2, C3)), const2((1, C3)), const2((1, C3)),
            const2((C3, F1)), const2((1, F1)),
            const2((F1, F2)), const2((1, F2)),
            const2((F2, Cout)), const2((1, Cout)),
        ],
        out_specs=pl.BlockSpec((1, 1, Cout), lambda b, t: (b, 0, 0)),
        scratch_shapes=[pltpu.VMEM((1, C3), jnp.float32)],
        compiler_params=pltpu.CompilerParams(
            dimension_semantics=("parallel", "arbitrary"),
            # Footprint is a few MiB even at TP=2048 (column-chunked conv3);
            # 32 MiB gives headroom on v5e's 16 MiB default without exceeding
            # v7x's 64 MiB physical VMEM.
            vmem_limit_bytes=32 * 1024 * 1024),
    )(
        x, w1,
        s1.reshape(1, C1), t1.reshape(1, C1),
        w2, s2.reshape(1, C2), t2.reshape(1, C2),
        w3, s3.reshape(1, C3), t3.reshape(1, C3),
        f1w, f1b.reshape(1, F1),
        f2w, f2b.reshape(1, F2),
        f3w, f3b.reshape(1, Cout),
    )
    return out.reshape(B, Cout)


# ---------------------------------------------------------------------------
# Parameters (deterministic synthetic init; mirrors the PyTorch module shapes)
# ---------------------------------------------------------------------------
def init_params(key):
    keys = iter(jax.random.split(key, 32))

    def dense(cin, cout):
        kw, kb = jax.random.split(next(keys))
        bound = cin ** -0.5
        w = jax.random.uniform(kw, (cin, cout), jnp.float32, -bound, bound)
        b = jax.random.uniform(kb, (cout,), jnp.float32, -bound, bound)
        return w, b

    def bn_folded(c, eps=1e-5):
        kg, kb, km, kv = jax.random.split(next(keys), 4)
        gamma = 1.0 + 0.1 * jax.random.normal(kg, (c,), jnp.float32)
        beta = 0.1 * jax.random.normal(kb, (c,), jnp.float32)
        mean = 0.1 * jax.random.normal(km, (c,), jnp.float32)
        var = 1.0 + 0.1 * jnp.abs(jax.random.normal(kv, (c,), jnp.float32))
        scale = gamma / jnp.sqrt(var + eps)
        shift = beta - mean * scale
        return scale, shift

    stn = {}
    stn["c1_w"], stn["c1_b"] = dense(3, 64)
    stn["c2_w"], stn["c2_b"] = dense(64, 128)
    stn["c3_w"], stn["c3_b"] = dense(128, 1024)
    stn["f1_w"], stn["f1_b"] = dense(1024, 512)
    stn["f2_w"], stn["f2_b"] = dense(512, 256)
    stn["f3_w"], stn["f3_b"] = dense(256, 9)

    feat = {}
    feat["c1_w"], feat["c1_b"] = dense(3, 64)
    feat["c2_w"], feat["c2_b"] = dense(64, 128)
    feat["c3_w"], feat["c3_b"] = dense(128, 1024)
    feat["bn1_scale"], feat["bn1_shift"] = bn_folded(64)
    feat["bn2_scale"], feat["bn2_shift"] = bn_folded(128)
    feat["bn3_scale"], feat["bn3_shift"] = bn_folded(1024)

    head = {}
    head["f1_w"], head["f1_b"] = dense(1024, 512)
    head["f2_w"], head["f2_b"] = dense(512, 256)
    head["f3_w"], head["f3_b"] = dense(256, 1)  # k = 1
    # NOTE: PointNetReg defines bn1/bn2 on the head but never applies them in
    # forward(), so they are intentionally omitted here.
    return {"stn": stn, "feat": feat, "head": head}


# ---------------------------------------------------------------------------
# Forward pass: exactly two fused pallas_call launches.
# ---------------------------------------------------------------------------
def pointnet_reg_forward(params, x_bcn, *, point_tile=1024):
    """x_bcn: (B, 3, N) float32 (PyTorch NCW). Returns (out (B,1), trans (B,3,3))."""
    B, _, N = x_bcn.shape
    x = jnp.transpose(x_bcn, (0, 2, 1)).astype(jnp.float32)  # (B, N, 3) channels-last

    # ---- STN3d branch (this model's STN3d has NO BatchNorm: scale=1, shift=bias) ----
    p = params["stn"]
    ones = lambda c: jnp.ones((c,), jnp.float32)
    stn9 = fused_branch(
        x,
        p["c1_w"], ones(64), p["c1_b"],
        p["c2_w"], ones(128), p["c2_b"],
        p["c3_w"], ones(1024), p["c3_b"],
        p["f1_w"], p["f1_b"], p["f2_w"], p["f2_b"], p["f3_w"], p["f3_b"],
        relu3=True, point_tile=point_tile)                          # (B, 9)
    iden = jnp.eye(3, dtype=jnp.float32).reshape(1, 9)
    trans = (stn9 + iden).reshape(B, 3, 3)

    # ---- PointNetfeat (global_feat=True, trans=True) + regression head, fused ----
    p = params["feat"]
    h = params["head"]
    # torch.bmm(x^T, trans) folded into conv1: (x @ trans) @ W1 == x @ (trans @ W1)
    w1b = jnp.einsum("bij,jk->bik", trans, p["c1_w"])               # (B, 3, 64), tiny
    # Fold conv bias into BN shift: BN(xW + b) = (xW)*scale + (b*scale + shift)
    sh1 = p["c1_b"] * p["bn1_scale"] + p["bn1_shift"]
    sh2 = p["c2_b"] * p["bn2_scale"] + p["bn2_shift"]
    sh3 = p["c3_b"] * p["bn3_scale"] + p["bn3_shift"]
    out = fused_branch(
        x,
        w1b, p["bn1_scale"], sh1,
        p["c2_w"], p["bn2_scale"], sh2,
        p["c3_w"], p["bn3_scale"], sh3,
        h["f1_w"], h["f1_b"], h["f2_w"], h["f2_b"], h["f3_w"], h["f3_b"],
        relu3=False, point_tile=point_tile)                         # (B, 1)
    return out, trans


if __name__ == "__main__":
    key = jax.random.PRNGKey(0)
    pkey, xkey = jax.random.split(key)
    params = init_params(pkey)

    # Small shapes for the example; N=200 with point_tile=128 exercises the
    # multi-tile resident max accumulator, the ragged-tile masking path and the
    # fc-head fusion on the last point tile.
    B, N = 2, 200
    x = jax.random.normal(xkey, (B, 3, N), jnp.float32)

    fwd = jax.jit(functools.partial(pointnet_reg_forward, point_tile=128))
    out, trans = fwd(params, x)
    jax.block_until_ready((out, trans))

    assert out.shape == (B, 1) and out.dtype == jnp.float32
    assert trans.shape == (B, 3, 3) and trans.dtype == jnp.float32
    assert bool(jnp.all(jnp.isfinite(out))) and bool(jnp.all(jnp.isfinite(trans)))
    print("KERNEL_OK")
</pallas_src>

<mosaic_0001>
module attributes {stable_mosaic.version = 11 : i64} {
  func.func @_fused_branch_kernel(%arg0: i32, %arg1: i32, %arg2: memref<1x128x3xf32, #tpu.memory_space<vmem>>, %arg3: memref<1x3x64xf32, #tpu.memory_space<vmem>>, %arg4: memref<1x64xf32, #tpu.memory_space<vmem>>, %arg5: memref<1x64xf32, #tpu.memory_space<vmem>>, %arg6: memref<64x128xbf16, #tpu.memory_space<vmem>>, %arg7: memref<1x128xf32, #tpu.memory_space<vmem>>, %arg8: memref<1x128xf32, #tpu.memory_space<vmem>>, %arg9: memref<128x1024xbf16, #tpu.memory_space<vmem>>, %arg10: memref<1x1024xf32, #tpu.memory_space<vmem>>, %arg11: memref<1x1024xf32, #tpu.memory_space<vmem>>, %arg12: memref<1024x512xbf16, #tpu.memory_space<vmem>>, %arg13: memref<1x512xf32, #tpu.memory_space<vmem>>, %arg14: memref<512x256xbf16, #tpu.memory_space<vmem>>, %arg15: memref<1x256xf32, #tpu.memory_space<vmem>>, %arg16: memref<256x9xf32, #tpu.memory_space<vmem>>, %arg17: memref<1x9xf32, #tpu.memory_space<vmem>>, %arg18: memref<1x1x9xf32, #tpu.memory_space<vmem>>, %arg19: memref<1x1024xf32, #tpu.memory_space<vmem>>) attributes {dimension_semantics = [#tpu.dimension_semantics<parallel>, #tpu.dimension_semantics<arbitrary>], iteration_bounds = array<i64: 2, 2>, scalar_prefetch = 0 : i64, scratch_operands = 1 : i64, tpu.core_type = #tpu.core_type<tc>, window_params = [{transform_indices = @transform_0, window_bounds = array<i64: 1, 128, 3>}, {pipeline_mode = #tpu.pipeline_mode<synchronous>, transform_indices = @transform_1, window_bounds = array<i64: 1, 3, 64>}, {pipeline_mode = #tpu.pipeline_mode<synchronous>, transform_indices = @transform_2, window_bounds = array<i64: 1, 64>}, {pipeline_mode = #tpu.pipeline_mode<synchronous>, transform_indices = @transform_3, window_bounds = array<i64: 1, 64>}, {pipeline_mode = #tpu.pipeline_mode<synchronous>, transform_indices = @transform_4, window_bounds = array<i64: 64, 128>}, {pipeline_mode = #tpu.pipeline_mode<synchronous>, transform_indices = @transform_5, window_bounds = array<i64: 1, 128>}, {pipeline_mode = #tpu.pipeline_mode<synchronous>, transform_indices = @transform_6, window_bounds = array<i64: 1, 128>}, {pipeline_mode = #tpu.pipeline_mode<synchronous>, transform_indices = @transform_7, window_bounds = array<i64: 128, 1024>}, {pipeline_mode = #tpu.pipeline_mode<synchronous>, transform_indices = @transform_8, window_bounds = array<i64: 1, 1024>}, {pipeline_mode = #tpu.pipeline_mode<synchronous>, transform_indices = @transform_9, window_bounds = array<i64: 1, 1024>}, {pipeline_mode = #tpu.pipeline_mode<synchronous>, transform_indices = @transform_10, window_bounds = array<i64: 1024, 512>}, {pipeline_mode = #tpu.pipeline_mode<synchronous>, transform_indices = @transform_11, window_bounds = array<i64: 1, 512>}, {pipeline_mode = #tpu.pipeline_mode<synchronous>, transform_indices = @transform_12, window_bounds = array<i64: 512, 256>}, {pipeline_mode = #tpu.pipeline_mode<synchronous>, transform_indices = @transform_13, window_bounds = array<i64: 1, 256>}, {pipeline_mode = #tpu.pipeline_mode<synchronous>, transform_indices = @transform_14, window_bounds = array<i64: 256, 9>}, {pipeline_mode = #tpu.pipeline_mode<synchronous>, transform_indices = @transform_15, window_bounds = array<i64: 1, 9>}, {transform_indices = @transform_16, window_bounds = array<i64: 1, 1, 9>}]} {
    %c0_i32 = arith.constant 0 : i32
    %0 = arith.cmpi eq, %arg1, %c0_i32 : i32
    %1 = arith.extui %0 : i1 to i32
    %c0_i32_0 = arith.constant 0 : i32
    %2 = arith.cmpi ne, %1, %c0_i32_0 : i32
    scf.if %2 {
      %cst_72 = arith.constant 0xFF800000 : f32
      %129 = vector.broadcast %cst_72 : f32 to vector<1x1024xf32>
      %c0_73 = arith.constant 0 : index
      %c0_74 = arith.constant 0 : index
      %130 = vector.load %arg19[%c0_73, %c0_74] : memref<1x1024xf32, #tpu.memory_space<vmem>>, vector<1x1024xf32>
      tpu.vector_store %arg19[%c0_73, %c0_74], %129 {strides = array<i32>} : memref<1x1024xf32, #tpu.memory_space<vmem>>, vector<1x1024xf32>,
    } else {
    }
    %c0 = arith.constant 0 : index
    %c0_1 = arith.constant 0 : index
    %c0_2 = arith.constant 0 : index
    %3 = vector.load %arg2[%c0, %c0_1, %c0_2] : memref<1x128x3xf32, #tpu.memory_space<vmem>>, vector<1x128x3xf32>
    %4 = vector.shape_cast %3 : vector<1x128x3xf32> to vector<128x3xf32>
    %c0_3 = arith.constant 0 : index
    %c0_4 = arith.constant 0 : index
    %c0_5 = arith.constant 0 : index
    %5 = vector.load %arg3[%c0_3, %c0_4, %c0_5] : memref<1x3x64xf32, #tpu.memory_space<vmem>>, vector<1x3x64xf32>
    %6 = vector.shape_cast %5 : vector<1x3x64xf32> to vector<3x64xf32>
    %7 = vector.extract_strided_slice %4 {offsets = [0, 0], sizes = [128, 1], strides = [1, 1]} : vector<128x3xf32> to vector<128x1xf32>
    %8 = vector.extract_strided_slice %6 {offsets = [0, 0], sizes = [1, 64], strides = [1, 1]} : vector<3x64xf32> to vector<1x64xf32>
    %9 = vector.broadcast %7 : vector<128x1xf32> to vector<128x64xf32>
    %10 = vector.broadcast %8 : vector<1x64xf32> to vector<128x64xf32>
    %11 = arith.mulf %9, %10 : vector<128x64xf32>
    %12 = vector.extract_strided_slice %4 {offsets = [0, 1], sizes = [128, 1], strides = [1, 1]} : vector<128x3xf32> to vector<128x1xf32>
    %13 = vector.extract_strided_slice %6 {offsets = [1, 0], sizes = [1, 64], strides = [1, 1]} : vector<3x64xf32> to vector<1x64xf32>
    %14 = vector.broadcast %12 : vector<128x1xf32> to vector<128x64xf32>
    %15 = vector.broadcast %13 : vector<1x64xf32> to vector<128x64xf32>
    %16 = arith.mulf %14, %15 : vector<128x64xf32>
    %17 = arith.addf %11, %16 : vector<128x64xf32>
    %18 = vector.extract_strided_slice %4 {offsets = [0, 2], sizes = [128, 1], strides = [1, 1]} : vector<128x3xf32> to vector<128x1xf32>
    %19 = vector.extract_strided_slice %6 {offsets = [2, 0], sizes = [1, 64], strides = [1, 1]} : vector<3x64xf32> to vector<1x64xf32>
    %20 = vector.broadcast %18 : vector<128x1xf32> to vector<128x64xf32>
    %21 = vector.broadcast %19 : vector<1x64xf32> to vector<128x64xf32>
    %22 = arith.mulf %20, %21 : vector<128x64xf32>
    %23 = arith.addf %17, %22 : vector<128x64xf32>
    %c0_6 = arith.constant 0 : index
    %c0_7 = arith.constant 0 : index
    %24 = vector.load %arg4[%c0_6, %c0_7] : memref<1x64xf32, #tpu.memory_space<vmem>>, vector<1x64xf32>
    %25 = vector.broadcast %24 : vector<1x64xf32> to vector<128x64xf32>
    %26 = arith.mulf %23, %25 : vector<128x64xf32>
    %c0_8 = arith.constant 0 : index
    %c0_9 = arith.constant 0 : index
    %27 = vector.load %arg5[%c0_8, %c0_9] : memref<1x64xf32, #tpu.memory_space<vmem>>, vector<1x64xf32>
    %28 = vector.broadcast %27 : vector<1x64xf32> to vector<128x64xf32>
    %29 = arith.addf %26, %28 : vector<128x64xf32>
    %cst = arith.constant 0.000000e+00 : f32
    %30 = vector.broadcast %cst : f32 to vector<128x64xf32>
    %31 = arith.maximumf %29, %30 : vector<128x64xf32>
    %32 = arith.truncf %31 : vector<128x64xf32> to vector<128x64xbf16>
    %c0_10 = arith.constant 0 : index
    %c0_11 = arith.constant 0 : index
    %33 = vector.load %arg6[%c0_10, %c0_11] : memref<64x128xbf16, #tpu.memory_space<vmem>>, vector<64x128xbf16>
    %cst_12 = arith.constant dense<0.000000e+00> : vector<128x128xf32>
    %34 = tpu.matmul %32, %33, %cst_12 {dimension_numbers = #tpu.dot_dimension_numbers<[1], [0], [0], [1], [0, 0, 1, 1], [], []>} : vector<128x64xbf16>, vector<64x128xbf16>, vector<128x128xf32> -> vector<128x128xf32>
    %c0_13 = arith.constant 0 : index
    %c0_14 = arith.constant 0 : index
    %35 = vector.load %arg7[%c0_13, %c0_14] : memref<1x128xf32, #tpu.memory_space<vmem>>, vector<1x128xf32>
    %36 = vector.broadcast %35 : vector<1x128xf32> to vector<128x128xf32>
    %37 = arith.mulf %34, %36 : vector<128x128xf32>
    %c0_15 = arith.constant 0 : index
    %c0_16 = arith.constant 0 : index
    %38 = vector.load %arg8[%c0_15, %c0_16] : memref<1x128xf32, #tpu.memory_space<vmem>>, vector<1x128xf32>
    %39 = vector.broadcast %38 : vector<1x128xf32> to vector<128x128xf32>
    %40 = arith.addf %37, %39 : vector<128x128xf32>
    %cst_17 = arith.constant 0.000000e+00 : f32
    %41 = vector.broadcast %cst_17 : f32 to vector<128x128xf32>
    %42 = arith.maximumf %40, %41 : vector<128x128xf32>
    %43 = arith.truncf %42 : vector<128x128xf32> to vector<128x128xbf16>
    %c128_i32 = arith.constant 128 : i32
    %44 = arith.muli %arg1, %c128_i32 : i32
    %45 = tpu.iota {dimensions = array<i32: 0>} : vector<128x1xi32>
    %46 = vector.broadcast %44 : i32 to vector<128x1xi32>
    %47 = arith.addi %46, %45 : vector<128x1xi32>
    %c200_i32 = arith.constant 200 : i32
    %48 = vector.broadcast %c200_i32 : i32 to vector<128x1xi32>
    %49 = arith.cmpi slt, %47, %48 : vector<128x1xi32>
    %c0_18 = arith.constant 0 : index
    %c0_19 = arith.constant 0 : index
    %50 = vector.load %arg9[%c0_18, %c0_19] : memref<128x1024xbf16, #tpu.memory_space<vmem>>, vector<128x256xbf16>
    %cst_20 = arith.constant dense<0.000000e+00> : vector<128x256xf32>
    %51 = tpu.matmul %43, %50, %cst_20 {dimension_numbers = #tpu.dot_dimension_numbers<[1], [0], [0], [1], [0, 0, 1, 1], [], []>} : vector<128x128xbf16>, vector<128x256xbf16>, vector<128x256xf32> -> vector<128x256xf32>
    %c0_21 = arith.constant 0 : index
    %c0_22 = arith.constant 0 : index
    %52 = vector.load %arg10[%c0_21, %c0_22] : memref<1x1024xf32, #tpu.memory_space<vmem>>, vector<1x256xf32>
    %53 = vector.broadcast %52 : vector<1x256xf32> to vector<128x256xf32>
    %54 = arith.mulf %51, %53 : vector<128x256xf32>
    %c0_23 = arith.constant 0 : index
    %c0_24 = arith.constant 0 : index
    %55 = vector.load %arg11[%c0_23, %c0_24] : memref<1x1024xf32, #tpu.memory_space<vmem>>, vector<1x256xf32>
    %56 = vector.broadcast %55 : vector<1x256xf32> to vector<128x256xf32>
    %57 = arith.addf %54, %56 : vector<128x256xf32>
    %cst_25 = arith.constant 0.000000e+00 : f32
    %58 = vector.broadcast %cst_25 : f32 to vector<128x256xf32>
    %59 = arith.maximumf %57, %58 : vector<128x256xf32>
    %cst_26 = arith.constant 0xFF800000 : f32
    %60 = vector.shape_cast %49 : vector<128x1xi1> to vector<128x1xi1>
    %61 = vector.broadcast %60 : vector<128x1xi1> to vector<128x256xi1>
    %62 = vector.broadcast %cst_26 : f32 to vector<128x256xf32>
    %63 = arith.select %61, %59, %62 : vector<128x256xi1>, vector<128x256xf32>
    %cst_27 = arith.constant dense<0xFF800000> : vector<256xf32>
    %64 = vector.multi_reduction <maximumf>, %63, %cst_27 [0] : vector<128x256xf32> to vector<256xf32>
    %65 = vector.shape_cast %64 : vector<256xf32> to vector<1x256xf32>
    %c0_28 = arith.constant 0 : index
    %c0_29 = arith.constant 0 : index
    %66 = vector.load %arg19[%c0_28, %c0_29] : memref<1x1024xf32, #tpu.memory_space<vmem>>, vector<1x256xf32>
    %67 = arith.maximumf %66, %65 : vector<1x256xf32>
    %c0_30 = arith.constant 0 : index
    %c0_31 = arith.constant 0 : index
    %68 = vector.load %arg19[%c0_30, %c0_31] : memref<1x1024xf32, #tpu.memory_space<vmem>>, vector<1x256xf32>
    tpu.vector_store %arg19[%c0_30, %c0_31], %67 {strides = array<i32>} : memref<1x1024xf32, #tpu.memory_space<vmem>>, vector<1x256xf32>,
    %c0_32 = arith.constant 0 : index
    %c256 = arith.constant 256 : index
    %69 = vector.load %arg9[%c0_32, %c256] : memref<128x1024xbf16, #tpu.memory_space<vmem>>, vector<128x256xbf16>
    %cst_33 = arith.constant dense<0.000000e+00> : vector<128x256xf32>
    %70 = tpu.matmul %43, %69, %cst_33 {dimension_numbers = #tpu.dot_dimension_numbers<[1], [0], [0], [1], [0, 0, 1, 1], [], []>} : vector<128x128xbf16>, vector<128x256xbf16>, vector<128x256xf32> -> vector<128x256xf32>
    %c0_34 = arith.constant 0 : index
    %c256_35 = arith.constant 256 : index
    %71 = vector.load %arg10[%c0_34, %c256_35] : memref<1x1024xf32, #tpu.memory_space<vmem>>, vector<1x256xf32>
    %72 = vector.broadcast %71 : vector<1x256xf32> to vector<128x256xf32>
    %73 = arith.mulf %70, %72 : vector<128x256xf32>
    %c0_36 = arith.constant 0 : index
    %c256_37 = arith.constant 256 : index
    %74 = vector.load %arg11[%c0_36, %c256_37] : memref<1x1024xf32, #tpu.memory_space<vmem>>, vector<1x256xf32>
    %75 = vector.broadcast %74 : vector<1x256xf32> to vector<128x256xf32>
    %76 = arith.addf %73, %75 : vector<128x256xf32>
    %cst_38 = arith.constant 0.000000e+00 : f32
    %77 = vector.broadcast %cst_38 : f32 to vector<128x256xf32>
    %78 = arith.maximumf %76, %77 : vector<128x256xf32>
    %cst_39 = arith.constant 0xFF800000 : f32
    %79 = vector.shape_cast %49 : vector<128x1xi1> to vector<128x1xi1>
    %80 = vector.broadcast %79 : vector<128x1xi1> to vector<128x256xi1>
    %81 = vector.broadcast %cst_39 : f32 to vector<128x256xf32>
    %82 = arith.select %80, %78, %81 : vector<128x256xi1>, vector<128x256xf32>
    %cst_40 = arith.constant dense<0xFF800000> : vector<256xf32>
    %83 = vector.multi_reduction <maximumf>, %82, %cst_40 [0] : vector<128x256xf32> to vector<256xf32>
    %84 = vector.shape_cast %83 : vector<256xf32> to vector<1x256xf32>
    %c0_41 = arith.constant 0 : index
    %c256_42 = arith.constant 256 : index
    %85 = vector.load %arg19[%c0_41, %c256_42] : memref<1x1024xf32, #tpu.memory_space<vmem>>, vector<1x256xf32>
    %86 = arith.maximumf %85, %84 : vector<1x256xf32>
    %c0_43 = arith.constant 0 : index
    %c256_44 = arith.constant 256 : index
    %87 = vector.load %arg19[%c0_43, %c256_44] : memref<1x1024xf32, #tpu.memory_space<vmem>>, vector<1x256xf32>
    tpu.vector_store %arg19[%c0_43, %c256_44], %86 {strides = array<i32>} : memref<1x1024xf32, #tpu.memory_space<vmem>>, vector<1x256xf32>,
    %c0_45 = arith.constant 0 : index
    %c512 = arith.constant 512 : index
    %88 = vector.load %arg9[%c0_45, %c512] : memref<128x1024xbf16, #tpu.memory_space<vmem>>, vector<128x256xbf16>
    %cst_46 = arith.constant dense<0.000000e+00> : vector<128x256xf32>
    %89 = tpu.matmul %43, %88, %cst_46 {dimension_numbers = #tpu.dot_dimension_numbers<[1], [0], [0], [1], [0, 0, 1, 1], [], []>} : vector<128x128xbf16>, vector<128x256xbf16>, vector<128x256xf32> -> vector<128x256xf32>
    %c0_47 = arith.constant 0 : index
    %c512_48 = arith.constant 512 : index
    %90 = vector.load %arg10[%c0_47, %c512_48] : memref<1x1024xf32, #tpu.memory_space<vmem>>, vector<1x256xf32>
    %91 = vector.broadcast %90 : vector<1x256xf32> to vector<128x256xf32>
    %92 = arith.mulf %89, %91 : vector<128x256xf32>
    %c0_49 = arith.constant 0 : index
    %c512_50 = arith.constant 512 : index
    %93 = vector.load %arg11[%c0_49, %c512_50] : memref<1x1024xf32, #tpu.memory_space<vmem>>, vector<1x256xf32>
    %94 = vector.broadcast %93 : vector<1x256xf32> to vector<128x256xf32>
    %95 = arith.addf %92, %94 : vector<128x256xf32>
    %cst_51 = arith.constant 0.000000e+00 : f32
    %96 = vector.broadcast %cst_51 : f32 to vector<128x256xf32>
    %97 = arith.maximumf %95, %96 : vector<128x256xf32>
    %cst_52 = arith.constant 0xFF800000 : f32
    %98 = vector.shape_cast %49 : vector<128x1xi1> to vector<128x1xi1>
    %99 = vector.broadcast %98 : vector<128x1xi1> to vector<128x256xi1>
    %100 = vector.broadcast %cst_52 : f32 to vector<128x256xf32>
    %101 = arith.select %99, %97, %100 : vector<128x256xi1>, vector<128x256xf32>
    %cst_53 = arith.constant dense<0xFF800000> : vector<256xf32>
    %102 = vector.multi_reduction <maximumf>, %101, %cst_53 [0] : vector<128x256xf32> to vector<256xf32>
    %103 = vector.shape_cast %102 : vector<256xf32> to vector<1x256xf32>
    %c0_54 = arith.constant 0 : index
    %c512_55 = arith.constant 512 : index
    %104 = vector.load %arg19[%c0_54, %c512_55] : memref<1x1024xf32, #tpu.memory_space<vmem>>, vector<1x256xf32>
    %105 = arith.maximumf %104, %103 : vector<1x256xf32>
    %c0_56 = arith.constant 0 : index
    %c512_57 = arith.constant 512 : index
    %106 = vector.load %arg19[%c0_56, %c512_57] : memref<1x1024xf32, #tpu.memory_space<vmem>>, vector<1x256xf32>
    tpu.vector_store %arg19[%c0_56, %c512_57], %105 {strides = array<i32>} : memref<1x1024xf32, #tpu.memory_space<vmem>>, vector<1x256xf32>,
    %c0_58 = arith.constant 0 : index
    %c768 = arith.constant 768 : index
    %107 = vector.load %arg9[%c0_58, %c768] : memref<128x1024xbf16, #tpu.memory_space<vmem>>, vector<128x256xbf16>
    %cst_59 = arith.constant dense<0.000000e+00> : vector<128x256xf32>
    %108 = tpu.matmul %43, %107, %cst_59 {dimension_numbers = #tpu.dot_dimension_numbers<[1], [0], [0], [1], [0, 0, 1, 1], [], []>} : vector<128x128xbf16>, vector<128x256xbf16>, vector<128x256xf32> -> vector<128x256xf32>
    %c0_60 = arith.constant 0 : index
    %c768_61 = arith.constant 768 : index
    %109 = vector.load %arg10[%c0_60, %c768_61] : memref<1x1024xf32, #tpu.memory_space<vmem>>, vector<1x256xf32>
    %110 = vector.broadcast %109 : vector<1x256xf32> to vector<128x256xf32>
    %111 = arith.mulf %108, %110 : vector<128x256xf32>
    %c0_62 = arith.constant 0 : index
    %c768_63 = arith.constant 768 : index
    %112 = vector.load %arg11[%c0_62, %c768_63] : memref<1x1024xf32, #tpu.memory_space<vmem>>, vector<1x256xf32>
    %113 = vector.broadcast %112 : vector<1x256xf32> to vector<128x256xf32>
    %114 = arith.addf %111, %113 : vector<128x256xf32>
    %cst_64 = arith.constant 0.000000e+00 : f32
    %115 = vector.broadcast %cst_64 : f32 to vector<128x256xf32>
    %116 = arith.maximumf %114, %115 : vector<128x256xf32>
    %cst_65 = arith.constant 0xFF800000 : f32
    %117 = vector.shape_cast %49 : vector<128x1xi1> to vector<128x1xi1>
    %118 = vector.broadcast %117 : vector<128x1xi1> to vector<128x256xi1>
    %119 = vector.broadcast %cst_65 : f32 to vector<128x256xf32>
    %120 = arith.select %118, %116, %119 : vector<128x256xi1>, vector<128x256xf32>
    %cst_66 = arith.constant dense<0xFF800000> : vector<256xf32>
    %121 = vector.multi_reduction <maximumf>, %120, %cst_66 [0] : vector<128x256xf32> to vector<256xf32>
    %122 = vector.shape_cast %121 : vector<256xf32> to vector<1x256xf32>
    %c0_67 = arith.constant 0 : index
    %c768_68 = arith.constant 768 : index
    %123 = vector.load %arg19[%c0_67, %c768_68] : memref<1x1024xf32, #tpu.memory_space<vmem>>, vector<1x256xf32>
    %124 = arith.maximumf %123, %122 : vector<1x256xf32>
    %c0_69 = arith.constant 0 : index
    %c768_70 = arith.constant 768 : index
    %125 = vector.load %arg19[%c0_69, %c768_70] : memref<1x1024xf32, #tpu.memory_space<vmem>>, vector<1x256xf32>
    tpu.vector_store %arg19[%c0_69, %c768_70], %124 {strides = array<i32>} : memref<1x1024xf32, #tpu.memory_space<vmem>>, vector<1x256xf32>,
    %c1_i32 = arith.constant 1 : i32
    %126 = arith.cmpi eq, %arg1, %c1_i32 : i32
    %127 = arith.extui %126 : i1 to i32
    %c0_i32_71 = arith.constant 0 : i32
    %128 = arith.cmpi ne, %127, %c0_i32_71 : i32
    scf.if %128 {
      %c0_72 = arith.constant 0 : index
      %c0_73 = arith.constant 0 : index
      %129 = vector.load %arg19[%c0_72, %c0_73] : memref<1x1024xf32, #tpu.memory_space<vmem>>, vector<1x1024xf32>
      %130 = arith.truncf %129 : vector<1x1024xf32> to vector<1x1024xbf16>
      %c0_74 = arith.constant 0 : index
      %c0_75 = arith.constant 0 : index
      %131 = vector.load %arg12[%c0_74, %c0_75] : memref<1024x512xbf16, #tpu.memory_space<vmem>>, vector<1024x512xbf16>
      %cst_76 = arith.constant dense<0.000000e+00> : vector<1x512xf32>
      %132 = tpu.matmul %130, %131, %cst_76 {dimension_numbers = #tpu.dot_dimension_numbers<[1], [0], [0], [1], [0, 0, 1, 1], [], []>} : vector<1x1024xbf16>, vector<1024x512xbf16>, vector<1x512xf32> -> vector<1x512xf32>
      %c0_77 = arith.constant 0 : index
      %c0_78 = arith.constant 0 : index
      %133 = vector.load %arg13[%c0_77, %c0_78] : memref<1x512xf32, #tpu.memory_space<vmem>>, vector<1x512xf32>
      %134 = arith.addf %132, %133 : vector<1x512xf32>
      %cst_79 = arith.constant 0.000000e+00 : f32
      %135 = vector.broadcast %cst_79 : f32 to vector<1x512xf32>
      %136 = arith.maximumf %134, %135 : vector<1x512xf32>
      %137 = arith.truncf %136 : vector<1x512xf32> to vector<1x512xbf16>
      %c0_80 = arith.constant 0 : index
      %c0_81 = arith.constant 0 : index
      %138 = vector.load %arg14[%c0_80, %c0_81] : memref<512x256xbf16, #tpu.memory_space<vmem>>, vector<512x256xbf16>
      %cst_82 = arith.constant dense<0.000000e+00> : vector<1x256xf32>
      %139 = tpu.matmul %137, %138, %cst_82 {dimension_numbers = #tpu.dot_dimension_numbers<[1], [0], [0], [1], [0, 0, 1, 1], [], []>} : vector<1x512xbf16>, vector<512x256xbf16>, vector<1x256xf32> -> vector<1x256xf32>
      %c0_83 = arith.constant 0 : index
      %c0_84 = arith.constant 0 : index
      %140 = vector.load %arg15[%c0_83, %c0_84] : memref<1x256xf32, #tpu.memory_space<vmem>>, vector<1x256xf32>
      %141 = arith.addf %139, %140 : vector<1x256xf32>
      %cst_85 = arith.constant 0.000000e+00 : f32
      %142 = vector.broadcast %cst_85 : f32 to vector<1x256xf32>
      %143 = arith.maximumf %141, %142 : vector<1x256xf32>
      %c0_86 = arith.constant 0 : index
      %c0_87 = arith.constant 0 : index
      %144 = vector.load %arg16[%c0_86, %c0_87] : memref<256x9xf32, #tpu.memory_space<vmem>>, vector<256x9xf32>
      %cst_88 = arith.constant dense<0.000000e+00> : vector<1x9xf32>
      %145 = tpu.matmul %143, %144, %cst_88 {dimension_numbers = #tpu.dot_dimension_numbers<[1], [0], [0], [1], [0, 0, 1, 1], [], []>} : vector<1x256xf32>, vector<256x9xf32>, vector<1x9xf32> -> vector<1x9xf32>
      %c0_89 = arith.constant 0 : index
      %c0_90 = arith.constant 0 : index
      %146 = vector.load %arg17[%c0_89, %c0_90] : memref<1x9xf32, #tpu.memory_space<vmem>>, vector<1x9xf32>
      %147 = arith.addf %145, %146 : vector<1x9xf32>
      %c0_91 = arith.constant 0 : index
      %c0_92 = arith.constant 0 : index
      %c0_93 = arith.constant 0 : index
      %148 = vector.load %arg18[%c0_91, %c0_92, %c0_93] : memref<1x1x9xf32, #tpu.memory_space<vmem>>, vector<1x1x9xf32>
      %149 = vector.shape_cast %148 : vector<1x1x9xf32> to vector<1x9xf32>
      %150 = vector.shape_cast %147 : vector<1x9xf32> to vector<1x1x9xf32>
      tpu.vector_store %arg18[%c0_91, %c0_92, %c0_93], %150 {strides = array<i32>} : memref<1x1x9xf32, #tpu.memory_space<vmem>>, vector<1x1x9xf32>,
    } else {
    }
    return
  }
  func.func @transform_0(%arg0: i32, %arg1: i32) -> (i32, i32, i32) {
    %c0_i32 = arith.constant 0 : i32
    %c0_i32_0 = arith.constant 0 : i32
    return %arg0, %arg1, %c0_i32 : i32, i32, i32
  }
  func.func @transform_1(%arg0: i32, %arg1: i32) -> (i32, i32, i32) {
    %c0_i32 = arith.constant 0 : i32
    %c0_i32_0 = arith.constant 0 : i32
    %c0_i32_1 = arith.constant 0 : i32
    %c0_i32_2 = arith.constant 0 : i32
    return %c0_i32, %c0_i32_0, %c0_i32_1 : i32, i32, i32
  }
  func.func @transform_2(%arg0: i32, %arg1: i32) -> (i32, i32) {
    %c0_i32 = arith.constant 0 : i32
    %c0_i32_0 = arith.constant 0 : i32
    %c0_i32_1 = arith.constant 0 : i32
    return %c0_i32, %c0_i32_0 : i32, i32
  }
  func.func @transform_3(%arg0: i32, %arg1: i32) -> (i32, i32) {
    %c0_i32 = arith.constant 0 : i32
    %c0_i32_0 = arith.constant 0 : i32
    %c0_i32_1 = arith.constant 0 : i32
    return %c0_i32, %c0_i32_0 : i32, i32
  }
  func.func @transform_4(%arg0: i32, %arg1: i32) -> (i32, i32) {
    %c0_i32 = arith.constant 0 : i32
    %c0_i32_0 = arith.constant 0 : i32
    %c0_i32_1 = arith.constant 0 : i32
    return %c0_i32, %c0_i32_0 : i32, i32
  }
  func.func @transform_5(%arg0: i32, %arg1: i32) -> (i32, i32) {
    %c0_i32 = arith.constant 0 : i32
    %c0_i32_0 = arith.constant 0 : i32
    %c0_i32_1 = arith.constant 0 : i32
    return %c0_i32, %c0_i32_0 : i32, i32
  }
  func.func @transform_6(%arg0: i32, %arg1: i32) -> (i32, i32) {
    %c0_i32 = arith.constant 0 : i32
    %c0_i32_0 = arith.constant 0 : i32
    %c0_i32_1 = arith.constant 0 : i32
    return %c0_i32, %c0_i32_0 : i32, i32
  }
  func.func @transform_7(%arg0: i32, %arg1: i32) -> (i32, i32) {
    %c0_i32 = arith.constant 0 : i32
    %c0_i32_0 = arith.constant 0 : i32
    %c0_i32_1 = arith.constant 0 : i32
    return %c0_i32, %c0_i32_0 : i32, i32
  }
  func.func @transform_8(%arg0: i32, %arg1: i32) -> (i32, i32) {
    %c0_i32 = arith.constant 0 : i32
    %c0_i32_0 = arith.constant 0 : i32
    %c0_i32_1 = arith.constant 0 : i32
    return %c0_i32, %c0_i32_0 : i32, i32
  }
  func.func @transform_9(%arg0: i32, %arg1: i32) -> (i32, i32) {
    %c0_i32 = arith.constant 0 : i32
    %c0_i32_0 = arith.constant 0 : i32
    %c0_i32_1 = arith.constant 0 : i32
    return %c0_i32, %c0_i32_0 : i32, i32
  }
  func.func @transform_10(%arg0: i32, %arg1: i32) -> (i32, i32) {
    %c0_i32 = arith.constant 0 : i32
    %c0_i32_0 = arith.constant 0 : i32
    %c0_i32_1 = arith.constant 0 : i32
    return %c0_i32, %c0_i32_0 : i32, i32
  }
  func.func @transform_11(%arg0: i32, %arg1: i32) -> (i32, i32) {
    %c0_i32 = arith.constant 0 : i32
    %c0_i32_0 = arith.constant 0 : i32
    %c0_i32_1 = arith.constant 0 : i32
    return %c0_i32, %c0_i32_0 : i32, i32
  }
  func.func @transform_12(%arg0: i32, %arg1: i32) -> (i32, i32) {
    %c0_i32 = arith.constant 0 : i32
    %c0_i32_0 = arith.constant 0 : i32
    %c0_i32_1 = arith.constant 0 : i32
    return %c0_i32, %c0_i32_0 : i32, i32
  }
  func.func @transform_13(%arg0: i32, %arg1: i32) -> (i32, i32) {
    %c0_i32 = arith.constant 0 : i32
    %c0_i32_0 = arith.constant 0 : i32
    %c0_i32_1 = arith.constant 0 : i32
    return %c0_i32, %c0_i32_0 : i32, i32
  }
  func.func @transform_14(%arg0: i32, %arg1: i32) -> (i32, i32) {
    %c0_i32 = arith.constant 0 : i32
    %c0_i32_0 = arith.constant 0 : i32
    %c0_i32_1 = arith.constant 0 : i32
    return %c0_i32, %c0_i32_0 : i32, i32
  }
  func.func @transform_15(%arg0: i32, %arg1: i32) -> (i32, i32) {
    %c0_i32 = arith.constant 0 : i32
    %c0_i32_0 = arith.constant 0 : i32
    %c0_i32_1 = arith.constant 0 : i32
    return %c0_i32, %c0_i32_0 : i32, i32
  }
  func.func @transform_16(%arg0: i32, %arg1: i32) -> (i32, i32, i32) {
    %c0_i32 = arith.constant 0 : i32
    %c0_i32_0 = arith.constant 0 : i32
    %c0_i32_1 = arith.constant 0 : i32
    return %arg0, %c0_i32, %c0_i32_0 : i32, i32, i32
  }
}

module attributes {stable_mosaic.version = 11 : i64} {
  func.func @_fused_branch_kernel(%arg0: i32, %arg1: i32, %arg2: memref<1x128x3xf32, #tpu.memory_space<vmem>>, %arg3: memref<1x3x64xf32, #tpu.memory_space<vmem>>, %arg4: memref<1x64xf32, #tpu.memory_space<vmem>>, %arg5: memref<1x64xf32, #tpu.memory_space<vmem>>, %arg6: memref<64x128xbf16, #tpu.memory_space<vmem>>, %arg7: memref<1x128xf32, #tpu.memory_space<vmem>>, %arg8: memref<1x128xf32, #tpu.memory_space<vmem>>, %arg9: memref<128x1024xbf16, #tpu.memory_space<vmem>>, %arg10: memref<1x1024xf32, #tpu.memory_space<vmem>>, %arg11: memref<1x1024xf32, #tpu.memory_space<vmem>>, %arg12: memref<1024x512xbf16, #tpu.memory_space<vmem>>, %arg13: memref<1x512xf32, #tpu.memory_space<vmem>>, %arg14: memref<512x256xbf16, #tpu.memory_space<vmem>>, %arg15: memref<1x256xf32, #tpu.memory_space<vmem>>, %arg16: memref<256x1xf32, #tpu.memory_space<vmem>>, %arg17: memref<1x1xf32, #tpu.memory_space<vmem>>, %arg18: memref<1x1x1xf32, #tpu.memory_space<vmem>>, %arg19: memref<1x1024xf32, #tpu.memory_space<vmem>>) attributes {dimension_semantics = [#tpu.dimension_semantics<parallel>, #tpu.dimension_semantics<arbitrary>], iteration_bounds = array<i64: 2, 2>, scalar_prefetch = 0 : i64, scratch_operands = 1 : i64, tpu.core_type = #tpu.core_type<tc>, window_params = [{transform_indices = @transform_0, window_bounds = array<i64: 1, 128, 3>}, {transform_indices = @transform_1, window_bounds = array<i64: 1, 3, 64>}, {pipeline_mode = #tpu.pipeline_mode<synchronous>, transform_indices = @transform_2, window_bounds = array<i64: 1, 64>}, {pipeline_mode = #tpu.pipeline_mode<synchronous>, transform_indices = @transform_3, window_bounds = array<i64: 1, 64>}, {pipeline_mode = #tpu.pipeline_mode<synchronous>, transform_indices = @transform_4, window_bounds = array<i64: 64, 128>}, {pipeline_mode = #tpu.pipeline_mode<synchronous>, transform_indices = @transform_5, window_bounds = array<i64: 1, 128>}, {pipeline_mode = #tpu.pipeline_mode<synchronous>, transform_indices = @transform_6, window_bounds = array<i64: 1, 128>}, {pipeline_mode = #tpu.pipeline_mode<synchronous>, transform_indices = @transform_7, window_bounds = array<i64: 128, 1024>}, {pipeline_mode = #tpu.pipeline_mode<synchronous>, transform_indices = @transform_8, window_bounds = array<i64: 1, 1024>}, {pipeline_mode = #tpu.pipeline_mode<synchronous>, transform_indices = @transform_9, window_bounds = array<i64: 1, 1024>}, {pipeline_mode = #tpu.pipeline_mode<synchronous>, transform_indices = @transform_10, window_bounds = array<i64: 1024, 512>}, {pipeline_mode = #tpu.pipeline_mode<synchronous>, transform_indices = @transform_11, window_bounds = array<i64: 1, 512>}, {pipeline_mode = #tpu.pipeline_mode<synchronous>, transform_indices = @transform_12, window_bounds = array<i64: 512, 256>}, {pipeline_mode = #tpu.pipeline_mode<synchronous>, transform_indices = @transform_13, window_bounds = array<i64: 1, 256>}, {pipeline_mode = #tpu.pipeline_mode<synchronous>, transform_indices = @transform_14, window_bounds = array<i64: 256, 1>}, {pipeline_mode = #tpu.pipeline_mode<synchronous>, transform_indices = @transform_15, window_bounds = array<i64: 1, 1>}, {transform_indices = @transform_16, window_bounds = array<i64: 1, 1, 1>}]} {
    %c0_i32 = arith.constant 0 : i32
    %0 = arith.cmpi eq, %arg1, %c0_i32 : i32
    %1 = arith.extui %0 : i1 to i32
    %c0_i32_0 = arith.constant 0 : i32
    %2 = arith.cmpi ne, %1, %c0_i32_0 : i32
    scf.if %2 {
      %cst_68 = arith.constant 0xFF800000 : f32
      %121 = vector.broadcast %cst_68 : f32 to vector<1x1024xf32>
      %c0_69 = arith.constant 0 : index
      %c0_70 = arith.constant 0 : index
      %122 = vector.load %arg19[%c0_69, %c0_70] : memref<1x1024xf32, #tpu.memory_space<vmem>>, vector<1x1024xf32>
      tpu.vector_store %arg19[%c0_69, %c0_70], %121 {strides = array<i32>} : memref<1x1024xf32, #tpu.memory_space<vmem>>, vector<1x1024xf32>,
    } else {
    }
    %c0 = arith.constant 0 : index
    %c0_1 = arith.constant 0 : index
    %c0_2 = arith.constant 0 : index
    %3 = vector.load %arg2[%c0, %c0_1, %c0_2] : memref<1x128x3xf32, #tpu.memory_space<vmem>>, vector<1x128x3xf32>
    %4 = vector.shape_cast %3 : vector<1x128x3xf32> to vector<128x3xf32>
    %c0_3 = arith.constant 0 : index
    %c0_4 = arith.constant 0 : index
    %c0_5 = arith.constant 0 : index
    %5 = vector.load %arg3[%c0_3, %c0_4, %c0_5] : memref<1x3x64xf32, #tpu.memory_space<vmem>>, vector<1x3x64xf32>
    %6 = vector.shape_cast %5 : vector<1x3x64xf32> to vector<3x64xf32>
    %7 = vector.extract_strided_slice %4 {offsets = [0, 0], sizes = [128, 1], strides = [1, 1]} : vector<128x3xf32> to vector<128x1xf32>
    %8 = vector.extract_strided_slice %6 {offsets = [0, 0], sizes = [1, 64], strides = [1, 1]} : vector<3x64xf32> to vector<1x64xf32>
    %9 = vector.broadcast %7 : vector<128x1xf32> to vector<128x64xf32>
    %10 = vector.broadcast %8 : vector<1x64xf32> to vector<128x64xf32>
    %11 = arith.mulf %9, %10 : vector<128x64xf32>
    %12 = vector.extract_strided_slice %4 {offsets = [0, 1], sizes = [128, 1], strides = [1, 1]} : vector<128x3xf32> to vector<128x1xf32>
    %13 = vector.extract_strided_slice %6 {offsets = [1, 0], sizes = [1, 64], strides = [1, 1]} : vector<3x64xf32> to vector<1x64xf32>
    %14 = vector.broadcast %12 : vector<128x1xf32> to vector<128x64xf32>
    %15 = vector.broadcast %13 : vector<1x64xf32> to vector<128x64xf32>
    %16 = arith.mulf %14, %15 : vector<128x64xf32>
    %17 = arith.addf %11, %16 : vector<128x64xf32>
    %18 = vector.extract_strided_slice %4 {offsets = [0, 2], sizes = [128, 1], strides = [1, 1]} : vector<128x3xf32> to vector<128x1xf32>
    %19 = vector.extract_strided_slice %6 {offsets = [2, 0], sizes = [1, 64], strides = [1, 1]} : vector<3x64xf32> to vector<1x64xf32>
    %20 = vector.broadcast %18 : vector<128x1xf32> to vector<128x64xf32>
    %21 = vector.broadcast %19 : vector<1x64xf32> to vector<128x64xf32>
    %22 = arith.mulf %20, %21 : vector<128x64xf32>
    %23 = arith.addf %17, %22 : vector<128x64xf32>
    %c0_6 = arith.constant 0 : index
    %c0_7 = arith.constant 0 : index
    %24 = vector.load %arg4[%c0_6, %c0_7] : memref<1x64xf32, #tpu.memory_space<vmem>>, vector<1x64xf32>
    %25 = vector.broadcast %24 : vector<1x64xf32> to vector<128x64xf32>
    %26 = arith.mulf %23, %25 : vector<128x64xf32>
    %c0_8 = arith.constant 0 : index
    %c0_9 = arith.constant 0 : index
    %27 = vector.load %arg5[%c0_8, %c0_9] : memref<1x64xf32, #tpu.memory_space<vmem>>, vector<1x64xf32>
    %28 = vector.broadcast %27 : vector<1x64xf32> to vector<128x64xf32>
    %29 = arith.addf %26, %28 : vector<128x64xf32>
    %cst = arith.constant 0.000000e+00 : f32
    %30 = vector.broadcast %cst : f32 to vector<128x64xf32>
    %31 = arith.maximumf %29, %30 : vector<128x64xf32>
    %32 = arith.truncf %31 : vector<128x64xf32> to vector<128x64xbf16>
    %c0_10 = arith.constant 0 : index
    %c0_11 = arith.constant 0 : index
    %33 = vector.load %arg6[%c0_10, %c0_11] : memref<64x128xbf16, #tpu.memory_space<vmem>>, vector<64x128xbf16>
    %cst_12 = arith.constant dense<0.000000e+00> : vector<128x128xf32>
    %34 = tpu.matmul %32, %33, %cst_12 {dimension_numbers = #tpu.dot_dimension_numbers<[1], [0], [0], [1], [0, 0, 1, 1], [], []>} : vector<128x64xbf16>, vector<64x128xbf16>, vector<128x128xf32> -> vector<128x128xf32>
    %c0_13 = arith.constant 0 : index
    %c0_14 = arith.constant 0 : index
    %35 = vector.load %arg7[%c0_13, %c0_14] : memref<1x128xf32, #tpu.memory_space<vmem>>, vector<1x128xf32>
    %36 = vector.broadcast %35 : vector<1x128xf32> to vector<128x128xf32>
    %37 = arith.mulf %34, %36 : vector<128x128xf32>
    %c0_15 = arith.constant 0 : index
    %c0_16 = arith.constant 0 : index
    %38 = vector.load %arg8[%c0_15, %c0_16] : memref<1x128xf32, #tpu.memory_space<vmem>>, vector<1x128xf32>
    %39 = vector.broadcast %38 : vector<1x128xf32> to vector<128x128xf32>
    %40 = arith.addf %37, %39 : vector<128x128xf32>
    %cst_17 = arith.constant 0.000000e+00 : f32
    %41 = vector.broadcast %cst_17 : f32 to vector<128x128xf32>
    %42 = arith.maximumf %40, %41 : vector<128x128xf32>
    %43 = arith.truncf %42 : vector<128x128xf32> to vector<128x128xbf16>
    %c128_i32 = arith.constant 128 : i32
    %44 = arith.muli %arg1, %c128_i32 : i32
    %45 = tpu.iota {dimensions = array<i32: 0>} : vector<128x1xi32>
    %46 = vector.broadcast %44 : i32 to vector<128x1xi32>
    %47 = arith.addi %46, %45 : vector<128x1xi32>
    %c200_i32 = arith.constant 200 : i32
    %48 = vector.broadcast %c200_i32 : i32 to vector<128x1xi32>
    %49 = arith.cmpi slt, %47, %48 : vector<128x1xi32>
    %c0_18 = arith.constant 0 : index
    %c0_19 = arith.constant 0 : index
    %50 = vector.load %arg9[%c0_18, %c0_19] : memref<128x1024xbf16, #tpu.memory_space<vmem>>, vector<128x256xbf16>
    %cst_20 = arith.constant dense<0.000000e+00> : vector<128x256xf32>
    %51 = tpu.matmul %43, %50, %cst_20 {dimension_numbers = #tpu.dot_dimension_numbers<[1], [0], [0], [1], [0, 0, 1, 1], [], []>} : vector<128x128xbf16>, vector<128x256xbf16>, vector<128x256xf32> -> vector<128x256xf32>
    %c0_21 = arith.constant 0 : index
    %c0_22 = arith.constant 0 : index
    %52 = vector.load %arg10[%c0_21, %c0_22] : memref<1x1024xf32, #tpu.memory_space<vmem>>, vector<1x256xf32>
    %53 = vector.broadcast %52 : vector<1x256xf32> to vector<128x256xf32>
    %54 = arith.mulf %51, %53 : vector<128x256xf32>
    %c0_23 = arith.constant 0 : index
    %c0_24 = arith.constant 0 : index
    %55 = vector.load %arg11[%c0_23, %c0_24] : memref<1x1024xf32, #tpu.memory_space<vmem>>, vector<1x256xf32>
    %56 = vector.broadcast %55 : vector<1x256xf32> to vector<128x256xf32>
    %57 = arith.addf %54, %56 : vector<128x256xf32>
    %cst_25 = arith.constant 0xFF800000 : f32
    %58 = vector.shape_cast %49 : vector<128x1xi1> to vector<128x1xi1>
    %59 = vector.broadcast %58 : vector<128x1xi1> to vector<128x256xi1>
    %60 = vector.broadcast %cst_25 : f32 to vector<128x256xf32>
    %61 = arith.select %59, %57, %60 : vector<128x256xi1>, vector<128x256xf32>
    %cst_26 = arith.constant dense<0xFF800000> : vector<256xf32>
    %62 = vector.multi_reduction <maximumf>, %61, %cst_26 [0] : vector<128x256xf32> to vector<256xf32>
    %63 = vector.shape_cast %62 : vector<256xf32> to vector<1x256xf32>
    %c0_27 = arith.constant 0 : index
    %c0_28 = arith.constant 0 : index
    %64 = vector.load %arg19[%c0_27, %c0_28] : memref<1x1024xf32, #tpu.memory_space<vmem>>, vector<1x256xf32>
    %65 = arith.maximumf %64, %63 : vector<1x256xf32>
    %c0_29 = arith.constant 0 : index
    %c0_30 = arith.constant 0 : index
    %66 = vector.load %arg19[%c0_29, %c0_30] : memref<1x1024xf32, #tpu.memory_space<vmem>>, vector<1x256xf32>
    tpu.vector_store %arg19[%c0_29, %c0_30], %65 {strides = array<i32>} : memref<1x1024xf32, #tpu.memory_space<vmem>>, vector<1x256xf32>,
    %c0_31 = arith.constant 0 : index
    %c256 = arith.constant 256 : index
    %67 = vector.load %arg9[%c0_31, %c256] : memref<128x1024xbf16, #tpu.memory_space<vmem>>, vector<128x256xbf16>
    %cst_32 = arith.constant dense<0.000000e+00> : vector<128x256xf32>
    %68 = tpu.matmul %43, %67, %cst_32 {dimension_numbers = #tpu.dot_dimension_numbers<[1], [0], [0], [1], [0, 0, 1, 1], [], []>} : vector<128x128xbf16>, vector<128x256xbf16>, vector<128x256xf32> -> vector<128x256xf32>
    %c0_33 = arith.constant 0 : index
    %c256_34 = arith.constant 256 : index
    %69 = vector.load %arg10[%c0_33, %c256_34] : memref<1x1024xf32, #tpu.memory_space<vmem>>, vector<1x256xf32>
    %70 = vector.broadcast %69 : vector<1x256xf32> to vector<128x256xf32>
    %71 = arith.mulf %68, %70 : vector<128x256xf32>
    %c0_35 = arith.constant 0 : index
    %c256_36 = arith.constant 256 : index
    %72 = vector.load %arg11[%c0_35, %c256_36] : memref<1x1024xf32, #tpu.memory_space<vmem>>, vector<1x256xf32>
    %73 = vector.broadcast %72 : vector<1x256xf32> to vector<128x256xf32>
    %74 = arith.addf %71, %73 : vector<128x256xf32>
    %cst_37 = arith.constant 0xFF800000 : f32
    %75 = vector.shape_cast %49 : vector<128x1xi1> to vector<128x1xi1>
    %76 = vector.broadcast %75 : vector<128x1xi1> to vector<128x256xi1>
    %77 = vector.broadcast %cst_37 : f32 to vector<128x256xf32>
    %78 = arith.select %76, %74, %77 : vector<128x256xi1>, vector<128x256xf32>
    %cst_38 = arith.constant dense<0xFF800000> : vector<256xf32>
    %79 = vector.multi_reduction <maximumf>, %78, %cst_38 [0] : vector<128x256xf32> to vector<256xf32>
    %80 = vector.shape_cast %79 : vector<256xf32> to vector<1x256xf32>
    %c0_39 = arith.constant 0 : index
    %c256_40 = arith.constant 256 : index
    %81 = vector.load %arg19[%c0_39, %c256_40] : memref<1x1024xf32, #tpu.memory_space<vmem>>, vector<1x256xf32>
    %82 = arith.maximumf %81, %80 : vector<1x256xf32>
    %c0_41 = arith.constant 0 : index
    %c256_42 = arith.constant 256 : index
    %83 = vector.load %arg19[%c0_41, %c256_42] : memref<1x1024xf32, #tpu.memory_space<vmem>>, vector<1x256xf32>
    tpu.vector_store %arg19[%c0_41, %c256_42], %82 {strides = array<i32>} : memref<1x1024xf32, #tpu.memory_space<vmem>>, vector<1x256xf32>,
    %c0_43 = arith.constant 0 : index
    %c512 = arith.constant 512 : index
    %84 = vector.load %arg9[%c0_43, %c512] : memref<128x1024xbf16, #tpu.memory_space<vmem>>, vector<128x256xbf16>
    %cst_44 = arith.constant dense<0.000000e+00> : vector<128x256xf32>
    %85 = tpu.matmul %43, %84, %cst_44 {dimension_numbers = #tpu.dot_dimension_numbers<[1], [0], [0], [1], [0, 0, 1, 1], [], []>} : vector<128x128xbf16>, vector<128x256xbf16>, vector<128x256xf32> -> vector<128x256xf32>
    %c0_45 = arith.constant 0 : index
    %c512_46 = arith.constant 512 : index
    %86 = vector.load %arg10[%c0_45, %c512_46] : memref<1x1024xf32, #tpu.memory_space<vmem>>, vector<1x256xf32>
    %87 = vector.broadcast %86 : vector<1x256xf32> to vector<128x256xf32>
    %88 = arith.mulf %85, %87 : vector<128x256xf32>
    %c0_47 = arith.constant 0 : index
    %c512_48 = arith.constant 512 : index
    %89 = vector.load %arg11[%c0_47, %c512_48] : memref<1x1024xf32, #tpu.memory_space<vmem>>, vector<1x256xf32>
    %90 = vector.broadcast %89 : vector<1x256xf32> to vector<128x256xf32>
    %91 = arith.addf %88, %90 : vector<128x256xf32>
    %cst_49 = arith.constant 0xFF800000 : f32
    %92 = vector.shape_cast %49 : vector<128x1xi1> to vector<128x1xi1>
    %93 = vector.broadcast %92 : vector<128x1xi1> to vector<128x256xi1>
    %94 = vector.broadcast %cst_49 : f32 to vector<128x256xf32>
    %95 = arith.select %93, %91, %94 : vector<128x256xi1>, vector<128x256xf32>
    %cst_50 = arith.constant dense<0xFF800000> : vector<256xf32>
    %96 = vector.multi_reduction <maximumf>, %95, %cst_50 [0] : vector<128x256xf32> to vector<256xf32>
    %97 = vector.shape_cast %96 : vector<256xf32> to vector<1x256xf32>
    %c0_51 = arith.constant 0 : index
    %c512_52 = arith.constant 512 : index
    %98 = vector.load %arg19[%c0_51, %c512_52] : memref<1x1024xf32, #tpu.memory_space<vmem>>, vector<1x256xf32>
    %99 = arith.maximumf %98, %97 : vector<1x256xf32>
    %c0_53 = arith.constant 0 : index
    %c512_54 = arith.constant 512 : index
    %100 = vector.load %arg19[%c0_53, %c512_54] : memref<1x1024xf32, #tpu.memory_space<vmem>>, vector<1x256xf32>
    tpu.vector_store %arg19[%c0_53, %c512_54], %99 {strides = array<i32>} : memref<1x1024xf32, #tpu.memory_space<vmem>>, vector<1x256xf32>,
    %c0_55 = arith.constant 0 : index
    %c768 = arith.constant 768 : index
    %101 = vector.load %arg9[%c0_55, %c768] : memref<128x1024xbf16, #tpu.memory_space<vmem>>, vector<128x256xbf16>
    %cst_56 = arith.constant dense<0.000000e+00> : vector<128x256xf32>
    %102 = tpu.matmul %43, %101, %cst_56 {dimension_numbers = #tpu.dot_dimension_numbers<[1], [0], [0], [1], [0, 0, 1, 1], [], []>} : vector<128x128xbf16>, vector<128x256xbf16>, vector<128x256xf32> -> vector<128x256xf32>
    %c0_57 = arith.constant 0 : index
    %c768_58 = arith.constant 768 : index
    %103 = vector.load %arg10[%c0_57, %c768_58] : memref<1x1024xf32, #tpu.memory_space<vmem>>, vector<1x256xf32>
    %104 = vector.broadcast %103 : vector<1x256xf32> to vector<128x256xf32>
    %105 = arith.mulf %102, %104 : vector<128x256xf32>
    %c0_59 = arith.constant 0 : index
    %c768_60 = arith.constant 768 : index
    %106 = vector.load %arg11[%c0_59, %c768_60] : memref<1x1024xf32, #tpu.memory_space<vmem>>, vector<1x256xf32>
    %107 = vector.broadcast %106 : vector<1x256xf32> to vector<128x256xf32>
    %108 = arith.addf %105, %107 : vector<128x256xf32>
    %cst_61 = arith.constant 0xFF800000 : f32
    %109 = vector.shape_cast %49 : vector<128x1xi1> to vector<128x1xi1>
    %110 = vector.broadcast %109 : vector<128x1xi1> to vector<128x256xi1>
    %111 = vector.broadcast %cst_61 : f32 to vector<128x256xf32>
    %112 = arith.select %110, %108, %111 : vector<128x256xi1>, vector<128x256xf32>
    %cst_62 = arith.constant dense<0xFF800000> : vector<256xf32>
    %113 = vector.multi_reduction <maximumf>, %112, %cst_62 [0] : vector<128x256xf32> to vector<256xf32>
    %114 = vector.shape_cast %113 : vector<256xf32> to vector<1x256xf32>
    %c0_63 = arith.constant 0 : index
    %c768_64 = arith.constant 768 : index
    %115 = vector.load %arg19[%c0_63, %c768_64] : memref<1x1024xf32, #tpu.memory_space<vmem>>, vector<1x256xf32>
    %116 = arith.maximumf %115, %114 : vector<1x256xf32>
    %c0_65 = arith.constant 0 : index
    %c768_66 = arith.constant 768 : index
    %117 = vector.load %arg19[%c0_65, %c768_66] : memref<1x1024xf32, #tpu.memory_space<vmem>>, vector<1x256xf32>
    tpu.vector_store %arg19[%c0_65, %c768_66], %116 {strides = array<i32>} : memref<1x1024xf32, #tpu.memory_space<vmem>>, vector<1x256xf32>,
    %c1_i32 = arith.constant 1 : i32
    %118 = arith.cmpi eq, %arg1, %c1_i32 : i32
    %119 = arith.extui %118 : i1 to i32
    %c0_i32_67 = arith.constant 0 : i32
    %120 = arith.cmpi ne, %119, %c0_i32_67 : i32
    scf.if %120 {
      %c0_68 = arith.constant 0 : index
      %c0_69 = arith.constant 0 : index
      %121 = vector.load %arg19[%c0_68, %c0_69] : memref<1x1024xf32, #tpu.memory_space<vmem>>, vector<1x1024xf32>
      %122 = arith.truncf %121 : vector<1x1024xf32> to vector<1x1024xbf16>
      %c0_70 = arith.constant 0 : index
      %c0_71 = arith.constant 0 : index
      %123 = vector.load %arg12[%c0_70, %c0_71] : memref<1024x512xbf16, #tpu.memory_space<vmem>>, vector<1024x512xbf16>
      %cst_72 = arith.constant dense<0.000000e+00> : vector<1x512xf32>
      %124 = tpu.matmul %122, %123, %cst_72 {dimension_numbers = #tpu.dot_dimension_numbers<[1], [0], [0], [1], [0, 0, 1, 1], [], []>} : vector<1x1024xbf16>, vector<1024x512xbf16>, vector<1x512xf32> -> vector<1x512xf32>
      %c0_73 = arith.constant 0 : index
      %c0_74 = arith.constant 0 : index
      %125 = vector.load %arg13[%c0_73, %c0_74] : memref<1x512xf32, #tpu.memory_space<vmem>>, vector<1x512xf32>
      %126 = arith.addf %124, %125 : vector<1x512xf32>
      %cst_75 = arith.constant 0.000000e+00 : f32
      %127 = vector.broadcast %cst_75 : f32 to vector<1x512xf32>
      %128 = arith.maximumf %126, %127 : vector<1x512xf32>
      %129 = arith.truncf %128 : vector<1x512xf32> to vector<1x512xbf16>
      %c0_76 = arith.constant 0 : index
      %c0_77 = arith.constant 0 : index
      %130 = vector.load %arg14[%c0_76, %c0_77] : memref<512x256xbf16, #tpu.memory_space<vmem>>, vector<512x256xbf16>
      %cst_78 = arith.constant dense<0.000000e+00> : vector<1x256xf32>
      %131 = tpu.matmul %129, %130, %cst_78 {dimension_numbers = #tpu.dot_dimension_numbers<[1], [0], [0], [1], [0, 0, 1, 1], [], []>} : vector<1x512xbf16>, vector<512x256xbf16>, vector<1x256xf32> -> vector<1x256xf32>
      %c0_79 = arith.constant 0 : index
      %c0_80 = arith.constant 0 : index
      %132 = vector.load %arg15[%c0_79, %c0_80] : memref<1x256xf32, #tpu.memory_space<vmem>>, vector<1x256xf32>
      %133 = arith.addf %131, %132 : vector<1x256xf32>
      %cst_81 = arith.constant 0.000000e+00 : f32
      %134 = vector.broadcast %cst_81 : f32 to vector<1x256xf32>
      %135 = arith.maximumf %133, %134 : vector<1x256xf32>
      %c0_82 = arith.constant 0 : index
      %c0_83 = arith.constant 0 : index
      %136 = vector.load %arg16[%c0_82, %c0_83] : memref<256x1xf32, #tpu.memory_space<vmem>>, vector<256x1xf32>
      %cst_84 = arith.constant dense<0.000000e+00> : vector<1x1xf32>
      %137 = tpu.matmul %135, %136, %cst_84 {dimension_numbers = #tpu.dot_dimension_numbers<[1], [0], [0], [1], [0, 0, 1, 1], [], []>} : vector<1x256xf32>, vector<256x1xf32>, vector<1x1xf32> -> vector<1x1xf32>
      %c0_85 = arith.constant 0 : index
      %c0_86 = arith.constant 0 : index
      %138 = vector.load %arg17[%c0_85, %c0_86] : memref<1x1xf32, #tpu.memory_space<vmem>>, vector<1x1xf32>
      %139 = arith.addf %137, %138 : vector<1x1xf32>
      %c0_87 = arith.constant 0 : index
      %c0_88 = arith.constant 0 : index
      %c0_89 = arith.constant 0 : index
      %140 = vector.load %arg18[%c0_87, %c0_88, %c0_89] : memref<1x1x1xf32, #tpu.memory_space<vmem>>, vector<1x1x1xf32>
      %141 = vector.shape_cast %140 : vector<1x1x1xf32> to vector<1x1xf32>
      %142 = vector.shape_cast %139 : vector<1x1xf32> to vector<1x1x1xf32>
      tpu.vector_store %arg18[%c0_87, %c0_88, %c0_89], %142 {strides = array<i32>} : memref<1x1x1xf32, #tpu.memory_space<vmem>>, vector<1x1x1xf32>,
    } else {
    }
    return
  }
  func.func @transform_0(%arg0: i32, %arg1: i32) -> (i32, i32, i32) {
    %c0_i32 = arith.constant 0 : i32
    %c0_i32_0 = arith.constant 0 : i32
    return %arg0, %arg1, %c0_i32 : i32, i32, i32
  }
  func.func @transform_1(%arg0: i32, %arg1: i32) -> (i32, i32, i32) {
    %c0_i32 = arith.constant 0 : i32
    %c0_i32_0 = arith.constant 0 : i32
    %c0_i32_1 = arith.constant 0 : i32
    return %arg0, %c0_i32, %c0_i32_0 : i32, i32, i32
  }
  func.func @transform_2(%arg0: i32, %arg1: i32) -> (i32, i32) {
    %c0_i32 = arith.constant 0 : i32
    %c0_i32_0 = arith.constant 0 : i32
    %c0_i32_1 = arith.constant 0 : i32
    return %c0_i32, %c0_i32_0 : i32, i32
  }
  func.func @transform_3(%arg0: i32, %arg1: i32) -> (i32, i32) {
    %c0_i32 = arith.constant 0 : i32
    %c0_i32_0 = arith.constant 0 : i32
    %c0_i32_1 = arith.constant 0 : i32
    return %c0_i32, %c0_i32_0 : i32, i32
  }
  func.func @transform_4(%arg0: i32, %arg1: i32) -> (i32, i32) {
    %c0_i32 = arith.constant 0 : i32
    %c0_i32_0 = arith.constant 0 : i32
    %c0_i32_1 = arith.constant 0 : i32
    return %c0_i32, %c0_i32_0 : i32, i32
  }
  func.func @transform_5(%arg0: i32, %arg1: i32) -> (i32, i32) {
    %c0_i32 = arith.constant 0 : i32
    %c0_i32_0 = arith.constant 0 : i32
    %c0_i32_1 = arith.constant 0 : i32
    return %c0_i32, %c0_i32_0 : i32, i32
  }
  func.func @transform_6(%arg0: i32, %arg1: i32) -> (i32, i32) {
    %c0_i32 = arith.constant 0 : i32
    %c0_i32_0 = arith.constant 0 : i32
    %c0_i32_1 = arith.constant 0 : i32
    return %c0_i32, %c0_i32_0 : i32, i32
  }
  func.func @transform_7(%arg0: i32, %arg1: i32) -> (i32, i32) {
    %c0_i32 = arith.constant 0 : i32
    %c0_i32_0 = arith.constant 0 : i32
    %c0_i32_1 = arith.constant 0 : i32
    return %c0_i32, %c0_i32_0 : i32, i32
  }
  func.func @transform_8(%arg0: i32, %arg1: i32) -> (i32, i32) {
    %c0_i32 = arith.constant 0 : i32
    %c0_i32_0 = arith.constant 0 : i32
    %c0_i32_1 = arith.constant 0 : i32
    return %c0_i32, %c0_i32_0 : i32, i32
  }
  func.func @transform_9(%arg0: i32, %arg1: i32) -> (i32, i32) {
    %c0_i32 = arith.constant 0 : i32
    %c0_i32_0 = arith.constant 0 : i32
    %c0_i32_1 = arith.constant 0 : i32
    return %c0_i32, %c0_i32_0 : i32, i32
  }
  func.func @transform_10(%arg0: i32, %arg1: i32) -> (i32, i32) {
    %c0_i32 = arith.constant 0 : i32
    %c0_i32_0 = arith.constant 0 : i32
    %c0_i32_1 = arith.constant 0 : i32
    return %c0_i32, %c0_i32_0 : i32, i32
  }
  func.func @transform_11(%arg0: i32, %arg1: i32) -> (i32, i32) {
    %c0_i32 = arith.constant 0 : i32
    %c0_i32_0 = arith.constant 0 : i32
    %c0_i32_1 = arith.constant 0 : i32
    return %c0_i32, %c0_i32_0 : i32, i32
  }
  func.func @transform_12(%arg0: i32, %arg1: i32) -> (i32, i32) {
    %c0_i32 = arith.constant 0 : i32
    %c0_i32_0 = arith.constant 0 : i32
    %c0_i32_1 = arith.constant 0 : i32
    return %c0_i32, %c0_i32_0 : i32, i32
  }
  func.func @transform_13(%arg0: i32, %arg1: i32) -> (i32, i32) {
    %c0_i32 = arith.constant 0 : i32
    %c0_i32_0 = arith.constant 0 : i32
    %c0_i32_1 = arith.constant 0 : i32
    return %c0_i32, %c0_i32_0 : i32, i32
  }
  func.func @transform_14(%arg0: i32, %arg1: i32) -> (i32, i32) {
    %c0_i32 = arith.constant 0 : i32
    %c0_i32_0 = arith.constant 0 : i32
    %c0_i32_1 = arith.constant 0 : i32
    return %c0_i32, %c0_i32_0 : i32, i32
  }
  func.func @transform_15(%arg0: i32, %arg1: i32) -> (i32, i32) {
    %c0_i32 = arith.constant 0 : i32
    %c0_i32_0 = arith.constant 0 : i32
    %c0_i32_1 = arith.constant 0 : i32
    return %c0_i32, %c0_i32_0 : i32, i32
  }
  func.func @transform_16(%arg0: i32, %arg1: i32) -> (i32, i32, i32) {
    %c0_i32 = arith.constant 0 : i32
    %c0_i32_0 = arith.constant 0 : i32
    %c0_i32_1 = arith.constant 0 : i32
    return %arg0, %c0_i32, %c0_i32_0 : i32, i32, i32
  }
}

</mosaic_0001>

<bundles_post_ra>
// kernel: pointnet_reg_forward.2
= control target key start
LH: loop header
LB: loop body
LE: loop exit
PB: predicated region body
PF: predicated region fallthrough
CT: control target
= control target key end

     0   :  { %s6812_s21 = smov 0   ;;  %s6814_s22 = smov 0   ;;  %s9703_s0 = inlined_call_operand.vmem [shape: f32[2,200,3], index: 0, kind: input, shape index: {}]   ;;  %s9704_s1 = inlined_call_operand.vmem [shape: f32[1,3,64], index: 1, kind: input, shape index: {}]   ;;  %s9705_s2 = inlined_call_operand.vmem [shape: f32[1,64], index: 2, kind: input, shape index: {}]   ;;  %s9706_s3 = inlined_call_operand.vmem [shape: f32[1,64], index: 3, kind: input, shape index: {}]   ;;  %s9707_s4 = inlined_call_operand.vmem [shape: bf16[64,128], index: 4, kind: input, shape index: {}]   ;;  %s9708_s5 = inlined_call_operand.vmem [shape: f32[1,128], index: 5, kind: input, shape index: {}]   ;;  %s9709_s6 = inlined_call_operand.vmem [shape: f32[1,128], index: 6, kind: input, shape index: {}]   ;;  %s9710_s7 = inlined_call_operand.vmem [shape: bf16[128,1024], index: 7, kind: input, shape index: {}]   ;;  %s9711_s8 = inlined_call_operand.vmem [shape: f32[1,1024], index: 8, kind: input, shape index: {}]   ;;  %s9712_s9 = inlined_call_operand.vmem [shape: f32[1,1024], index: 9, kind: input, shape index: {}]   ;;  %s9713_s10 = inlined_call_operand.vmem [shape: bf16[1024,512], index: 10, kind: input, shape index: {}]   ;;  %s9714_s11 = inlined_call_operand.vmem [shape: f32[1,512], index: 11, kind: input, shape index: {}]   ;;  %s9715_s12 = inlined_call_operand.vmem [shape: bf16[512,256], index: 12, kind: input, shape index: {}]   ;;  %s9716_s13 = inlined_call_operand.vmem [shape: f32[1,256], index: 13, kind: input, shape index: {}]   ;;  %s9717_s14 = inlined_call_operand.vmem [shape: f32[256,9], index: 14, kind: input, shape index: {}]   ;;  %s9718_s15 = inlined_call_operand.vmem [shape: f32[1,9], index: 15, kind: input, shape index: {}]   ;;  %s9719_s16 = inlined_call_operand.vmem [shape: f32[2,1,9], index: 16, kind: output, shape index: {}]  }
   0x1   :  { %9740 = sst [smem:[#allocation15_spill]] %s9703_s0  ;;  %s6816_s23 = smov 0  }
   0x2   :  { %s6818_s24 = smov 0   ;;  %s6820_s25 = smov 0  }
   0x3 LB: > { %9741 = sst [smem:[#allocation3_spill]] %s6716_s24  ;;  %s35_s26 = sadd.s32 1, %s6712_s23  ;;  %s6720_s25 = sphi %s6820_s25, %s26_s25   ;;  %s6716_s24 = sphi %s6818_s24, %s9776_s24   ;;  %s6712_s23 = sphi %s6816_s23, %s9778_s23   ;;  %s6708_s22 = sphi %s6814_s22, %s9774_s22   ;;  %s6704_s21 = sphi %s6812_s21, %s9777_s21  }
   0x4   : > { %s38_s27 = sadd.s32 1, %s6716_s24  ;;  %p36_p0 = scmp.ge.s32.totalorder %s35_s26, 2 }
   0x5   : > { %p5567_p1 = scmp.ge.s32.totalorder %s6720_s25, 1  ;;  %p489_p2 = scmp.lt.s32.totalorder %s6720_s25, 5 }
   0x6   : > { %s9780_s26 = smov (%p36_p0, %s35_s26), 0  ;;  %s9782_s27 = smov (!%p36_p0, %s38_s27), %s6716_s24 }
   0x7   : > { %9742 = sst [smem:[#allocation4_spill]] %s9780_s26  ;;  %p490_p3 = pnand %p5567_p1, %p489_p2 }
   0x8   : > { %p40_p4 = scmp.ge.s32.totalorder %s9782_s27, 2 }
   0x9   : > { %493 = sbr.rel (%p490_p3) target bundleno = 1845 (0x735), region = 84 }
   0xa   : > { %s9784_s27 = smov (%p40_p4, %s9782_s27), 0 }
   0xb   : > { %9743 = sst [smem:[#allocation5_spill]] %s9784_s27 }
  0x10   : > { %s5568_s28 = sshll.u32 %s6704_s21, 4  ;;  %p550_p5 = scmp.lt.s32.totalorder %s6708_s22, 1 }
  0x11   : > { %p552_p6 = scmp.lt.s32.totalorder %s5568_s28, 24  ;;  %s9744_s27 = sld [smem:[#allocation15_spill]] }
  0x12   : > { %s9786_s22 = smov (!%p550_p5, %s6708_s22), 1  ;;  %p5570_p7 = scmp.ne.s32.totalorder %s6704_s21, 0 }
  0x13   : > { %s9788_s28 = smov (!%p552_p6, %s5568_s28), 24  ;;  %s6126_s29 = smul.u32 25, %s9786_s22  ;;  %v6722_v0 = vmov (!%p5570_p7), -inf  }
  0x14   : > { %s565_s17 = scalar_lea.vmem %s9719_s16, %s9786_s22  ;;  %570 = sbr.rel (%p5570_p7) target bundleno = 27 (0x1b), region = 88  ;;  %571 = vst [vmem:[#allocation2] sm:$0xff] (!%p5570_p7), %v6722_v0 }
  0x15   : > { %s555_s18 = sadd.s32 %s6126_s29, %s9788_s28 }
  0x16   : > { %s5569_s19 = sshll.u32 %s555_s18, 3 }
  0x17   : > { %s6855_s24 = scalar_lea.vmem %s9744_s27, %s5569_s19 }
  0x1b PF: > { %v572_v1 = vld [vmem:[%s6855_s24] sm:$0xff]  ;;  %v6723_v2 = vmov 1   ;;  %v6724_v3 = vmov 0   ;;  %v573_v4 = vld [vmem:[%s6855_s24 + $0x8] sm:$0xff]  ;;  %v574_v5 = vld [vmem:[%s6855_s24 + $0x10] sm:$0xff]  ;;  %v6725_v8 = vmov 2   ;;  %v9721_v26 = vlaneseq }
  0x1c   : > { %6173 = vset.pattern.permute.xlu1 %v6723_v2  ;;  %6172 = vset.pattern.permute.xlu0 %v6724_v3  ;;  %v575_v6 = vld [vmem:[%s6855_s24 + $0x18] sm:$0xff]  ;;  %v577_v7 = vld [vmem:[%s6855_s24 + $0x28] sm:$0xff]  ;;  %v578_v9 = vld [vmem:[%s6855_s24 + $0x30] sm:$0xff]  ;;  %vm991_vm0 = vcmask 523264   ;;  %s5587_s18 = sshll.u32 %s6704_s21, 7  ;;  %p5652_p8 = scmp.ne.s32.totalorder %s6704_s21, 1 }
  0x1d   : > { %690 = vperm.xlu1 %6173, %v572_v1   ;;  %591 = vperm.xlu0 %6172, %v572_v1   ;;  %v6197_v10 = vld [vmem:[%s9707_s4] sm:$0xff]   ;;  %v6198_v11 = vld [vmem:[%s9707_s4 + $0x8] sm:$0xff]   ;;  %v6199_v13 = vld [vmem:[%s9707_s4 + $0x10] sm:$0xff]   ;;  %v6913_v29 = vshrl.u32 %v9721_v26, 7 }
  0x1e   : > { %1362 = vmatprep.mubr.bf16.mxu1 %v6724_v3  ;;  %6022 = vmatprep.subr.bf16.mxu0 %v6197_v10  ;;  %v576_v12 = vld [vmem:[%s6855_s24 + $0x20] sm:$0xff]  ;;  %v579_v14 = vld [vmem:[%s6855_s24 + $0x38] sm:$0xff]  ;;  %v581_v16 = vld [vmem:[%s6855_s24 + $0x48] sm:$0xff] }
  0x1f   : > { %6023 = vmatpush3.bf16.msra.mxu0 %v6197_v10  ;;  %v6200_v15 = vld [vmem:[%s9707_s4 + $0x18] sm:$0xff]   ;;  %v582_v17 = vld [vmem:[%s6855_s24 + $0x50] sm:$0xff]  ;;  %v584_v18 = vld [vmem:[%s6855_s24 + $0x60] sm:$0xff]  ;;  %9745 = vst [vmem:[#allocation6_spill] sm:$0xff] %v6913_v29  ;;  %v6916_v31 = vsub.s32 1, %v6913_v29  ;;  %v6919_v32 = vsub.s32 0, %v6913_v29 }
  0x20   : > { %6024 = vmatprep.subr.bf16.mxu0 %v6198_v11  ;;  %v585_v19 = vld [vmem:[%s6855_s24 + $0x68] sm:$0xff]  ;;  %v580_v20 = vld [vmem:[%s6855_s24 + $0x40] sm:$0xff]  ;;  %v586_v21 = vld [vmem:[%s6855_s24 + $0x70] sm:$0xff]  ;;  %v6925_v35 = vsub.s32 2, %v6913_v29 }
  0x21   : > { %694 = vperm.xlu1 %6173, %v573_v4   ;;  %596 = vperm.xlu0 %6172, %v573_v4   ;;  %v583_v22 = vld [vmem:[%s6855_s24 + $0x58] sm:$0xff]  ;;  %9746 = vst [vmem:[#allocation7_spill] sm:$0xff] %v6916_v31  ;;  %9747 = vst [vmem:[#allocation8_spill] sm:$0xff] %v6919_v32  ;;  %v588_v34 = vld [vmem:[%s9704_s1] sm:$0x7] }
  0x22   : > { %v587_v23 = vld [vmem:[%s6855_s24 + $0x78] sm:$0xff]  ;;  %9748 = vst [vmem:[#allocation9_spill] sm:$0xff] %v6925_v35  ;;  %v6928_v36 = vrot.slane %v588_v34, %v6916_v31  ;;  %v6931_v37 = vrot.slane %v588_v34, %v6919_v32  ;;  %v1234_v40 = vld [vmem:[%s9710_s7] sm:$0xff]  ;;  %v6942_v42 = vld [vmem:[%s9710_s7 + $0x8] sm:$0xff]  ;;  %v6945_v43 = vrot.slane %v588_v34, %v6925_v35 }
  0x23   : > { %6025 = vmatpush3.bf16.msra.mxu0 %v6198_v11  ;;  %v1235_v41 = vld [vmem:[%s9710_s7 + $0x20] sm:$0xff]  ;;  %v6950_v45 = vld [vmem:[%s9710_s7 + $0x28] sm:$0xff] }
  0x24   : > { %6026 = vmatprep.subr.bf16.mxu0 %v6199_v13  ;;  %v5589_v44 = vcombine.high %v1234_v40, %v1235_v41  ;;  %v5588_v46 = vcombine.low %v1234_v40, %v1235_v41  ;;  %v1236_v47 = vld [vmem:[%s9710_s7 + $0x40] sm:$0xff]  ;;  %v5605_v52 = vcombine.high %v6942_v42, %v6950_v45 }
  0x25   : > { %6174 = vset.pattern.permute.xlu1 %v6724_v3  ;;  %601 = vperm.xlu0 %6172, %v574_v5   ;;  %v1237_v48 = vld [vmem:[%s9710_s7 + $0x60] sm:$0xff] }
  0x26   : > { %606 = vperm.xlu1 %6174, %v575_v6   ;;  %v5591_v53 = vcombine.high %v1236_v47, %v1237_v48  ;;  %v1238_v54 = vld [vmem:[%s9710_s7 + $0x80] sm:$0xff]  ;;  %1330 = vmatprep.subr.bf16.mxu1 %v5589_v44  ;;  %v5590_v59 = vcombine.low %v1236_v47, %v1237_v48 }
  0x27   : > { %6027 = vmatpush3.bf16.msra.mxu0 %v6199_v13  ;;  %v1239_v57 = vld [vmem:[%s9710_s7 + $0xa0] sm:$0xff]  ;;  %1331 = vmatpush1.bf16.msra.mxu1 %v5588_v46 }
  0x28   : > { %6028 = vmatprep.subr.bf16.mxu0 %v6200_v15  ;;  %1332 = vmatprep.subr.bf16.mxu1 %v5591_v53  ;;  %v5593_v61 = vcombine.high %v1238_v54, %v1239_v57  ;;  %v1240_v0 = vld [vmem:[%s9710_s7 + $0xc0] sm:$0xff]  ;;  %v1696_v53 = vld [vmem:[%s9710_s7 + $0x48] sm:$0xff] }
  0x29   : > { %6175 = vset.pattern.permute.xlu0 %v6723_v2  ;;  %v6987_v10 = vld [vmem:[%s9705_s2] ss:$0 sm:$0xff] }
  0x2a   : > { %6176 = vset.pattern.permute.xlu1 %v6723_v2  ;;  %698 = vperm.xlu0 %6175, %v574_v5   ;;  %v1242_v13 = vld [vmem:[%s9710_s7 + $0x100] sm:$0xff] }
  0x2b   : > { %702 = vperm.xlu1 %6176, %v575_v6   ;;  %6029 = vmatpush3.bf16.msra.mxu0 %v6200_v15 }
  0x2c   : > { %1790 = vmatprep.subr.bf16.mxu0 %v5605_v52  ;;  %1333 = vmatpush1.bf16.msra.mxu1 %v5590_v59  ;;  %v5604_v59 = vcombine.low %v6942_v42, %v6950_v45 }
  0x2d   : > { %1334 = vmatprep.subr.bf16.mxu1 %v5593_v61 }
  0x2e   : > { %710 = vperm.xlu0 %6175, %v577_v7  }
  0x2f   : > { %6177 = vset.pattern.permute.xlu1 %v6725_v8 }
  0x30   : > { %790 = vperm.xlu1 %6177, %v572_v1   ;;  %v1241_v1 = vld [vmem:[%s9710_s7 + $0xe0] sm:$0xff] }
  0x32   : > { %714 = vperm.xlu0 %6175, %v578_v9  }
  0x34   : > { %798 = vperm.xlu1 %6177, %v574_v5  }
  0x36   : > { %6181 = vset.pattern.permute.xlu0 %v6725_v8 }
  0x37   : > { %794 = vperm.xlu0 %6181, %v573_v4  }
  0x38   : > { %802 = vperm.xlu1 %6177, %v575_v6  }
  0x3b   : > { %806 = vperm.xlu0 %6181, %v576_v12  }
  0x3c   : > { %6178 = vset.pattern.permute.xlu1 %v6724_v3 }
  0x3d   : > { %616 = vperm.xlu1 %6178, %v577_v7  }
  0x3f   : > { %818 = vperm.xlu0 %6181, %v579_v14  }
  0x41   : > { %6179 = vset.pattern.permute.xlu1 %v6723_v2 }
  0x42   : > { %706 = vperm.xlu1 %6179, %v576_v12  }
  0x43   : > { %826 = vperm.xlu0 %6181, %v581_v16  }
  0x46   : > { %6180 = vset.pattern.permute.xlu1 %v6724_v3 }
  0x47   : > { %621 = vperm.xlu1 %6180, %v578_v9   ;;  %6189 = vset.pattern.permute.xlu0 %v6724_v3 }
  0x48   : > { %611 = vperm.xlu0 %6189, %v576_v12   ;;  %v5595_v12 = vcombine.high %v1240_v0, %v1241_v1 }
  0x4b   : > { %626 = vperm.xlu1 %6180, %v579_v14  }
  0x4c   : > { %636 = vperm.xlu0 %6189, %v581_v16  }
  0x4f   : > { %6182 = vset.pattern.permute.xlu1 %v6723_v2 }
  0x50   : > { %718 = vperm.xlu1 %6182, %v579_v14   ;;  %641 = vperm.xlu0 %6189, %v582_v17   ;;  %v1243_v14 = vld [vmem:[%s9710_s7 + $0x120] sm:$0xff] }
  0x51   : > { %v5596_v40 = vcombine.low %v1242_v13, %v1243_v14 }
  0x54   : > { %6183 = vset.pattern.permute.xlu1 %v6725_v8  ;;  %651 = vperm.xlu0 %6189, %v584_v18  }
  0x55   : > { %810 = vperm.xlu1 %6183, %v577_v7  }
  0x58   : > { %6190 = vset.pattern.permute.xlu0 %v6723_v2 }
  0x59   : > { %814 = vperm.xlu1 %6183, %v578_v9   ;;  %730 = vperm.xlu0 %6190, %v582_v17  }
  0x5d   : > { %6184 = vset.pattern.permute.xlu1 %v6724_v3  ;;  %742 = vperm.xlu0 %6190, %v585_v19  }
  0x5e   : > { %631 = vperm.xlu1 %6184, %v580_v20  }
  0x61   : > { %746 = vperm.xlu0 %6190, %v586_v21  }
  0x62   : > { %6185 = vset.pattern.permute.xlu1 %v6723_v2 }
  0x63   : > { %722 = vperm.xlu1 %6185, %v580_v20  }
  0x65   : > { %6195 = vset.pattern.permute.xlu0 %v6725_v8 }
  0x66   : > { %838 = vperm.xlu0 %6195, %v584_v18  }
  0x67   : > { %726 = vperm.xlu1 %6185, %v581_v16  }
  0x6a   : > { %850 = vperm.xlu0 %6195, %v587_v23  }
  0x6b   : > { %6186 = vset.pattern.permute.xlu1 %v6724_v3 }
  0x6c   : > { %646 = vperm.xlu1 %6186, %v583_v22  }
  0x70   : > { %6187 = vset.pattern.permute.xlu1 %v6723_v2 }
  0x71   : > { %734 = vperm.xlu1 %6187, %v583_v22  }
  0x75   : > { %6188 = vset.pattern.permute.xlu1 %v6725_v8 }
  0x76   : > { %822 = vperm.xlu1 %6188, %v580_v20  }
  0x7a   : > { %830 = vperm.xlu1 %6188, %v582_v17  }
  0x7e   : > { %834 = vperm.xlu1 %6188, %v583_v22   ;;  %v5594_v22 = vcombine.low %v1240_v0, %v1241_v1  ;;  %v1698_v0 = vld [vmem:[%s9710_s7 + $0x88] sm:$0xff] }
  0x7f   : > { %v1699_v1 = vld [vmem:[%s9710_s7 + $0xa8] sm:$0xff] }
  0x80   : > { %v5609_v42 = vcombine.high %v1698_v0, %v1699_v1 }
  0x82   : > { %6191 = vset.pattern.permute.xlu1 %v6724_v3 }
  0x83   : > { %656 = vperm.xlu1 %6191, %v585_v19  }
  0x87   : > { %6192 = vset.pattern.permute.xlu1 %v6723_v2 }
  0x88   : > { %738 = vperm.xlu1 %6192, %v584_v18  }
  0x8c   : > { %6193 = vset.pattern.permute.xlu1 %v6724_v3 }
  0x8d   : > { %661 = vperm.xlu1 %6193, %v586_v21  }
  0x91   : > { %666 = vperm.xlu1 %6193, %v587_v23  }
  0x95   : > { %6194 = vset.pattern.permute.xlu1 %v6723_v2 }
  0x96   : > { %750 = vperm.xlu1 %6194, %v587_v23  }
  0x9a   : > { %6196 = vset.pattern.permute.xlu1 %v6725_v8  ;;  %v5592_v8 = vcombine.low %v1238_v54, %v1239_v57  ;;  %v1697_v54 = vld [vmem:[%s9710_s7 + $0x68] sm:$0xff] }
  0x9b   : > { %842 = vperm.xlu1 %6196, %v585_v19  }
  0x9c   : > { %v691_v24 = vpop.permute.xlu1 %690  ;;  %v592_v25 = vpop.permute.xlu0 %591  ;;  %1335 = vmatpush1.bf16.msra.mxu1 %v5592_v8  ;;  %v5608_v8 = vcombine.low %v1698_v0, %v1699_v1 }
  0x9d   : > { %v757_v49 = vmul.f32 %v6928_v36, %v691_v24  ;;  %v673_v50 = vmul.f32 %v6931_v37, %v592_v25  ;;  %v7002_v24 = vld [vmem:[%s9706_s3] ss:$0 sm:$0xff]  ;;  %1336 = vmatprep.subr.bf16.mxu1 %v5595_v12 }
  0x9f   : > { %846 = vperm.xlu1 %6196, %v586_v21   ;;  %v773_v62 = vadd.f32 %v757_v49, %v673_v50 }
  0xa0   : > { %v695_v27 = vpop.permute.xlu1 %694  ;;  %v597_v28 = vpop.permute.xlu0 %596  ;;  %1337 = vmatpush1.bf16.msra.mxu1 %v5594_v22 }
  0xa1   : > { %v758_v4 = vmul.f32 %v6928_v36, %v695_v27  ;;  %v674_v5 = vmul.f32 %v6931_v37, %v597_v28  ;;  %v5597_v28 = vcombine.high %v1242_v13, %v1243_v14  ;;  %v1702_v13 = vld [vmem:[%s9710_s7 + $0x108] sm:$0xff] }
  0xa2   : > { %v1703_v14 = vld [vmem:[%s9710_s7 + $0x128] sm:$0xff] }
  0xa3   : > { %v774_v18 = vadd.f32 %v758_v4, %v674_v5  ;;  %1338 = vmatprep.subr.bf16.mxu1 %v5597_v28  ;;  %v1700_v5 = vld [vmem:[%s9710_s7 + $0xc8] sm:$0xff]  ;;  %v5612_v28 = vcombine.low %v1702_v13, %v1703_v14 }
  0xa4   : > { %v602_v30 = vpop.permute.xlu0 %601  ;;  %1339 = vmatpush1.bf16.msra.mxu1 %v5596_v40 }
  0xa5   : > { %v607_v33 = vpop.permute.xlu1 %606  ;;  %v675_v55 = vmul.f32 %v6931_v37, %v602_v30 }
  0xa6   : > { %v676_v15 = vmul.f32 %v6931_v37, %v607_v33 }
  0xa9   : > { %v699_v38 = vpop.permute.xlu0 %698 }
  0xaa   : > { %v703_v39 = vpop.permute.xlu1 %702  ;;  %v759_v56 = vmul.f32 %v6928_v36, %v699_v38 }
  0xab   : > { %v760_v9 = vmul.f32 %v6928_v36, %v703_v39 }
  0xac   : > { %v775_v2 = vadd.f32 %v759_v56, %v675_v55 }
  0xad   : > { %v6960_v51 = vpop.permute.xlu0 %710  ;;  %v776_v23 = vadd.f32 %v760_v9, %v676_v15 }
  0xaf   : > { %v791_v58 = vpop.permute.xlu1 %790 }
  0xb0   : > { %v857_v60 = vmul.f32 %v6945_v43, %v791_v58 }
  0xb1   : > { %v6973_v63 = vpop.permute.xlu0 %714 }
  0xb2   : > { %v873_v6 = vadd.f32 %v857_v60, %v773_v62  ;;  %v5607_v62 = vcombine.high %v1696_v53, %v1697_v54 }
  0xb3   : > { %v799_v7 = vpop.permute.xlu1 %798 }
  0xb4   : > { %v859_v11 = vmul.f32 %v6945_v43, %v799_v7  ;;  %v896_v19 = vmul.f32 %v6987_v10, %v873_v6  ;;  %v1701_v6 = vld [vmem:[%s9710_s7 + $0xe8] sm:$0xff] }
  0xb6   : > { %v875_v16 = vadd.f32 %v859_v11, %v775_v2  ;;  %v795_v17 = vpop.permute.xlu0 %794  ;;  %v919_v39 = vadd.f32 %v7002_v24, %v896_v19  ;;  %v5606_v2 = vcombine.low %v1696_v53, %v1697_v54  ;;  %v5611_v11 = vcombine.high %v1700_v5, %v1701_v6 }
  0xb7   : > { %v858_v20 = vmul.f32 %v6945_v43, %v795_v17  ;;  %v803_v21 = vpop.permute.xlu1 %802  ;;  %v5610_v17 = vcombine.low %v1700_v5, %v1701_v6 }
  0xb8   : > { %v898_v25 = vmul.f32 %v6987_v10, %v875_v16  ;;  %v860_v27 = vmul.f32 %v6945_v43, %v803_v21  ;;  %v935_v50 = vmax.f32 %v919_v39, 0.0 }
  0xb9   : > { %v874_v30 = vadd.f32 %v858_v20, %v774_v18  ;;  %v5613_v18 = vcombine.high %v1702_v13, %v1703_v14  ;;  %v762_v20 = vmul.f32 %v6928_v36, %v6960_v51 }
  0xba   : > { %v876_v33 = vadd.f32 %v860_v27, %v776_v23  ;;  %v807_v34 = vpop.permute.xlu0 %806  ;;  %v921_v41 = vadd.f32 %v7002_v24, %v898_v25 }
  0xbb   : > { %v897_v38 = vmul.f32 %v6987_v10, %v874_v30  ;;  %v861_v15 = vmul.f32 %v6945_v43, %v807_v34 }
  0xbc   : > { %v899_v44 = vmul.f32 %v6987_v10, %v876_v33  ;;  %v617_v46 = vpop.permute.xlu1 %616  ;;  %v937_v55 = vmax.f32 %v921_v41, 0.0  ;;  %v763_v33 = vmul.f32 %v6928_v36, %v6973_v63 }
  0xbd   : > { %v920_v47 = vadd.f32 %v7002_v24, %v897_v38  ;;  %v678_v23 = vmul.f32 %v6931_v37, %v617_v46 }
  0xbe   : > { %v922_v48 = vadd.f32 %v7002_v24, %v899_v44  ;;  %v819_v49 = vpop.permute.xlu0 %818 }
  0xbf   : > { %v936_v52 = vmax.f32 %v920_v47, 0.0  ;;  %v864_v25 = vmul.f32 %v6945_v43, %v819_v49  ;;  %v778_v51 = vadd.f32 %v762_v20, %v678_v23 }
  0xc0   : > { %v938_v56 = vmax.f32 %v922_v48, 0.0 }
  0xc1   : > { %v707_v57 = vpop.permute.xlu1 %706  ;;  %v951_v58 = vpack.c.bf16 %v936_v52, %v935_v50 }
  0xc2   : > { %v7020_v60 = vpop.permute.xlu0 %826  ;;  %v952_v61 = vpack.c.bf16 %v938_v56, %v937_v55  ;;  %v761_v12 = vmul.f32 %v6928_v36, %v707_v57 }
  0xc3   : > { %6030 = vmatprep.mubr.msk.bf16.mxu0 %vm991_vm0, %v951_v58 }
  0xc4   : > { %6031 = vmatmul.mubr.msk.bf16.vlgmr.msra.gmra.mrb[0].mxu0 %vm991_vm0, %v952_v61 }
  0xc5   : > { %1791 = vmatpush1.bf16.msra.mxu0 %v5604_v59 }
  0xc6   : > { %v622_v4 = vpop.permute.xlu1 %621  ;;  %1792 = vmatprep.subr.bf16.mxu0 %v5607_v62 }
  0xc7   : > { %v612_v45 = vpop.permute.xlu0 %611  ;;  %v679_v34 = vmul.f32 %v6931_v37, %v622_v4 }
  0xc8   : > { %v677_v7 = vmul.f32 %v6931_v37, %v612_v45 }
  0xc9   : > { %1793 = vmatpush1.bf16.msra.mxu0 %v5606_v2  ;;  %v779_v46 = vadd.f32 %v763_v33, %v679_v34 }
  0xca   : > { %v627_v9 = vpop.permute.xlu1 %626  ;;  %1794 = vmatprep.subr.bf16.mxu0 %v5609_v42  ;;  %v777_v16 = vadd.f32 %v761_v12, %v677_v7 }
  0xcb   : > { %v680_v21 = vmul.f32 %v6931_v37, %v627_v9  ;;  %v637_v1 = vpop.permute.xlu0 %636  ;;  %v866_v9 = vmul.f32 %v6945_v43, %v7020_v60 }
  0xcc   : > { %v877_v27 = vadd.f32 %v861_v15, %v777_v16  ;;  %v682_v6 = vmul.f32 %v6931_v37, %v637_v1 }
  0xcd   : > { %1795 = vmatpush1.bf16.msra.mxu0 %v5608_v8 }
  0xce   : > { %1796 = vmatprep.subr.bf16.mxu0 %v5611_v11  ;;  %v900_v39 = vmul.f32 %v6987_v10, %v877_v27 }
  0xcf   : > { %v719_v19 = vpop.permute.xlu1 %718  ;;  %v642_v42 = vpop.permute.xlu0 %641 }
  0xd0   : > { %v764_v22 = vmul.f32 %v6928_v36, %v719_v19  ;;  %v923_v48 = vadd.f32 %v7002_v24, %v900_v39 }
  0xd1   : > { %1797 = vmatpush1.bf16.msra.mxu0 %v5610_v17  ;;  %v683_v17 = vmul.f32 %v6931_v37, %v642_v42 }
  0xd2   : > { %v780_v30 = vadd.f32 %v764_v22, %v680_v21  ;;  %1798 = vmatprep.subr.bf16.mxu0 %v5613_v18  ;;  %v939_v54 = vmax.f32 %v923_v48, 0.0 }
  0xd3   : > { %v652_v8 = vpop.permute.xlu0 %651 }
  0xd4   : > { %v811_v38 = vpop.permute.xlu1 %810  ;;  %v880_v40 = vadd.f32 %v864_v25, %v780_v30 }
  0xd5   : > { %v862_v41 = vmul.f32 %v6945_v43, %v811_v38  ;;  %1799 = vmatpush1.bf16.msra.mxu0 %v5612_v28 }
  0xd6   : > { %v903_v49 = vmul.f32 %v6987_v10, %v880_v40 }
  0xd7   : > { %v878_v44 = vadd.f32 %v862_v41, %v778_v51 }
  0xd8   : > { %v815_v47 = vpop.permute.xlu1 %814  ;;  %v926_v55 = vadd.f32 %v7002_v24, %v903_v49  ;;  %v731_v14 = vpop.permute.xlu0 %730 }
  0xd9   : > { %v901_v50 = vmul.f32 %v6987_v10, %v878_v44  ;;  %v863_v63 = vmul.f32 %v6945_v43, %v815_v47  ;;  %v767_v18 = vmul.f32 %v6928_v36, %v731_v14 }
  0xda   : > { %v942_v62 = vmax.f32 %v926_v55, 0.0 }
  0xdb   : > { %v924_v52 = vadd.f32 %v7002_v24, %v901_v50  ;;  %v879_v53 = vadd.f32 %v863_v63, %v779_v46  ;;  %v783_v60 = vadd.f32 %v767_v18, %v683_v17 }
  0xdd   : > { %v940_v56 = vmax.f32 %v924_v52, 0.0  ;;  %v902_v57 = vmul.f32 %v6987_v10, %v879_v53  ;;  %v632_v58 = vpop.permute.xlu1 %631 }
  0xde   : > { %v681_v16 = vmul.f32 %v6931_v37, %v632_v58 }
  0xdf   : > { %v925_v59 = vadd.f32 %v7002_v24, %v902_v57  ;;  %v953_v61 = vpack.c.bf16 %v940_v56, %v939_v54  ;;  %v743_v54 = vpop.permute.xlu0 %742 }
  0xe0   : > { %v770_v17 = vmul.f32 %v6928_v36, %v743_v54 }
  0xe1   : > { %v941_v0 = vmax.f32 %v925_v59, 0.0  ;;  %6034 = vmatprep.mubr.msk.bf16.mxu0 %vm991_vm0, %v953_v61 }
  0xe2   : > { %v723_v2 = vpop.permute.xlu1 %722 }
  0xe3   : > { %v954_v4 = vpack.c.bf16 %v942_v62, %v941_v0  ;;  %v765_v15 = vmul.f32 %v6928_v36, %v723_v2  ;;  %v747_v59 = vpop.permute.xlu0 %746  ;;  %v685_v2 = vmul.f32 %v6931_v37, %v652_v8 }
  0xe5   : > { %6035 = vmatmul.mubr.msk.bf16.gmra.mrb[4].mxu0 %vm991_vm0, %v954_v4  ;;  %v781_v21 = vadd.f32 %v765_v15, %v681_v16 }
  0xe6   : > { %v727_v45 = vpop.permute.xlu1 %726 }
  0xe7   : > { %v766_v5 = vmul.f32 %v6928_v36, %v727_v45  ;;  %v839_v0 = vpop.permute.xlu0 %838 }
  0xe8   : > { %v869_v42 = vmul.f32 %v6945_v43, %v839_v0 }
  0xe9   : > { %v782_v11 = vadd.f32 %v766_v5, %v682_v6  ;;  %v1244_v5 = vld [vmem:[%s9710_s7 + $0x140] sm:$0xff] }
  0xea   : > { %v1245_v6 = vld [vmem:[%s9710_s7 + $0x160] sm:$0xff] }
  0xeb   : > { %v647_v7 = vpop.permute.xlu1 %646  ;;  %v882_v13 = vadd.f32 %v866_v9, %v782_v11  ;;  %v851_v45 = vpop.permute.xlu0 %850  ;;  %v5599_v8 = vcombine.high %v1244_v5, %v1245_v6  ;;  %v5598_v16 = vcombine.low %v1244_v5, %v1245_v6  ;;  %v2118_v6 = vld [vmem:[%s9710_s7 + $0x10] sm:$0xff] }
  0xec   : > { %v684_v34 = vmul.f32 %v6931_v37, %v647_v7  ;;  %v1704_v7 = vld [vmem:[%s9710_s7 + $0x148] sm:$0xff] }
  0xed   : > { %v905_v19 = vmul.f32 %v6987_v10, %v882_v13  ;;  %1340 = vmatprep.subr.bf16.mxu1 %v5599_v8 }
  0xee   : > { %1341 = vmatpush1.bf16.msra.mxu1 %v5598_v16 }
  0xef   : > { %v928_v25 = vadd.f32 %v7002_v24, %v905_v19 }
  0xf0   : > { %v735_v12 = vpop.permute.xlu1 %734 }
  0xf1   : > { %v768_v28 = vmul.f32 %v6928_v36, %v735_v12  ;;  %v944_v39 = vmax.f32 %v928_v25, 0.0  ;;  %v1705_v12 = vld [vmem:[%s9710_s7 + $0x168] sm:$0xff] }
  0xf2   : > { %v5614_v14 = vcombine.low %v1704_v7, %v1705_v12  ;;  %v5615_v15 = vcombine.high %v1704_v7, %v1705_v12  ;;  %v7166_v12 = vld [vmem:[%s9708_s5] ss:$0 sm:$0xff] }
  0xf3   : > { %v784_v41 = vadd.f32 %v768_v28, %v684_v34  ;;  %v1707_v28 = vld [vmem:[%s9710_s7 + $0x1a8] sm:$0xff] }
  0xf4   : > { %1800 = vmatprep.subr.bf16.mxu0 %v5615_v15 }
  0xf5   : > { %v823_v20 = vpop.permute.xlu1 %822  ;;  %1801 = vmatpush1.bf16.msra.mxu0 %v5614_v14  ;;  %v7171_v14 = vld [vmem:[%s9709_s6] ss:$0 sm:$0xff] }
  0xf6   : > { %v865_v22 = vmul.f32 %v6945_v43, %v823_v20  ;;  %v872_v20 = vmul.f32 %v6945_v43, %v851_v45 }
  0xf8   : > { %v881_v23 = vadd.f32 %v865_v22, %v781_v21  ;;  %v1246_v22 = vld [vmem:[%s9710_s7 + $0x180] sm:$0xff] }
  0xf9   : > { %v831_v27 = vpop.permute.xlu1 %830 }
  0xfa   : > { %v904_v30 = vmul.f32 %v6987_v10, %v881_v23  ;;  %v867_v33 = vmul.f32 %v6945_v43, %v831_v27  ;;  %v1247_v23 = vld [vmem:[%s9710_s7 + $0x1a0] sm:$0xff]  ;;  %v1706_v27 = vld [vmem:[%s9710_s7 + $0x188] sm:$0xff] }
  0xfb   : > { %v5601_v25 = vcombine.high %v1246_v22, %v1247_v23  ;;  %v5616_v34 = vcombine.low %v1706_v27, %v1707_v28 }
  0xfc   : > { %v927_v38 = vadd.f32 %v7002_v24, %v904_v30  ;;  %v883_v51 = vadd.f32 %v867_v33, %v783_v60  ;;  %v771_v60 = vmul.f32 %v6928_v36, %v747_v59 }
  0xfd   : > { %v835_v40 = vpop.permute.xlu1 %834  ;;  %1342 = vmatprep.subr.bf16.mxu1 %v5601_v25 }
  0xfe   : > { %v943_v44 = vmax.f32 %v927_v38, 0.0  ;;  %v906_v46 = vmul.f32 %v6987_v10, %v883_v51  ;;  %v868_v47 = vmul.f32 %v6945_v43, %v835_v40  ;;  %v5617_v38 = vcombine.high %v1706_v27, %v1707_v28 }
  0xff   : > { %v5600_v51 = vcombine.low %v1246_v22, %v1247_v23 }
 0x100   : > { %v884_v48 = vadd.f32 %v868_v47, %v784_v41  ;;  %v955_v49 = vpack.c.bf16 %v944_v39, %v943_v44  ;;  %v929_v50 = vadd.f32 %v7002_v24, %v906_v46  ;;  %1802 = vmatprep.subr.bf16.mxu0 %v5617_v38  ;;  %v1248_v44 = vld [vmem:[%s9710_s7 + $0x1c0] sm:$0xff]  ;;  %v1708_v46 = vld [vmem:[%s9710_s7 + $0x1c8] sm:$0xff]  ;;  %v2121_v38 = vld [vmem:[%s9710_s7 + $0x70] sm:$0xff] }
 0x101   : > { %1343 = vmatpush1.bf16.msra.mxu1 %v5600_v51  ;;  %1803 = vmatpush1.bf16.msra.mxu0 %v5616_v34  ;;  %v2544_v51 = vld [vmem:[%s9710_s7 + $0x58] sm:$0xff] }
 0x102   : > { %v907_v63 = vmul.f32 %v6987_v10, %v884_v48  ;;  %v657_v52 = vpop.permute.xlu1 %656  ;;  %6038 = vmatprep.mubr.msk.bf16.mxu0 %vm991_vm0, %v955_v49  ;;  %v945_v55 = vmax.f32 %v929_v50, 0.0  ;;  %v1709_v49 = vld [vmem:[%s9710_s7 + $0x1e8] sm:$0xff] }
 0x103   : > { %v686_v18 = vmul.f32 %v6931_v37, %v657_v52  ;;  %v5618_v52 = vcombine.low %v1708_v46, %v1709_v49 }
 0x104   : > { %v930_v53 = vadd.f32 %v7002_v24, %v907_v63 }
 0x105   : > { %v786_v39 = vadd.f32 %v770_v17, %v686_v18 }
 0x106   : > { %v946_v56 = vmax.f32 %v930_v53, 0.0  ;;  %v5619_v53 = vcombine.high %v1708_v46, %v1709_v49  ;;  %v2547_v49 = vld [vmem:[%s9710_s7 + $0xb8] sm:$0xff] }
 0x107   : > { %v739_v57 = vpop.permute.xlu1 %738 }
 0x108   : > { %v956_v58 = vpack.c.bf16 %v946_v56, %v945_v55  ;;  %v769_v62 = vmul.f32 %v6928_v36, %v739_v57  ;;  %1804 = vmatprep.subr.bf16.mxu0 %v5619_v53  ;;  %v2124_v53 = vld [vmem:[%s9710_s7 + $0xd0] sm:$0xff] }
 0x109   : > { %1805 = vmatpush1.bf16.msra.mxu0 %v5618_v52 }
 0x10a   : > { %6039 = vmatmul.mubr.msk.bf16.gmra.mrb[8].mxu0 %vm991_vm0, %v956_v58  ;;  %v785_v4 = vadd.f32 %v769_v62, %v685_v2 }
 0x10c   : > { %v662_v61 = vpop.permute.xlu1 %661  ;;  %v885_v19 = vadd.f32 %v869_v42, %v785_v4 }
 0x10d   : > { %v687_v30 = vmul.f32 %v6931_v37, %v662_v61 }
 0x10e   : > { %v908_v40 = vmul.f32 %v6987_v10, %v885_v19 }
 0x10f   : > { %v787_v50 = vadd.f32 %v771_v60, %v687_v30  ;;  %v2120_v30 = vld [vmem:[%s9710_s7 + $0x50] sm:$0xff] }
 0x110   : > { %v667_v1 = vpop.permute.xlu1 %666  ;;  %v931_v55 = vadd.f32 %v7002_v24, %v908_v40 }
 0x111   : > { %v688_v9 = vmul.f32 %v6931_v37, %v667_v1  ;;  %v1249_v37 = vld [vmem:[%s9710_s7 + $0x1e0] sm:$0xff] }
 0x112   : > { %v5603_v48 = vcombine.high %v1248_v44, %v1249_v37  ;;  %v5602_v54 = vcombine.low %v1248_v44, %v1249_v37  ;;  %v947_v62 = vmax.f32 %v931_v55, 0.0  ;;  %v5623_v44 = vcombine.high %v2120_v30, %v2121_v38  ;;  %v2122_v37 = vld [vmem:[%s9710_s7 + $0x90] sm:$0xff] }
 0x113   : > { %v2125_v55 = vld [vmem:[%s9710_s7 + $0xf0] sm:$0xff] }
 0x114   : > { %1344 = vmatprep.subr.bf16.mxu1 %v5603_v48  ;;  %v2546_v48 = vld [vmem:[%s9710_s7 + $0x98] sm:$0xff] }
 0x115   : > { %v751_v11 = vpop.permute.xlu1 %750  ;;  %1345 = vmatpush1.bf16.msra.mxu1 %v5602_v54  ;;  %v7224_v54 = vcombine.high %v2546_v48, %v2547_v49 }
 0x116   : > { %v772_v13 = vmul.f32 %v6928_v36, %v751_v11  ;;  %v2543_v11 = vld [vmem:[%s9710_s7 + $0x38] sm:$0xff] }
 0x118   : > { %v788_v21 = vadd.f32 %v772_v13, %v688_v9  ;;  %v2542_v9 = vld [vmem:[%s9710_s7 + $0x18] sm:$0xff] }
 0x119   : > { %v7160_v8 = vcombine.high %v2542_v9, %v2543_v11 }
 0x11a   : > { %v843_v33 = vpop.permute.xlu1 %842  ;;  %v888_v36 = vadd.f32 %v872_v20, %v788_v21 }
 0x11b   : > { %v870_v41 = vmul.f32 %v6945_v43, %v843_v33  ;;  %2638 = vmatprep.subr.bf16.mxu0 %v7160_v8 }
 0x11c   : > { %v911_v56 = vmul.f32 %v6987_v10, %v888_v36 }
 0x11d   : > { %v886_v47 = vadd.f32 %v870_v41, %v786_v39  ;;  %v2545_v39 = vld [vmem:[%s9710_s7 + $0x78] sm:$0xff]  ;;  %v7197_v41 = vcombine.low %v2542_v9, %v2543_v11 }
 0x11e   : > { %v847_v63 = vpop.permute.xlu1 %846  ;;  %v934_v0 = vadd.f32 %v7002_v24, %v911_v56  ;;  %v7202_v46 = vcombine.high %v2544_v51, %v2545_v39  ;;  %v2548_v56 = vld [vmem:[%s9710_s7 + $0xd8] sm:$0xff] }
 0x11f   : > { %v909_v57 = vmul.f32 %v6987_v10, %v886_v47  ;;  %v871_v58 = vmul.f32 %v6945_v43, %v847_v63  ;;  %v2123_v47 = vld [vmem:[%s9710_s7 + $0xb0] sm:$0xff]  ;;  %v7218_v63 = vcombine.low %v2544_v51, %v2545_v39 }
 0x120   : > { %v950_v45 = vmax.f32 %v934_v0, 0.0  ;;  %v5625_v52 = vcombine.high %v2122_v37, %v2123_v47 }
 0x121   : > { %v932_v59 = vadd.f32 %v7002_v24, %v909_v57  ;;  %v887_v61 = vadd.f32 %v871_v58, %v787_v50  ;;  %v5622_v50 = vcombine.low %v2120_v30, %v2121_v38  ;;  %v2549_v57 = vld [vmem:[%s9710_s7 + $0xf8] sm:$0xff]  ;;  %v5624_v58 = vcombine.low %v2122_v37, %v2123_v47 }
 0x122   : > { %v7242_v0 = vcombine.high %v2548_v56, %v2549_v57 }
 0x123   : > { %v948_v1 = vmax.f32 %v932_v59, 0.0  ;;  %v910_v2 = vmul.f32 %v6987_v10, %v887_v61  ;;  %v2119_v10 = vld [vmem:[%s9710_s7 + $0x30] sm:$0xff]  ;;  %v7236_v59 = vcombine.low %v2546_v48, %v2547_v49  ;;  %v5627_v61 = vcombine.high %v2124_v53, %v2125_v55 }
 0x124   : > { %v5620_v7 = vcombine.low %v2118_v6, %v2119_v10 }
 0x125   : > { %v933_v4 = vadd.f32 %v7002_v24, %v910_v2  ;;  %v957_v42 = vpack.c.bf16 %v948_v1, %v947_v62  ;;  %v5621_v24 = vcombine.high %v2118_v6, %v2119_v10  ;;  %v2126_v62 = vld [vmem:[%s9710_s7 + $0x110] sm:$0xff]  ;;  %v2550_v2 = vld [vmem:[%s9710_s7 + $0x118] sm:$0xff] }
 0x126   : > { %v2127_v1 = vld [vmem:[%s9710_s7 + $0x130] sm:$0xff] }
 0x127   : > { %v949_v5 = vmax.f32 %v933_v4, 0.0  ;;  %6042 = vmatprep.mubr.msk.bf16.mxu0 %vm991_vm0, %v957_v42  ;;  %2214 = vmatprep.subr.bf16.mxu1 %v5621_v24  ;;  %v2551_v4 = vld [vmem:[%s9710_s7 + $0x138] sm:$0xff]  ;;  %v5626_v42 = vcombine.low %v2124_v53, %v2125_v55  ;;  %v2129_v10 = vld [vmem:[%s9710_s7 + $0x170] sm:$0xff]  ;;  %v5628_v9 = vcombine.low %v2126_v62, %v2127_v1 }
 0x128   : > { %v7264_v6 = vcombine.high %v2550_v2, %v2551_v4  ;;  %v2553_v24 = vld [vmem:[%s9710_s7 + $0x178] sm:$0xff]  ;;  %v7276_v11 = vcombine.low %v2550_v2, %v2551_v4 }
 0x129   : > { %v958_v43 = vpack.c.bf16 %v950_v45, %v949_v5  ;;  %v7258_v45 = vcombine.low %v2548_v56, %v2549_v57  ;;  %v5629_v5 = vcombine.high %v2126_v62, %v2127_v1 }
 0x12b   : > { %6043 = vmatmul.mubr.msk.bf16.gmra.mrb[12].mxu0 %vm991_vm0, %v958_v43  ;;  %v2128_v43 = vld [vmem:[%s9710_s7 + $0x150] sm:$0xff] }
 0x12c   : > { %1822 = vmatprep.mubr.bf16.mxu0 %v6724_v3 }
 0x197   : > { %v6032_v13 = vpop.f32.mrb[0].mxu0 }
 0x198   : > { %v1122_v15 = vmul.f32 %v6032_v13, %v7166_v12  ;;  %v1050_v16 = vpop.f32.mrb[1].mxu0  ;;  %v5631_v13 = vcombine.high %v2128_v43, %v2129_v10 }
 0x199   : > { %v1120_v17 = vmul.f32 %v7166_v12, %v1050_v16  ;;  %v6033_v18 = vpop.f32.mrb[2].mxu0 }
 0x19a   : > { %v1145_v19 = vadd.f32 %v7171_v14, %v1122_v15  ;;  %v1123_v20 = vmul.f32 %v6033_v18, %v7166_v12  ;;  %v1053_v21 = vpop.f32.mrb[3].mxu0  ;;  %v2130_v15 = vld [vmem:[%s9710_s7 + $0x190] sm:$0xff]  ;;  %v2554_v18 = vld [vmem:[%s9710_s7 + $0x198] sm:$0xff] }
 0x19b   : > { %v1143_v22 = vadd.f32 %v7171_v14, %v1120_v17  ;;  %v1121_v23 = vmul.f32 %v7166_v12, %v1053_v21  ;;  %v2131_v17 = vld [vmem:[%s9710_s7 + $0x1b0] sm:$0xff] }
 0x19c   : > { %v1146_v60 = vadd.f32 %v7171_v14, %v1123_v20  ;;  %v1161_v27 = vmax.f32 %v1145_v19, 0.0  ;;  %v2555_v19 = vld [vmem:[%s9710_s7 + $0x1b8] sm:$0xff]  ;;  %v5630_v20 = vcombine.low %v2128_v43, %v2129_v10  ;;  %v5632_v38 = vcombine.low %v2130_v15, %v2131_v17 }
 0x19d   : > { %v1144_v25 = vadd.f32 %v7171_v14, %v1121_v23  ;;  %v1159_v33 = vmax.f32 %v1143_v22, 0.0  ;;  %v5633_v22 = vcombine.high %v2130_v15, %v2131_v17  ;;  %v2132_v23 = vld [vmem:[%s9710_s7 + $0x1d0] sm:$0xff]  ;;  %v7313_v51 = vcombine.low %v2554_v18, %v2555_v19 }
 0x19e   : > { %v1162_v28 = vmax.f32 %v1146_v60, 0.0  ;;  %v7300_v60 = vcombine.high %v2554_v18, %v2555_v19 }
 0x19f   : > { %v1160_v34 = vmax.f32 %v1144_v25, 0.0  ;;  %v2133_v25 = vld [vmem:[%s9710_s7 + $0x1f0] sm:$0xff] }
 0x1a0   : > { %v7193_v40 = vpack.c.bf16 %v1162_v28, %v1161_v27  ;;  %v2556_v27 = vld [vmem:[%s9710_s7 + $0x1d8] sm:$0xff]  ;;  %v5635_v37 = vcombine.high %v2132_v23, %v2133_v25  ;;  %v5634_v56 = vcombine.low %v2132_v23, %v2133_v25 }
 0x1a1   : > { %v7195_v36 = vpack.c.bf16 %v1160_v34, %v1159_v33  ;;  %v2557_v28 = vld [vmem:[%s9710_s7 + $0x1f8] sm:$0xff] }
 0x1a2   : > { %v7317_v47 = vcombine.high %v2556_v27, %v2557_v28  ;;  %v7325_v57 = vcombine.low %v2556_v27, %v2557_v28 }
 0x1a3   : > { %1363 = vmatmul.mubr.bf16.vlgmr.msra.gmra.mrb[0].mxu1 %v7195_v36  ;;  %1823 = vmatmul.mubr.bf16.vlgmr.msra.gmra.mrb[16].mxu0 %v7195_v36 }
 0x1a4   : > { %1372 = vmatprep.mubr.bf16.mxu1 %v6724_v3  ;;  %1832 = vmatprep.mubr.bf16.mxu0 %v6724_v3 }
 0x1a5   : > { %2215 = vmatpush1.bf16.msra.mxu1 %v5620_v7  ;;  %2639 = vmatpush1.bf16.msra.mxu0 %v7197_v41  ;;  %v2552_v7 = vld [vmem:[%s9710_s7 + $0x158] sm:$0xff] }
 0x1a6   : > { %2216 = vmatprep.subr.bf16.mxu1 %v5623_v44  ;;  %2640 = vmatprep.subr.bf16.mxu0 %v7202_v46  ;;  %v7282_v16 = vcombine.high %v2552_v7, %v2553_v24  ;;  %v7294_v21 = vcombine.low %v2552_v7, %v2553_v24 }
 0x1a9   : > { %2217 = vmatpush1.bf16.msra.mxu1 %v5622_v50  ;;  %2641 = vmatpush1.bf16.msra.mxu0 %v7218_v63 }
 0x1aa   : > { %2218 = vmatprep.subr.bf16.mxu1 %v5625_v52  ;;  %2642 = vmatprep.subr.bf16.mxu0 %v7224_v54 }
 0x1ab   : > { %1373 = vmatmul.mubr.bf16.gmra.mrb[4].mxu1 %v7193_v40  ;;  %1833 = vmatmul.mubr.bf16.gmra.mrb[20].mxu0 %v7193_v40 }
 0x1ac   : > { %1382 = vmatprep.mubr.bf16.mxu1 %v6724_v3  ;;  %1842 = vmatprep.mubr.bf16.mxu0 %v6724_v3 }
 0x1ad   : > { %2219 = vmatpush1.bf16.msra.mxu1 %v5624_v58  ;;  %2643 = vmatpush1.bf16.msra.mxu0 %v7236_v59 }
 0x1ae   : > { %2220 = vmatprep.subr.bf16.mxu1 %v5627_v61  ;;  %2644 = vmatprep.subr.bf16.mxu0 %v7242_v0 }
 0x1b1   : > { %2221 = vmatpush1.bf16.msra.mxu1 %v5626_v42  ;;  %2645 = vmatpush1.bf16.msra.mxu0 %v7258_v45 }
 0x1b2   : > { %2222 = vmatprep.subr.bf16.mxu1 %v5629_v5  ;;  %2646 = vmatprep.subr.bf16.mxu0 %v7264_v6 }
 0x1b5   : > { %2223 = vmatpush1.bf16.msra.mxu1 %v5628_v9  ;;  %2647 = vmatpush1.bf16.msra.mxu0 %v7276_v11 }
 0x1b6   : > { %2224 = vmatprep.subr.bf16.mxu1 %v5631_v13  ;;  %2648 = vmatprep.subr.bf16.mxu0 %v7282_v16 }
 0x1b8   : > { %v6036_v30 = vpop.f32.mrb[4].mxu0 }
 0x1b9   : > { %v1126_v33 = vmul.f32 %v6036_v30, %v7166_v12  ;;  %v1066_v34 = vpop.f32.mrb[5].mxu0  ;;  %2225 = vmatpush1.bf16.msra.mxu1 %v5630_v20  ;;  %2649 = vmatpush1.bf16.msra.mxu0 %v7294_v21 }
 0x1ba   : > { %v1124_v39 = vmul.f32 %v7166_v12, %v1066_v34  ;;  %v6037_v44 = vpop.f32.mrb[6].mxu0  ;;  %2226 = vmatprep.subr.bf16.mxu1 %v5633_v22  ;;  %2650 = vmatprep.subr.bf16.mxu0 %v7300_v60 }
 0x1bb   : > { %v1149_v48 = vadd.f32 %v7171_v14, %v1126_v33  ;;  %v1127_v49 = vmul.f32 %v6037_v44, %v7166_v12  ;;  %v1069_v50 = vpop.f32.mrb[7].mxu0 }
 0x1bc   : > { %v1147_v52 = vadd.f32 %v7171_v14, %v1124_v39  ;;  %v1125_v53 = vmul.f32 %v7166_v12, %v1069_v50 }
 0x1bd   : > { %v1150_v55 = vadd.f32 %v7171_v14, %v1127_v49  ;;  %2227 = vmatpush1.bf16.msra.mxu1 %v5632_v38  ;;  %2651 = vmatpush1.bf16.msra.mxu0 %v7313_v51  ;;  %v1165_v61 = vmax.f32 %v1149_v48, 0.0 }
 0x1be   : > { %v1148_v58 = vadd.f32 %v7171_v14, %v1125_v53  ;;  %2228 = vmatprep.subr.bf16.mxu1 %v5635_v37  ;;  %2652 = vmatprep.subr.bf16.mxu0 %v7317_v47  ;;  %v1163_v1 = vmax.f32 %v1147_v52, 0.0 }
 0x1bf   : > { %v1166_v62 = vmax.f32 %v1150_v55, 0.0 }
 0x1c0   : > { %v1164_v2 = vmax.f32 %v1148_v58, 0.0 }
 0x1c1   : > { %v7329_v4 = vpack.c.bf16 %v1166_v62, %v1165_v61  ;;  %2229 = vmatpush1.bf16.msra.mxu1 %v5634_v56  ;;  %2653 = vmatpush1.bf16.msra.mxu0 %v7325_v57 }
 0x1c2   : > { %v7332_v42 = vpack.c.bf16 %v1164_v2, %v1163_v1  ;;  %6078 = vmatprep.subr.bf16.mxu1 %v7160_v8 }
 0x1c4   : > { %1383 = vmatmul.mubr.bf16.gmra.mrb[8].mxu1 %v7332_v42  ;;  %1843 = vmatmul.mubr.bf16.gmra.mrb[24].mxu0 %v7332_v42 }
 0x1c5   : > { %1392 = vmatprep.mubr.bf16.mxu1 %v6724_v3  ;;  %1852 = vmatprep.mubr.bf16.mxu0 %v6724_v3 }
 0x1cc   : > { %1393 = vmatmul.mubr.bf16.gmra.mrb[12].mxu1 %v7329_v4  ;;  %1853 = vmatmul.mubr.bf16.gmra.mrb[28].mxu0 %v7329_v4 }
 0x1cd   : > { %1402 = vmatprep.mubr.bf16.mxu1 %v6724_v3  ;;  %1862 = vmatprep.mubr.bf16.mxu0 %v6724_v3 }
 0x1dd   : > { %v6040_v5 = vpop.f32.mrb[8].mxu0 }
 0x1de   : > { %v1130_v43 = vmul.f32 %v6040_v5, %v7166_v12  ;;  %v1082_v8 = vpop.f32.mrb[9].mxu0 }
 0x1df   : > { %v1128_v10 = vmul.f32 %v7166_v12, %v1082_v8  ;;  %v6041_v7 = vpop.f32.mrb[10].mxu0 }
 0x1e0   : > { %v1153_v24 = vadd.f32 %v7171_v14, %v1130_v43  ;;  %v1131_v9 = vmul.f32 %v6041_v7, %v7166_v12  ;;  %v1085_v13 = vpop.f32.mrb[11].mxu0 }
 0x1e1   : > { %v1151_v15 = vadd.f32 %v7171_v14, %v1128_v10  ;;  %v1129_v17 = vmul.f32 %v7166_v12, %v1085_v13 }
 0x1e2   : > { %v1154_v18 = vadd.f32 %v7171_v14, %v1131_v9  ;;  %v1169_v20 = vmax.f32 %v1153_v24, 0.0 }
 0x1e3   : > { %v1152_v19 = vadd.f32 %v7171_v14, %v1129_v17  ;;  %v1167_v23 = vmax.f32 %v1151_v15, 0.0 }
 0x1e4   : > { %v1170_v22 = vmax.f32 %v1154_v18, 0.0 }
 0x1e5   : > { %v1168_v25 = vmax.f32 %v1152_v19, 0.0 }
 0x1e6   : > { %v7351_v27 = vpack.c.bf16 %v1170_v22, %v1169_v20 }
 0x1e7   : > { %v7353_v28 = vpack.c.bf16 %v1168_v25, %v1167_v23 }
 0x1e9   : > { %1403 = vmatmul.mubr.bf16.gmra.mrb[16].mxu1 %v7353_v28  ;;  %1863 = vmatmul.mubr.bf16.gmra.mrb[32].mxu0 %v7353_v28 }
 0x1ea   : > { %1412 = vmatprep.mubr.bf16.mxu1 %v6724_v3  ;;  %1872 = vmatprep.mubr.bf16.mxu0 %v6724_v3 }
 0x1f1   : > { %1413 = vmatmul.mubr.bf16.gmra.mrb[20].mxu1 %v7351_v27  ;;  %1873 = vmatmul.mubr.bf16.gmra.mrb[36].mxu0 %v7351_v27 }
 0x1f2   : > { %1422 = vmatprep.mubr.bf16.mxu1 %v6724_v3  ;;  %1882 = vmatprep.mubr.bf16.mxu0 %v6724_v3 }
 0x1fe   : > { %v6044_v30 = vpop.f32.mrb[12].mxu0 }
 0x1ff   : > { %v1134_v33 = vmul.f32 %v6044_v30, %v7166_v12  ;;  %v1098_v34 = vpop.f32.mrb[13].mxu0 }
 0x200   : > { %v1132_v38 = vmul.f32 %v7166_v12, %v1098_v34  ;;  %v6045_v39 = vpop.f32.mrb[14].mxu0 }
 0x201   : > { %v1157_v44 = vadd.f32 %v7171_v14, %v1134_v33  ;;  %v1135_v37 = vmul.f32 %v6045_v39, %v7166_v12  ;;  %v1101_v48 = vpop.f32.mrb[15].mxu0 }
 0x202   : > { %v1155_v49 = vadd.f32 %v7171_v14, %v1132_v38  ;;  %v1133_v50 = vmul.f32 %v7166_v12, %v1101_v48  ;;  %v1186_v12 = vadd.s32 8, %v6913_v29 }
 0x203   : > { %v1158_v52 = vadd.f32 %v7171_v14, %v1135_v37  ;;  %v1173_v55 = vmax.f32 %v1157_v44, 0.0 }
 0x204   : > { %v1156_v53 = vadd.f32 %v7171_v14, %v1133_v50  ;;  %v1171_v58 = vmax.f32 %v1155_v49, 0.0  ;;  %v7418_v14 = vstv %s5587_s18 }
 0x205   : > { %v1174_v56 = vmax.f32 %v1158_v52, 0.0 }
 0x206   : > { %v1172_v61 = vmax.f32 %v1156_v53, 0.0 }
 0x207   : > { %v1182_v62 = vpack.c.bf16 %v1174_v56, %v1173_v55 }
 0x208   : > { %v1181_v1 = vpack.c.bf16 %v1172_v61, %v1171_v58 }
 0x20a   : > { %1423 = vmatmul.mubr.bf16.gmra.mrb[24].mxu1 %v1181_v1  ;;  %1883 = vmatmul.mubr.bf16.gmra.mrb[40].mxu0 %v1181_v1 }
 0x20b   : > { %1432 = vmatprep.mubr.bf16.mxu1 %v6724_v3  ;;  %1892 = vmatprep.mubr.bf16.mxu0 %v6724_v3 }
 0x212   : > { %1433 = vmatmul.mubr.bf16.gmra.mrb[28].mxu1 %v1182_v62  ;;  %1893 = vmatmul.mubr.bf16.gmra.mrb[44].mxu0 %v1182_v62 }
 0x213   : > { %2246 = vmatprep.mubr.bf16.mxu1 %v6724_v3  ;;  %2670 = vmatprep.mubr.bf16.mxu0 %v6724_v3 }
 0x21a   : > { %2247 = vmatmul.mubr.bf16.vlgmr.msra.gmra.mrb[32].mxu1 %v7195_v36  ;;  %2671 = vmatmul.mubr.bf16.vlgmr.msra.gmra.mrb[48].mxu0 %v7195_v36  ;;  %v1903_v36 = vld [vmem:[%s9711_s8 + $0x2] sm:$0x3] }
 0x21b   : > { %6086 = vmatpush1.bf16.msra.mxu1 %v7197_v41  ;;  %2256 = vmatprep.mubr.bf16.mxu1 %v6724_v3  ;;  %v1487_v41 = vld [vmem:[%s9712_s9] sm:$0x3] }
 0x21c   : > { %6079 = vmatprep.subr.bf16.mxu1 %v7202_v46  ;;  %2680 = vmatprep.mubr.bf16.mxu0 %v6724_v3  ;;  %v7434_v46 = vadd.s32 %v7418_v14, %v6913_v29 }
 0x21e   : > { %vm1218_vm1 = vcmp.lt.s32.totalorder %v7434_v46, 200 }
 0x21f   : > { %6087 = vmatpush1.bf16.msra.mxu1 %v7218_v63 }
 0x220   : > { %6080 = vmatprep.subr.bf16.mxu1 %v7224_v54  ;;  %v7440_v54 = vrot.slane %v1903_v36, %v6919_v32 }
 0x222   : > { %2257 = vmatmul.mubr.bf16.gmra.mrb[36].mxu1 %v7193_v40  ;;  %2681 = vmatmul.mubr.bf16.gmra.mrb[52].mxu0 %v7193_v40  ;;  %v1443_v40 = vld [vmem:[%s9711_s8] sm:$0x3] }
 0x223   : > { %2266 = vmatprep.mubr.bf16.mxu1 %v6724_v3  ;;  %2690 = vmatprep.mubr.bf16.mxu0 %v6724_v3  ;;  %v7437_v63 = vrot.slane %v1443_v40, %v6919_v32 }
 0x224   : > { %6088 = vmatpush1.bf16.msra.mxu1 %v7236_v59  ;;  %v7443_v59 = vadd.s32 %v7418_v14, %v1186_v12 }
 0x225   : > { %6081 = vmatprep.subr.bf16.mxu1 %v7242_v0  ;;  %v7446_v0 = vrot.slane %v1443_v40, %v6916_v31 }
 0x226   : > { %vm1219_vm2 = vcmp.lt.s32.totalorder %v7443_v59, 200 }
 0x228   : > { %6089 = vmatpush1.bf16.msra.mxu1 %v7258_v45  ;;  %v7449_v45 = vrot.slane %v1903_v36, %v6916_v31 }
 0x229   : > { %6082 = vmatprep.subr.bf16.mxu1 %v7264_v6  ;;  %v1187_v6 = vadd.s32 16, %v6913_v29 }
 0x22a   : > { %2267 = vmatmul.mubr.bf16.gmra.mrb[40].mxu1 %v7332_v42  ;;  %2691 = vmatmul.mubr.bf16.gmra.mrb[56].mxu0 %v7332_v42 }
 0x22b   : > { %2276 = vmatprep.mubr.bf16.mxu1 %v6724_v3  ;;  %2700 = vmatprep.mubr.bf16.mxu0 %v6724_v3  ;;  %v7472_v24 = vadd.s32 %v7418_v14, %v1187_v6 }
 0x22c   : > { %6090 = vmatpush1.bf16.msra.mxu1 %v7276_v11  ;;  %v1188_v11 = vadd.s32 24, %v6913_v29 }
 0x22d   : > { %6083 = vmatprep.subr.bf16.mxu1 %v7282_v16  ;;  %v7454_v16 = vrot.slane %v1487_v41, %v6919_v32  ;;  %vm1220_vm3 = vcmp.lt.s32.totalorder %v7472_v24, 200 }
 0x22e   : > { %v7475_v9 = vadd.s32 %v7418_v14, %v1188_v11 }
 0x230   : > { %6091 = vmatpush1.bf16.msra.mxu1 %v7294_v21  ;;  %vm1221_vm4 = vcmp.lt.s32.totalorder %v7475_v9, 200 }
 0x231   : > { %6084 = vmatprep.subr.bf16.mxu1 %v7300_v60 }
 0x232   : > { %2277 = vmatmul.mubr.bf16.gmra.mrb[44].mxu1 %v7329_v4  ;;  %2701 = vmatmul.mubr.bf16.gmra.mrb[60].mxu0 %v7329_v4 }
 0x233   : > { %2286 = vmatprep.mubr.bf16.mxu1 %v6724_v3  ;;  %2710 = vmatprep.mubr.bf16.mxu0 %v6724_v3 }
 0x234   : > { %6092 = vmatpush1.bf16.msra.mxu1 %v7313_v51 }
 0x235   : > { %6085 = vmatprep.subr.bf16.mxu1 %v7317_v47  ;;  %v7460_v47 = vrot.slane %v1487_v41, %v6916_v31 }
 0x238   : > { %6093 = vmatpush1.bf16.msra.mxu1 %v7325_v57 }
 0x23a   : > { %2287 = vmatmul.mubr.bf16.gmra.mrb[48].mxu1 %v7353_v28  ;;  %2711 = vmatmul.mubr.bf16.gmra.mrb[64].mxu0 %v7353_v28 }
 0x23b   : > { %2296 = vmatprep.mubr.bf16.mxu1 %v6724_v3  ;;  %2720 = vmatprep.mubr.bf16.mxu0 %v6724_v3 }
 0x242   : > { %2297 = vmatmul.mubr.bf16.gmra.mrb[52].mxu1 %v7351_v27  ;;  %2721 = vmatmul.mubr.bf16.gmra.mrb[68].mxu0 %v7351_v27 }
 0x243   : > { %2306 = vmatprep.mubr.bf16.mxu1 %v6724_v3  ;;  %2730 = vmatprep.mubr.bf16.mxu0 %v6724_v3 }
 0x24a   : > { %2307 = vmatmul.mubr.bf16.gmra.mrb[56].mxu1 %v1181_v1  ;;  %2731 = vmatmul.mubr.bf16.gmra.mrb[72].mxu0 %v1181_v1 }
 0x24b   : > { %2316 = vmatprep.mubr.bf16.mxu1 %v6724_v3 }
 0x252   : > { %2317 = vmatmul.mubr.bf16.gmra.mrb[60].mxu1 %v1182_v62 }
 0x253   : > { %2740 = vmatprep.mubr.bf16.mxu1 %v6724_v3  ;;  %v1947_v3 = vld [vmem:[%s9712_s9 + $0x2] sm:$0x3] }
 0x254   : > { %v7457_v21 = vrot.slane %v1947_v3, %v6919_v32  ;;  %v7463_v57 = vrot.slane %v1947_v3, %v6916_v31 }
 0x25a   : > { %2741 = vmatmul.mubr.bf16.vlgmr.msra.gmra.mrb[64].mxu1 %v1182_v62 }
 0x276   : > { %v1364_v60 = vpop.f32.mrb[0].mxu1  ;;  %v1824_v51 = vpop.f32.mrb[16].mxu0 }
 0x277   : > { %v1455_v2 = vmul.f32 %v7437_v63, %v1364_v60  ;;  %v1915_v4 = vmul.f32 %v7440_v54, %v1824_v51  ;;  %v1366_v42 = vpop.f32.mrb[1].mxu1  ;;  %v1826_v5 = vpop.f32.mrb[17].mxu0 }
 0x278   : > { %v1456_v43 = vmul.f32 %v7446_v0, %v1366_v42  ;;  %v1916_v8 = vmul.f32 %v7449_v45, %v1826_v5  ;;  %v1368_v10 = vpop.f32.mrb[2].mxu1  ;;  %v1828_v7 = vpop.f32.mrb[18].mxu0 }
 0x279   : > { %v1499_v13 = vadd.f32 %v7454_v16, %v1455_v2  ;;  %v1959_v15 = vadd.f32 %v7457_v21, %v1915_v4  ;;  %v1457_v17 = vmul.f32 %v7437_v63, %v1368_v10  ;;  %v1917_v18 = vmul.f32 %v7440_v54, %v1828_v7  ;;  %v1370_v19 = vpop.f32.mrb[3].mxu1  ;;  %v1830_v20 = vpop.f32.mrb[19].mxu0 }
 0x27a   : > { %v1500_v22 = vadd.f32 %v7460_v47, %v1456_v43  ;;  %v1960_v23 = vadd.f32 %v7463_v57, %v1916_v8  ;;  %v1458_v25 = vmul.f32 %v7446_v0, %v1370_v19  ;;  %v1918_v27 = vmul.f32 %v7449_v45, %v1830_v20 }
 0x27b   : > { %v1531_v28 = vmax.f32 %v1499_v13, 0.0  ;;  %v1991_v30 = vmax.f32 %v1959_v15, 0.0  ;;  %v1501_v33 = vadd.f32 %v7454_v16, %v1457_v17  ;;  %v1961_v34 = vadd.f32 %v7457_v21, %v1917_v18 }
 0x27c   : > { %v1532_v38 = vmax.f32 %v1500_v22, 0.0  ;;  %v1992_v39 = vmax.f32 %v1960_v23, 0.0  ;;  %v1502_v44 = vadd.f32 %v7460_v47, %v1458_v25  ;;  %v1962_v37 = vadd.f32 %v7463_v57, %v1918_v27 }
 0x27d   : > { %v1533_v48 = vmax.f32 %v1501_v33, 0.0  ;;  %v1993_v49 = vmax.f32 %v1961_v34, 0.0  ;;  %v7493_v50 = vsel %vm1218_vm1, %v1531_v28, -inf  ;;  %v7497_v52 = vsel %vm1218_vm1, %v1991_v30, -inf }
 0x27e   : > { %v7501_v53 = vsel %vm1218_vm1, %v1532_v38, -inf  ;;  %v7505_v55 = vsel %vm1218_vm1, %v1992_v39, -inf  ;;  %v1374_v56 = vpop.f32.mrb[4].mxu1  ;;  %v1834_v58 = vpop.f32.mrb[20].mxu0  ;;  %v1534_v61 = vmax.f32 %v1502_v44, 0.0  ;;  %v1994_v62 = vmax.f32 %v1962_v37, 0.0 }
 0x27f   : > { %v1459_v1 = vmul.f32 %v7437_v63, %v1374_v56  ;;  %v1919_v12 = vmul.f32 %v7440_v54, %v1834_v58  ;;  %v1376_v40 = vpop.f32.mrb[5].mxu1  ;;  %v1836_v36 = vpop.f32.mrb[21].mxu0  ;;  %v7511_v41 = vsel %vm1219_vm2, %v1533_v48, -inf  ;;  %v7515_v3 = vsel %vm1219_vm2, %v1993_v49, -inf }
 0x280   : > { %v1460_v6 = vmul.f32 %v7446_v0, %v1376_v40  ;;  %v1920_v11 = vmul.f32 %v7449_v45, %v1836_v36  ;;  %v1378_v60 = vpop.f32.mrb[6].mxu1  ;;  %v1838_v51 = vpop.f32.mrb[22].mxu0  ;;  %v7569_v40 = vsel %vm1219_vm2, %v1534_v61, -inf  ;;  %v7573_v36 = vsel %vm1219_vm2, %v1994_v62, -inf }
 0x281   : > { %v1503_v2 = vadd.f32 %v7454_v16, %v1459_v1  ;;  %v1963_v4 = vadd.f32 %v7457_v21, %v1919_v12  ;;  %v1461_v42 = vmul.f32 %v7437_v63, %v1378_v60  ;;  %v1921_v5 = vmul.f32 %v7440_v54, %v1838_v51  ;;  %v1380_v43 = vpop.f32.mrb[7].mxu1  ;;  %v1840_v8 = vpop.f32.mrb[23].mxu0 }
 0x282   : > { %v1504_v10 = vadd.f32 %v7460_v47, %v1460_v6  ;;  %v1964_v7 = vadd.f32 %v7463_v57, %v1920_v11  ;;  %v1462_v13 = vmul.f32 %v7446_v0, %v1380_v43  ;;  %v1922_v15 = vmul.f32 %v7449_v45, %v1840_v8 }
 0x283   : > { %v1535_v17 = vmax.f32 %v1503_v2, 0.0  ;;  %v1995_v18 = vmax.f32 %v1963_v4, 0.0  ;;  %v1505_v19 = vadd.f32 %v7454_v16, %v1461_v42  ;;  %v1965_v20 = vadd.f32 %v7457_v21, %v1921_v5 }
 0x284   : > { %v1536_v22 = vmax.f32 %v1504_v10, 0.0  ;;  %v1996_v23 = vmax.f32 %v1964_v7, 0.0  ;;  %v1506_v25 = vadd.f32 %v7460_v47, %v1462_v13  ;;  %v1966_v27 = vadd.f32 %v7463_v57, %v1922_v15 }
 0x285   : > { %v7533_v28 = vsel %vm1220_vm3, %v1535_v17, -inf  ;;  %v7537_v30 = vsel %vm1220_vm3, %v1995_v18, -inf  ;;  %v1537_v33 = vmax.f32 %v1505_v19, 0.0  ;;  %v1997_v34 = vmax.f32 %v1965_v20, 0.0 }
 0x286   : > { %v1627_v38 = vmax.f32 %v7493_v50, %v7533_v28  ;;  %v2055_v39 = vmax.f32 %v7497_v52, %v7537_v30  ;;  %v7545_v44 = vsel %vm1220_vm3, %v1536_v22, -inf  ;;  %v7549_v37 = vsel %vm1220_vm3, %v1996_v23, -inf }
 0x287   : > { %v1648_v48 = vmax.f32 %v7501_v53, %v7545_v44  ;;  %v2076_v49 = vmax.f32 %v7505_v55, %v7549_v37  ;;  %v7557_v50 = vsel %vm1221_vm4, %v1537_v33, -inf  ;;  %v7561_v52 = vsel %vm1221_vm4, %v1997_v34, -inf }
 0x288   : > { %v1628_v56 = vmax.f32 %v7511_v41, %v7557_v50  ;;  %v2056_v58 = vmax.f32 %v7515_v3, %v7561_v52  ;;  %v1538_v1 = vmax.f32 %v1506_v25, 0.0  ;;  %v1998_v12 = vmax.f32 %v1966_v27, 0.0 }
 0x289   : > { %v1189_v61 = vadd.s32 32, %v6913_v29  ;;  %v1190_v2 = vadd.s32 40, %v6913_v29  ;;  %v1191_v42 = vadd.s32 48, %v6913_v29  ;;  %v1192_v5 = vadd.s32 56, %v6913_v29 }
 0x28a   : > { %v7577_v6 = vsel %vm1221_vm4, %v1538_v1, -inf  ;;  %v7581_v11 = vsel %vm1221_vm4, %v1998_v12, -inf }
 0x28b   : > { %v1649_v60 = vmax.f32 %v7569_v40, %v7577_v6  ;;  %v2077_v51 = vmax.f32 %v7573_v36, %v7581_v11  ;;  %v7590_v62 = vadd.s32 %v7418_v14, %v1189_v61  ;;  %v7593_v4 = vadd.s32 %v7418_v14, %v1190_v2 }
 0x28c   : > { %v7604_v22 = vadd.s32 %v7418_v14, %v1191_v42  ;;  %v7607_v23 = vadd.s32 %v7418_v14, %v1192_v5 }
 0x28d   : > { %vm1222_vm5 = vcmp.lt.s32.totalorder %v7590_v62, 200  ;;  %vm1223_vm6 = vcmp.lt.s32.totalorder %v7593_v4, 200 }
 0x28e   : > { %9749 = vst [vmem:[#allocation10_spill] sm:$0xff] %v7607_v23  ;;  %vm1224_vm7 = vcmp.lt.s32.totalorder %v7604_v22, 200  ;;  %vm1225_vm8 = vcmp.lt.s32.totalorder %v7607_v23, 200 }
 0x297   : > { %v1384_v43 = vpop.f32.mrb[8].mxu1  ;;  %v1844_v8 = vpop.f32.mrb[24].mxu0 }
 0x298   : > { %v1463_v10 = vmul.f32 %v7437_v63, %v1384_v43  ;;  %v1923_v7 = vmul.f32 %v7440_v54, %v1844_v8  ;;  %v1386_v13 = vpop.f32.mrb[9].mxu1  ;;  %v1846_v15 = vpop.f32.mrb[25].mxu0 }
 0x299   : > { %v1464_v17 = vmul.f32 %v7446_v0, %v1386_v13  ;;  %v1924_v18 = vmul.f32 %v7449_v45, %v1846_v15  ;;  %v1388_v19 = vpop.f32.mrb[10].mxu1  ;;  %v1848_v20 = vpop.f32.mrb[26].mxu0 }
 0x29a   : > { %v1507_v25 = vadd.f32 %v7454_v16, %v1463_v10  ;;  %v1967_v27 = vadd.f32 %v7457_v21, %v1923_v7  ;;  %v1465_v28 = vmul.f32 %v7437_v63, %v1388_v19  ;;  %v1925_v30 = vmul.f32 %v7440_v54, %v1848_v20  ;;  %v1390_v33 = vpop.f32.mrb[11].mxu1  ;;  %v1850_v34 = vpop.f32.mrb[27].mxu0 }
 0x29b   : > { %v1508_v1 = vadd.f32 %v7460_v47, %v1464_v17  ;;  %v1968_v12 = vadd.f32 %v7463_v57, %v1924_v18  ;;  %v1466_v61 = vmul.f32 %v7446_v0, %v1390_v33  ;;  %v1926_v2 = vmul.f32 %v7449_v45, %v1850_v34 }
 0x29c   : > { %v1539_v42 = vmax.f32 %v1507_v25, 0.0  ;;  %v1999_v5 = vmax.f32 %v1967_v27, 0.0  ;;  %v1509_v43 = vadd.f32 %v7454_v16, %v1465_v28  ;;  %v1969_v8 = vadd.f32 %v7457_v21, %v1925_v30 }
 0x29d   : > { %v1540_v10 = vmax.f32 %v1508_v1, 0.0  ;;  %v2000_v7 = vmax.f32 %v1968_v12, 0.0  ;;  %v1510_v13 = vadd.f32 %v7460_v47, %v1466_v61  ;;  %v1970_v15 = vadd.f32 %v7463_v57, %v1926_v2 }
 0x29e   : > { %v1603_v17 = vsel %vm1222_vm5, %v1539_v42, -inf  ;;  %v2031_v18 = vsel %vm1222_vm5, %v1999_v5, -inf  ;;  %v1541_v19 = vmax.f32 %v1509_v43, 0.0  ;;  %v2001_v20 = vmax.f32 %v1969_v8, 0.0 }
 0x29f   : > { %v7626_v25 = vmax.f32 %v1627_v38, %v1603_v17  ;;  %v7628_v27 = vmax.f32 %v2055_v39, %v2031_v18  ;;  %v1604_v28 = vsel %vm1222_vm5, %v1540_v10, -inf  ;;  %v2032_v30 = vsel %vm1222_vm5, %v2000_v7, -inf  ;;  %v1394_v33 = vpop.f32.mrb[12].mxu1  ;;  %v1854_v34 = vpop.f32.mrb[28].mxu0 }
 0x2a0   : > { %v7638_v1 = vmax.f32 %v1648_v48, %v1604_v28  ;;  %v7643_v38 = vmax.f32 %v2076_v49, %v2032_v30  ;;  %v1605_v39 = vsel %vm1223_vm6, %v1541_v19, -inf  ;;  %v2033_v12 = vsel %vm1223_vm6, %v2001_v20, -inf  ;;  %v1396_v61 = vpop.f32.mrb[13].mxu1  ;;  %v1856_v2 = vpop.f32.mrb[29].mxu0 }
 0x2a1   : > { %v7652_v42 = vmax.f32 %v1628_v56, %v1605_v39  ;;  %v7657_v53 = vmax.f32 %v2056_v58, %v2033_v12  ;;  %v1542_v55 = vmax.f32 %v1510_v13, 0.0  ;;  %v2002_v44 = vmax.f32 %v1970_v15, 0.0  ;;  %v1398_v37 = vpop.f32.mrb[14].mxu1  ;;  %v1858_v48 = vpop.f32.mrb[30].mxu0 }
 0x2a2   : > { %v1467_v49 = vmul.f32 %v7437_v63, %v1394_v33  ;;  %v1927_v5 = vmul.f32 %v7440_v54, %v1854_v34  ;;  %v1468_v43 = vmul.f32 %v7446_v0, %v1396_v61  ;;  %v1928_v8 = vmul.f32 %v7449_v45, %v1856_v2  ;;  %v1400_v41 = vpop.f32.mrb[15].mxu1  ;;  %v1860_v50 = vpop.f32.mrb[31].mxu0 }
 0x2a3   : > { %v1606_v56 = vsel %vm1223_vm6, %v1542_v55, -inf  ;;  %v2034_v3 = vsel %vm1223_vm6, %v2002_v44, -inf  ;;  %v1469_v52 = vmul.f32 %v7437_v63, %v1398_v37  ;;  %v1929_v58 = vmul.f32 %v7440_v54, %v1858_v48 }
 0x2a4   : > { %v7672_v10 = vmax.f32 %v1649_v60, %v1606_v56  ;;  %v7677_v7 = vmax.f32 %v2077_v51, %v2034_v3  ;;  %v1511_v13 = vadd.f32 %v7454_v16, %v1467_v49  ;;  %v1971_v15 = vadd.f32 %v7457_v21, %v1927_v5 }
 0x2a5   : > { %v1512_v17 = vadd.f32 %v7460_v47, %v1468_v43  ;;  %v1972_v18 = vadd.f32 %v7463_v57, %v1928_v8  ;;  %v1513_v19 = vadd.f32 %v7454_v16, %v1469_v52  ;;  %v1973_v20 = vadd.f32 %v7457_v21, %v1929_v58 }
 0x2a6   : > { %v1543_v40 = vmax.f32 %v1511_v13, 0.0  ;;  %v2003_v6 = vmax.f32 %v1971_v15, 0.0  ;;  %v1470_v60 = vmul.f32 %v7446_v0, %v1400_v41  ;;  %v1930_v36 = vmul.f32 %v7449_v45, %v1860_v50 }
 0x2a7   : > { %v1544_v11 = vmax.f32 %v1512_v17, 0.0  ;;  %v2004_v51 = vmax.f32 %v1972_v18, 0.0  ;;  %v1545_v28 = vmax.f32 %v1513_v19, 0.0  ;;  %v2005_v30 = vmax.f32 %v1973_v20, 0.0 }
 0x2a8   : > { %v7689_v33 = vsel %vm1224_vm7, %v1543_v40, -inf  ;;  %v7693_v34 = vsel %vm1224_vm7, %v2003_v6, -inf  ;;  %v1514_v39 = vadd.f32 %v7460_v47, %v1470_v60  ;;  %v1974_v12 = vadd.f32 %v7463_v57, %v1930_v36 }
 0x2a9   : > { %v1631_v61 = vmax.f32 %v7626_v25, %v7689_v33  ;;  %v2059_v2 = vmax.f32 %v7628_v27, %v7693_v34  ;;  %v7703_v55 = vsel %vm1224_vm7, %v1544_v11, -inf  ;;  %v7707_v44 = vsel %vm1224_vm7, %v2004_v51, -inf }
 0x2aa   : > { %v1652_v37 = vmax.f32 %v7638_v1, %v7703_v55  ;;  %v2080_v48 = vmax.f32 %v7643_v38, %v7707_v44  ;;  %v7715_v25 = vsel %vm1225_vm8, %v1545_v28, -inf  ;;  %v7719_v27 = vsel %vm1225_vm8, %v2005_v30, -inf }
 0x2ab   : > { %v1632_v49 = vmax.f32 %v7652_v42, %v7715_v25  ;;  %v2060_v5 = vmax.f32 %v7657_v53, %v7719_v27  ;;  %v1546_v43 = vmax.f32 %v1514_v39, 0.0  ;;  %v2006_v8 = vmax.f32 %v1974_v12, 0.0 }
 0x2ac   : > { %v1193_v56 = vadd.s32 64, %v6913_v29  ;;  %v1194_v3 = vadd.s32 72, %v6913_v29  ;;  %v1195_v13 = vadd.s32 80, %v6913_v29  ;;  %v1196_v15 = vadd.s32 88, %v6913_v29 }
 0x2ad   : > { %v7727_v1 = vsel %vm1225_vm8, %v1546_v43, -inf  ;;  %v7731_v38 = vsel %vm1225_vm8, %v2006_v8, -inf }
 0x2ae   : > { %v1653_v41 = vmax.f32 %v7672_v10, %v7727_v1  ;;  %v2081_v50 = vmax.f32 %v7677_v7, %v7731_v38  ;;  %v7740_v52 = vadd.s32 %v7418_v14, %v1193_v56  ;;  %v7743_v58 = vadd.s32 %v7418_v14, %v1194_v3 }
 0x2af   : > { %v7754_v28 = vadd.s32 %v7418_v14, %v1195_v13  ;;  %v7757_v30 = vadd.s32 %v7418_v14, %v1196_v15 }
 0x2b0   : > { %9750 = vst [vmem:[#allocation11_spill] sm:$0xff] %v7740_v52  ;;  %9751 = vst [vmem:[#allocation12_spill] sm:$0xff] %v7743_v58  ;;  %vm1226_vm9 = vcmp.lt.s32.totalorder %v7740_v52, 200  ;;  %vm1227_vm10 = vcmp.lt.s32.totalorder %v7743_v58, 200 }
 0x2b1   : > { %9752 = vst [vmem:[#allocation13_spill] sm:$0xff] %v7754_v28  ;;  %9753 = vst [vmem:[#allocation14_spill] sm:$0xff] %v7757_v30  ;;  %vm1228_vm11 = vcmp.lt.s32.totalorder %v7754_v28, 200  ;;  %vm1229_vm12 = vcmp.lt.s32.totalorder %v7757_v30, 200 }
 0x2bc   : > { %v1404_v17 = vpop.f32.mrb[16].mxu1  ;;  %v1864_v18 = vpop.f32.mrb[32].mxu0 }
 0x2bd   : > { %v1471_v19 = vmul.f32 %v7437_v63, %v1404_v17  ;;  %v1931_v20 = vmul.f32 %v7440_v54, %v1864_v18  ;;  %v1406_v40 = vpop.f32.mrb[17].mxu1  ;;  %v1866_v6 = vpop.f32.mrb[33].mxu0 }
 0x2be   : > { %v1472_v60 = vmul.f32 %v7446_v0, %v1406_v40  ;;  %v1932_v36 = vmul.f32 %v7449_v45, %v1866_v6  ;;  %v1408_v11 = vpop.f32.mrb[18].mxu1  ;;  %v1868_v51 = vpop.f32.mrb[34].mxu0 }
 0x2bf   : > { %v1515_v33 = vadd.f32 %v7454_v16, %v1471_v19  ;;  %v1975_v34 = vadd.f32 %v7457_v21, %v1931_v20  ;;  %v1473_v39 = vmul.f32 %v7437_v63, %v1408_v11  ;;  %v1933_v12 = vmul.f32 %v7440_v54, %v1868_v51  ;;  %v1410_v55 = vpop.f32.mrb[19].mxu1  ;;  %v1870_v44 = vpop.f32.mrb[35].mxu0 }
 0x2c0   : > { %v1516_v43 = vadd.f32 %v7460_v47, %v1472_v60  ;;  %v1976_v8 = vadd.f32 %v7463_v57, %v1932_v36  ;;  %v1474_v56 = vmul.f32 %v7446_v0, %v1410_v55  ;;  %v1934_v3 = vmul.f32 %v7449_v45, %v1870_v44 }
 0x2c1   : > { %v1547_v13 = vmax.f32 %v1515_v33, 0.0  ;;  %v2007_v15 = vmax.f32 %v1975_v34, 0.0  ;;  %v1517_v17 = vadd.f32 %v7454_v16, %v1473_v39  ;;  %v1977_v18 = vadd.f32 %v7457_v21, %v1933_v12 }
 0x2c2   : > { %v1548_v19 = vmax.f32 %v1516_v43, 0.0  ;;  %v2008_v20 = vmax.f32 %v1976_v8, 0.0  ;;  %v1518_v40 = vadd.f32 %v7460_v47, %v1474_v56  ;;  %v1978_v6 = vadd.f32 %v7463_v57, %v1934_v3 }
 0x2c3   : > { %v1611_v60 = vsel %vm1226_vm9, %v1547_v13, -inf  ;;  %v2039_v36 = vsel %vm1226_vm9, %v2007_v15, -inf  ;;  %v1549_v11 = vmax.f32 %v1517_v17, 0.0  ;;  %v2009_v51 = vmax.f32 %v1977_v18, 0.0 }
 0x2c4   : > { %v7776_v33 = vmax.f32 %v1631_v61, %v1611_v60  ;;  %v7778_v34 = vmax.f32 %v2059_v2, %v2039_v36  ;;  %v1612_v39 = vsel %vm1226_vm9, %v1548_v19, -inf  ;;  %v2040_v12 = vsel %vm1226_vm9, %v2008_v20, -inf  ;;  %v1414_v55 = vpop.f32.mrb[20].mxu1  ;;  %v1874_v44 = vpop.f32.mrb[36].mxu0 }
 0x2c5   : > { %v7785_v43 = vmax.f32 %v1652_v37, %v1612_v39  ;;  %v7787_v8 = vmax.f32 %v2080_v48, %v2040_v12  ;;  %v1613_v61 = vsel %vm1227_vm10, %v1549_v11, -inf  ;;  %v2041_v2 = vsel %vm1227_vm10, %v2009_v51, -inf  ;;  %v1416_v56 = vpop.f32.mrb[21].mxu1  ;;  %v1876_v3 = vpop.f32.mrb[37].mxu0 }
 0x2c6   : > { %v7796_v13 = vmax.f32 %v1632_v49, %v1613_v61  ;;  %v7801_v37 = vmax.f32 %v2060_v5, %v2041_v2  ;;  %v1550_v48 = vmax.f32 %v1518_v40, 0.0  ;;  %v2010_v15 = vmax.f32 %v1978_v6, 0.0  ;;  %v1418_v17 = vpop.f32.mrb[22].mxu1  ;;  %v1878_v18 = vpop.f32.mrb[38].mxu0 }
 0x2c7   : > { %v1475_v19 = vmul.f32 %v7437_v63, %v1414_v55  ;;  %v1935_v20 = vmul.f32 %v7440_v54, %v1874_v44  ;;  %v1476_v60 = vmul.f32 %v7446_v0, %v1416_v56  ;;  %v1936_v36 = vmul.f32 %v7449_v45, %v1876_v3  ;;  %v1420_v42 = vpop.f32.mrb[23].mxu1  ;;  %v1880_v25 = vpop.f32.mrb[39].mxu0 }
 0x2c8   : > { %v1614_v49 = vsel %vm1227_vm10, %v1550_v48, -inf  ;;  %v2042_v53 = vsel %vm1227_vm10, %v2010_v15, -inf  ;;  %v1477_v27 = vmul.f32 %v7437_v63, %v1418_v17  ;;  %v1937_v5 = vmul.f32 %v7440_v54, %v1878_v18 }
 0x2c9   : > { %v7816_v40 = vmax.f32 %v1653_v41, %v1614_v49  ;;  %v7821_v6 = vmax.f32 %v2081_v50, %v2042_v53  ;;  %v1519_v11 = vadd.f32 %v7454_v16, %v1475_v19  ;;  %v1979_v51 = vadd.f32 %v7457_v21, %v1935_v20 }
 0x2ca   : > { %v1520_v39 = vadd.f32 %v7460_v47, %v1476_v60  ;;  %v1980_v12 = vadd.f32 %v7463_v57, %v1936_v36  ;;  %v1521_v55 = vadd.f32 %v7454_v16, %v1477_v27  ;;  %v1981_v44 = vadd.f32 %v7457_v21, %v1937_v5 }
 0x2cb   : > { %v1551_v10 = vmax.f32 %v1519_v11, 0.0  ;;  %v2011_v1 = vmax.f32 %v1979_v51, 0.0  ;;  %v1478_v41 = vmul.f32 %v7446_v0, %v1420_v42  ;;  %v1938_v7 = vmul.f32 %v7449_v45, %v1880_v25 }
 0x2cc   : > { %v1552_v38 = vmax.f32 %v1520_v39, 0.0  ;;  %v2012_v50 = vmax.f32 %v1980_v12, 0.0  ;;  %v1553_v61 = vmax.f32 %v1521_v55, 0.0  ;;  %v2013_v2 = vmax.f32 %v1981_v44, 0.0 }
 0x2cd   : > { %v7833_v56 = vsel %vm1228_vm11, %v1551_v10, -inf  ;;  %v7837_v3 = vsel %vm1228_vm11, %v2011_v1, -inf  ;;  %v1522_v48 = vadd.f32 %v7460_v47, %v1478_v41  ;;  %v1982_v15 = vadd.f32 %v7463_v57, %v1938_v7 }
 0x2ce   : > { %v7847_v19 = vsel %vm1228_vm11, %v1552_v38, -inf  ;;  %v7851_v20 = vsel %vm1228_vm11, %v2012_v50, -inf  ;;  %v7859_v42 = vsel %vm1229_vm12, %v1553_v61, -inf  ;;  %v7863_v25 = vsel %vm1229_vm12, %v2013_v2, -inf  ;;  %v2327_v61 = vld [vmem:[%s9711_s8 + $0x4] sm:$0x3] }
 0x2cf   : > { %v1554_v27 = vmax.f32 %v1522_v48, 0.0  ;;  %v2014_v5 = vmax.f32 %v1982_v15, 0.0  ;;  %v1197_v55 = vadd.s32 96, %v6913_v29  ;;  %v1198_v44 = vadd.s32 104, %v6913_v29  ;;  %v2371_v2 = vld [vmem:[%s9712_s9 + $0x4] sm:$0x3] }
 0x2d0   : > { %v6726_v1 = vmov 1966171168   ;;  %v1199_v38 = vadd.s32 112, %v6913_v29  ;;  %v1200_v50 = vadd.s32 120, %v6913_v29  ;;  %v2751_v48 = vld [vmem:[%s9711_s8 + $0x6] sm:$0x3]  ;;  %v7915_v12 = vrot.slane %v2371_v2, %v6919_v32 }
 0x2d1   : > { %v7871_v11 = vsel %vm1229_vm12, %v1554_v27, -inf  ;;  %v7875_v51 = vsel %vm1229_vm12, %v2014_v5, -inf  ;;  %v7884_v10 = vadd.s32 %v7418_v14, %v1197_v55  ;;  %v1674_v41 = vunpack.c.l.s4 %v6726_v1  ;;  %v2795_v27 = vld [vmem:[%s9712_s9 + $0x6] sm:$0x3] }
 0x2d2   : > { %v7887_v7 = vadd.s32 %v7418_v14, %v1198_v44  ;;  %v7906_v5 = vadd.s32 %v7418_v14, %v1199_v38  ;;  %v7909_v55 = vadd.s32 %v7418_v14, %v1200_v50  ;;  %v7912_v44 = vrot.slane %v2327_v61, %v6919_v32 }
 0x2d3   : > { %vm1230_vm13 = vcmp.lt.s32.totalorder %v7884_v10, 200  ;;  %v1675_v15 = vunpack.c.0.s8 %v1674_v41  ;;  %v7918_v41 = vrot.slane %v2751_v48, %v6919_v32  ;;  %v7921_v39 = vrot.slane %v2327_v61, %v6916_v31 }
 0x2d4   : > { %vm1231_vm14 = vcmp.lt.s32.totalorder %v7887_v7, 200  ;;  %v7924_v38 = vrot.slane %v2751_v48, %v6916_v31  ;;  %v7929_v36 = vrot.slane %v2795_v27, %v6919_v32  ;;  %v7932_v60 = vrot.slane %v2371_v2, %v6916_v31 }
 0x2d5   : > { %v7937_v48 = vsub.s32 %v1675_v15, %v6913_v29  ;;  %vm1232_vm15 = vcmp.lt.s32.totalorder %v7906_v5, 200  ;;  %vm1233_vm0 = vcmp.lt.s32.totalorder %v7909_v55, 200 }
 0x2dd   : > { %v1424_v1 = vpop.f32.mrb[24].mxu1  ;;  %v1884_v26 = vpop.f32.mrb[40].mxu0 }
 0x2de   : > { %v1479_v14 = vmul.f32 %v7437_v63, %v1424_v1  ;;  %v1939_v50 = vmul.f32 %v7440_v54, %v1884_v26  ;;  %v1426_v53 = vpop.f32.mrb[25].mxu1  ;;  %v1886_v49 = vpop.f32.mrb[41].mxu0  ;;  %v7940_v1 = vrot.slane %v2795_v27, %v6916_v31 }
 0x2df   : > { %v1480_v18 = vmul.f32 %v7446_v0, %v1426_v53  ;;  %v1940_v61 = vmul.f32 %v7449_v45, %v1886_v49  ;;  %v1428_v17 = vpop.f32.mrb[26].mxu1  ;;  %v1888_v35 = vpop.f32.mrb[42].mxu0 }
 0x2e0   : > { %v1523_v26 = vadd.f32 %v7454_v16, %v1479_v14  ;;  %v1983_v32 = vadd.f32 %v7457_v21, %v1939_v50  ;;  %v1481_v30 = vmul.f32 %v7437_v63, %v1428_v17  ;;  %v1941_v2 = vmul.f32 %v7440_v54, %v1888_v35  ;;  %v1430_v28 = vpop.f32.mrb[27].mxu1  ;;  %v1890_v53 = vpop.f32.mrb[43].mxu0 }
 0x2e1   : > { %v1524_v49 = vadd.f32 %v7460_v47, %v1480_v18  ;;  %v1984_v58 = vadd.f32 %v7463_v57, %v1940_v61  ;;  %v1482_v15 = vmul.f32 %v7446_v0, %v1430_v28  ;;  %v1942_v29 = vmul.f32 %v7449_v45, %v1890_v53 }
 0x2e2   : > { %v1555_v27 = vmax.f32 %v1523_v26, 0.0  ;;  %v2015_v31 = vmax.f32 %v1983_v32, 0.0  ;;  %v1525_v14 = vadd.f32 %v7454_v16, %v1481_v30  ;;  %v1985_v50 = vadd.f32 %v7457_v21, %v1941_v2 }
 0x2e3   : > { %v1556_v52 = vmax.f32 %v1524_v49, 0.0  ;;  %v2016_v17 = vmax.f32 %v1984_v58, 0.0  ;;  %v1526_v35 = vadd.f32 %v7460_v47, %v1482_v15  ;;  %v1986_v23 = vadd.f32 %v7463_v57, %v1942_v29 }
 0x2e4   : > { %v1619_v18 = vsel %vm1230_vm13, %v1555_v27, -inf  ;;  %v2047_v28 = vsel %vm1230_vm13, %v2015_v31, -inf  ;;  %v1557_v61 = vmax.f32 %v1525_v14, 0.0  ;;  %v2017_v32 = vmax.f32 %v1985_v50, 0.0 }
 0x2e5   : > { %v9754_v30 = vmax.f32 %v7776_v33, %v7833_v56  ;;  %v9755_v58 = vmax.f32 %v7778_v34, %v7837_v3  ;;  %v1620_v29 = vsel %vm1230_vm13, %v1556_v52, -inf  ;;  %v2048_v53 = vsel %vm1230_vm13, %v2016_v17, -inf  ;;  %v1434_v49 = vpop.f32.mrb[28].mxu1  ;;  %v1894_v31 = vpop.f32.mrb[44].mxu0 }
 0x2e6   : > { %v9756_v33 = vmax.f32 %v7785_v43, %v7847_v19  ;;  %v9757_v34 = vmax.f32 %v7787_v8, %v7851_v20  ;;  %v1621_v52 = vsel %vm1231_vm14, %v1557_v61, -inf  ;;  %v2049_v15 = vsel %vm1231_vm14, %v2017_v32, -inf  ;;  %v1436_v27 = vpop.f32.mrb[29].mxu1  ;;  %v1896_v14 = vpop.f32.mrb[45].mxu0 }
 0x2e7   : > { %v7962_v26 = vmax.f32 %v9754_v30, %v1619_v18  ;;  %v7967_v2 = vmax.f32 %v9755_v58, %v2047_v28  ;;  %v9758_v50 = vmax.f32 %v7796_v13, %v7859_v42  ;;  %v9759_v43 = vmax.f32 %v7801_v37, %v7863_v25  ;;  %v1438_v20 = vpop.f32.mrb[30].mxu1  ;;  %v1898_v28 = vpop.f32.mrb[46].mxu0 }
 0x2e8   : > { %v7977_v56 = vmax.f32 %v9756_v33, %v1620_v29  ;;  %v7982_v3 = vmax.f32 %v9757_v34, %v2048_v53  ;;  %v1558_v18 = vmax.f32 %v1526_v35, 0.0  ;;  %v2018_v8 = vmax.f32 %v1986_v23, 0.0  ;;  %v1440_v29 = vpop.f32.mrb[31].mxu1  ;;  %v1900_v53 = vpop.f32.mrb[47].mxu0 }
 0x2e9   : > { %v1638_v17 = vmax.f32 %v9758_v50, %v1621_v52  ;;  %v2066_v19 = vmax.f32 %v9759_v43, %v2049_v15  ;;  %v1483_v30 = vmul.f32 %v7437_v63, %v1434_v49  ;;  %v1943_v61 = vmul.f32 %v7440_v54, %v1894_v31 }
 0x2ea   : > { %v1484_v32 = vmul.f32 %v7446_v0, %v1436_v27  ;;  %v1944_v58 = vmul.f32 %v7449_v45, %v1896_v14  ;;  %v1622_v13 = vsel %vm1231_vm14, %v1558_v18, -inf  ;;  %v2050_v37 = vsel %vm1231_vm14, %v2018_v8, -inf }
 0x2eb   : > { %v1485_v23 = vmul.f32 %v7437_v63, %v1438_v20  ;;  %v1945_v42 = vmul.f32 %v7440_v54, %v1898_v28  ;;  %v9760_v25 = vmax.f32 %v7816_v40, %v7871_v11  ;;  %v9761_v49 = vmax.f32 %v7821_v6, %v7875_v51 }
 0x2ec   : > { %v1527_v33 = vadd.f32 %v7454_v16, %v1483_v30  ;;  %v1987_v34 = vadd.f32 %v7457_v21, %v1943_v61  ;;  %v1528_v52 = vadd.f32 %v7460_v47, %v1484_v32  ;;  %v1988_v15 = vadd.f32 %v7463_v57, %v1944_v58 }
 0x2ed   : > { %v1659_v35 = vmax.f32 %v9760_v25, %v1622_v13  ;;  %v2087_v31 = vmax.f32 %v9761_v49, %v2050_v37  ;;  %v1529_v63 = vadd.f32 %v7454_v16, %v1485_v23  ;;  %v1989_v54 = vadd.f32 %v7457_v21, %v1945_v42  ;;  %v2248_v18 = vpop.f32.mrb[32].mxu1  ;;  %v2672_v8 = vpop.f32.mrb[48].mxu0 }
 0x2ee   : > { %v1559_v27 = vmax.f32 %v1527_v33, 0.0  ;;  %v2019_v14 = vmax.f32 %v1987_v34, 0.0  ;;  %v1486_v40 = vmul.f32 %v7446_v0, %v1440_v29  ;;  %v1946_v11 = vmul.f32 %v7449_v45, %v1900_v53  ;;  %v2250_v30 = vpop.f32.mrb[33].mxu1  ;;  %v2674_v0 = vpop.f32.mrb[49].mxu0 }
 0x2ef   : > { %v1560_v6 = vmax.f32 %v1528_v52, 0.0  ;;  %v2020_v51 = vmax.f32 %v1988_v15, 0.0  ;;  %v1561_v50 = vmax.f32 %v1529_v63, 0.0  ;;  %v2021_v43 = vmax.f32 %v1989_v54, 0.0  ;;  %v2252_v29 = vpop.f32.mrb[34].mxu1  ;;  %v2676_v53 = vpop.f32.mrb[50].mxu0 }
 0x2f0   : > { %v1623_v20 = vsel %vm1232_vm15, %v1559_v27, -inf  ;;  %v2051_v16 = vsel %vm1232_vm15, %v2019_v14, -inf  ;;  %v1530_v21 = vadd.f32 %v7460_v47, %v1486_v40  ;;  %v1990_v28 = vadd.f32 %v7463_v57, %v1946_v11  ;;  %v2254_v37 = vpop.f32.mrb[35].mxu1 }
 0x2f1   : > { %v1639_v45 = vmax.f32 %v7962_v26, %v1623_v20  ;;  %v2067_v61 = vmax.f32 %v7967_v2, %v2051_v16  ;;  %v1624_v32 = vsel %vm1232_vm15, %v1560_v6, -inf  ;;  %v2052_v58 = vsel %vm1232_vm15, %v2020_v51, -inf  ;;  %v2678_v2 = vpop.f32.mrb[51].mxu0 }
 0x2f2   : > { %v1660_v13 = vmax.f32 %v7977_v56, %v1624_v32  ;;  %v2088_v47 = vmax.f32 %v7982_v3, %v2052_v58  ;;  %v1625_v57 = vsel %vm1233_vm0, %v1561_v50, -inf  ;;  %v2053_v26 = vsel %vm1233_vm0, %v2021_v43, -inf }
 0x2f3   : > { %v1640_v23 = vmax.f32 %v1638_v17, %v1625_v57  ;;  %v2068_v42 = vmax.f32 %v2066_v19, %v2053_v26  ;;  %v1562_v25 = vmax.f32 %v1530_v21, 0.0  ;;  %v2022_v49 = vmax.f32 %v1990_v28, 0.0 }
 0x2f4   : > { %v2339_v33 = vmul.f32 %v7912_v44, %v2248_v18  ;;  %v2763_v34 = vmul.f32 %v7918_v41, %v2672_v8  ;;  %v2340_v56 = vmul.f32 %v7921_v39, %v2250_v30  ;;  %v2764_v3 = vmul.f32 %v7924_v38, %v2674_v0 }
 0x2f5   : > { %v1641_v52 = vmax.f32 %v1639_v45, %v1640_v23  ;;  %v2069_v15 = vmax.f32 %v2067_v61, %v2068_v42  ;;  %v1626_v63 = vsel %vm1233_vm0, %v1562_v25, -inf  ;;  %v2054_v54 = vsel %vm1233_vm0, %v2022_v49, -inf  ;;  %v8048_v50 = vpop.f32.mrb[36].mxu1  ;;  %v8050_v43 = vpop.f32.mrb[52].mxu0 }
 0x2f6   : > { %v1661_v17 = vmax.f32 %v1659_v35, %v1626_v63  ;;  %v2089_v19 = vmax.f32 %v2087_v31, %v2054_v54  ;;  %v2383_v27 = vadd.f32 %v7915_v12, %v2339_v33  ;;  %v2807_v14 = vadd.f32 %v7929_v36, %v2763_v34  ;;  %v2260_v35 = vpop.f32.mrb[37].mxu1  ;;  %v2684_v31 = vpop.f32.mrb[53].mxu0 }
 0x2f7   : > { %v1642_v40 = vrot.slane %v1641_v52, 4  ;;  %v2070_v11 = vrot.slane %v2069_v15, 4  ;;  %v2384_v6 = vadd.f32 %v7932_v60, %v2340_v56  ;;  %v2808_v51 = vadd.f32 %v7940_v1, %v2764_v3  ;;  %v2262_v45 = vpop.f32.mrb[38].mxu1  ;;  %v2686_v61 = vpop.f32.mrb[54].mxu0 }
 0x2f8   : > { %v1662_v18 = vmax.f32 %v1660_v13, %v1661_v17  ;;  %v2090_v8 = vmax.f32 %v2088_v47, %v2089_v19  ;;  %v2415_v20 = vmax.f32 %v2383_v27, 0.0  ;;  %v2839_v16 = vmax.f32 %v2807_v14, 0.0  ;;  %v8060_v47 = vpop.f32.mrb[39].mxu1  ;;  %v8062_v26 = vpop.f32.mrb[55].mxu0 }
 0x2f9   : > { %v1643_v21 = vmax.f32 %v1641_v52, %v1642_v40  ;;  %v2071_v28 = vmax.f32 %v2069_v15, %v2070_v11  ;;  %v2416_v30 = vmax.f32 %v2384_v6, 0.0  ;;  %v2840_v0 = vmax.f32 %v2808_v51, 0.0 }
 0x2fa   : > { %v1663_v32 = vrot.slane %v1662_v18, 4  ;;  %v2091_v58 = vrot.slane %v2090_v8, 4  ;;  %v8054_v57 = vsel %vm1218_vm1, %v2415_v20, -inf  ;;  %v8058_v13 = vsel %vm1218_vm1, %v2839_v16, -inf }
 0x2fb   : > { %v1644_v23 = vrot.slane %v1643_v21, 2  ;;  %v2072_v42 = vrot.slane %v2071_v28, 2  ;;  %v8066_v25 = vsel %vm1218_vm1, %v2416_v30, -inf  ;;  %v8070_v49 = vsel %vm1218_vm1, %v2840_v0, -inf }
 0x2fc   : > { %v1664_v33 = vmax.f32 %v1662_v18, %v1663_v32  ;;  %v2092_v34 = vmax.f32 %v2090_v8, %v2091_v58  ;;  %v2341_v56 = vmul.f32 %v7912_v44, %v2252_v29  ;;  %v2765_v3 = vmul.f32 %v7918_v41, %v2676_v53 }
 0x2fd   : > { %v1645_v52 = vmax.f32 %v1643_v21, %v1644_v23  ;;  %v2073_v15 = vmax.f32 %v2071_v28, %v2072_v42  ;;  %v2342_v63 = vmul.f32 %v7921_v39, %v2254_v37  ;;  %v2766_v54 = vmul.f32 %v7924_v38, %v2678_v2  ;;  %v8080_v6 = vpop.f32.mrb[40].mxu1  ;;  %v8082_v53 = vpop.f32.mrb[56].mxu0 }
 0x2fe   : > { %v1665_v17 = vrot.slane %v1664_v33, 2  ;;  %v2093_v19 = vrot.slane %v2092_v34, 2  ;;  %v2385_v27 = vadd.f32 %v7915_v12, %v2341_v56  ;;  %v2809_v46 = vadd.f32 %v7929_v36, %v2765_v3  ;;  %v8084_v8 = vpop.f32.mrb[41].mxu1  ;;  %v8086_v20 = vpop.f32.mrb[57].mxu0 }
 0x2ff   : > { %v1646_v14 = vrot.slane %v1645_v52, 1  ;;  %v2074_v40 = vrot.slane %v2073_v15, 1  ;;  %v2386_v11 = vadd.f32 %v7932_v60, %v2342_v63  ;;  %v2810_v29 = vadd.f32 %v7940_v1, %v2766_v54  ;;  %v8088_v0 = vpop.f32.mrb[42].mxu1  ;;  %v8090_v32 = vpop.f32.mrb[58].mxu0 }
 0x300   : > { %v1666_v51 = vmax.f32 %v1664_v33, %v1665_v17  ;;  %v2094_v37 = vmax.f32 %v2092_v34, %v2093_v19  ;;  %v2417_v18 = vmax.f32 %v2385_v27, 0.0  ;;  %v2841_v2 = vmax.f32 %v2809_v46, 0.0  ;;  %v8100_v34 = vpop.f32.mrb[43].mxu1  ;;  %v8102_v56 = vpop.f32.mrb[59].mxu0 }
 0x301   : > { %v1647_v16 = vmax.f32 %v1645_v52, %v1646_v14  ;;  %v2075_v21 = vmax.f32 %v2073_v15, %v2074_v40  ;;  %v2418_v28 = vmax.f32 %v2386_v11, 0.0  ;;  %v2842_v30 = vmax.f32 %v2810_v29, 0.0  ;;  %v6206_v52 = vld [vmem:[%s9713_s10 + $0x200] ss:$16 sps:$4 sm:$0xff] (!%p5652_p8)  }
 0x302   : > { %v1667_v58 = vrot.slane %v1666_v51, 1  ;;  %v2095_v23 = vrot.slane %v2094_v37, 1  ;;  %v8094_v42 = vsel %vm1219_vm2, %v2417_v18, -inf  ;;  %v8098_v33 = vsel %vm1219_vm2, %v2841_v2, -inf }
 0x303   : > { %v9762_v3 = vlaneseq  ;;  %v8111_v15 = vsel %vm1219_vm2, %v2418_v28, -inf  ;;  %v8115_v63 = vsel %vm1219_vm2, %v2842_v30, -inf  ;;  %v2343_v54 = vmul.f32 %v7912_v44, %v8048_v50 }
 0x304   : > { %v2767_v17 = vmul.f32 %v7918_v41, %v8050_v43  ;;  %v1668_v19 = vmax.f32 %v1666_v51, %v1667_v58  ;;  %v2096_v27 = vmax.f32 %v2094_v37, %v2095_v23  ;;  %v2344_v46 = vmul.f32 %v7921_v39, %v2260_v35  ;;  %v1669_v51 = vld [vmem:[#allocation2] sm:$0x3] }
 0x305   : > { %vm8105_vm1 = vcmp.lt.s32.totalorder %v9762_v3, 256  ;;  %v2768_v14 = vmul.f32 %v7924_v38, %v2684_v31  ;;  %v2387_v40 = vadd.f32 %v7915_v12, %v2343_v54  ;;  %v2345_v59 = vmul.f32 %v7912_v44, %v2262_v45  ;;  %v8131_v30 = vpop.f32.mrb[44].mxu1  ;;  %v8133_v58 = vpop.f32.mrb[60].mxu0 }
 0x306   : > { %v2811_v11 = vadd.f32 %v7929_v36, %v2767_v17  ;;  %v2769_v29 = vmul.f32 %v7918_v41, %v2686_v61  ;;  %v1672_v18 = vcombine.low %v1647_v16, %v1668_v19  ;;  %v2100_v2 = vcombine.low %v2075_v21, %v2096_v27  ;;  %v2097_v61 = vld [vmem:[#allocation2 + $0x2] sm:$0x3]  ;;  %v8137_v3 = vpop.f32.mrb[45].mxu1  ;;  %v8139_v54 = vpop.f32.mrb[61].mxu0 }
 0x307   : > { %v2388_v50 = vadd.f32 %v7932_v60, %v2344_v46  ;;  %v2812_v43 = vadd.f32 %v7940_v1, %v2768_v14  ;;  %v2419_v37 = vmax.f32 %v2387_v40, 0.0  ;;  %v2389_v35 = vadd.f32 %v7915_v12, %v2345_v59  ;;  %v8149_v14 = vpop.f32.mrb[46].mxu1  ;;  %v8151_v40 = vpop.f32.mrb[62].mxu0 }
 0x308   : > { %v2843_v28 = vmax.f32 %v2811_v11, 0.0  ;;  %v2813_v31 = vadd.f32 %v7929_v36, %v2769_v29  ;;  %v1679_v45 = vrot.slane %v1672_v18, %v7937_v48  ;;  %v2107_v16 = vrot.slane %v2100_v2, %v7937_v48  ;;  %v8159_v2 = vpop.f32.mrb[47].mxu1 }
 0x309   : > { %v2420_v21 = vmax.f32 %v2388_v50, 0.0  ;;  %v2844_v23 = vmax.f32 %v2812_v43, 0.0  ;;  %v8143_v17 = vsel %vm1220_vm3, %v2419_v37, -inf  ;;  %v2421_v27 = vmax.f32 %v2389_v35, 0.0  ;;  %v8161_v50 = vpop.f32.mrb[63].mxu0 }
 0x30a   : > { %v8147_v19 = vsel %vm1220_vm3, %v2843_v28, -inf  ;;  %v2845_v46 = vmax.f32 %v2813_v31, 0.0  ;;  %v1686_v11 = vrot.slane %v1679_v45, %v7937_v48  ;;  %v2114_v59 = vrot.slane %v2107_v16, %v7937_v48 }
 0x30b   : > { %v2479_v29 = vmax.f32 %v8054_v57, %v8143_v17  ;;  %v2903_v18 = vmax.f32 %v8058_v13, %v8147_v19  ;;  %v2452_v43 = vsel %vm1220_vm3, %v2420_v21, -inf  ;;  %v2876_v37 = vsel %vm1220_vm3, %v2844_v23, -inf }
 0x30c   : > { %v2453_v28 = vsel %vm1221_vm4, %v2421_v27, -inf  ;;  %v2877_v35 = vsel %vm1221_vm4, %v2845_v46, -inf  ;;  %v1688_v57 = vmax.f32 %v1669_v51, %v1686_v11  ;;  %v2116_v31 = vmax.f32 %v2097_v61, %v2114_v59 }
 0x30d   : > { %v2500_v13 = vmax.f32 %v8066_v25, %v2452_v43  ;;  %v2924_v45 = vmax.f32 %v8070_v49, %v2876_v37  ;;  %v2480_v16 = vmax.f32 %v8094_v42, %v2453_v28  ;;  %v2904_v17 = vmax.f32 %v8098_v33, %v2877_v35  ;;  %v8199_v23 = vpop.f32.mrb[64].mxu0 }
 0x30e   : > { %v2346_v24 = vmul.f32 %v7921_v39, %v8060_v47  ;;  %v2770_v21 = vmul.f32 %v7924_v38, %v8062_v26  ;;  %1693 = vst.msk [vmem:[#allocation2] sm:$0x3] %vm8105_vm1, %v1688_v57  ;;  %2117 = vst.msk [vmem:[#allocation2 + $0x2] sm:$0x3] %vm8105_vm1, %v2116_v31  ;;  %v2347_v25 = vmul.f32 %v7912_v44, %v8080_v6  ;;  %v8197_v6 = vpop.f32.mrb[48].mxu1  ;;  %v8207_v46 = vpop.f32.mrb[65].mxu0 }
 0x30f   : > { %v2771_v49 = vmul.f32 %v7918_v41, %v8082_v53  ;;  %v2348_v42 = vmul.f32 %v7921_v39, %v8084_v8  ;;  %v2772_v47 = vmul.f32 %v7924_v38, %v8086_v20  ;;  %v2349_v51 = vmul.f32 %v7912_v44, %v8088_v0  ;;  %v8205_v27 = vpop.f32.mrb[49].mxu1  ;;  %v8213_v37 = vpop.f32.mrb[66].mxu0 }
 0x310   : > { %v2390_v26 = vadd.f32 %v7932_v60, %v2346_v24  ;;  %v2814_v33 = vadd.f32 %v7940_v1, %v2770_v21  ;;  %v2773_v61 = vmul.f32 %v7918_v41, %v8090_v32  ;;  %v2391_v53 = vadd.f32 %v7915_v12, %v2347_v25  ;;  %v8211_v43 = vpop.f32.mrb[50].mxu1  ;;  %v8217_v21 = vpop.f32.mrb[67].mxu0 }
 0x311   : > { %v2815_v8 = vadd.f32 %v7929_v36, %v2771_v49  ;;  %v2392_v20 = vadd.f32 %v7932_v60, %v2348_v42  ;;  %v2816_v19 = vadd.f32 %v7940_v1, %v2772_v47  ;;  %v2393_v32 = vadd.f32 %v7915_v12, %v2349_v51  ;;  %v8215_v24 = vpop.f32.mrb[51].mxu1 }
 0x312   : > { %v2422_v0 = vmax.f32 %v2390_v26, 0.0  ;;  %v2846_v11 = vmax.f32 %v2814_v33, 0.0  ;;  %v2817_v59 = vadd.f32 %v7929_v36, %v2773_v61  ;;  %v2423_v28 = vmax.f32 %v2391_v53, 0.0 }
 0x313   : > { %v2847_v35 = vmax.f32 %v2815_v8, 0.0  ;;  %v2424_v57 = vmax.f32 %v2392_v20, 0.0  ;;  %v2848_v31 = vmax.f32 %v2816_v19, 0.0  ;;  %v2425_v42 = vmax.f32 %v2393_v32, 0.0 }
 0x314   : > { %v2454_v25 = vsel %vm1221_vm4, %v2422_v0, -inf  ;;  %v2878_v49 = vsel %vm1221_vm4, %v2846_v11, -inf  ;;  %v2849_v47 = vmax.f32 %v2817_v59, 0.0  ;;  %v2455_v51 = vsel %vm1222_vm5, %v2423_v28, -inf }
 0x315   : > { %v2501_v26 = vmax.f32 %v8111_v15, %v2454_v25  ;;  %v2925_v33 = vmax.f32 %v8115_v63, %v2878_v49  ;;  %v2879_v61 = vsel %vm1222_vm5, %v2847_v35, -inf  ;;  %v8229_v53 = vmax.f32 %v2479_v29, %v2455_v51 }
 0x316   : > { %v8231_v8 = vmax.f32 %v2903_v18, %v2879_v61  ;;  %v2456_v9 = vsel %vm1222_vm5, %v2424_v57, -inf  ;;  %v2880_v20 = vsel %vm1222_vm5, %v2848_v31, -inf  ;;  %v2457_v63 = vsel %vm1223_vm6, %v2425_v42, -inf }
 0x317   : > { %v8237_v19 = vmax.f32 %v2500_v13, %v2456_v9  ;;  %v8239_v15 = vmax.f32 %v2924_v45, %v2880_v20  ;;  %v2881_v0 = vsel %vm1223_vm6, %v2849_v47, -inf  ;;  %v8245_v29 = vmax.f32 %v2480_v16, %v2457_v63  ;;  %v8253_v13 = vpop.f32.mrb[52].mxu1  ;;  %v8255_v45 = vpop.f32.mrb[68].mxu0 }
 0x318   : > { %v8247_v18 = vmax.f32 %v2904_v17, %v2881_v0  ;;  %v2350_v11 = vmul.f32 %v7921_v39, %v8100_v34  ;;  %v2774_v62 = vmul.f32 %v7924_v38, %v8102_v56  ;;  %v2351_v32 = vmul.f32 %v7912_v44, %v8131_v30  ;;  %v8265_v34 = vpop.f32.mrb[53].mxu1  ;;  %v8267_v28 = vpop.f32.mrb[69].mxu0 }
 0x319   : > { %v2775_v59 = vmul.f32 %v7918_v41, %v8133_v58  ;;  %v2352_v16 = vmul.f32 %v7921_v39, %v8137_v3  ;;  %v2776_v17 = vmul.f32 %v7924_v38, %v8139_v54  ;;  %v2353_v30 = vmul.f32 %v7912_v44, %v8149_v14  ;;  %v8275_v57 = vpop.f32.mrb[54].mxu1  ;;  %v8277_v3 = vpop.f32.mrb[70].mxu0 }
 0x31a   : > { %v2394_v56 = vadd.f32 %v7932_v60, %v2350_v11  ;;  %v2818_v35 = vadd.f32 %v7940_v1, %v2774_v62  ;;  %v2777_v58 = vmul.f32 %v7918_v41, %v8151_v40  ;;  %v2395_v54 = vadd.f32 %v7915_v12, %v2351_v32  ;;  %v8283_v42 = vpop.f32.mrb[55].mxu1  ;;  %v8285_v47 = vpop.f32.mrb[71].mxu0 }
 0x31b   : > { %v2819_v31 = vadd.f32 %v7929_v36, %v2775_v59  ;;  %v2396_v25 = vadd.f32 %v7932_v60, %v2352_v16  ;;  %v2820_v49 = vadd.f32 %v7940_v1, %v2776_v17  ;;  %v2397_v40 = vadd.f32 %v7915_v12, %v2353_v30 }
 0x31c   : > { %v2426_v14 = vmax.f32 %v2394_v56, 0.0  ;;  %v2850_v51 = vmax.f32 %v2818_v35, 0.0  ;;  %v2821_v61 = vadd.f32 %v7929_v36, %v2777_v58  ;;  %v2427_v9 = vmax.f32 %v2395_v54, 0.0 }
 0x31d   : > { %v2851_v20 = vmax.f32 %v2819_v31, 0.0  ;;  %v2428_v63 = vmax.f32 %v2396_v25, 0.0  ;;  %v2852_v0 = vmax.f32 %v2820_v49, 0.0  ;;  %v2429_v32 = vmax.f32 %v2397_v40, 0.0 }
 0x31e   : > { %v2458_v11 = vsel %vm1223_vm6, %v2426_v14, -inf  ;;  %v2882_v62 = vsel %vm1223_vm6, %v2850_v51, -inf  ;;  %v2853_v59 = vmax.f32 %v2821_v61, 0.0  ;;  %v2459_v56 = vsel %vm1224_vm7, %v2427_v9, -inf }
 0x31f   : > { %v8293_v16 = vmax.f32 %v2501_v26, %v2458_v11  ;;  %v8295_v17 = vmax.f32 %v2925_v33, %v2882_v62  ;;  %v2883_v35 = vsel %vm1224_vm7, %v2851_v20, -inf  ;;  %v2483_v30 = vmax.f32 %v8229_v53, %v2459_v56  ;;  %v8307_v26 = vpop.f32.mrb[56].mxu1  ;;  %v8309_v33 = vpop.f32.mrb[72].mxu0 }
 0x320   : > { %v2907_v58 = vmax.f32 %v8231_v8, %v2883_v35  ;;  %v2460_v4 = vsel %vm1224_vm7, %v2428_v63, -inf  ;;  %v2884_v54 = vsel %vm1224_vm7, %v2852_v0, -inf  ;;  %v2461_v14 = vsel %vm1225_vm8, %v2429_v32, -inf  ;;  %v8317_v8 = vpop.f32.mrb[57].mxu1  ;;  %v8319_v51 = vpop.f32.mrb[73].mxu0 }
 0x321   : > { %v2504_v31 = vmax.f32 %v8237_v19, %v2460_v4  ;;  %v2928_v25 = vmax.f32 %v8239_v15, %v2884_v54  ;;  %v2885_v53 = vsel %vm1225_vm8, %v2853_v59, -inf  ;;  %v2484_v22 = vmax.f32 %v8245_v29, %v2461_v14  ;;  %v8327_v15 = vpop.f32.mrb[58].mxu1  ;;  %v8329_v9 = vpop.f32.mrb[74].mxu0 }
 0x322   : > { %v2908_v40 = vmax.f32 %v8247_v18, %v2885_v53  ;;  %v2354_v61 = vmul.f32 %v7921_v39, %v8159_v2  ;;  %v2778_v19 = vmul.f32 %v7924_v38, %v8161_v50  ;;  %v2355_v20 = vmul.f32 %v7912_v44, %v8197_v6  ;;  %v8339_v2 = vpop.f32.mrb[59].mxu1  ;;  %v8341_v0 = vpop.f32.mrb[75].mxu0 }
 0x323   : > { %v2779_v63 = vmul.f32 %v7918_v41, %v8199_v23  ;;  %v2356_v29 = vmul.f32 %v7921_v39, %v8205_v27  ;;  %v2780_v18 = vmul.f32 %v7924_v38, %v8207_v46  ;;  %v2357_v6 = vmul.f32 %v7912_v44, %v8211_v43 }
 0x324   : > { %v2398_v50 = vadd.f32 %v7932_v60, %v2354_v61  ;;  %v2822_v11 = vadd.f32 %v7940_v1, %v2778_v19  ;;  %v2781_v23 = vmul.f32 %v7918_v41, %v8213_v37  ;;  %v2399_v62 = vadd.f32 %v7915_v12, %v2355_v20 }
 0x325   : > { %v2823_v27 = vadd.f32 %v7929_v36, %v2779_v63  ;;  %v2400_v46 = vadd.f32 %v7932_v60, %v2356_v29  ;;  %v2824_v32 = vadd.f32 %v7940_v1, %v2780_v18  ;;  %v2401_v35 = vadd.f32 %v7915_v12, %v2357_v6  ;;  %v8359_v63 = vpop.f32.mrb[60].mxu1 }
 0x326   : > { %v2430_v59 = vmax.f32 %v2398_v50, 0.0  ;;  %v2854_v56 = vmax.f32 %v2822_v11, 0.0  ;;  %v2825_v4 = vadd.f32 %v7929_v36, %v2781_v23  ;;  %v2431_v54 = vmax.f32 %v2399_v62, 0.0  ;;  %v8367_v23 = vpop.f32.mrb[61].mxu1 }
 0x327   : > { %v2855_v14 = vmax.f32 %v2823_v27, 0.0  ;;  %v2432_v43 = vmax.f32 %v2400_v46, 0.0  ;;  %v2856_v53 = vmax.f32 %v2824_v32, 0.0  ;;  %v2433_v19 = vmax.f32 %v2401_v35, 0.0  ;;  %v8377_v46 = vpop.f32.mrb[62].mxu1 }
 0x328   : > { %v2462_v37 = vsel %vm1225_vm8, %v2430_v59, -inf  ;;  %v2886_v61 = vsel %vm1225_vm8, %v2854_v56, -inf  ;;  %v2857_v20 = vmax.f32 %v2825_v4, 0.0  ;;  %v2463_v11 = vsel %vm1226_vm9, %v2431_v54, -inf }
 0x329   : > { %v2505_v29 = vmax.f32 %v8293_v16, %v2462_v37  ;;  %v2929_v18 = vmax.f32 %v8295_v17, %v2886_v61  ;;  %v2887_v6 = vsel %vm1226_vm9, %v2855_v14, -inf  ;;  %v8369_v62 = vmax.f32 %v2483_v30, %v2463_v11 }
 0x32a   : > { %v8371_v49 = vmax.f32 %v2907_v58, %v2887_v6  ;;  %v2464_v27 = vsel %vm1226_vm9, %v2432_v43, -inf  ;;  %v2888_v16 = vsel %vm1226_vm9, %v2856_v53, -inf  ;;  %v2465_v56 = vsel %vm1227_vm10, %v2433_v19, -inf  ;;  %v8387_v58 = vpop.f32.mrb[63].mxu1 }
 0x32b   : > { %v8379_v17 = vmax.f32 %v2504_v31, %v2464_v27  ;;  %v8381_v32 = vmax.f32 %v2928_v25, %v2888_v16  ;;  %v2889_v30 = vsel %vm1227_vm10, %v2857_v20, -inf  ;;  %v8389_v35 = vmax.f32 %v2484_v22, %v2465_v56 }
 0x32c   : > { %v8391_v4 = vmax.f32 %v2908_v40, %v2889_v30  ;;  %v2358_v54 = vmul.f32 %v7921_v39, %v8215_v24  ;;  %v2782_v31 = vmul.f32 %v7924_v38, %v8217_v21  ;;  %v2359_v25 = vmul.f32 %v7912_v44, %v8253_v13 }
 0x32d   : > { %v2783_v14 = vmul.f32 %v7918_v41, %v8255_v45  ;;  %v2360_v43 = vmul.f32 %v7921_v39, %v8265_v34  ;;  %v2784_v22 = vmul.f32 %v7924_v38, %v8267_v28  ;;  %v2361_v24 = vmul.f32 %v7912_v44, %v8275_v57  ;;  %v8417_v50 = vpop.f32.mrb[64].mxu1 }
 0x32e   : > { %v2402_v40 = vadd.f32 %v7932_v60, %v2358_v54  ;;  %v2826_v53 = vadd.f32 %v7940_v1, %v2782_v31  ;;  %v2785_v21 = vmul.f32 %v7918_v41, %v8277_v3  ;;  %v2403_v13 = vadd.f32 %v7915_v12, %v2359_v25  ;;  %v8419_v27 = vpop.f32.mrb[65].mxu1 }
 0x32f   : > { %v2827_v45 = vadd.f32 %v7929_v36, %v2783_v14  ;;  %v2404_v37 = vadd.f32 %v7932_v60, %v2360_v43  ;;  %v2828_v34 = vadd.f32 %v7940_v1, %v2784_v22  ;;  %v2405_v19 = vadd.f32 %v7915_v12, %v2361_v24  ;;  %v8425_v31 = vpop.f32.mrb[66].mxu1 }
 0x330   : > { %v2434_v61 = vmax.f32 %v2402_v40, 0.0  ;;  %v2858_v28 = vmax.f32 %v2826_v53, 0.0  ;;  %v2829_v20 = vadd.f32 %v7929_v36, %v2785_v21  ;;  %v2435_v57 = vmax.f32 %v2403_v13, 0.0  ;;  %v8435_v53 = vpop.f32.mrb[67].mxu1 }
 0x331   : > { %v2859_v11 = vmax.f32 %v2827_v45, 0.0  ;;  %v2436_v6 = vmax.f32 %v2404_v37, 0.0  ;;  %v2860_v3 = vmax.f32 %v2828_v34, 0.0  ;;  %v2437_v30 = vmax.f32 %v2405_v19, 0.0 }
 0x332   : > { %v2466_v16 = vsel %vm1227_vm10, %v2434_v61, -inf  ;;  %v2890_v56 = vsel %vm1227_vm10, %v2858_v28, -inf  ;;  %v2861_v54 = vmax.f32 %v2829_v20, 0.0  ;;  %v2467_v22 = vsel %vm1228_vm11, %v2435_v57, -inf }
 0x333   : > { %v8427_v25 = vmax.f32 %v2505_v29, %v2466_v16  ;;  %v8429_v14 = vmax.f32 %v2929_v18, %v2890_v56  ;;  %v2891_v40 = vsel %vm1228_vm11, %v2859_v11, -inf  ;;  %v2487_v24 = vmax.f32 %v8369_v62, %v2467_v22 }
 0x334   : > { %v2911_v59 = vmax.f32 %v8371_v49, %v2891_v40  ;;  %v2468_v21 = vsel %vm1228_vm11, %v2436_v6, -inf  ;;  %v2892_v29 = vsel %vm1228_vm11, %v2860_v3, -inf  ;;  %v2469_v37 = vsel %vm1229_vm12, %v2437_v30, -inf }
 0x335   : > { %v2508_v18 = vmax.f32 %v8379_v17, %v2468_v21  ;;  %v2932_v13 = vmax.f32 %v8381_v32, %v2892_v29  ;;  %v2893_v34 = vsel %vm1229_vm12, %v2861_v54, -inf  ;;  %v2488_v62 = vmax.f32 %v8389_v35, %v2469_v37 }
 0x336   : > { %v2912_v49 = vmax.f32 %v8391_v4, %v2893_v34  ;;  %v2362_v61 = vmul.f32 %v7921_v39, %v8283_v42  ;;  %v2786_v28 = vmul.f32 %v7924_v38, %v8285_v47  ;;  %v2363_v17 = vmul.f32 %v7912_v44, %v8307_v26 }
 0x337   : > { %v2787_v32 = vmul.f32 %v7918_v41, %v8309_v33  ;;  %v2364_v19 = vmul.f32 %v7921_v39, %v8317_v8  ;;  %v2788_v35 = vmul.f32 %v7924_v38, %v8319_v51  ;;  %v2365_v42 = vmul.f32 %v7912_v44, %v8327_v15 }
 0x338   : > { %v2406_v4 = vadd.f32 %v7932_v60, %v2362_v61  ;;  %v2830_v20 = vadd.f32 %v7940_v1, %v2786_v28  ;;  %v2789_v47 = vmul.f32 %v7918_v41, %v8329_v9  ;;  %v2407_v26 = vadd.f32 %v7915_v12, %v2363_v17 }
 0x339   : > { %v2831_v33 = vadd.f32 %v7929_v36, %v2787_v32  ;;  %v2408_v57 = vadd.f32 %v7932_v60, %v2364_v19  ;;  %v2832_v8 = vadd.f32 %v7940_v1, %v2788_v35  ;;  %v2409_v6 = vadd.f32 %v7915_v12, %v2365_v42 }
 0x33a   : > { %v2438_v11 = vmax.f32 %v2406_v4, 0.0  ;;  %v2862_v51 = vmax.f32 %v2830_v20, 0.0  ;;  %v2833_v3 = vadd.f32 %v7929_v36, %v2789_v47  ;;  %v2439_v16 = vmax.f32 %v2407_v26, 0.0 }
 0x33b   : > { %v2863_v56 = vmax.f32 %v2831_v33, 0.0  ;;  %v2440_v15 = vmax.f32 %v2408_v57, 0.0  ;;  %v2864_v30 = vmax.f32 %v2832_v8, 0.0  ;;  %v2441_v43 = vmax.f32 %v2409_v6, 0.0 }
 0x33c   : > { %v2470_v9 = vsel %vm1229_vm12, %v2438_v11, -inf  ;;  %v2894_v54 = vsel %vm1229_vm12, %v2862_v51, -inf  ;;  %v2865_v22 = vmax.f32 %v2833_v3, 0.0  ;;  %v2471_v29 = vsel %vm1230_vm13, %v2439_v16, -inf }
 0x33d   : > { %v2509_v40 = vmax.f32 %v8427_v25, %v2470_v9  ;;  %v2933_v21 = vmax.f32 %v8429_v14, %v2894_v54  ;;  %v2895_v37 = vsel %vm1230_vm13, %v2863_v56, -inf  ;;  %v2489_v34 = vmax.f32 %v2487_v24, %v2471_v29 }
 0x33e   : > { %v8485_v61 = vmax.f32 %v2911_v59, %v2895_v37  ;;  %v2472_v28 = vsel %vm1230_vm13, %v2440_v15, -inf  ;;  %v2896_v45 = vsel %vm1230_vm13, %v2864_v30, -inf  ;;  %v2473_v25 = vsel %vm1231_vm14, %v2441_v43, -inf }
 0x33f   : > { %v2510_v17 = vmax.f32 %v2508_v18, %v2472_v28  ;;  %v8491_v32 = vmax.f32 %v2932_v13, %v2896_v45  ;;  %v2897_v14 = vsel %vm1231_vm14, %v2865_v22, -inf  ;;  %v2490_v19 = vmax.f32 %v2488_v62, %v2473_v25 }
 0x340   : > { %v2914_v35 = vmax.f32 %v2912_v49, %v2897_v14  ;;  %v2366_v24 = vmul.f32 %v7921_v39, %v8339_v2  ;;  %v2790_v59 = vmul.f32 %v7924_v38, %v8341_v0  ;;  %v2367_v10 = vmul.f32 %v7912_v44, %v8359_v63 }
 0x341   : > { %v2368_v18 = vmul.f32 %v7921_v39, %v8367_v23  ;;  %v2369_v13 = vmul.f32 %v7912_v44, %v8377_v46  ;;  %v2370_v4 = vmul.f32 %v7921_v39, %v8387_v58  ;;  %v2791_v2 = vmul.f32 %v7918_v41, %v8417_v50 }
 0x342   : > { %v2410_v62 = vadd.f32 %v7932_v60, %v2366_v24  ;;  %v2834_v49 = vadd.f32 %v7940_v1, %v2790_v59  ;;  %v2792_v0 = vmul.f32 %v7924_v38, %v8419_v27  ;;  %v2411_v63 = vadd.f32 %v7915_v12, %v2367_v10 }
 0x343   : > { %v2412_v23 = vadd.f32 %v7932_v60, %v2368_v18  ;;  %v2413_v20 = vadd.f32 %v7915_v12, %v2369_v13  ;;  %v2414_v44 = vadd.f32 %v7932_v60, %v2370_v4  ;;  %v2835_v58 = vadd.f32 %v7929_v36, %v2791_v2 }
 0x344   : > { %v2442_v46 = vmax.f32 %v2410_v62, 0.0  ;;  %v2866_v39 = vmax.f32 %v2834_v49, 0.0  ;;  %v2836_v42 = vadd.f32 %v7940_v1, %v2792_v0  ;;  %v2443_v47 = vmax.f32 %v2411_v63, 0.0 }
 0x345   : > { %v2444_v26 = vmax.f32 %v2412_v23, 0.0  ;;  %v2445_v50 = vmax.f32 %v2413_v20, 0.0  ;;  %v2446_v33 = vmax.f32 %v2414_v44, 0.0  ;;  %v2867_v8 = vmax.f32 %v2835_v58, 0.0 }
 0x346   : > { %v2474_v27 = vsel %vm1231_vm14, %v2442_v46, -inf  ;;  %v2898_v57 = vsel %vm1231_vm14, %v2866_v39, -inf  ;;  %v2868_v12 = vmax.f32 %v2836_v42, 0.0  ;;  %v2475_v51 = vsel %vm1232_vm15, %v2443_v47, -inf  ;;  %v2521_v46 = vld [vmem:[#allocation2 + $0x4] sm:$0x3] }
 0x347   : > { %v2511_v11 = vmax.f32 %v2509_v40, %v2474_v27  ;;  %v2935_v60 = vmax.f32 %v2933_v21, %v2898_v57  ;;  %v2476_v6 = vsel %vm1232_vm15, %v2444_v26, -inf  ;;  %v2491_v3 = vmax.f32 %v2489_v34, %v2475_v51  ;;  %v2945_v57 = vld [vmem:[#allocation2 + $0x6] sm:$0x3] }
 0x348   : > { %v2512_v16 = vmax.f32 %v2510_v17, %v2476_v6  ;;  %v2477_v56 = vsel %vm1233_vm0, %v2445_v50, -inf  ;;  %v2478_v15 = vsel %vm1233_vm0, %v2446_v33, -inf  ;;  %v2899_v9 = vsel %vm1232_vm15, %v2867_v8, -inf  ;;  %v6207_v51 = vld [vmem:[%s9713_s10 + $0x24] ss:$16 sps:$4 sm:$0xff] (!%p5652_p8)  }
 0x349   : > { %v2492_v7 = vmax.f32 %v2490_v19, %v2477_v56  ;;  %v2513_v30 = vmax.f32 %v2511_v11, %v2478_v15  ;;  %v2900_v54 = vsel %vm1232_vm15, %v2868_v12, -inf  ;;  %v2915_v43 = vmax.f32 %v8485_v61, %v2899_v9  ;;  %v6201_v11 = vld [vmem:[%s9713_s10 + $0x4] ss:$16 sps:$4 sm:$0xff] (!%p5652_p8)  }
 0x34a   : > { %v2936_v22 = vmax.f32 %v8491_v32, %v2900_v54  ;;  %v2793_v40 = vmul.f32 %v7918_v41, %v8425_v31  ;;  %v2794_v21 = vmul.f32 %v7924_v38, %v8435_v53  ;;  %4578 = vmatprep.subr.bf16.mxu1 (!%p5652_p8), %v6201_v11  ;;  %v6209_v6 = vld [vmem:[%s9713_s10 + $0x224] ss:$16 sps:$4 sm:$0xff] (!%p5652_p8)   ;;  %vm5497_vm2 = vcmask (!%p5652_p8), 65536  }
 0x34b   : > { %v2493_v29 = vmax.f32 %v2491_v3, %v2492_v7  ;;  %v2514_v37 = vmax.f32 %v2512_v16, %v2513_v30  ;;  %v6211_v3 = vld [vmem:[%s9713_s10 + $0x20] ss:$16 sps:$4 sm:$0xff] (!%p5652_p8)   ;;  %v6213_v56 = vld [vmem:[%s9713_s10 + $0x44] ss:$16 sps:$4 sm:$0xff] (!%p5652_p8)  }
 0x34c   : > { %v2837_v34 = vadd.f32 %v7929_v36, %v2793_v40  ;;  %v2838_v28 = vadd.f32 %v7940_v1, %v2794_v21  ;;  %v6212_v16 = vld [vmem:[%s9713_s10 + $0x220] ss:$16 sps:$4 sm:$0xff] (!%p5652_p8)   ;;  %v6215_v15 = vld [vmem:[%s9713_s10 + $0x244] ss:$16 sps:$4 sm:$0xff] (!%p5652_p8)  }
 0x34d   : > { %v2494_v45 = vrot.slane %v2493_v29, 4  ;;  %v2515_v17 = vrot.slane %v2514_v37, 4  ;;  %v6217_v7 = vld [vmem:[%s9713_s10 + $0x40] ss:$16 sps:$4 sm:$0xff] (!%p5652_p8)   ;;  %v6219_v9 = vld [vmem:[%s9713_s10 + $0x64] ss:$16 sps:$4 sm:$0xff] (!%p5652_p8)  }
 0x34e   : > { %v2869_v5 = vmax.f32 %v2837_v34, 0.0  ;;  %v2870_v25 = vmax.f32 %v2838_v28, 0.0  ;;  %v6218_v30 = vld [vmem:[%s9713_s10 + $0x240] ss:$16 sps:$4 sm:$0xff] (!%p5652_p8)   ;;  %v6221_v54 = vld [vmem:[%s9713_s10 + $0x264] ss:$16 sps:$4 sm:$0xff] (!%p5652_p8)  }
 0x34f   : > { %v2495_v14 = vmax.f32 %v2493_v29, %v2494_v45  ;;  %v2516_v61 = vmax.f32 %v2514_v37, %v2515_v17  ;;  %v6225_v40 = vld [vmem:[%s9713_s10 + $0x84] ss:$16 sps:$4 sm:$0xff] (!%p5652_p8)   ;;  %v6229_v29 = vld [vmem:[%s9713_s10 + $0x80] ss:$16 sps:$4 sm:$0xff] (!%p5652_p8)  }
 0x350   : > { %v2901_v32 = vsel %vm1233_vm0, %v2869_v5, -inf  ;;  %v2902_v41 = vsel %vm1233_vm0, %v2870_v25, -inf  ;;  %v6227_v21 = vld [vmem:[%s9713_s10 + $0x284] ss:$16 sps:$4 sm:$0xff] (!%p5652_p8)   ;;  %v6230_v37 = vld [vmem:[%s9713_s10 + $0x280] ss:$16 sps:$4 sm:$0xff] (!%p5652_p8)  }
 0x351   : > { %v2496_v31 = vrot.slane %v2495_v14, 2  ;;  %v2517_v38 = vrot.slane %v2516_v61, 2  ;;  %v2916_v53 = vmax.f32 %v2914_v35, %v2901_v32  ;;  %v2937_v19 = vmax.f32 %v2935_v60, %v2902_v41  ;;  %v6203_v60 = vld [vmem:[%s9713_s10 + $0x204] ss:$16 sps:$4 sm:$0xff] (!%p5652_p8)   ;;  %v6235_v45 = vld [vmem:[%s9713_s10 + $0xa0] ss:$16 sps:$4 sm:$0xff] (!%p5652_p8)  }
 0x352   : > { %4619 = vmatprep.subr.bf16.mxu0 (!%p5652_p8), %v6203_v60  ;;  %v6231_v34 = vld [vmem:[%s9713_s10 + $0xa4] ss:$16 sps:$4 sm:$0xff] (!%p5652_p8)   ;;  %v6236_v17 = vld [vmem:[%s9713_s10 + $0x2a0] ss:$16 sps:$4 sm:$0xff] (!%p5652_p8)  }
 0x353   : > { %v2497_v24 = vmax.f32 %v2495_v14, %v2496_v31  ;;  %v2518_v36 = vmax.f32 %v2516_v61, %v2517_v38  ;;  %v2917_v59 = vmax.f32 %v2915_v43, %v2916_v53  ;;  %v2938_v1 = vmax.f32 %v2936_v22, %v2937_v19  ;;  %4620 = vmatpush1.bf16.msra.mxu0 (!%p5652_p8), %v6206_v52  ;;  %v6223_v43 = vld [vmem:[%s9713_s10 + $0x60] ss:$16 sps:$4 sm:$0xff] (!%p5652_p8)   ;;  %v6233_v28 = vld [vmem:[%s9713_s10 + $0x2a4] ss:$16 sps:$4 sm:$0xff] (!%p5652_p8)  }
 0x354   : > { %4621 = vmatprep.subr.bf16.mxu0 (!%p5652_p8), %v6209_v6  ;;  %v6224_v22 = vld [vmem:[%s9713_s10 + $0x260] ss:$16 sps:$4 sm:$0xff] (!%p5652_p8)   ;;  %v6237_v5 = vld [vmem:[%s9713_s10 + $0xc4] ss:$16 sps:$4 sm:$0xff] (!%p5652_p8)  }
 0x355   : > { %v2498_v10 = vrot.slane %v2497_v24, 1  ;;  %v2519_v18 = vrot.slane %v2518_v36, 1  ;;  %v2918_v13 = vrot.slane %v2917_v59, 4  ;;  %v2939_v4 = vrot.slane %v2938_v1, 4  ;;  %v6239_v25 = vld [vmem:[%s9713_s10 + $0x2c4] ss:$16 sps:$4 sm:$0xff] (!%p5652_p8)  }
 0x356   : > { %v6241_v14 = vld [vmem:[%s9713_s10 + $0xc0] ss:$16 sps:$4 sm:$0xff] (!%p5652_p8)   ;;  %v6243_v32 = vld [vmem:[%s9713_s10 + $0xe4] ss:$16 sps:$4 sm:$0xff] (!%p5652_p8)  }
 0x357   : > { %v2499_v62 = vmax.f32 %v2497_v24, %v2498_v10  ;;  %v2520_v49 = vmax.f32 %v2518_v36, %v2519_v18  ;;  %v2919_v2 = vmax.f32 %v2917_v59, %v2918_v13  ;;  %v2940_v0 = vmax.f32 %v2938_v1, %v2939_v4  ;;  %4622 = vmatpush1.bf16.msra.mxu0 (!%p5652_p8), %v6212_v16  ;;  %v6242_v61 = vld [vmem:[%s9713_s10 + $0x2c0] ss:$16 sps:$4 sm:$0xff] (!%p5652_p8)   ;;  %v6245_v41 = vld [vmem:[%s9713_s10 + $0x2e4] ss:$16 sps:$4 sm:$0xff] (!%p5652_p8)  }
 0x358   : > { %4623 = vmatprep.subr.bf16.mxu0 (!%p5652_p8), %v6215_v15  ;;  %v6247_v31 = vld [vmem:[%s9713_s10 + $0xe0] ss:$16 sps:$4 sm:$0xff] (!%p5652_p8)   ;;  %v6249_v53 = vld [vmem:[%s9713_s10 + $0x104] ss:$16 sps:$4 sm:$0xff] (!%p5652_p8)  }
 0x359   : > { %v2524_v63 = vcombine.low %v2499_v62, %v2520_v49  ;;  %v2920_v23 = vrot.slane %v2919_v2, 2  ;;  %v2941_v55 = vrot.slane %v2940_v0, 2  ;;  %v6248_v38 = vld [vmem:[%s9713_s10 + $0x2e0] ss:$16 sps:$4 sm:$0xff] (!%p5652_p8)   ;;  %v6251_v19 = vld [vmem:[%s9713_s10 + $0x304] ss:$16 sps:$4 sm:$0xff] (!%p5652_p8)  }
 0x35a   : > { %v6253_v24 = vld [vmem:[%s9713_s10 + $0x100] ss:$16 sps:$4 sm:$0xff] (!%p5652_p8)   ;;  %v6255_v59 = vld [vmem:[%s9713_s10 + $0x124] ss:$16 sps:$4 sm:$0xff] (!%p5652_p8)  }
 0x35b   : > { %v2531_v20 = vrot.slane %v2524_v63, %v7937_v48  ;;  %v2921_v44 = vmax.f32 %v2919_v2, %v2920_v23  ;;  %v2942_v35 = vmax.f32 %v2940_v0, %v2941_v55  ;;  %4624 = vmatpush1.bf16.msra.mxu0 (!%p5652_p8), %v6218_v30  ;;  %v6254_v36 = vld [vmem:[%s9713_s10 + $0x300] ss:$16 sps:$4 sm:$0xff] (!%p5652_p8)   ;;  %v6257_v1 = vld [vmem:[%s9713_s10 + $0x324] ss:$16 sps:$4 sm:$0xff] (!%p5652_p8)   ;;  %v9770_v2 = vld [vmem:[#allocation6_spill] sm:$0xff] (!%p5652_p8) }
 0x35c   : > { %4625 = vmatprep.subr.bf16.mxu0 (!%p5652_p8), %v6221_v54  ;;  %v6259_v10 = vld [vmem:[%s9713_s10 + $0x120] ss:$16 sps:$4 sm:$0xff] (!%p5652_p8)   ;;  %v6261_v13 = vld [vmem:[%s9713_s10 + $0x144] ss:$16 sps:$4 sm:$0xff] (!%p5652_p8)   ;;  %v2986_v0 = vsub.s32 (!%p5652_p8), 3, %v9770_v2 }
 0x35d   : > { %v2538_v39 = vrot.slane %v2531_v20, %v7937_v48  ;;  %v2922_v58 = vrot.slane %v2921_v44, 1  ;;  %v2943_v42 = vrot.slane %v2942_v35, 1  ;;  %v6260_v18 = vld [vmem:[%s9713_s10 + $0x320] ss:$16 sps:$4 sm:$0xff] (!%p5652_p8)   ;;  %v6263_v4 = vld [vmem:[%s9713_s10 + $0x344] ss:$16 sps:$4 sm:$0xff] (!%p5652_p8)  }
 0x35e   : > { %v6265_v62 = vld [vmem:[%s9713_s10 + $0x140] ss:$16 sps:$4 sm:$0xff] (!%p5652_p8)   ;;  %v6267_v63 = vld [vmem:[%s9713_s10 + $0x164] ss:$16 sps:$4 sm:$0xff] (!%p5652_p8)  }
 0x35f   : > { %v2540_v47 = vmax.f32 %v2521_v46, %v2538_v39  ;;  %v2923_v26 = vmax.f32 %v2921_v44, %v2922_v58  ;;  %v2944_v50 = vmax.f32 %v2942_v35, %v2943_v42  ;;  %4626 = vmatpush1.bf16.msra.mxu0 (!%p5652_p8), %v6224_v22  ;;  %v6266_v49 = vld [vmem:[%s9713_s10 + $0x340] ss:$16 sps:$4 sm:$0xff] (!%p5652_p8)   ;;  %v6269_v23 = vld [vmem:[%s9713_s10 + $0x364] ss:$16 sps:$4 sm:$0xff] (!%p5652_p8)  }
 0x360   : > { %4627 = vmatprep.subr.bf16.mxu0 (!%p5652_p8), %v6227_v21  ;;  %v6271_v20 = vld [vmem:[%s9713_s10 + $0x160] ss:$16 sps:$4 sm:$0xff] (!%p5652_p8)   ;;  %v6273_v58 = vld [vmem:[%s9713_s10 + $0x184] ss:$16 sps:$4 sm:$0xff] (!%p5652_p8)  }
 0x361   : > { %2541 = vst.msk [vmem:[#allocation2 + $0x4] sm:$0x3] %vm8105_vm1, %v2540_v47  ;;  %v2948_v33 = vcombine.low %v2923_v26, %v2944_v50  ;;  %v9771_v44 = vld [vmem:[#allocation7_spill] sm:$0xff] (!%p5652_p8) }
 0x362   : > { %v6272_v39 = vld [vmem:[%s9713_s10 + $0x360] ss:$16 sps:$4 sm:$0xff] (!%p5652_p8)   ;;  %v6275_v42 = vld [vmem:[%s9713_s10 + $0x384] ss:$16 sps:$4 sm:$0xff] (!%p5652_p8)  }
 0x363   : > { %v2955_v27 = vrot.slane %v2948_v33, %v7937_v48  ;;  %2969 = sbr.rel (%p5652_p8) target bundleno = 1845 (0x735), region = 92  ;;  %4628 = vmatpush1.bf16.msra.mxu0 (!%p5652_p8), %v6230_v37  ;;  %v6277_v50 = vld [vmem:[%s9713_s10 + $0x180] ss:$16 sps:$4 sm:$0xff] (!%p5652_p8)   ;;  %v6285_v11 = vld [vmem:[%s9713_s10 + $0x1c4] ss:$16 sps:$4 sm:$0xff] (!%p5652_p8)  }
 0x364   : > { %4629 = vmatprep.subr.bf16.mxu0 (!%p5652_p8), %v6233_v28  ;;  %v6278_v33 = vld [vmem:[%s9713_s10 + $0x380] ss:$16 sps:$4 sm:$0xff] (!%p5652_p8)   ;;  %v6287_v60 = vld [vmem:[%s9713_s10 + $0x3c4] ss:$16 sps:$4 sm:$0xff] (!%p5652_p8)   ;;  %v6300_v37 = vld [vmem:[%s9713_s10 + $0x8] ss:$16 sps:$4 sm:$0xff] (!%p5652_p8)  }
 0x365   : > { %v2962_v8 = vrot.slane %v2955_v27, %v7937_v48  ;;  %v6205_v48 = vld [vmem:[%s9713_s10] ss:$16 sps:$4 sm:$0xff] (!%p5652_p8)   ;;  %v6279_v27 = vld [vmem:[%s9713_s10 + $0x1a4] ss:$16 sps:$4 sm:$0xff] (!%p5652_p8)   ;;  %v6308_v28 = vld [vmem:[%s9713_s10 + $0x2c] ss:$16 sps:$4 sm:$0xff] (!%p5652_p8)  }
 0x366   : > { %4579 = vmatpush1.bf16.msra.mxu1 (!%p5652_p8), %v6205_v48  ;;  %v6289_v48 = vld [vmem:[%s9713_s10 + $0x1c0] ss:$16 sps:$4 sm:$0xff] (!%p5652_p8)   ;;  %v6293_v6 = vld [vmem:[%s9713_s10 + $0x3e4] ss:$16 sps:$4 sm:$0xff] (!%p5652_p8)  }
 0x367   : > { %v2964_v12 = vmax.f32 %v2945_v57, %v2962_v8  ;;  %4580 = vmatprep.subr.bf16.mxu1 (!%p5652_p8), %v6207_v51  ;;  %4630 = vmatpush1.bf16.msra.mxu0 (!%p5652_p8), %v6236_v17  ;;  %v6281_v57 = vld [vmem:[%s9713_s10 + $0x3a4] ss:$16 sps:$4 sm:$0xff] (!%p5652_p8)   ;;  %v6283_v8 = vld [vmem:[%s9713_s10 + $0x1a0] ss:$16 sps:$4 sm:$0xff] (!%p5652_p8)  }
 0x368   : > { %4631 = vmatprep.subr.bf16.mxu0 (!%p5652_p8), %v6239_v25  ;;  %v6290_v52 = vld [vmem:[%s9713_s10 + $0x3c0] ss:$16 sps:$4 sm:$0xff] (!%p5652_p8)   ;;  %v6291_v51 = vld [vmem:[%s9713_s10 + $0x1e4] ss:$16 sps:$4 sm:$0xff] (!%p5652_p8)  }
 0x369   : > { %2965 = vst.msk [vmem:[#allocation2 + $0x6] sm:$0x3] %vm8105_vm1, %v2964_v12  ;;  %v6284_v12 = vld [vmem:[%s9713_s10 + $0x3a0] ss:$16 sps:$4 sm:$0xff] (!%p5652_p8)   ;;  %v6299_v54 = vld [vmem:[%s9713_s10 + $0x404] ss:$16 sps:$4 sm:$0xff] (!%p5652_p8)  }
 0x36a   : > { %4581 = vmatpush1.bf16.msra.mxu1 %v6211_v3  ;;  %v2994_v3 = vsub.s32 5, %v9770_v2  ;;  %v6295_v16 = vld [vmem:[%s9713_s10 + $0x1e0] ss:$16 sps:$4 sm:$0xff]   ;;  %v6311_v25 = vld [vmem:[%s9713_s10 + $0x444] ss:$16 sps:$4 sm:$0xff]  }
 0x36b   : > { %4582 = vmatprep.subr.bf16.mxu1 %v6213_v56  ;;  %4632 = vmatpush1.bf16.msra.mxu0 %v6242_v61  ;;  %v9772_v56 = vld [vmem:[#allocation8_spill] sm:$0xff]  ;;  %v6297_v21 = vld [vmem:[%s9713_s10 + $0x400] ss:$16 sps:$4 sm:$0xff]  }
 0x36c   : > { %4633 = vmatprep.subr.bf16.mxu0 %v6245_v41  ;;  %v6303_v17 = vld [vmem:[%s9713_s10 + $0x420] ss:$16 sps:$4 sm:$0xff]   ;;  %v6317_v41 = vld [vmem:[%s9713_s10 + $0x464] ss:$16 sps:$4 sm:$0xff]  }
 0x36d   : > { %v6309_v61 = vld [vmem:[%s9713_s10 + $0x440] ss:$16 sps:$4 sm:$0xff]  }
 0x36e   : > { %4583 = vmatpush1.bf16.msra.mxu1 %v6217_v7  ;;  %v9773_v7 = vld [vmem:[#allocation9_spill] sm:$0xff] }
 0x36f   : > { %4584 = vmatprep.subr.bf16.mxu1 %v6219_v9  ;;  %4634 = vmatpush1.bf16.msra.mxu0 %v6248_v38  ;;  %v6296_v9 = vld [vmem:[%s9713_s10 + $0x3e0] ss:$16 sps:$4 sm:$0xff]  }
 0x370   : > { %4635 = vmatprep.subr.bf16.mxu0 %v6251_v19  ;;  %v8697_v55 = vld [vmem:[#allocation2] sm:$0xff] }
 0x371   : > { %v2979_v35 = vrot.slane %v8697_v55, %v9771_v44  ;;  %v2987_v46 = vrot.slane %v8697_v55, %v2986_v0  ;;  %v2975_v15 = vrot.slane %v8697_v55, %v9772_v56  ;;  %v2983_v30 = vrot.slane %v8697_v55, %v9773_v7  ;;  %v6315_v38 = vld [vmem:[%s9713_s10 + $0x460] ss:$16 sps:$4 sm:$0xff]   ;;  %v6323_v19 = vld [vmem:[%s9713_s10 + $0x484] ss:$16 sps:$4 sm:$0xff]  }
 0x372   : > { %4585 = vmatpush1.bf16.msra.mxu1 %v6223_v43  ;;  %v6302_v43 = vld [vmem:[%s9713_s10 + $0xc] ss:$16 sps:$4 sm:$0xff]   ;;  %v2995_v22 = vrot.slane %v8697_v55, %v2994_v3  ;;  %v6371_v3 = vld [vmem:[%s9713_s10 + $0x584] ss:$16 sps:$4 sm:$0xff]  }
 0x373   : > { %4586 = vmatprep.subr.bf16.mxu1 %v6225_v40  ;;  %4636 = vmatpush1.bf16.msra.mxu0 %v6254_v36  ;;  %v3013_v47 = vpack.c.bf16 %v2979_v35, %v2979_v35  ;;  %v8716_v26 = vpack.c.bf16 %v2987_v46, %v2987_v46  ;;  %v8773_v40 = vpack.c.bf16 %v2975_v15, %v2975_v15  ;;  %v6321_v36 = vld [vmem:[%s9713_s10 + $0x480] ss:$16 sps:$4 sm:$0xff]   ;;  %v6342_v46 = vld [vmem:[%s9713_s10 + $0xe8] ss:$16 sps:$4 sm:$0xff]  }
 0x374   : > { %4637 = vmatprep.subr.bf16.mxu0 %v6257_v1  ;;  %v6329_v1 = vld [vmem:[%s9713_s10 + $0x4a4] ss:$16 sps:$4 sm:$0xff]   ;;  %v6339_v35 = vld [vmem:[%s9713_s10 + $0x4e0] ss:$16 sps:$4 sm:$0xff]  }
 0x375   : > { %4610 = vmatprep.mubr.bf16.mxu1 %v3013_v47  ;;  %4651 = vmatprep.mubr.bf16.mxu0 %v8716_v26  ;;  %v6369_v15 = vld [vmem:[%s9713_s10 + $0x580] ss:$16 sps:$4 sm:$0xff]  }
 0x376   : > { %4587 = vmatpush1.bf16.msra.mxu1 %v6229_v29  ;;  %v8778_v29 = vpack.c.bf16 %v2983_v30, %v2983_v30  ;;  %v6372_v30 = vld [vmem:[%s9713_s10 + $0x188] ss:$16 sps:$4 sm:$0xff]  }
 0x377   : > { %4588 = vmatprep.subr.bf16.mxu1 %v6231_v34  ;;  %4638 = vmatpush1.bf16.msra.mxu0 %v6260_v18  ;;  %v6305_v34 = vld [vmem:[%s9713_s10 + $0x424] ss:$16 sps:$4 sm:$0xff]   ;;  %v6327_v18 = vld [vmem:[%s9713_s10 + $0x4a0] ss:$16 sps:$4 sm:$0xff]  }
 0x378   : > { %4639 = vmatprep.subr.bf16.mxu0 %v6263_v4  ;;  %v6335_v4 = vld [vmem:[%s9713_s10 + $0x4c4] ss:$16 sps:$4 sm:$0xff]  }
 0x37a   : > { %4589 = vmatpush1.bf16.msra.mxu1 %v6235_v45  ;;  %v8789_v45 = vpack.c.bf16 %v2995_v22, %v2995_v22  ;;  %v6378_v22 = vld [vmem:[%s9713_s10 + $0x1a8] ss:$16 sps:$4 sm:$0xff]  }
 0x37b   : > { %4590 = vmatprep.subr.bf16.mxu1 %v6237_v5  ;;  %4640 = vmatpush1.bf16.msra.mxu0 %v6266_v49  ;;  %v6306_v5 = vld [vmem:[%s9713_s10 + $0x28] ss:$16 sps:$4 sm:$0xff]   ;;  %v6333_v49 = vld [vmem:[%s9713_s10 + $0x4c0] ss:$16 sps:$4 sm:$0xff]  }
 0x37c   : > { %4641 = vmatprep.subr.bf16.mxu0 %v6269_v23  ;;  %v6341_v23 = vld [vmem:[%s9713_s10 + $0x4e4] ss:$16 sps:$4 sm:$0xff]  }
 0x37e   : > { %4591 = vmatpush1.bf16.msra.mxu1 %v6241_v14  ;;  %v6314_v14 = vld [vmem:[%s9713_s10 + $0x4c] ss:$16 sps:$4 sm:$0xff]  }
 0x37f   : > { %4592 = vmatprep.subr.bf16.mxu1 %v6243_v32  ;;  %4642 = vmatpush1.bf16.msra.mxu0 %v6272_v39  ;;  %v6312_v32 = vld [vmem:[%s9713_s10 + $0x48] ss:$16 sps:$4 sm:$0xff]   ;;  %v6347_v39 = vld [vmem:[%s9713_s10 + $0x504] ss:$16 sps:$4 sm:$0xff]  }
 0x380   : > { %4643 = vmatprep.subr.bf16.mxu0 %v6275_v42  ;;  %v6345_v42 = vld [vmem:[%s9713_s10 + $0x500] ss:$16 sps:$4 sm:$0xff]  }
 0x382   : > { %4593 = vmatpush1.bf16.msra.mxu1 %v6247_v31  ;;  %v6320_v31 = vld [vmem:[%s9713_s10 + $0x6c] ss:$16 sps:$4 sm:$0xff]  }
 0x383   : > { %4594 = vmatprep.subr.bf16.mxu1 %v6249_v53  ;;  %4644 = vmatpush1.bf16.msra.mxu0 %v6278_v33  ;;  %v6318_v53 = vld [vmem:[%s9713_s10 + $0x68] ss:$16 sps:$4 sm:$0xff]   ;;  %v6356_v33 = vld [vmem:[%s9713_s10 + $0x12c] ss:$16 sps:$4 sm:$0xff]  }
 0x384   : > { %4645 = vmatprep.subr.bf16.mxu0 %v6281_v57  ;;  %v6354_v57 = vld [vmem:[%s9713_s10 + $0x128] ss:$16 sps:$4 sm:$0xff]  }
 0x386   : > { %4595 = vmatpush1.bf16.msra.mxu1 %v6253_v24  ;;  %v6326_v24 = vld [vmem:[%s9713_s10 + $0x8c] ss:$16 sps:$4 sm:$0xff]  }
 0x387   : > { %4596 = vmatprep.subr.bf16.mxu1 %v6255_v59  ;;  %4646 = vmatpush1.bf16.msra.mxu0 %v6284_v12  ;;  %v6324_v59 = vld [vmem:[%s9713_s10 + $0x88] ss:$16 sps:$4 sm:$0xff]   ;;  %v6362_v12 = vld [vmem:[%s9713_s10 + $0x14c] ss:$16 sps:$4 sm:$0xff]  }
 0x388   : > { %4647 = vmatprep.subr.bf16.mxu0 %v6287_v60  ;;  %v6360_v60 = vld [vmem:[%s9713_s10 + $0x148] ss:$16 sps:$4 sm:$0xff]  }
 0x38a   : > { %4597 = vmatpush1.bf16.msra.mxu1 %v6259_v10  ;;  %v6332_v10 = vld [vmem:[%s9713_s10 + $0xac] ss:$16 sps:$4 sm:$0xff]  }
 0x38b   : > { %4598 = vmatprep.subr.bf16.mxu1 %v6261_v13  ;;  %4648 = vmatpush1.bf16.msra.mxu0 %v6290_v52  ;;  %v6330_v13 = vld [vmem:[%s9713_s10 + $0xa8] ss:$16 sps:$4 sm:$0xff]   ;;  %v6368_v52 = vld [vmem:[%s9713_s10 + $0x16c] ss:$16 sps:$4 sm:$0xff]  }
 0x38c   : > { %4649 = vmatprep.subr.bf16.mxu0 %v6293_v6  ;;  %v6366_v6 = vld [vmem:[%s9713_s10 + $0x168] ss:$16 sps:$4 sm:$0xff]  }
 0x38e   : > { %4599 = vmatpush1.bf16.msra.mxu1 %v6265_v62  ;;  %v6338_v62 = vld [vmem:[%s9713_s10 + $0xcc] ss:$16 sps:$4 sm:$0xff]  }
 0x38f   : > { %4600 = vmatprep.subr.bf16.mxu1 %v6267_v63  ;;  %4650 = vmatpush1.bf16.msra.mxu0 %v6296_v9  ;;  %v6336_v63 = vld [vmem:[%s9713_s10 + $0xc8] ss:$16 sps:$4 sm:$0xff]   ;;  %v6377_v9 = vld [vmem:[%s9713_s10 + $0x5a4] ss:$16 sps:$4 sm:$0xff]  }
 0x390   : > { %4660 = vmatprep.subr.bf16.mxu0 %v6299_v54  ;;  %v6380_v54 = vld [vmem:[%s9713_s10 + $0x1ac] ss:$16 sps:$4 sm:$0xff]  }
 0x392   : > { %4601 = vmatpush1.bf16.msra.mxu1 %v6271_v20  ;;  %4652 = vmatmul.mubr.bf16.vlgmr.msra.gmra.mrb[0].mxu0 %v8778_v29  ;;  %v6344_v20 = vld [vmem:[%s9713_s10 + $0xec] ss:$16 sps:$4 sm:$0xff]  }
 0x393   : > { %4602 = vmatprep.subr.bf16.mxu1 %v6273_v58  ;;  %4661 = vmatpush1.bf16.msra.mxu0 %v6297_v21  ;;  %v6350_v58 = vld [vmem:[%s9713_s10 + $0x10c] ss:$16 sps:$4 sm:$0xff]   ;;  %v6383_v21 = vld [vmem:[%s9713_s10 + $0x5c4] ss:$16 sps:$4 sm:$0xff]  }
 0x394   : > { %4662 = vmatprep.subr.bf16.mxu0 %v6305_v34  ;;  %4692 = vmatprep.mubr.bf16.mxu0 %v8789_v45  ;;  %v6381_v34 = vld [vmem:[%s9713_s10 + $0x5c0] ss:$16 sps:$4 sm:$0xff]  }
 0x396   : > { %4603 = vmatpush1.bf16.msra.mxu1 %v6277_v50  ;;  %v6353_v50 = vld [vmem:[%s9713_s10 + $0x524] ss:$16 sps:$4 sm:$0xff]  }
 0x397   : > { %4604 = vmatprep.subr.bf16.mxu1 %v6279_v27  ;;  %4663 = vmatpush1.bf16.msra.mxu0 %v6303_v17  ;;  %v6351_v27 = vld [vmem:[%s9713_s10 + $0x520] ss:$16 sps:$4 sm:$0xff]   ;;  %v6384_v17 = vld [vmem:[%s9713_s10 + $0x1c8] ss:$16 sps:$4 sm:$0xff]  }
 0x398   : > { %4664 = vmatprep.subr.bf16.mxu0 %v6311_v25  ;;  %v6392_v25 = vld [vmem:[%s9713_s10 + $0x1ec] ss:$16 sps:$4 sm:$0xff]  }
 0x39a   : > { %4605 = vmatpush1.bf16.msra.mxu1 %v6283_v8  ;;  %v6359_v8 = vld [vmem:[%s9713_s10 + $0x544] ss:$16 sps:$4 sm:$0xff]  }
 0x39b   : > { %4606 = vmatprep.subr.bf16.mxu1 %v6285_v11  ;;  %4665 = vmatpush1.bf16.msra.mxu0 %v6309_v61  ;;  %v6357_v11 = vld [vmem:[%s9713_s10 + $0x540] ss:$16 sps:$4 sm:$0xff]  }
 0x39c   : > { %4666 = vmatprep.subr.bf16.mxu0 %v6317_v41  ;;  %v6387_v61 = vld [vmem:[%s9713_s10 + $0x5e0] ss:$16 sps:$4 sm:$0xff]   ;;  %v6390_v41 = vld [vmem:[%s9713_s10 + $0x1e8] ss:$16 sps:$4 sm:$0xff]  }
 0x39e   : > { %4607 = vmatpush1.bf16.msra.mxu1 %v6289_v48  ;;  %v6365_v48 = vld [vmem:[%s9713_s10 + $0x564] ss:$16 sps:$4 sm:$0xff]  }
 0x39f   : > { %4608 = vmatprep.subr.bf16.mxu1 %v6291_v51  ;;  %4667 = vmatpush1.bf16.msra.mxu0 %v6315_v38  ;;  %v6363_v51 = vld [vmem:[%s9713_s10 + $0x560] ss:$16 sps:$4 sm:$0xff]   ;;  %v6398_v38 = vld [vmem:[%s9713_s10 + $0x20c] ss:$16 sps:$4 sm:$0xff]  }
 0x3a0   : > { %4668 = vmatprep.subr.bf16.mxu0 %v6323_v19  ;;  %v6393_v19 = vld [vmem:[%s9713_s10 + $0x600] ss:$16 sps:$4 sm:$0xff]  }
 0x3a2   : > { %4609 = vmatpush1.bf16.msra.mxu1 %v6295_v16  ;;  %v6374_v16 = vld [vmem:[%s9713_s10 + $0x18c] ss:$16 sps:$4 sm:$0xff]  }
 0x3a3   : > { %4742 = vmatprep.subr.bf16.mxu1 %v6302_v43  ;;  %4669 = vmatpush1.bf16.msra.mxu0 %v6321_v36  ;;  %v6375_v43 = vld [vmem:[%s9713_s10 + $0x5a0] ss:$16 sps:$4 sm:$0xff]   ;;  %v6396_v36 = vld [vmem:[%s9713_s10 + $0x208] ss:$16 sps:$4 sm:$0xff]  }
 0x3a4   : > { %4670 = vmatprep.subr.bf16.mxu0 %v6329_v1 }
 0x3a5   : > { %4611 = vmatmul.mubr.bf16.vlgmr.msra.gmra.mrb[0].mxu1 %v8773_v40 }
 0x3a6   : > { %4743 = vmatpush1.bf16.msra.mxu1 %v6300_v37  ;;  %4774 = vmatprep.mubr.bf16.mxu1 %v3013_v47  ;;  %v6348_v47 = vld [vmem:[%s9713_s10 + $0x108] ss:$16 sps:$4 sm:$0xff]   ;;  %v6386_v37 = vld [vmem:[%s9713_s10 + $0x1cc] ss:$16 sps:$4 sm:$0xff]  }
 0x3a7   : > { %4744 = vmatprep.subr.bf16.mxu1 %v6308_v28  ;;  %4671 = vmatpush1.bf16.msra.mxu0 %v6327_v18  ;;  %v2990_v28 = vsub.s32 4, %v9770_v2  ;;  %v6402_v18 = vld [vmem:[%s9713_s10 + $0x228] ss:$16 sps:$4 sm:$0xff]  }
 0x3a8   : > { %4672 = vmatprep.subr.bf16.mxu0 %v6335_v4  ;;  %v6405_v4 = vld [vmem:[%s9713_s10 + $0x640] ss:$16 sps:$4 sm:$0xff]  }
 0x3aa   : > { %4745 = vmatpush1.bf16.msra.mxu1 %v6306_v5  ;;  %v6389_v5 = vld [vmem:[%s9713_s10 + $0x5e4] ss:$16 sps:$4 sm:$0xff]  }
 0x3ab   : > { %4746 = vmatprep.subr.bf16.mxu1 %v6314_v14  ;;  %4673 = vmatpush1.bf16.msra.mxu0 %v6333_v49  ;;  %v3002_v14 = vsub.s32 7, %v9770_v2  ;;  %v6413_v49 = vld [vmem:[%s9713_s10 + $0x664] ss:$16 sps:$4 sm:$0xff]  }
 0x3ac   : > { %4674 = vmatprep.subr.bf16.mxu0 %v6341_v23  ;;  %v6414_v23 = vld [vmem:[%s9713_s10 + $0x268] ss:$16 sps:$4 sm:$0xff]  }
 0x3ae   : > { %4747 = vmatpush1.bf16.msra.mxu1 %v6312_v32  ;;  %v2991_v32 = vrot.slane %v8697_v55, %v2990_v28  ;;  %v6459_v28 = vld [vmem:[%s9713_s10 + $0x760] ss:$16 sps:$4 sm:$0xff]  }
 0x3af   : > { %4748 = vmatprep.subr.bf16.mxu1 %v6320_v31  ;;  %4675 = vmatpush1.bf16.msra.mxu0 %v6339_v35  ;;  %v6395_v31 = vld [vmem:[%s9713_s10 + $0x604] ss:$16 sps:$4 sm:$0xff]   ;;  %v6422_v35 = vld [vmem:[%s9713_s10 + $0x28c] ss:$16 sps:$4 sm:$0xff]  }
 0x3b0   : > { %4676 = vmatprep.subr.bf16.mxu0 %v6347_v39  ;;  %v6420_v39 = vld [vmem:[%s9713_s10 + $0x288] ss:$16 sps:$4 sm:$0xff]  }
 0x3b2   : > { %4749 = vmatpush1.bf16.msra.mxu1 %v6318_v53  ;;  %v3003_v53 = vrot.slane %v8697_v55, %v3002_v14  ;;  %v6404_v55 = vld [vmem:[%s9713_s10 + $0x22c] ss:$16 sps:$4 sm:$0xff]   ;;  %v6465_v14 = vld [vmem:[%s9713_s10 + $0x780] ss:$16 sps:$4 sm:$0xff]  }
 0x3b3   : > { %4750 = vmatprep.subr.bf16.mxu1 %v6326_v24  ;;  %4677 = vmatpush1.bf16.msra.mxu0 %v6345_v42  ;;  %v8981_v24 = vpack.c.bf16 %v2991_v32, %v2991_v32  ;;  %v6428_v42 = vld [vmem:[%s9713_s10 + $0x2ac] ss:$16 sps:$4 sm:$0xff]   ;;  %v6473_v32 = vld [vmem:[%s9713_s10 + $0x7a4] ss:$16 sps:$4 sm:$0xff]  }
 0x3b4   : > { %4678 = vmatprep.subr.bf16.mxu0 %v6353_v50  ;;  %v8992_v1 = vpack.c.bf16 %v3003_v53, %v3003_v53  ;;  %v6426_v50 = vld [vmem:[%s9713_s10 + $0x2a8] ss:$16 sps:$4 sm:$0xff]   ;;  %v6479_v53 = vld [vmem:[%s9713_s10 + $0x7c4] ss:$16 sps:$4 sm:$0xff]  }
 0x3b6   : > { %4751 = vmatpush1.bf16.msra.mxu1 %v6324_v59  ;;  %v6401_v59 = vld [vmem:[%s9713_s10 + $0x624] ss:$16 sps:$4 sm:$0xff]  }
 0x3b7   : > { %4752 = vmatprep.subr.bf16.mxu1 %v6332_v10  ;;  %4679 = vmatpush1.bf16.msra.mxu0 %v6351_v27  ;;  %v6399_v10 = vld [vmem:[%s9713_s10 + $0x620] ss:$16 sps:$4 sm:$0xff]   ;;  %v6434_v27 = vld [vmem:[%s9713_s10 + $0x2cc] ss:$16 sps:$4 sm:$0xff]  }
 0x3b8   : > { %4680 = vmatprep.subr.bf16.mxu0 %v6359_v8  ;;  %v6432_v8 = vld [vmem:[%s9713_s10 + $0x2c8] ss:$16 sps:$4 sm:$0xff]  }
 0x3ba   : > { %4753 = vmatpush1.bf16.msra.mxu1 %v6330_v13  ;;  %v6407_v13 = vld [vmem:[%s9713_s10 + $0x644] ss:$16 sps:$4 sm:$0xff]  }
 0x3bb   : > { %4754 = vmatprep.subr.bf16.mxu1 %v6338_v62  ;;  %4681 = vmatpush1.bf16.msra.mxu0 %v6357_v11  ;;  %v6408_v62 = vld [vmem:[%s9713_s10 + $0x248] ss:$16 sps:$4 sm:$0xff]   ;;  %v6440_v11 = vld [vmem:[%s9713_s10 + $0x2ec] ss:$16 sps:$4 sm:$0xff]  }
 0x3bc   : > { %4682 = vmatprep.subr.bf16.mxu0 %v6365_v48  ;;  %v6438_v48 = vld [vmem:[%s9713_s10 + $0x2e8] ss:$16 sps:$4 sm:$0xff]  }
 0x3be   : > { %4755 = vmatpush1.bf16.msra.mxu1 %v6336_v63  ;;  %v6411_v63 = vld [vmem:[%s9713_s10 + $0x660] ss:$16 sps:$4 sm:$0xff]  }
 0x3bf   : > { %4756 = vmatprep.subr.bf16.mxu1 %v6344_v20  ;;  %4683 = vmatpush1.bf16.msra.mxu0 %v6363_v51  ;;  %v6419_v20 = vld [vmem:[%s9713_s10 + $0x684] ss:$16 sps:$4 sm:$0xff]   ;;  %v6446_v51 = vld [vmem:[%s9713_s10 + $0x30c] ss:$16 sps:$4 sm:$0xff]  }
 0x3c0   : > { %4684 = vmatprep.subr.bf16.mxu0 %v6371_v3  ;;  %v6444_v3 = vld [vmem:[%s9713_s10 + $0x308] ss:$16 sps:$4 sm:$0xff]  }
 0x3c2   : > { %4757 = vmatpush1.bf16.msra.mxu1 %v6342_v46  ;;  %v6417_v46 = vld [vmem:[%s9713_s10 + $0x680] ss:$16 sps:$4 sm:$0xff]  }
 0x3c3   : > { %4758 = vmatprep.subr.bf16.mxu1 %v6350_v58  ;;  %4685 = vmatpush1.bf16.msra.mxu0 %v6369_v15  ;;  %v6425_v58 = vld [vmem:[%s9713_s10 + $0x6a4] ss:$16 sps:$4 sm:$0xff]   ;;  %v6452_v15 = vld [vmem:[%s9713_s10 + $0x32c] ss:$16 sps:$4 sm:$0xff]  }
 0x3c4   : > { %4686 = vmatprep.subr.bf16.mxu0 %v6377_v9  ;;  %v6450_v9 = vld [vmem:[%s9713_s10 + $0x328] ss:$16 sps:$4 sm:$0xff]  }
 0x3c6   : > { %4759 = vmatpush1.bf16.msra.mxu1 %v6348_v47  ;;  %v6423_v47 = vld [vmem:[%s9713_s10 + $0x6a0] ss:$16 sps:$4 sm:$0xff]  }
 0x3c7   : > { %4760 = vmatprep.subr.bf16.mxu1 %v6356_v33  ;;  %4687 = vmatpush1.bf16.msra.mxu0 %v6375_v43  ;;  %v6431_v33 = vld [vmem:[%s9713_s10 + $0x6c4] ss:$16 sps:$4 sm:$0xff]   ;;  %v6458_v43 = vld [vmem:[%s9713_s10 + $0x34c] ss:$16 sps:$4 sm:$0xff]  }
 0x3c8   : > { %4688 = vmatprep.subr.bf16.mxu0 %v6383_v21  ;;  %v6456_v21 = vld [vmem:[%s9713_s10 + $0x348] ss:$16 sps:$4 sm:$0xff]  }
 0x3ca   : > { %4761 = vmatpush1.bf16.msra.mxu1 %v6354_v57  ;;  %v6429_v57 = vld [vmem:[%s9713_s10 + $0x6c0] ss:$16 sps:$4 sm:$0xff]  }
 0x3cb   : > { %4762 = vmatprep.subr.bf16.mxu1 %v6362_v12  ;;  %4689 = vmatpush1.bf16.msra.mxu0 %v6381_v34  ;;  %v6437_v12 = vld [vmem:[%s9713_s10 + $0x6e4] ss:$16 sps:$4 sm:$0xff]   ;;  %v6464_v34 = vld [vmem:[%s9713_s10 + $0x36c] ss:$16 sps:$4 sm:$0xff]  }
 0x3cc   : > { %4690 = vmatprep.subr.bf16.mxu0 %v6389_v5  ;;  %v6467_v5 = vld [vmem:[%s9713_s10 + $0x784] ss:$16 sps:$4 sm:$0xff]  }
 0x3ce   : > { %4763 = vmatpush1.bf16.msra.mxu1 %v6360_v60  ;;  %v6435_v60 = vld [vmem:[%s9713_s10 + $0x6e0] ss:$16 sps:$4 sm:$0xff]  }
 0x3cf   : > { %4764 = vmatprep.subr.bf16.mxu1 %v6368_v52  ;;  %4691 = vmatpush1.bf16.msra.mxu0 %v6387_v61  ;;  %v6443_v52 = vld [vmem:[%s9713_s10 + $0x704] ss:$16 sps:$4 sm:$0xff]   ;;  %v6468_v61 = vld [vmem:[%s9713_s10 + $0x388] ss:$16 sps:$4 sm:$0xff]  }
 0x3d0   : > { %4701 = vmatprep.subr.bf16.mxu0 %v6395_v31  ;;  %v6471_v31 = vld [vmem:[%s9713_s10 + $0x7a0] ss:$16 sps:$4 sm:$0xff]  }
 0x3d2   : > { %4765 = vmatpush1.bf16.msra.mxu1 %v6366_v6  ;;  %4693 = vmatmul.mubr.bf16.vlgmr.msra.gmra.mrb[0].mxu0 %v8981_v24  ;;  %v6441_v6 = vld [vmem:[%s9713_s10 + $0x700] ss:$16 sps:$4 sm:$0xff]  }
 0x3d3   : > { %4766 = vmatprep.subr.bf16.mxu1 %v6374_v16  ;;  %4702 = vmatpush1.bf16.msra.mxu0 %v6393_v19  ;;  %v6449_v16 = vld [vmem:[%s9713_s10 + $0x724] ss:$16 sps:$4 sm:$0xff]   ;;  %v6482_v19 = vld [vmem:[%s9713_s10 + $0x3cc] ss:$16 sps:$4 sm:$0xff]  }
 0x3d4   : > { %4703 = vmatprep.subr.bf16.mxu0 %v6401_v59  ;;  %4733 = vmatprep.mubr.bf16.mxu0 %v8992_v1  ;;  %v6480_v59 = vld [vmem:[%s9713_s10 + $0x3c8] ss:$16 sps:$4 sm:$0xff]  }
 0x3d6   : > { %4767 = vmatpush1.bf16.msra.mxu1 %v6372_v30  ;;  %v6447_v30 = vld [vmem:[%s9713_s10 + $0x720] ss:$16 sps:$4 sm:$0xff]  }
 0x3d7   : > { %4768 = vmatprep.subr.bf16.mxu1 %v6380_v54  ;;  %4704 = vmatpush1.bf16.msra.mxu0 %v6399_v10  ;;  %v6455_v54 = vld [vmem:[%s9713_s10 + $0x744] ss:$16 sps:$4 sm:$0xff]  }
 0x3d8   : > { %4705 = vmatprep.subr.bf16.mxu0 %v6407_v13  ;;  %v6485_v10 = vld [vmem:[%s9713_s10 + $0x7e4] ss:$16 sps:$4 sm:$0xff]   ;;  %v6483_v13 = vld [vmem:[%s9713_s10 + $0x7e0] ss:$16 sps:$4 sm:$0xff]  }
 0x3da   : > { %4769 = vmatpush1.bf16.msra.mxu1 %v6378_v22  ;;  %v6453_v22 = vld [vmem:[%s9713_s10 + $0x740] ss:$16 sps:$4 sm:$0xff]  }
 0x3db   : > { %4770 = vmatprep.subr.bf16.mxu1 %v6386_v37  ;;  %4706 = vmatpush1.bf16.msra.mxu0 %v6405_v4  ;;  %v6461_v37 = vld [vmem:[%s9713_s10 + $0x764] ss:$16 sps:$4 sm:$0xff]  }
 0x3dc   : > { %4707 = vmatprep.subr.bf16.mxu0 %v6413_v49  ;;  %v6491_v49 = vld [vmem:[%s9713_s10 + $0x40c] ss:$16 sps:$4 sm:$0xff]  }
 0x3de   : > { %4771 = vmatpush1.bf16.msra.mxu1 %v6384_v17  ;;  %v6462_v17 = vld [vmem:[%s9713_s10 + $0x368] ss:$16 sps:$4 sm:$0xff]  }
 0x3df   : > { %4772 = vmatprep.subr.bf16.mxu1 %v6392_v25  ;;  %4708 = vmatpush1.bf16.msra.mxu0 %v6411_v63  ;;  %v6470_v25 = vld [vmem:[%s9713_s10 + $0x38c] ss:$16 sps:$4 sm:$0xff]   ;;  %v6489_v63 = vld [vmem:[%s9713_s10 + $0x408] ss:$16 sps:$4 sm:$0xff]  }
 0x3e0   : > { %4709 = vmatprep.subr.bf16.mxu0 %v6419_v20  ;;  %v6585_v20 = vld [vmem:[%s9715_s12] ss:$8 sps:$4 sm:$0xff]  }
 0x3e2   : > { %4773 = vmatpush1.bf16.msra.mxu1 %v6390_v41  ;;  %v6476_v41 = vld [vmem:[%s9713_s10 + $0x3ac] ss:$16 sps:$4 sm:$0xff]  }
 0x3e3   : > { %4783 = vmatprep.subr.bf16.mxu1 %v6398_v38  ;;  %4710 = vmatpush1.bf16.msra.mxu0 %v6417_v46  ;;  %v6474_v38 = vld [vmem:[%s9713_s10 + $0x3a8] ss:$16 sps:$4 sm:$0xff]  }
 0x3e4   : > { %4711 = vmatprep.subr.bf16.mxu0 %v6425_v58  ;;  %v6492_v46 = vld [vmem:[%s9713_s10 + $0x428] ss:$16 sps:$4 sm:$0xff]  }
 0x3e5   : > { %4775 = vmatmul.mubr.bf16.vlgmr.msra.gmra.mrb[4].mxu1 %v8773_v40  ;;  %v6410_v40 = vld [vmem:[%s9713_s10 + $0x24c] ss:$16 sps:$4 sm:$0xff]   ;;  %v6588_v58 = vld [vmem:[%s9715_s12 + $0x10] ss:$8 sps:$4 sm:$0xff]  }
 0x3e6   : > { %4784 = vmatpush1.bf16.msra.mxu1 %v6396_v36  ;;  %4815 = vmatprep.mubr.bf16.mxu1 %v8716_v26  ;;  %v6416_v26 = vld [vmem:[%s9713_s10 + $0x26c] ss:$16 sps:$4 sm:$0xff]   ;;  %v6477_v36 = vld [vmem:[%s9713_s10 + $0x7c0] ss:$16 sps:$4 sm:$0xff]  }
 0x3e7   : > { %4785 = vmatprep.subr.bf16.mxu1 %v6404_v55  ;;  %4712 = vmatpush1.bf16.msra.mxu0 %v6423_v47  ;;  %v2998_v55 = vsub.s32 6, %v9770_v2  ;;  %v6500_v47 = vld [vmem:[%s9713_s10 + $0x46c] ss:$16 sps:$4 sm:$0xff]  }
 0x3e8   : > { %4713 = vmatprep.subr.bf16.mxu0 %v6431_v33  ;;  %v6596_v33 = vld [vmem:[%s9715_s12 + $0x34] ss:$8 sps:$4 sm:$0xff]   ;;  %v5407_v2 = vld [vmem:[%s9717_s14 + $0x68] sm:$0xff] }
 0x3ea   : > { %4786 = vmatpush1.bf16.msra.mxu1 %v6402_v18  ;;  %v6488_v18 = vld [vmem:[%s9713_s10 + $0x3ec] ss:$16 sps:$4 sm:$0xff]  }
 0x3eb   : > { %4787 = vmatprep.subr.bf16.mxu1 %v6410_v40  ;;  %4714 = vmatpush1.bf16.msra.mxu0 %v6429_v57  ;;  %v6681_v40 = vld [vmem:[#allocation2] sm:$0xff]  ;;  %v6503_v57 = vld [vmem:[%s9713_s10 + $0x48c] ss:$16 sps:$4 sm:$0xff]  }
 0x3ec   : > { %4715 = vmatprep.subr.bf16.mxu0 %v6437_v12  ;;  %v2999_v4 = vrot.slane %v6681_v40, %v2998_v55  ;;  %v6599_v12 = vld [vmem:[%s9715_s12 + $0x44] ss:$8 sps:$4 sm:$0xff]   ;;  %v6626_v40 = vld [vmem:[%s9715_s12 + $0xd4] ss:$8 sps:$4 sm:$0xff]  }
 0x3ed   : > { %v6623_v55 = vld [vmem:[%s9715_s12 + $0xc4] ss:$8 sps:$4 sm:$0xff]  }
 0x3ee   : > { %4788 = vmatpush1.bf16.msra.mxu1 %v6408_v62  ;;  %v6486_v62 = vld [vmem:[%s9713_s10 + $0x3e8] ss:$16 sps:$4 sm:$0xff]  }
 0x3ef   : > { %4789 = vmatprep.subr.bf16.mxu1 %v6416_v26  ;;  %4716 = vmatpush1.bf16.msra.mxu0 %v6435_v60  ;;  %v9176_v26 = vpack.c.bf16 %v2999_v4, %v2999_v4  ;;  %v6506_v60 = vld [vmem:[%s9713_s10 + $0x4ac] ss:$16 sps:$4 sm:$0xff]   ;;  %v6528_v4 = vld [vmem:[%s9713_s10 + $0x5a8] ss:$16 sps:$4 sm:$0xff]  }
 0x3f0   : > { %4717 = vmatprep.subr.bf16.mxu0 %v6443_v52  ;;  %v6602_v52 = vld [vmem:[%s9715_s12 + $0x54] ss:$8 sps:$4 sm:$0xff]  }
 0x3f2   : > { %4790 = vmatpush1.bf16.msra.mxu1 %v6414_v23  ;;  %v6494_v23 = vld [vmem:[%s9713_s10 + $0x42c] ss:$16 sps:$4 sm:$0xff]  }
 0x3f3   : > { %4791 = vmatprep.subr.bf16.mxu1 %v6422_v35  ;;  %4718 = vmatpush1.bf16.msra.mxu0 %v6441_v6  ;;  %v6587_v35 = vld [vmem:[%s9715_s12 + $0x4] ss:$8 sps:$4 sm:$0xff]  }
 0x3f4   : > { %4719 = vmatprep.subr.bf16.mxu0 %v6449_v16  ;;  %v6509_v6 = vld [vmem:[%s9713_s10 + $0x4cc] ss:$16 sps:$4 sm:$0xff]  }
 0x3f5   : > { %v6605_v16 = vld [vmem:[%s9715_s12 + $0x64] ss:$8 sps:$4 sm:$0xff]  }
 0x3f6   : > { %4792 = vmatpush1.bf16.msra.mxu1 %v6420_v39  ;;  %v6590_v39 = vld [vmem:[%s9715_s12 + $0x14] ss:$8 sps:$4 sm:$0xff]  }
 0x3f7   : > { %4793 = vmatprep.subr.bf16.mxu1 %v6428_v42  ;;  %4720 = vmatpush1.bf16.msra.mxu0 %v6447_v30  ;;  %v6495_v42 = vld [vmem:[%s9713_s10 + $0x448] ss:$16 sps:$4 sm:$0xff]   ;;  %v6512_v30 = vld [vmem:[%s9713_s10 + $0x4ec] ss:$16 sps:$4 sm:$0xff]  }
 0x3f8   : > { %4721 = vmatprep.subr.bf16.mxu0 %v6455_v54  ;;  %v6608_v54 = vld [vmem:[%s9715_s12 + $0x74] ss:$8 sps:$4 sm:$0xff]  }
 0x3fa   : > { %4794 = vmatpush1.bf16.msra.mxu1 %v6426_v50  ;;  %v6591_v50 = vld [vmem:[%s9715_s12 + $0x20] ss:$8 sps:$4 sm:$0xff]  }
 0x3fb   : > { %4795 = vmatprep.subr.bf16.mxu1 %v6434_v27  ;;  %4722 = vmatpush1.bf16.msra.mxu0 %v6453_v22  ;;  %v6498_v27 = vld [vmem:[%s9713_s10 + $0x468] ss:$16 sps:$4 sm:$0xff]   ;;  %v6515_v22 = vld [vmem:[%s9713_s10 + $0x50c] ss:$16 sps:$4 sm:$0xff]  }
 0x3fc   : > { %4723 = vmatprep.subr.bf16.mxu0 %v6461_v37  ;;  %v6611_v37 = vld [vmem:[%s9715_s12 + $0x84] ss:$8 sps:$4 sm:$0xff]  }
 0x3fe   : > { %4796 = vmatpush1.bf16.msra.mxu1 %v6432_v8  ;;  %v6594_v8 = vld [vmem:[%s9715_s12 + $0x30] ss:$8 sps:$4 sm:$0xff]  }
 0x3ff   : > { %4797 = vmatprep.subr.bf16.mxu1 %v6440_v11  ;;  %4724 = vmatpush1.bf16.msra.mxu0 %v6459_v28  ;;  %v6501_v11 = vld [vmem:[%s9713_s10 + $0x488] ss:$16 sps:$4 sm:$0xff]   ;;  %v6518_v28 = vld [vmem:[%s9713_s10 + $0x52c] ss:$16 sps:$4 sm:$0xff]  }
 0x400   : > { %4725 = vmatprep.subr.bf16.mxu0 %v6467_v5  ;;  %v6614_v5 = vld [vmem:[%s9715_s12 + $0x94] ss:$8 sps:$4 sm:$0xff]  }
 0x402   : > { %4798 = vmatpush1.bf16.msra.mxu1 %v6438_v48  ;;  %v6597_v48 = vld [vmem:[%s9715_s12 + $0x40] ss:$8 sps:$4 sm:$0xff]  }
 0x403   : > { %4799 = vmatprep.subr.bf16.mxu1 %v6446_v51  ;;  %4726 = vmatpush1.bf16.msra.mxu0 %v6465_v14  ;;  %v6504_v51 = vld [vmem:[%s9713_s10 + $0x4a8] ss:$16 sps:$4 sm:$0xff]   ;;  %v6521_v14 = vld [vmem:[%s9713_s10 + $0x54c] ss:$16 sps:$4 sm:$0xff]  }
 0x404   : > { %4727 = vmatprep.subr.bf16.mxu0 %v6473_v32  ;;  %v6617_v32 = vld [vmem:[%s9715_s12 + $0xa4] ss:$8 sps:$4 sm:$0xff]  }
 0x406   : > { %4800 = vmatpush1.bf16.msra.mxu1 %v6444_v3  ;;  %v6600_v3 = vld [vmem:[%s9715_s12 + $0x50] ss:$8 sps:$4 sm:$0xff]  }
 0x407   : > { %4801 = vmatprep.subr.bf16.mxu1 %v6452_v15  ;;  %4728 = vmatpush1.bf16.msra.mxu0 %v6471_v31  ;;  %v6507_v15 = vld [vmem:[%s9713_s10 + $0x4c8] ss:$16 sps:$4 sm:$0xff]   ;;  %v6524_v31 = vld [vmem:[%s9713_s10 + $0x56c] ss:$16 sps:$4 sm:$0xff]  }
 0x408   : > { %4729 = vmatprep.subr.bf16.mxu0 %v6479_v53  ;;  %v6620_v53 = vld [vmem:[%s9715_s12 + $0xb4] ss:$8 sps:$4 sm:$0xff]  }
 0x40a   : > { %4802 = vmatpush1.bf16.msra.mxu1 %v6450_v9  ;;  %v6603_v9 = vld [vmem:[%s9715_s12 + $0x60] ss:$8 sps:$4 sm:$0xff]  }
 0x40b   : > { %4803 = vmatprep.subr.bf16.mxu1 %v6458_v43  ;;  %4730 = vmatpush1.bf16.msra.mxu0 %v6477_v36  ;;  %v6510_v43 = vld [vmem:[%s9713_s10 + $0x4e8] ss:$16 sps:$4 sm:$0xff]   ;;  %v6527_v36 = vld [vmem:[%s9713_s10 + $0x58c] ss:$16 sps:$4 sm:$0xff]  }
 0x40c   : > { %4731 = vmatprep.subr.bf16.mxu0 %v6485_v10  ;;  %v6525_v10 = vld [vmem:[%s9713_s10 + $0x588] ss:$16 sps:$4 sm:$0xff]  }
 0x40e   : > { %4804 = vmatpush1.bf16.msra.mxu1 %v6456_v21  ;;  %v6606_v21 = vld [vmem:[%s9715_s12 + $0x70] ss:$8 sps:$4 sm:$0xff]  }
 0x40f   : > { %4805 = vmatprep.subr.bf16.mxu1 %v6464_v34  ;;  %4732 = vmatpush1.bf16.msra.mxu0 %v6483_v13  ;;  %v6513_v34 = vld [vmem:[%s9713_s10 + $0x508] ss:$16 sps:$4 sm:$0xff]  }
 0x410   : > { %5310 = vmatprep.subr.bf16.mxu0 %v6587_v35  ;;  %v6621_v13 = vld [vmem:[%s9715_s12 + $0xc0] ss:$8 sps:$4 sm:$0xff]   ;;  %v6539_v35 = vld [vmem:[%s9713_s10 + $0x60c] ss:$16 sps:$4 sm:$0xff]  }
 0x412   : > { %4806 = vmatpush1.bf16.msra.mxu1 %v6462_v17  ;;  %4734 = vmatmul.mubr.bf16.vlgmr.msra.gmra.mrb[0].mxu0 %v9176_v26  ;;  %v6609_v17 = vld [vmem:[%s9715_s12 + $0x80] ss:$8 sps:$4 sm:$0xff]  }
 0x413   : > { %4807 = vmatprep.subr.bf16.mxu1 %v6470_v25  ;;  %5311 = vmatpush1.bf16.msra.mxu0 %v6585_v20  ;;  %v6516_v25 = vld [vmem:[%s9713_s10 + $0x528] ss:$16 sps:$4 sm:$0xff]  }
 0x414   : > { %5312 = vmatprep.subr.bf16.mxu0 %v6590_v39  ;;  %v6534_v20 = vld [vmem:[%s9713_s10 + $0x5e8] ss:$16 sps:$4 sm:$0xff]   ;;  %v6542_v39 = vld [vmem:[%s9713_s10 + $0x62c] ss:$16 sps:$4 sm:$0xff]  }
 0x416   : > { %4808 = vmatpush1.bf16.msra.mxu1 %v6468_v61  ;;  %v6612_v61 = vld [vmem:[%s9715_s12 + $0x90] ss:$8 sps:$4 sm:$0xff]  }
 0x417   : > { %4809 = vmatprep.subr.bf16.mxu1 %v6476_v41  ;;  %5313 = vmatpush1.bf16.msra.mxu0 %v6588_v58  ;;  %v6519_v41 = vld [vmem:[%s9713_s10 + $0x548] ss:$16 sps:$4 sm:$0xff]   ;;  %v6545_v58 = vld [vmem:[%s9713_s10 + $0x64c] ss:$16 sps:$4 sm:$0xff]  }
 0x41a   : > { %4810 = vmatpush1.bf16.msra.mxu1 %v6474_v38  ;;  %v6615_v38 = vld [vmem:[%s9715_s12 + $0xa0] ss:$8 sps:$4 sm:$0xff]  }
 0x41b   : > { %4811 = vmatprep.subr.bf16.mxu1 %v6482_v19  ;;  %v6522_v19 = vld [vmem:[%s9713_s10 + $0x568] ss:$16 sps:$4 sm:$0xff]  }
 0x41e   : > { %4812 = vmatpush1.bf16.msra.mxu1 %v6480_v59  ;;  %v6618_v59 = vld [vmem:[%s9715_s12 + $0xb0] ss:$8 sps:$4 sm:$0xff]  }
 0x41f   : > { %4813 = vmatprep.subr.bf16.mxu1 %v6488_v18  ;;  %v6530_v18 = vld [vmem:[%s9713_s10 + $0x5ac] ss:$16 sps:$4 sm:$0xff]  }
 0x422   : > { %4814 = vmatpush1.bf16.msra.mxu1 %v6486_v62  ;;  %v6533_v62 = vld [vmem:[%s9713_s10 + $0x5cc] ss:$16 sps:$4 sm:$0xff]  }
 0x423   : > { %4824 = vmatprep.subr.bf16.mxu1 %v6491_v49  ;;  %v6624_v49 = vld [vmem:[%s9715_s12 + $0xd0] ss:$8 sps:$4 sm:$0xff]  }
 0x425   : > { %4816 = vmatmul.mubr.bf16.vlgmr.msra.gmra.mrb[4].mxu1 %v8778_v29  ;;  %v6497_v29 = vld [vmem:[%s9713_s10 + $0x44c] ss:$16 sps:$4 sm:$0xff]  }
 0x426   : > { %4825 = vmatpush1.bf16.msra.mxu1 %v6489_v63  ;;  %4856 = vmatprep.mubr.bf16.mxu1 %v8789_v45  ;;  %v6593_v45 = vld [vmem:[%s9715_s12 + $0x24] ss:$8 sps:$4 sm:$0xff]   ;;  %v6531_v63 = vld [vmem:[%s9713_s10 + $0x5c8] ss:$16 sps:$4 sm:$0xff]  }
 0x427   : > { %4826 = vmatprep.subr.bf16.mxu1 %v6494_v23  ;;  %5314 = vmatprep.subr.bf16.mxu0 %v6593_v45  ;;  %v6536_v23 = vld [vmem:[%s9713_s10 + $0x5ec] ss:$16 sps:$4 sm:$0xff]   ;;  %v6543_v45 = vld [vmem:[%s9713_s10 + $0x648] ss:$16 sps:$4 sm:$0xff]  }
 0x428   : > { %5315 = vmatpush1.bf16.msra.mxu0 %v6591_v50  ;;  %v6554_v50 = vld [vmem:[%s9713_s10 + $0x6ac] ss:$16 sps:$4 sm:$0xff]  }
 0x429   : > { %5316 = vmatprep.subr.bf16.mxu0 %v6596_v33  ;;  %v6552_v33 = vld [vmem:[%s9713_s10 + $0x6a8] ss:$16 sps:$4 sm:$0xff]  }
 0x42a   : > { %4827 = vmatpush1.bf16.msra.mxu1 %v6492_v46  ;;  %v6537_v46 = vld [vmem:[%s9713_s10 + $0x608] ss:$16 sps:$4 sm:$0xff]  }
 0x42b   : > { %4828 = vmatprep.subr.bf16.mxu1 %v6497_v29  ;;  %v6540_v29 = vld [vmem:[%s9713_s10 + $0x628] ss:$16 sps:$4 sm:$0xff]  }
 0x42c   : > { %5317 = vmatpush1.bf16.msra.mxu0 %v6594_v8 }
 0x42d   : > { %5318 = vmatprep.subr.bf16.mxu0 %v6599_v12  ;;  %v6627_v12 = vld [vmem:[%s9715_s12 + $0xe0] ss:$8 sps:$4 sm:$0xff]  }
 0x42e   : > { %4829 = vmatpush1.bf16.msra.mxu1 %v6495_v42  ;;  %v6551_v42 = vld [vmem:[%s9713_s10 + $0x68c] ss:$16 sps:$4 sm:$0xff]  }
 0x42f   : > { %4830 = vmatprep.subr.bf16.mxu1 %v6500_v47  ;;  %v6549_v47 = vld [vmem:[%s9713_s10 + $0x688] ss:$16 sps:$4 sm:$0xff]  }
 0x430   : > { %5319 = vmatpush1.bf16.msra.mxu0 %v6597_v48  ;;  %v6555_v48 = vld [vmem:[%s9713_s10 + $0x6c8] ss:$16 sps:$4 sm:$0xff]  }
 0x431   : > { %5320 = vmatprep.subr.bf16.mxu0 %v6602_v52 }
 0x432   : > { %4831 = vmatpush1.bf16.msra.mxu1 %v6498_v27  ;;  %v6557_v27 = vld [vmem:[%s9713_s10 + $0x6cc] ss:$16 sps:$4 sm:$0xff]  }
 0x433   : > { %4832 = vmatprep.subr.bf16.mxu1 %v6503_v57  ;;  %v6629_v57 = vld [vmem:[%s9715_s12 + $0xe4] ss:$8 sps:$4 sm:$0xff]  }
 0x434   : > { %5321 = vmatpush1.bf16.msra.mxu0 %v6600_v3  ;;  %v6630_v3 = vld [vmem:[%s9715_s12 + $0xf0] ss:$8 sps:$4 sm:$0xff]  }
 0x435   : > { %5322 = vmatprep.subr.bf16.mxu0 %v6605_v16  ;;  %v6558_v16 = vld [vmem:[%s9713_s10 + $0x6e8] ss:$16 sps:$4 sm:$0xff]  }
 0x436   : > { %4833 = vmatpush1.bf16.msra.mxu1 %v6501_v11 }
 0x437   : > { %4834 = vmatprep.subr.bf16.mxu1 %v6506_v60 }
 0x438   : > { %5323 = vmatpush1.bf16.msra.mxu0 %v6603_v9  ;;  %v6561_v9 = vld [vmem:[%s9713_s10 + $0x708] ss:$16 sps:$4 sm:$0xff]  }
 0x439   : > { %5324 = vmatprep.subr.bf16.mxu0 %v6608_v54  ;;  %v6566_v54 = vld [vmem:[%s9713_s10 + $0x72c] ss:$16 sps:$4 sm:$0xff]  }
 0x43a   : > { %4835 = vmatpush1.bf16.msra.mxu1 %v6504_v51  ;;  %v6560_v51 = vld [vmem:[%s9713_s10 + $0x6ec] ss:$16 sps:$4 sm:$0xff]  }
 0x43b   : > { %4836 = vmatprep.subr.bf16.mxu1 %v6509_v6  ;;  %v6632_v6 = vld [vmem:[%s9715_s12 + $0xf4] ss:$8 sps:$4 sm:$0xff]  }
 0x43c   : > { %5325 = vmatpush1.bf16.msra.mxu0 %v6606_v21  ;;  %v6567_v21 = vld [vmem:[%s9713_s10 + $0x748] ss:$16 sps:$4 sm:$0xff]  }
 0x43d   : > { %5326 = vmatprep.subr.bf16.mxu0 %v6611_v37  ;;  %v6572_v37 = vld [vmem:[%s9713_s10 + $0x76c] ss:$16 sps:$4 sm:$0xff]  }
 0x43e   : > { %4837 = vmatpush1.bf16.msra.mxu1 %v6507_v15  ;;  %v6563_v15 = vld [vmem:[%s9713_s10 + $0x70c] ss:$16 sps:$4 sm:$0xff]  }
 0x43f   : > { %4838 = vmatprep.subr.bf16.mxu1 %v6512_v30  ;;  %v6635_v30 = vld [vmem:[%s9715_s12 + $0x104] ss:$8 sps:$4 sm:$0xff]  }
 0x440   : > { %5327 = vmatpush1.bf16.msra.mxu0 %v6609_v17  ;;  %v6573_v17 = vld [vmem:[%s9713_s10 + $0x788] ss:$16 sps:$4 sm:$0xff]  }
 0x441   : > { %5328 = vmatprep.subr.bf16.mxu0 %v6614_v5  ;;  %v6578_v5 = vld [vmem:[%s9713_s10 + $0x7ac] ss:$16 sps:$4 sm:$0xff]  }
 0x442   : > { %4839 = vmatpush1.bf16.msra.mxu1 %v6510_v43  ;;  %v6564_v43 = vld [vmem:[%s9713_s10 + $0x728] ss:$16 sps:$4 sm:$0xff]  }
 0x443   : > { %4840 = vmatprep.subr.bf16.mxu1 %v6515_v22  ;;  %v6569_v22 = vld [vmem:[%s9713_s10 + $0x74c] ss:$16 sps:$4 sm:$0xff]  }
 0x444   : > { %5329 = vmatpush1.bf16.msra.mxu0 %v6612_v61  ;;  %v6579_v61 = vld [vmem:[%s9713_s10 + $0x7c8] ss:$16 sps:$4 sm:$0xff]  }
 0x445   : > { %5330 = vmatprep.subr.bf16.mxu0 %v6617_v32  ;;  %v6584_v32 = vld [vmem:[%s9713_s10 + $0x7ec] ss:$16 sps:$4 sm:$0xff]  }
 0x446   : > { %4841 = vmatpush1.bf16.msra.mxu1 %v6513_v34  ;;  %v6570_v34 = vld [vmem:[%s9713_s10 + $0x768] ss:$16 sps:$4 sm:$0xff]  }
 0x447   : > { %4842 = vmatprep.subr.bf16.mxu1 %v6518_v28  ;;  %v6575_v28 = vld [vmem:[%s9713_s10 + $0x78c] ss:$16 sps:$4 sm:$0xff]  }
 0x448   : > { %5331 = vmatpush1.bf16.msra.mxu0 %v6615_v38 }
 0x449   : > { %5332 = vmatprep.subr.bf16.mxu0 %v6620_v53 }
 0x44a   : > { %4843 = vmatpush1.bf16.msra.mxu1 %v6516_v25  ;;  %v6576_v25 = vld [vmem:[%s9713_s10 + $0x7a8] ss:$16 sps:$4 sm:$0xff]  }
 0x44b   : > { %4844 = vmatprep.subr.bf16.mxu1 %v6521_v14  ;;  %v6581_v14 = vld [vmem:[%s9713_s10 + $0x7cc] ss:$16 sps:$4 sm:$0xff]  }
 0x44c   : > { %5333 = vmatpush1.bf16.msra.mxu0 %v6618_v59 }
 0x44d   : > { %5334 = vmatprep.subr.bf16.mxu0 %v6623_v55 }
 0x44e   : > { %4845 = vmatpush1.bf16.msra.mxu1 %v6519_v41  ;;  %v6582_v41 = vld [vmem:[%s9713_s10 + $0x7e8] ss:$16 sps:$4 sm:$0xff]  }
 0x44f   : > { %4846 = vmatprep.subr.bf16.mxu1 %v6524_v31  ;;  %v9475_v31 = vld [vmem:[%s9714_s11] sm:$0xf] }
 0x450   : > { %5335 = vmatpush1.bf16.msra.mxu0 %v6621_v13  ;;  %v4561_v38 = vrot.slane %v9475_v31, %v9772_v56  ;;  %v4565_v53 = vrot.slane %v9475_v31, %v9771_v44 }
 0x451   : > { %5336 = vmatprep.subr.bf16.mxu0 %v6626_v40 }
 0x452   : > { %4847 = vmatpush1.bf16.msra.mxu1 %v6522_v19 }
 0x453   : > { %4848 = vmatprep.subr.bf16.mxu1 %v6527_v36 }
 0x454   : > { %5337 = vmatpush1.bf16.msra.mxu0 %v6624_v49  ;;  %v6633_v49 = vld [vmem:[%s9715_s12 + $0x100] ss:$8 sps:$4 sm:$0xff]  }
 0x455   : > { %5338 = vmatprep.subr.bf16.mxu0 %v6629_v57  ;;  %v5415_v57 = vld [vmem:[%s9717_s14 + $0xa8] sm:$0xff] }
 0x456   : > { %4849 = vmatpush1.bf16.msra.mxu1 %v6525_v10 }
 0x457   : > { %4850 = vmatprep.subr.bf16.mxu1 %v6530_v18 }
 0x458   : > { %5339 = vmatpush1.bf16.msra.mxu0 %v6627_v12  ;;  %v6639_v12 = vld [vmem:[%s9715_s12 + $0x120] ss:$8 sps:$4 sm:$0xff]  }
 0x459   : > { %5340 = vmatprep.subr.bf16.mxu0 %v6632_v6  ;;  %v5417_v6 = vld [vmem:[%s9717_s14 + $0xb8] sm:$0xff] }
 0x45a   : > { %4851 = vmatpush1.bf16.msra.mxu1 %v6528_v4 }
 0x45b   : > { %4852 = vmatprep.subr.bf16.mxu1 %v6533_v62 }
 0x45c   : > { %5341 = vmatpush1.bf16.msra.mxu0 %v6630_v3 }
 0x45d   : > { %5351 = vmatprep.subr.bf16.mxu0 %v6635_v30  ;;  %v5400_v30 = vld [vmem:[%s9717_s14 + $0x30] sm:$0xff] }
 0x45e   : > { %4853 = vmatpush1.bf16.msra.mxu1 %v6531_v63 }
 0x45f   : > { %4854 = vmatprep.subr.bf16.mxu1 %v6536_v23  ;;  %v6638_v23 = vld [vmem:[%s9715_s12 + $0x114] ss:$8 sps:$4 sm:$0xff]  }
 0x462   : > { %4855 = vmatpush1.bf16.msra.mxu1 %v6534_v20  ;;  %v6636_v20 = vld [vmem:[%s9715_s12 + $0x110] ss:$8 sps:$4 sm:$0xff]  }
 0x463   : > { %4865 = vmatprep.subr.bf16.mxu1 %v6539_v35  ;;  %v6641_v35 = vld [vmem:[%s9715_s12 + $0x124] ss:$8 sps:$4 sm:$0xff]  }
 0x465   : > { %4857 = vmatmul.mubr.bf16.vlgmr.msra.gmra.mrb[4].mxu1 %v8981_v24  ;;  %v6548_v24 = vld [vmem:[%s9713_s10 + $0x66c] ss:$16 sps:$4 sm:$0xff]  }
 0x466   : > { %4866 = vmatpush1.bf16.msra.mxu1 %v6537_v46  ;;  %4897 = vmatprep.mubr.bf16.mxu1 %v8992_v1  ;;  %v6546_v1 = vld [vmem:[%s9713_s10 + $0x668] ss:$16 sps:$4 sm:$0xff]   ;;  %v5410_v46 = vld [vmem:[%s9717_s14 + $0x80] sm:$0xff] }
 0x467   : > { %4867 = vmatprep.subr.bf16.mxu1 %v6542_v39  ;;  %v5411_v39 = vld [vmem:[%s9717_s14 + $0x88] sm:$0xff] }
 0x46a   : > { %4868 = vmatpush1.bf16.msra.mxu1 %v6540_v29  ;;  %v5394_v29 = vld [vmem:[%s9717_s14] sm:$0xff] }
 0x46b   : > { %4869 = vmatprep.subr.bf16.mxu1 %v6545_v58  ;;  %v6046_v58 = vpack.c.bf16 %v5411_v39, %v5410_v46  ;;  %v6671_v46 = vld [vmem:[%s9715_s12 + $0x1c4] ss:$8 sps:$4 sm:$0xff]   ;;  %v6669_v39 = vld [vmem:[%s9715_s12 + $0x1c0] ss:$8 sps:$4 sm:$0xff]  }
 0x46e   : > { %4870 = vmatpush1.bf16.msra.mxu1 %v6543_v45  ;;  %v5395_v45 = vld [vmem:[%s9717_s14 + $0x8] sm:$0xff] }
 0x46f   : > { %4871 = vmatprep.subr.bf16.mxu1 %v6548_v24  ;;  %v5412_v24 = vld [vmem:[%s9717_s14 + $0x90] sm:$0xff] }
 0x472   : > { %4872 = vmatpush1.bf16.msra.mxu1 %v6546_v1  ;;  %v5413_v1 = vld [vmem:[%s9717_s14 + $0x98] sm:$0xff] }
 0x473   : > { %4873 = vmatprep.subr.bf16.mxu1 %v6551_v42  ;;  %v6048_v42 = vpack.c.bf16 %v5395_v45, %v5394_v29  ;;  %v6674_v29 = vld [vmem:[%s9715_s12 + $0x1d4] ss:$8 sps:$4 sm:$0xff]   ;;  %v6677_v45 = vld [vmem:[%s9715_s12 + $0x1e4] ss:$8 sps:$4 sm:$0xff]  }
 0x476   : > { %4874 = vmatpush1.bf16.msra.mxu1 %v6549_v47  ;;  %v6050_v47 = vpack.c.bf16 %v5413_v1, %v5412_v24  ;;  %v6675_v24 = vld [vmem:[%s9715_s12 + $0x1e0] ss:$8 sps:$4 sm:$0xff]   ;;  %v6680_v1 = vld [vmem:[%s9715_s12 + $0x1f4] ss:$8 sps:$4 sm:$0xff]  }
 0x477   : > { %4875 = vmatprep.subr.bf16.mxu1 %v6554_v50  ;;  %v5396_v50 = vld [vmem:[%s9717_s14 + $0x10] sm:$0xff] }
 0x478   : > { %v4612_v8 = vpop.f32.mrb[0].mxu1 }
 0x479   : > { %v4614_v11 = vpop.f32.mrb[1].mxu1  ;;  %v4613_v19 = vadd.f32 %v4612_v8, %v4561_v38  ;;  %v5404_v38 = vld [vmem:[%s9717_s14 + $0x50] sm:$0xff] }
 0x47a   : > { %v4616_v60 = vpop.f32.mrb[2].mxu1  ;;  %4876 = vmatpush1.bf16.msra.mxu1 %v6552_v33  ;;  %v4615_v36 = vadd.f32 %v4614_v11, %v4565_v53  ;;  %v5397_v33 = vld [vmem:[%s9717_s14 + $0x18] sm:$0xff] }
 0x47b   : > { %v4617_v52 = vpop.f32.mrb[3].mxu1  ;;  %4877 = vmatprep.subr.bf16.mxu1 %v6557_v27  ;;  %v5414_v27 = vld [vmem:[%s9717_s14 + $0xa0] sm:$0xff]  ;;  %v6052_v8 = vpack.c.bf16 %v5397_v33, %v5396_v50  ;;  %v5405_v53 = vld [vmem:[%s9717_s14 + $0x58] sm:$0xff]  ;;  %v4573_v50 = vrot.slane %v9475_v31, %v2986_v0 }
 0x47c   : > { %v6054_v11 = vpack.c.bf16 %v5415_v57, %v5414_v27  ;;  %v5398_v60 = vld [vmem:[%s9717_s14 + $0x20] sm:$0xff]  ;;  %v6644_v52 = vld [vmem:[%s9715_s12 + $0x134] ss:$8 sps:$4 sm:$0xff]  }
 0x47e   : > { %4878 = vmatpush1.bf16.msra.mxu1 %v6555_v48  ;;  %v5399_v48 = vld [vmem:[%s9717_s14 + $0x28] sm:$0xff] }
 0x47f   : > { %4879 = vmatprep.subr.bf16.mxu1 %v6560_v51  ;;  %v5416_v51 = vld [vmem:[%s9717_s14 + $0xb0] sm:$0xff]  ;;  %v6056_v3 = vpack.c.bf16 %v5399_v48, %v5398_v60 }
 0x482   : > { %4880 = vmatpush1.bf16.msra.mxu1 %v6558_v16  ;;  %v6642_v16 = vld [vmem:[%s9715_s12 + $0x130] ss:$8 sps:$4 sm:$0xff]  }
 0x483   : > { %4881 = vmatprep.subr.bf16.mxu1 %v6563_v15  ;;  %v6058_v15 = vpack.c.bf16 %v5417_v6, %v5416_v51  ;;  %v5425_v6 = vld [vmem:[%s9717_s14 + $0xf8] sm:$0xff] }
 0x486   : > { %4882 = vmatpush1.bf16.msra.mxu1 %v6561_v9  ;;  %v5401_v9 = vld [vmem:[%s9717_s14 + $0x38] sm:$0xff] }
 0x487   : > { %4883 = vmatprep.subr.bf16.mxu1 %v6566_v54  ;;  %v6647_v54 = vld [vmem:[%s9715_s12 + $0x144] ss:$8 sps:$4 sm:$0xff]  }
 0x48a   : > { %4884 = vmatpush1.bf16.msra.mxu1 %v6564_v43  ;;  %v5418_v43 = vld [vmem:[%s9717_s14 + $0xc0] sm:$0xff] }
 0x48b   : > { %4885 = vmatprep.subr.bf16.mxu1 %v6569_v22  ;;  %v5419_v22 = vld [vmem:[%s9717_s14 + $0xc8] sm:$0xff] }
 0x48e   : > { %4886 = vmatpush1.bf16.msra.mxu1 %v6567_v21  ;;  %v6060_v21 = vpack.c.bf16 %v5401_v9, %v5400_v30  ;;  %v4978_v9 = vld [vmem:[%s9716_s13] sm:$0x3] }
 0x48f   : > { %4887 = vmatprep.subr.bf16.mxu1 %v6572_v37  ;;  %v6645_v37 = vld [vmem:[%s9715_s12 + $0x140] ss:$8 sps:$4 sm:$0xff]  }
 0x492   : > { %4888 = vmatpush1.bf16.msra.mxu1 %v6570_v34  ;;  %v6062_v34 = vpack.c.bf16 %v5419_v22, %v5418_v43  ;;  %v5307_v43 = vrot.slane %v4978_v9, %v9771_v44 }
 0x493   : > { %4889 = vmatprep.subr.bf16.mxu1 %v6575_v28  ;;  %v5402_v28 = vld [vmem:[%s9717_s14 + $0x40] sm:$0xff] }
 0x496   : > { %4890 = vmatpush1.bf16.msra.mxu1 %v6573_v17  ;;  %v5403_v17 = vld [vmem:[%s9717_s14 + $0x48] sm:$0xff] }
 0x497   : > { %4891 = vmatprep.subr.bf16.mxu1 %v6578_v5  ;;  %v6650_v5 = vld [vmem:[%s9715_s12 + $0x154] ss:$8 sps:$4 sm:$0xff]  }
 0x49a   : > { %4892 = vmatpush1.bf16.msra.mxu1 %v6576_v25  ;;  %v5420_v25 = vld [vmem:[%s9717_s14 + $0xd0] sm:$0xff] }
 0x49b   : > { %4893 = vmatprep.subr.bf16.mxu1 %v6581_v14  ;;  %v5421_v14 = vld [vmem:[%s9717_s14 + $0xd8] sm:$0xff] }
 0x49e   : > { %4894 = vmatpush1.bf16.msra.mxu1 %v6579_v61  ;;  %v6064_v61 = vpack.c.bf16 %v5403_v17, %v5402_v28 }
 0x49f   : > { %4895 = vmatprep.subr.bf16.mxu1 %v6584_v32  ;;  %v6648_v32 = vld [vmem:[%s9715_s12 + $0x150] ss:$8 sps:$4 sm:$0xff]  }
 0x4a2   : > { %4896 = vmatpush1.bf16.msra.mxu1 %v6582_v41  ;;  %v6066_v41 = vpack.c.bf16 %v5421_v14, %v5420_v25 }
 0x4a3   : > { %6047 = vmatprep.subr.bf16.mxu1 %v6046_v58  ;;  %v6672_v58 = vld [vmem:[%s9715_s12 + $0x1d0] ss:$8 sps:$4 sm:$0xff]  }
 0x4a5   : > { %4898 = vmatmul.mubr.bf16.vlgmr.msra.gmra.mrb[4].mxu1 %v9176_v26 }
 0x4a6   : > { %6049 = vmatpush3.bf16.msra.mxu1 %v6048_v42  ;;  %v6678_v42 = vld [vmem:[%s9715_s12 + $0x1f0] ss:$8 sps:$4 sm:$0xff]  }
 0x4a7   : > { %6051 = vmatprep.subr.bf16.mxu1 %v6050_v47  ;;  %v4569_v47 = vrot.slane %v9475_v31, %v9773_v7  ;;  %v5406_v7 = vld [vmem:[%s9717_s14 + $0x60] sm:$0xff]  ;;  %v5424_v31 = vld [vmem:[%s9717_s14 + $0xf0] sm:$0xff] }
 0x4a8   : > { %v6072_v0 = vpack.c.bf16 %v5407_v2, %v5406_v7 }
 0x4aa   : > { %6053 = vmatpush3.bf16.msra.mxu1 %v6052_v8 }
 0x4ab   : > { %6055 = vmatprep.subr.bf16.mxu1 %v6054_v11 }
 0x4ae   : > { %6057 = vmatpush3.bf16.msra.mxu1 %v6056_v3  ;;  %v6074_v3 = vpack.c.bf16 %v5425_v6, %v5424_v31 }
 0x4af   : > { %6059 = vmatprep.subr.bf16.mxu1 %v6058_v15  ;;  %v5409_v15 = vld [vmem:[%s9717_s14 + $0x78] sm:$0xff] }
 0x4b2   : > { %6061 = vmatpush3.bf16.msra.mxu1 %v6060_v21 }
 0x4b3   : > { %6063 = vmatprep.subr.bf16.mxu1 %v6062_v34 }
 0x4b6   : > { %6065 = vmatpush3.bf16.msra.mxu1 %v6064_v61  ;;  %v5426_v61 = vld [vmem:[%s9718_s15] sm:$0x1] }
 0x4b7   : > { %6067 = vmatprep.subr.bf16.mxu1 %v6066_v41 }
 0x4e5   : > { %v4735_v59 = vpop.f32.mrb[0].mxu0 }
 0x4e6   : > { %v6095_v55 = vadd.f32 %v4735_v59, %v4613_v19  ;;  %v4737_v10 = vpop.f32.mrb[1].mxu0  ;;  %v6653_v19 = vld [vmem:[%s9715_s12 + $0x164] ss:$8 sps:$4 sm:$0xff]  }
 0x4e7   : > { %v6097_v18 = vadd.f32 %v4737_v10, %v4615_v36  ;;  %v4739_v13 = vpop.f32.mrb[2].mxu0  ;;  %v5422_v36 = vld [vmem:[%s9717_s14 + $0xe0] sm:$0xff]  ;;  %v5423_v59 = vld [vmem:[%s9717_s14 + $0xe8] sm:$0xff] }
 0x4e8   : > { %v4906_v40 = vmax.f32 %v6095_v55, 0.0  ;;  %v4740_v26 = vpop.f32.mrb[3].mxu0  ;;  %v6068_v55 = vpack.c.bf16 %v5405_v53, %v5404_v38  ;;  %v6651_v10 = vld [vmem:[%s9715_s12 + $0x160] ss:$8 sps:$4 sm:$0xff]   ;;  %v6656_v13 = vld [vmem:[%s9715_s12 + $0x174] ss:$8 sps:$4 sm:$0xff]  }
 0x4e9   : > { %v4907_v4 = vmax.f32 %v6097_v18, 0.0  ;;  %v6070_v18 = vpack.c.bf16 %v5423_v59, %v5422_v36  ;;  %v6659_v26 = vld [vmem:[%s9715_s12 + $0x184] ss:$8 sps:$4 sm:$0xff]  }
 0x4ea   : > { %v4910_v63 = vpack.c.bf16 %v4906_v40, %v4906_v40  ;;  %6069 = vmatpush3.bf16.msra.mxu1 %v6068_v55  ;;  %v6654_v40 = vld [vmem:[%s9715_s12 + $0x170] ss:$8 sps:$4 sm:$0xff]  }
 0x4eb   : > { %v4911_v62 = vpack.c.bf16 %v4907_v4, %v4907_v4  ;;  %6071 = vmatprep.subr.bf16.mxu1 %v6070_v18  ;;  %v6657_v4 = vld [vmem:[%s9715_s12 + $0x180] ss:$8 sps:$4 sm:$0xff]  }
 0x4ed   : > { %5342 = vmatprep.mubr.bf16.mxu0 %v4911_v62  ;;  %v6662_v62 = vld [vmem:[%s9715_s12 + $0x194] ss:$8 sps:$4 sm:$0xff]  }
 0x4ee   : > { %5343 = vmatmul.mubr.bf16.vlgmr.msra.gmra.mrb[4].mxu0 %v4910_v63  ;;  %v6665_v63 = vld [vmem:[%s9715_s12 + $0x1a4] ss:$8 sps:$4 sm:$0xff]   ;;  %6073 = vmatpush3.bf16.msra.mxu1 %v6072_v0 }
 0x4ef   : > { %5352 = vmatpush1.bf16.msra.mxu0 %v6633_v49  ;;  %v6660_v49 = vld [vmem:[%s9715_s12 + $0x190] ss:$8 sps:$4 sm:$0xff]   ;;  %6075 = vmatprep.subr.bf16.mxu1 %v6074_v3 }
 0x4f0   : > { %5353 = vmatprep.subr.bf16.mxu0 %v6638_v23  ;;  %v6663_v23 = vld [vmem:[%s9715_s12 + $0x1a0] ss:$8 sps:$4 sm:$0xff]  }
 0x4f3   : > { %5354 = vmatpush1.bf16.msra.mxu0 %v6636_v20  ;;  %v6668_v20 = vld [vmem:[%s9715_s12 + $0x1b4] ss:$8 sps:$4 sm:$0xff]  }
 0x4f4   : > { %5355 = vmatprep.subr.bf16.mxu0 %v6641_v35  ;;  %v6666_v35 = vld [vmem:[%s9715_s12 + $0x1b0] ss:$8 sps:$4 sm:$0xff]  }
 0x4f7   : > { %5356 = vmatpush1.bf16.msra.mxu0 %v6639_v12 }
 0x4f8   : > { %5357 = vmatprep.subr.bf16.mxu0 %v6644_v52 }
 0x4fb   : > { %5358 = vmatpush1.bf16.msra.mxu0 %v6642_v16  ;;  %v5408_v16 = vld [vmem:[%s9717_s14 + $0x70] sm:$0xff] }
 0x4fc   : > { %5359 = vmatprep.subr.bf16.mxu0 %v6647_v54  ;;  %v6076_v30 = vpack.c.bf16 %v5409_v15, %v5408_v16  ;;  %v5303_v54 = vrot.slane %v4978_v9, %v9772_v56 }
 0x4fe   : > { %6077 = vmatpush3.bf16.msra.mxu1 %v6076_v30 }
 0x4ff   : > { %5360 = vmatpush1.bf16.msra.mxu0 %v6645_v37 }
 0x500   : > { %5361 = vmatprep.subr.bf16.mxu0 %v6650_v5 }
 0x503   : > { %5362 = vmatpush1.bf16.msra.mxu0 %v6648_v32 }
 0x504   : > { %5363 = vmatprep.subr.bf16.mxu0 %v6653_v19 }
 0x507   : > { %5364 = vmatpush1.bf16.msra.mxu0 %v6651_v10 }
 0x508   : > { %5365 = vmatprep.subr.bf16.mxu0 %v6656_v13 }
 0x50b   : > { %5366 = vmatpush1.bf16.msra.mxu0 %v6654_v40 }
 0x50c   : > { %5367 = vmatprep.subr.bf16.mxu0 %v6659_v26 }
 0x50f   : > { %5368 = vmatpush1.bf16.msra.mxu0 %v6657_v4 }
 0x510   : > { %5369 = vmatprep.subr.bf16.mxu0 %v6662_v62 }
 0x513   : > { %5370 = vmatpush1.bf16.msra.mxu0 %v6660_v49 }
 0x514   : > { %5371 = vmatprep.subr.bf16.mxu0 %v6665_v63 }
 0x517   : > { %5372 = vmatpush1.bf16.msra.mxu0 %v6663_v23 }
 0x518   : > { %5373 = vmatprep.subr.bf16.mxu0 %v6668_v20 }
 0x51b   : > { %5374 = vmatpush1.bf16.msra.mxu0 %v6666_v35 }
 0x51c   : > { %5375 = vmatprep.subr.bf16.mxu0 %v6671_v46 }
 0x51f   : > { %5376 = vmatpush1.bf16.msra.mxu0 %v6669_v39 }
 0x520   : > { %5377 = vmatprep.subr.bf16.mxu0 %v6674_v29 }
 0x523   : > { %5378 = vmatpush1.bf16.msra.mxu0 %v6672_v58 }
 0x524   : > { %5379 = vmatprep.subr.bf16.mxu0 %v6677_v45 }
 0x527   : > { %5380 = vmatpush1.bf16.msra.mxu0 %v6675_v24 }
 0x528   : > { %5381 = vmatprep.subr.bf16.mxu0 %v6680_v1 }
 0x52b   : > { %5382 = vmatpush1.bf16.msra.mxu0 %v6678_v42 }
 0x578   : > { %v4899_v33 = vpop.f32.mrb[4].mxu1 }
 0x579   : > { %v6098_v27 = vadd.f32 %v4899_v33, %v4569_v47  ;;  %v4901_v57 = vpop.f32.mrb[5].mxu1 }
 0x57a   : > { %v6099_v8 = vadd.f32 %v4901_v57, %v4573_v50  ;;  %v4903_v12 = vpop.f32.mrb[6].mxu1 }
 0x57b   : > { %v4908_v11 = vmax.f32 %v6098_v27, 0.0  ;;  %v4904_v60 = vpop.f32.mrb[7].mxu1 }
 0x57c   : > { %v4909_v48 = vmax.f32 %v6099_v8, 0.0 }
 0x57d   : > { %v4912_v51 = vpack.c.bf16 %v4908_v11, %v4908_v11 }
 0x57e   : > { %v4913_v52 = vpack.c.bf16 %v4909_v48, %v4909_v48 }
 0x580   : > { %5383 = vmatprep.mubr.bf16.mxu0 %v4913_v52 }
 0x581   : > { %5384 = vmatmul.mubr.bf16.vlgmr.msra.gmra.mrb[4].mxu0 %v4912_v51 }
 0x654   : > { %v5385_v22 = vpop.f32.mrb[4].mxu0 }
 0x655   : > { %v6100_v21 = vadd.f32 %v5385_v22, %v5303_v54  ;;  %v5387_v37 = vpop.f32.mrb[5].mxu0 }
 0x656   : > { %v6101_v34 = vadd.f32 %v5387_v37, %v5307_v43  ;;  %v5389_v28 = vpop.f32.mrb[6].mxu0 }
 0x657   : > { %v5390_v17 = vpop.f32.mrb[7].mxu0  ;;  %v5392_v25 = vmax.f32 %v6100_v21, 0.0 }
 0x658   : > { %v5393_v5 = vmax.f32 %v6101_v34, 0.0 }
 0x65a   : > { %5491 = vmatprep.mubr.f32.mxu1 %v5393_v5 }
 0x65b   : > { %5492 = vmatmul.mubr.f32.vlgmr.msra.gmra.mrb[8].mxu1 %v5392_v25 }
 0x72e   : > { %v6019_v14 = vpop.f32.mrb[8].mxu1 }
 0x72f   : > { %v6020_v32 = vpop.f32.mrb[9].mxu1 }
 0x730   : > { %v6021_v56 = vadd.f32 %v6020_v32, %v6019_v14 }
 0x732   : > { %v5494_v44 = vadd.f32 %v6021_v56, %v5426_v61 }
 0x734   : > { %5498 = vst.msk [vmem:[%s565_s17] sm:$0x1] %vm5497_vm2, %v5494_v44 }
 0x735 PF: > { %s26_s25 = sadd.s32 1, %s6720_s25   ;;  %s9774_s22 = sld [smem:[#allocation3_spill]] }
 0x736   : > { %p23_p9 = scmp.ge.s32.totalorder %s26_s25, 6   ;;  %s9775_s27 = sld [smem:[#allocation4_spill]] }
 0x737   : > { %s9776_s24 = sld [smem:[#allocation5_spill]]  ;;  %s9777_s21 = smov %s6712_s23 }
 0x738   :  { %25 = sbr.rel (!%p23_p9) target bundleno = 3 (0x3), region = 122 }
 0x73c   : > { %s9778_s23 = smov %s9775_s27 }

// kernel: pointnet_reg_forward.3
= control target key start
LH: loop header
LB: loop body
LE: loop exit
PB: predicated region body
PF: predicated region fallthrough
CT: control target
= control target key end

     0   :  { %s6719_s23 = smov 0   ;;  %s6721_s24 = smov 0   ;;  %s9390_s0 = inlined_call_operand.vmem [shape: f32[2,200,3], index: 0, kind: input, shape index: {}]   ;;  %s9391_s1 = inlined_call_operand.vmem [shape: f32[2,3,64], index: 1, kind: input, shape index: {}]   ;;  %s9392_s2 = inlined_call_operand.vmem [shape: f32[1,64], index: 2, kind: input, shape index: {}]   ;;  %s9393_s3 = inlined_call_operand.vmem [shape: f32[1,64], index: 3, kind: input, shape index: {}]   ;;  %s9394_s4 = inlined_call_operand.vmem [shape: bf16[64,128], index: 4, kind: input, shape index: {}]   ;;  %s9395_s5 = inlined_call_operand.vmem [shape: f32[1,128], index: 5, kind: input, shape index: {}]   ;;  %s9396_s6 = inlined_call_operand.vmem [shape: f32[1,128], index: 6, kind: input, shape index: {}]   ;;  %s9397_s7 = inlined_call_operand.vmem [shape: bf16[128,1024], index: 7, kind: input, shape index: {}]   ;;  %s9398_s8 = inlined_call_operand.vmem [shape: f32[1,1024], index: 8, kind: input, shape index: {}]   ;;  %s9399_s9 = inlined_call_operand.vmem [shape: f32[1,1024], index: 9, kind: input, shape index: {}]   ;;  %s9400_s10 = inlined_call_operand.vmem [shape: bf16[1024,512], index: 10, kind: input, shape index: {}]   ;;  %s9401_s11 = inlined_call_operand.vmem [shape: f32[1,512], index: 11, kind: input, shape index: {}]   ;;  %s9402_s12 = inlined_call_operand.vmem [shape: bf16[512,256], index: 12, kind: input, shape index: {}]   ;;  %s9403_s13 = inlined_call_operand.vmem [shape: f32[1,256], index: 13, kind: input, shape index: {}]   ;;  %s9404_s14 = inlined_call_operand.vmem [shape: f32[256,1], index: 14, kind: input, shape index: {}]   ;;  %s9405_s15 = inlined_call_operand.<no memory space> [shape: f32[1,1], index: 15, kind: input, shape index: {}]   ;;  %s9406_s16 = inlined_call_operand.vmem [shape: f32[2,1,1], index: 16, kind: output, shape index: {}]  }
   0x1   :  { %9419 = sst [smem:[#allocation13_spill]] %s9390_s0  ;;  %v21_v0 = vstv %s9405_s15  ;;  %s6723_s25 = smov 0  }
   0x2   :  { %9420 = sst [smem:[#allocation14_spill]] %s9403_s13  ;;  %22 = vst [vmem:[#allocation3] sm:$0x1] %v21_v0  ;;  %s6725_s26 = smov 0  }
   0x3   :  { %s6727_s27 = smov 0  }
   0x4 LB: > { %9421 = sst [smem:[#allocation4_spill]] %s6616_s25  ;;  %s37_s15 = sadd.s32 1, %s6616_s25  ;;  %s6624_s27 = sphi %s6727_s27, %s28_s27   ;;  %s6620_s26 = sphi %s6725_s26, %s9449_s26   ;;  %s6616_s25 = sphi %s6723_s25, %s9448_s25   ;;  %s6612_s24 = sphi %s6721_s24, %s9447_s24   ;;  %s6608_s23 = sphi %s6719_s23, %s9446_s23  }
   0x5   : > { %9422 = sst [smem:[#allocation5_spill]] %s6620_s26  ;;  %s40_s28 = sadd.s32 1, %s6620_s26 }
   0x6   : > { %9423 = sst [smem:[#allocation6_spill]] %s6624_s27  ;;  %p38_p0 = scmp.ge.s32.totalorder %s37_s15, 2 }
   0x7   : > { %p5470_p1 = scmp.ge.s32.totalorder %s6624_s27, 1  ;;  %p500_p2 = scmp.lt.s32.totalorder %s6624_s27, 5 }
   0x8   : > { %s9451_s15 = smov (%p38_p0, %s37_s15), 0  ;;  %s9453_s28 = smov (!%p38_p0, %s40_s28), %s6620_s26 }
   0x9   : > { %9424 = sst [smem:[#allocation7_spill]] %s9451_s15  ;;  %p501_p3 = pnand %p5470_p1, %p500_p2 }
   0xa   : > { %p42_p4 = scmp.ge.s32.totalorder %s9453_s28, 2 }
   0xb   : > { %504 = sbr.rel (%p501_p3) target bundleno = 1826 (0x722), region = 84 }
   0xc   : > { %s9455_s28 = smov (%p42_p4, %s9453_s28), 0 }
   0xd   : > { %9425 = sst [smem:[#allocation8_spill]] %s9455_s28 }
  0x12   : > { %s5471_s29 = sshll.u32 %s6608_s23, 4  ;;  %p565_p5 = scmp.lt.s32.totalorder %s6612_s24, 1 }
  0x13   : > { %p567_p6 = scmp.lt.s32.totalorder %s5471_s29, 24  ;;  %s9426_s27 = sld [smem:[#allocation13_spill]] }
  0x14   : > { %s9457_s24 = smov (!%p565_p5, %s6612_s24), 1  ;;  %p5474_p7 = scmp.ne.s32.totalorder %s6608_s23, 0 }
  0x15   : > { %s9459_s29 = smov (!%p567_p6, %s5471_s29), 24  ;;  %s6030_s30 = smul.u32 25, %s9457_s24  ;;  %v6626_v1 = vmov (!%p5474_p7), -inf  }
  0x16   : > { %s5473_s0 = sshll.u32 %s9457_s24, 2  ;;  %s584_s22 = scalar_lea.vmem %s9406_s16, %s9457_s24  ;;  %590 = vst [vmem:[#allocation2] sm:$0xff] (!%p5474_p7), %v6626_v1 }
  0x17   : > { %s6759_s19 = scalar_lea.vmem %s9391_s1, %s5473_s0  ;;  %s570_s28 = sadd.s32 %s6030_s30, %s9459_s29 }
  0x18   : > { %s5472_s15 = sshll.u32 %s570_s28, 3  ;;  %589 = sbr.rel (%p5474_p7) target bundleno = 31 (0x1f), region = 88 }
  0x19   : > { %s6768_s13 = scalar_lea.vmem %s9426_s27, %s5472_s15 }
  0x1f PF: > { %v591_v2 = vld [vmem:[%s6768_s13] sm:$0xff]  ;;  %v6627_v3 = vmov 1   ;;  %v6628_v4 = vmov 0   ;;  %v592_v5 = vld [vmem:[%s6768_s13 + $0x8] sm:$0xff]  ;;  %v593_v6 = vld [vmem:[%s6768_s13 + $0x10] sm:$0xff]  ;;  %v6629_v9 = vmov 2   ;;  %v9410_v27 = vlaneseq }
  0x20   : > { %6077 = vset.pattern.permute.xlu1 %v6627_v3  ;;  %6076 = vset.pattern.permute.xlu0 %v6628_v4  ;;  %v594_v7 = vld [vmem:[%s6768_s13 + $0x18] sm:$0xff]  ;;  %v596_v8 = vld [vmem:[%s6768_s13 + $0x28] sm:$0xff]  ;;  %v597_v10 = vld [vmem:[%s6768_s13 + $0x30] sm:$0xff]  ;;  %vm1010_vm0 = vcmask 523264   ;;  %p5556_p8 = scmp.ne.s32.totalorder %s6608_s23, 1 }
  0x21   : > { %709 = vperm.xlu1 %6077, %v591_v2   ;;  %610 = vperm.xlu0 %6076, %v591_v2   ;;  %v6101_v11 = vld [vmem:[%s9394_s4] sm:$0xff]   ;;  %v6102_v12 = vld [vmem:[%s9394_s4 + $0x8] sm:$0xff]   ;;  %v6103_v14 = vld [vmem:[%s9394_s4 + $0x10] sm:$0xff]   ;;  %v6826_v30 = vshrl.u32 %v9410_v27, 7  ;;  %s9444_s18 = sld [smem:[#allocation14_spill]] (!%p5556_p8) }
  0x22   : > { %1381 = vmatprep.mubr.bf16.mxu1 %v6628_v4  ;;  %5926 = vmatprep.subr.bf16.mxu0 %v6101_v11  ;;  %v595_v13 = vld [vmem:[%s6768_s13 + $0x20] sm:$0xff]  ;;  %v598_v15 = vld [vmem:[%s6768_s13 + $0x38] sm:$0xff]  ;;  %v600_v17 = vld [vmem:[%s6768_s13 + $0x48] sm:$0xff] }
  0x23   : > { %5927 = vmatpush3.bf16.msra.mxu0 %v6101_v11  ;;  %v6104_v16 = vld [vmem:[%s9394_s4 + $0x18] sm:$0xff]   ;;  %v601_v18 = vld [vmem:[%s6768_s13 + $0x50] sm:$0xff]  ;;  %v603_v19 = vld [vmem:[%s6768_s13 + $0x60] sm:$0xff]  ;;  %v6829_v32 = vsub.s32 1, %v6826_v30  ;;  %v6832_v33 = vsub.s32 0, %v6826_v30  ;;  %v6836_v36 = vsub.s32 2, %v6826_v30 }
  0x24   : > { %5928 = vmatprep.subr.bf16.mxu0 %v6102_v12  ;;  %v604_v20 = vld [vmem:[%s6768_s13 + $0x68] sm:$0xff]  ;;  %v599_v21 = vld [vmem:[%s6768_s13 + $0x40] sm:$0xff]  ;;  %v605_v22 = vld [vmem:[%s6768_s13 + $0x70] sm:$0xff] }
  0x25   : > { %713 = vperm.xlu1 %6077, %v592_v5   ;;  %615 = vperm.xlu0 %6076, %v592_v5   ;;  %v602_v23 = vld [vmem:[%s6768_s13 + $0x58] sm:$0xff]  ;;  %9427 = vst [vmem:[#allocation9_spill] sm:$0xff] %v6832_v33  ;;  %v607_v35 = vld [vmem:[%s6759_s19] sm:$0x7]  ;;  %9428 = vst [vmem:[#allocation10_spill] sm:$0xff] %v6836_v36 }
  0x26   : > { %v606_v24 = vld [vmem:[%s6768_s13 + $0x78] sm:$0xff]  ;;  %v6839_v37 = vrot.slane %v607_v35, %v6829_v32  ;;  %v6842_v38 = vrot.slane %v607_v35, %v6832_v33  ;;  %v1253_v41 = vld [vmem:[%s9397_s7] sm:$0xff]  ;;  %v6853_v43 = vld [vmem:[%s9397_s7 + $0x8] sm:$0xff]  ;;  %v6856_v44 = vrot.slane %v607_v35, %v6836_v36  ;;  %s5491_s13 = sshll.u32 %s6608_s23, 7 }
  0x27   : > { %5929 = vmatpush3.bf16.msra.mxu0 %v6102_v12  ;;  %v1254_v42 = vld [vmem:[%s9397_s7 + $0x20] sm:$0xff]  ;;  %v6861_v46 = vld [vmem:[%s9397_s7 + $0x28] sm:$0xff] }
  0x28   : > { %5930 = vmatprep.subr.bf16.mxu0 %v6103_v14  ;;  %v5493_v45 = vcombine.high %v1253_v41, %v1254_v42  ;;  %v5492_v47 = vcombine.low %v1253_v41, %v1254_v42  ;;  %v1255_v48 = vld [vmem:[%s9397_s7 + $0x40] sm:$0xff]  ;;  %v5509_v53 = vcombine.high %v6853_v43, %v6861_v46 }
  0x29   : > { %6078 = vset.pattern.permute.xlu1 %v6628_v4  ;;  %620 = vperm.xlu0 %6076, %v593_v6   ;;  %v1256_v49 = vld [vmem:[%s9397_s7 + $0x60] sm:$0xff] }
  0x2a   : > { %625 = vperm.xlu1 %6078, %v594_v7   ;;  %v5495_v54 = vcombine.high %v1255_v48, %v1256_v49  ;;  %v1257_v55 = vld [vmem:[%s9397_s7 + $0x80] sm:$0xff]  ;;  %1349 = vmatprep.subr.bf16.mxu1 %v5493_v45  ;;  %v5494_v60 = vcombine.low %v1255_v48, %v1256_v49 }
  0x2b   : > { %5931 = vmatpush3.bf16.msra.mxu0 %v6103_v14  ;;  %v1258_v58 = vld [vmem:[%s9397_s7 + $0xa0] sm:$0xff]  ;;  %1350 = vmatpush1.bf16.msra.mxu1 %v5492_v47 }
  0x2c   : > { %5932 = vmatprep.subr.bf16.mxu0 %v6104_v16  ;;  %1351 = vmatprep.subr.bf16.mxu1 %v5495_v54  ;;  %v5497_v62 = vcombine.high %v1257_v55, %v1258_v58  ;;  %v1259_v1 = vld [vmem:[%s9397_s7 + $0xc0] sm:$0xff]  ;;  %v1683_v54 = vld [vmem:[%s9397_s7 + $0x48] sm:$0xff] }
  0x2d   : > { %6079 = vset.pattern.permute.xlu0 %v6627_v3  ;;  %v6898_v11 = vld [vmem:[%s9392_s2] ss:$0 sm:$0xff] }
  0x2e   : > { %6080 = vset.pattern.permute.xlu1 %v6627_v3  ;;  %717 = vperm.xlu0 %6079, %v593_v6   ;;  %v1261_v14 = vld [vmem:[%s9397_s7 + $0x100] sm:$0xff] }
  0x2f   : > { %721 = vperm.xlu1 %6080, %v594_v7   ;;  %5933 = vmatpush3.bf16.msra.mxu0 %v6104_v16 }
  0x30   : > { %1777 = vmatprep.subr.bf16.mxu0 %v5509_v53  ;;  %1352 = vmatpush1.bf16.msra.mxu1 %v5494_v60  ;;  %v5508_v60 = vcombine.low %v6853_v43, %v6861_v46 }
  0x31   : > { %1353 = vmatprep.subr.bf16.mxu1 %v5497_v62 }
  0x32   : > { %729 = vperm.xlu0 %6079, %v596_v8  }
  0x33   : > { %6081 = vset.pattern.permute.xlu1 %v6629_v9 }
  0x34   : > { %809 = vperm.xlu1 %6081, %v591_v2   ;;  %v1260_v2 = vld [vmem:[%s9397_s7 + $0xe0] sm:$0xff] }
  0x36   : > { %733 = vperm.xlu0 %6079, %v597_v10  }
  0x38   : > { %817 = vperm.xlu1 %6081, %v593_v6  }
  0x3a   : > { %6085 = vset.pattern.permute.xlu0 %v6629_v9 }
  0x3b   : > { %813 = vperm.xlu0 %6085, %v592_v5  }
  0x3c   : > { %821 = vperm.xlu1 %6081, %v594_v7  }
  0x3f   : > { %825 = vperm.xlu0 %6085, %v595_v13  }
  0x40   : > { %6082 = vset.pattern.permute.xlu1 %v6628_v4 }
  0x41   : > { %635 = vperm.xlu1 %6082, %v596_v8  }
  0x43   : > { %837 = vperm.xlu0 %6085, %v598_v15  }
  0x45   : > { %6083 = vset.pattern.permute.xlu1 %v6627_v3 }
  0x46   : > { %725 = vperm.xlu1 %6083, %v595_v13  }
  0x47   : > { %845 = vperm.xlu0 %6085, %v600_v17  }
  0x4a   : > { %6084 = vset.pattern.permute.xlu1 %v6628_v4 }
  0x4b   : > { %640 = vperm.xlu1 %6084, %v597_v10   ;;  %6093 = vset.pattern.permute.xlu0 %v6628_v4 }
  0x4c   : > { %630 = vperm.xlu0 %6093, %v595_v13   ;;  %v5499_v13 = vcombine.high %v1259_v1, %v1260_v2 }
  0x4f   : > { %645 = vperm.xlu1 %6084, %v598_v15  }
  0x50   : > { %655 = vperm.xlu0 %6093, %v600_v17  }
  0x53   : > { %6086 = vset.pattern.permute.xlu1 %v6627_v3 }
  0x54   : > { %737 = vperm.xlu1 %6086, %v598_v15   ;;  %660 = vperm.xlu0 %6093, %v601_v18   ;;  %v1262_v15 = vld [vmem:[%s9397_s7 + $0x120] sm:$0xff] }
  0x55   : > { %v5500_v41 = vcombine.low %v1261_v14, %v1262_v15 }
  0x58   : > { %6087 = vset.pattern.permute.xlu1 %v6629_v9  ;;  %670 = vperm.xlu0 %6093, %v603_v19  }
  0x59   : > { %829 = vperm.xlu1 %6087, %v596_v8  }
  0x5c   : > { %6094 = vset.pattern.permute.xlu0 %v6627_v3 }
  0x5d   : > { %833 = vperm.xlu1 %6087, %v597_v10   ;;  %749 = vperm.xlu0 %6094, %v601_v18  }
  0x61   : > { %6088 = vset.pattern.permute.xlu1 %v6628_v4  ;;  %761 = vperm.xlu0 %6094, %v604_v20  }
  0x62   : > { %650 = vperm.xlu1 %6088, %v599_v21  }
  0x65   : > { %765 = vperm.xlu0 %6094, %v605_v22  }
  0x66   : > { %6089 = vset.pattern.permute.xlu1 %v6627_v3 }
  0x67   : > { %741 = vperm.xlu1 %6089, %v599_v21  }
  0x69   : > { %6099 = vset.pattern.permute.xlu0 %v6629_v9 }
  0x6a   : > { %857 = vperm.xlu0 %6099, %v603_v19  }
  0x6b   : > { %745 = vperm.xlu1 %6089, %v600_v17  }
  0x6e   : > { %869 = vperm.xlu0 %6099, %v606_v24  }
  0x6f   : > { %6090 = vset.pattern.permute.xlu1 %v6628_v4 }
  0x70   : > { %665 = vperm.xlu1 %6090, %v602_v23  }
  0x74   : > { %6091 = vset.pattern.permute.xlu1 %v6627_v3 }
  0x75   : > { %753 = vperm.xlu1 %6091, %v602_v23  }
  0x79   : > { %6092 = vset.pattern.permute.xlu1 %v6629_v9 }
  0x7a   : > { %841 = vperm.xlu1 %6092, %v599_v21  }
  0x7e   : > { %849 = vperm.xlu1 %6092, %v601_v18  }
  0x82   : > { %853 = vperm.xlu1 %6092, %v602_v23   ;;  %v5498_v23 = vcombine.low %v1259_v1, %v1260_v2  ;;  %v1685_v1 = vld [vmem:[%s9397_s7 + $0x88] sm:$0xff] }
  0x83   : > { %v1686_v2 = vld [vmem:[%s9397_s7 + $0xa8] sm:$0xff] }
  0x84   : > { %v5513_v43 = vcombine.high %v1685_v1, %v1686_v2 }
  0x86   : > { %6095 = vset.pattern.permute.xlu1 %v6628_v4 }
  0x87   : > { %675 = vperm.xlu1 %6095, %v604_v20  }
  0x8b   : > { %6096 = vset.pattern.permute.xlu1 %v6627_v3 }
  0x8c   : > { %757 = vperm.xlu1 %6096, %v603_v19  }
  0x90   : > { %6097 = vset.pattern.permute.xlu1 %v6628_v4 }
  0x91   : > { %680 = vperm.xlu1 %6097, %v605_v22  }
  0x95   : > { %685 = vperm.xlu1 %6097, %v606_v24  }
  0x99   : > { %6098 = vset.pattern.permute.xlu1 %v6627_v3 }
  0x9a   : > { %769 = vperm.xlu1 %6098, %v606_v24  }
  0x9e   : > { %6100 = vset.pattern.permute.xlu1 %v6629_v9  ;;  %v5496_v9 = vcombine.low %v1257_v55, %v1258_v58  ;;  %v1684_v55 = vld [vmem:[%s9397_s7 + $0x68] sm:$0xff] }
  0x9f   : > { %861 = vperm.xlu1 %6100, %v604_v20  }
  0xa0   : > { %v710_v25 = vpop.permute.xlu1 %709  ;;  %v611_v26 = vpop.permute.xlu0 %610  ;;  %1354 = vmatpush1.bf16.msra.mxu1 %v5496_v9  ;;  %v5512_v9 = vcombine.low %v1685_v1, %v1686_v2 }
  0xa1   : > { %v776_v50 = vmul.f32 %v6839_v37, %v710_v25  ;;  %v692_v51 = vmul.f32 %v6842_v38, %v611_v26  ;;  %v6913_v25 = vld [vmem:[%s9393_s3] ss:$0 sm:$0xff]  ;;  %1355 = vmatprep.subr.bf16.mxu1 %v5499_v13 }
  0xa3   : > { %865 = vperm.xlu1 %6100, %v605_v22   ;;  %v792_v63 = vadd.f32 %v776_v50, %v692_v51 }
  0xa4   : > { %v714_v28 = vpop.permute.xlu1 %713  ;;  %v616_v29 = vpop.permute.xlu0 %615  ;;  %1356 = vmatpush1.bf16.msra.mxu1 %v5498_v23 }
  0xa5   : > { %v777_v5 = vmul.f32 %v6839_v37, %v714_v28  ;;  %v693_v6 = vmul.f32 %v6842_v38, %v616_v29  ;;  %v5501_v29 = vcombine.high %v1261_v14, %v1262_v15  ;;  %v1689_v14 = vld [vmem:[%s9397_s7 + $0x108] sm:$0xff] }
  0xa6   : > { %v1690_v15 = vld [vmem:[%s9397_s7 + $0x128] sm:$0xff] }
  0xa7   : > { %v793_v19 = vadd.f32 %v777_v5, %v693_v6  ;;  %1357 = vmatprep.subr.bf16.mxu1 %v5501_v29  ;;  %v1687_v6 = vld [vmem:[%s9397_s7 + $0xc8] sm:$0xff]  ;;  %v5516_v29 = vcombine.low %v1689_v14, %v1690_v15 }
  0xa8   : > { %v621_v31 = vpop.permute.xlu0 %620  ;;  %1358 = vmatpush1.bf16.msra.mxu1 %v5500_v41 }
  0xa9   : > { %v626_v34 = vpop.permute.xlu1 %625  ;;  %v694_v56 = vmul.f32 %v6842_v38, %v621_v31 }
  0xaa   : > { %v695_v16 = vmul.f32 %v6842_v38, %v626_v34 }
  0xad   : > { %v718_v39 = vpop.permute.xlu0 %717 }
  0xae   : > { %v722_v40 = vpop.permute.xlu1 %721  ;;  %v778_v57 = vmul.f32 %v6839_v37, %v718_v39 }
  0xaf   : > { %v779_v10 = vmul.f32 %v6839_v37, %v722_v40 }
  0xb0   : > { %v794_v3 = vadd.f32 %v778_v57, %v694_v56 }
  0xb1   : > { %v6871_v52 = vpop.permute.xlu0 %729  ;;  %v795_v24 = vadd.f32 %v779_v10, %v695_v16 }
  0xb3   : > { %v810_v59 = vpop.permute.xlu1 %809 }
  0xb4   : > { %v876_v61 = vmul.f32 %v6856_v44, %v810_v59 }
  0xb5   : > { %v6884_v0 = vpop.permute.xlu0 %733 }
  0xb6   : > { %v892_v7 = vadd.f32 %v876_v61, %v792_v63  ;;  %v5511_v63 = vcombine.high %v1683_v54, %v1684_v55 }
  0xb7   : > { %v818_v8 = vpop.permute.xlu1 %817 }
  0xb8   : > { %v878_v12 = vmul.f32 %v6856_v44, %v818_v8  ;;  %v915_v20 = vmul.f32 %v6898_v11, %v892_v7  ;;  %v1688_v7 = vld [vmem:[%s9397_s7 + $0xe8] sm:$0xff] }
  0xba   : > { %v894_v17 = vadd.f32 %v878_v12, %v794_v3  ;;  %v814_v18 = vpop.permute.xlu0 %813  ;;  %v938_v40 = vadd.f32 %v6913_v25, %v915_v20  ;;  %v5510_v3 = vcombine.low %v1683_v54, %v1684_v55  ;;  %v5515_v12 = vcombine.high %v1687_v6, %v1688_v7 }
  0xbb   : > { %v877_v21 = vmul.f32 %v6856_v44, %v814_v18  ;;  %v822_v22 = vpop.permute.xlu1 %821  ;;  %v5514_v18 = vcombine.low %v1687_v6, %v1688_v7 }
  0xbc   : > { %v917_v26 = vmul.f32 %v6898_v11, %v894_v17  ;;  %v879_v28 = vmul.f32 %v6856_v44, %v822_v22  ;;  %v954_v51 = vmax.f32 %v938_v40, 0.0 }
  0xbd   : > { %v893_v31 = vadd.f32 %v877_v21, %v793_v19  ;;  %v5517_v19 = vcombine.high %v1689_v14, %v1690_v15  ;;  %v781_v21 = vmul.f32 %v6839_v37, %v6871_v52 }
  0xbe   : > { %v895_v34 = vadd.f32 %v879_v28, %v795_v24  ;;  %v826_v35 = vpop.permute.xlu0 %825  ;;  %v940_v42 = vadd.f32 %v6913_v25, %v917_v26 }
  0xbf   : > { %v916_v39 = vmul.f32 %v6898_v11, %v893_v31  ;;  %v880_v16 = vmul.f32 %v6856_v44, %v826_v35 }
  0xc0   : > { %v918_v45 = vmul.f32 %v6898_v11, %v895_v34  ;;  %v636_v47 = vpop.permute.xlu1 %635  ;;  %v956_v56 = vmax.f32 %v940_v42, 0.0  ;;  %v782_v34 = vmul.f32 %v6839_v37, %v6884_v0 }
  0xc1   : > { %v939_v48 = vadd.f32 %v6913_v25, %v916_v39  ;;  %v697_v24 = vmul.f32 %v6842_v38, %v636_v47 }
  0xc2   : > { %v941_v49 = vadd.f32 %v6913_v25, %v918_v45  ;;  %v838_v50 = vpop.permute.xlu0 %837 }
  0xc3   : > { %v955_v53 = vmax.f32 %v939_v48, 0.0  ;;  %v883_v26 = vmul.f32 %v6856_v44, %v838_v50  ;;  %v797_v52 = vadd.f32 %v781_v21, %v697_v24 }
  0xc4   : > { %v957_v57 = vmax.f32 %v941_v49, 0.0 }
  0xc5   : > { %v726_v58 = vpop.permute.xlu1 %725  ;;  %v970_v59 = vpack.c.bf16 %v955_v53, %v954_v51 }
  0xc6   : > { %v6931_v61 = vpop.permute.xlu0 %845  ;;  %v971_v62 = vpack.c.bf16 %v957_v57, %v956_v56  ;;  %v780_v13 = vmul.f32 %v6839_v37, %v726_v58 }
  0xc7   : > { %5934 = vmatprep.mubr.msk.bf16.mxu0 %vm1010_vm0, %v970_v59 }
  0xc8   : > { %5935 = vmatmul.mubr.msk.bf16.vlgmr.msra.gmra.mrb[0].mxu0 %vm1010_vm0, %v971_v62 }
  0xc9   : > { %1778 = vmatpush1.bf16.msra.mxu0 %v5508_v60 }
  0xca   : > { %v641_v5 = vpop.permute.xlu1 %640  ;;  %1779 = vmatprep.subr.bf16.mxu0 %v5511_v63 }
  0xcb   : > { %v631_v46 = vpop.permute.xlu0 %630  ;;  %v698_v35 = vmul.f32 %v6842_v38, %v641_v5 }
  0xcc   : > { %v696_v8 = vmul.f32 %v6842_v38, %v631_v46 }
  0xcd   : > { %1780 = vmatpush1.bf16.msra.mxu0 %v5510_v3  ;;  %v798_v47 = vadd.f32 %v782_v34, %v698_v35 }
  0xce   : > { %v646_v10 = vpop.permute.xlu1 %645  ;;  %1781 = vmatprep.subr.bf16.mxu0 %v5513_v43  ;;  %v796_v17 = vadd.f32 %v780_v13, %v696_v8 }
  0xcf   : > { %v699_v22 = vmul.f32 %v6842_v38, %v646_v10  ;;  %v656_v2 = vpop.permute.xlu0 %655  ;;  %v885_v10 = vmul.f32 %v6856_v44, %v6931_v61 }
  0xd0   : > { %v896_v28 = vadd.f32 %v880_v16, %v796_v17  ;;  %v701_v7 = vmul.f32 %v6842_v38, %v656_v2 }
  0xd1   : > { %1782 = vmatpush1.bf16.msra.mxu0 %v5512_v9 }
  0xd2   : > { %1783 = vmatprep.subr.bf16.mxu0 %v5515_v12  ;;  %v919_v40 = vmul.f32 %v6898_v11, %v896_v28 }
  0xd3   : > { %v738_v20 = vpop.permute.xlu1 %737  ;;  %v661_v43 = vpop.permute.xlu0 %660 }
  0xd4   : > { %v783_v23 = vmul.f32 %v6839_v37, %v738_v20  ;;  %v942_v49 = vadd.f32 %v6913_v25, %v919_v40 }
  0xd5   : > { %1784 = vmatpush1.bf16.msra.mxu0 %v5514_v18  ;;  %v702_v18 = vmul.f32 %v6842_v38, %v661_v43 }
  0xd6   : > { %v799_v31 = vadd.f32 %v783_v23, %v699_v22  ;;  %1785 = vmatprep.subr.bf16.mxu0 %v5517_v19  ;;  %v958_v55 = vmax.f32 %v942_v49, 0.0 }
  0xd7   : > { %v671_v9 = vpop.permute.xlu0 %670 }
  0xd8   : > { %v830_v39 = vpop.permute.xlu1 %829  ;;  %v899_v41 = vadd.f32 %v883_v26, %v799_v31 }
  0xd9   : > { %v881_v42 = vmul.f32 %v6856_v44, %v830_v39  ;;  %1786 = vmatpush1.bf16.msra.mxu0 %v5516_v29 }
  0xda   : > { %v922_v50 = vmul.f32 %v6898_v11, %v899_v41 }
  0xdb   : > { %v897_v45 = vadd.f32 %v881_v42, %v797_v52 }
  0xdc   : > { %v834_v48 = vpop.permute.xlu1 %833  ;;  %v945_v56 = vadd.f32 %v6913_v25, %v922_v50  ;;  %v750_v15 = vpop.permute.xlu0 %749 }
  0xdd   : > { %v920_v51 = vmul.f32 %v6898_v11, %v897_v45  ;;  %v882_v0 = vmul.f32 %v6856_v44, %v834_v48  ;;  %v786_v19 = vmul.f32 %v6839_v37, %v750_v15 }
  0xde   : > { %v961_v63 = vmax.f32 %v945_v56, 0.0 }
  0xdf   : > { %v943_v53 = vadd.f32 %v6913_v25, %v920_v51  ;;  %v898_v54 = vadd.f32 %v882_v0, %v798_v47  ;;  %v802_v61 = vadd.f32 %v786_v19, %v702_v18 }
  0xe1   : > { %v959_v57 = vmax.f32 %v943_v53, 0.0  ;;  %v921_v58 = vmul.f32 %v6898_v11, %v898_v54  ;;  %v651_v59 = vpop.permute.xlu1 %650 }
  0xe2   : > { %v700_v17 = vmul.f32 %v6842_v38, %v651_v59 }
  0xe3   : > { %v944_v60 = vadd.f32 %v6913_v25, %v921_v58  ;;  %v972_v62 = vpack.c.bf16 %v959_v57, %v958_v55  ;;  %v762_v55 = vpop.permute.xlu0 %761 }
  0xe4   : > { %v789_v18 = vmul.f32 %v6839_v37, %v762_v55 }
  0xe5   : > { %v960_v1 = vmax.f32 %v944_v60, 0.0  ;;  %5938 = vmatprep.mubr.msk.bf16.mxu0 %vm1010_vm0, %v972_v62 }
  0xe6   : > { %v742_v3 = vpop.permute.xlu1 %741 }
  0xe7   : > { %v973_v5 = vpack.c.bf16 %v961_v63, %v960_v1  ;;  %v784_v16 = vmul.f32 %v6839_v37, %v742_v3  ;;  %v766_v60 = vpop.permute.xlu0 %765  ;;  %v704_v3 = vmul.f32 %v6842_v38, %v671_v9 }
  0xe9   : > { %5939 = vmatmul.mubr.msk.bf16.gmra.mrb[4].mxu0 %vm1010_vm0, %v973_v5  ;;  %v800_v22 = vadd.f32 %v784_v16, %v700_v17 }
  0xea   : > { %v746_v46 = vpop.permute.xlu1 %745 }
  0xeb   : > { %v785_v6 = vmul.f32 %v6839_v37, %v746_v46  ;;  %v858_v1 = vpop.permute.xlu0 %857 }
  0xec   : > { %v888_v43 = vmul.f32 %v6856_v44, %v858_v1 }
  0xed   : > { %v801_v12 = vadd.f32 %v785_v6, %v701_v7  ;;  %v1263_v6 = vld [vmem:[%s9397_s7 + $0x140] sm:$0xff] }
  0xee   : > { %v1264_v7 = vld [vmem:[%s9397_s7 + $0x160] sm:$0xff] }
  0xef   : > { %v666_v8 = vpop.permute.xlu1 %665  ;;  %v901_v14 = vadd.f32 %v885_v10, %v801_v12  ;;  %v870_v46 = vpop.permute.xlu0 %869  ;;  %v5503_v9 = vcombine.high %v1263_v6, %v1264_v7  ;;  %v5502_v17 = vcombine.low %v1263_v6, %v1264_v7  ;;  %v2073_v7 = vld [vmem:[%s9397_s7 + $0x10] sm:$0xff] }
  0xf0   : > { %v703_v35 = vmul.f32 %v6842_v38, %v666_v8  ;;  %v1691_v8 = vld [vmem:[%s9397_s7 + $0x148] sm:$0xff] }
  0xf1   : > { %v924_v20 = vmul.f32 %v6898_v11, %v901_v14  ;;  %1359 = vmatprep.subr.bf16.mxu1 %v5503_v9 }
  0xf2   : > { %1360 = vmatpush1.bf16.msra.mxu1 %v5502_v17 }
  0xf3   : > { %v947_v26 = vadd.f32 %v6913_v25, %v924_v20 }
  0xf4   : > { %v754_v13 = vpop.permute.xlu1 %753 }
  0xf5   : > { %v787_v29 = vmul.f32 %v6839_v37, %v754_v13  ;;  %v963_v40 = vmax.f32 %v947_v26, 0.0  ;;  %v1692_v13 = vld [vmem:[%s9397_s7 + $0x168] sm:$0xff] }
  0xf6   : > { %v5518_v15 = vcombine.low %v1691_v8, %v1692_v13  ;;  %v5519_v16 = vcombine.high %v1691_v8, %v1692_v13  ;;  %v7077_v13 = vld [vmem:[%s9395_s5] ss:$0 sm:$0xff] }
  0xf7   : > { %v803_v42 = vadd.f32 %v787_v29, %v703_v35  ;;  %v1694_v29 = vld [vmem:[%s9397_s7 + $0x1a8] sm:$0xff] }
  0xf8   : > { %1787 = vmatprep.subr.bf16.mxu0 %v5519_v16 }
  0xf9   : > { %v842_v21 = vpop.permute.xlu1 %841  ;;  %1788 = vmatpush1.bf16.msra.mxu0 %v5518_v15  ;;  %v7082_v15 = vld [vmem:[%s9396_s6] ss:$0 sm:$0xff] }
  0xfa   : > { %v884_v23 = vmul.f32 %v6856_v44, %v842_v21  ;;  %v891_v21 = vmul.f32 %v6856_v44, %v870_v46 }
  0xfc   : > { %v900_v24 = vadd.f32 %v884_v23, %v800_v22  ;;  %v1265_v23 = vld [vmem:[%s9397_s7 + $0x180] sm:$0xff] }
  0xfd   : > { %v850_v28 = vpop.permute.xlu1 %849 }
  0xfe   : > { %v923_v31 = vmul.f32 %v6898_v11, %v900_v24  ;;  %v886_v34 = vmul.f32 %v6856_v44, %v850_v28  ;;  %v1266_v24 = vld [vmem:[%s9397_s7 + $0x1a0] sm:$0xff]  ;;  %v1693_v28 = vld [vmem:[%s9397_s7 + $0x188] sm:$0xff] }
  0xff   : > { %v5505_v26 = vcombine.high %v1265_v23, %v1266_v24  ;;  %v5520_v35 = vcombine.low %v1693_v28, %v1694_v29 }
 0x100   : > { %v946_v39 = vadd.f32 %v6913_v25, %v923_v31  ;;  %v902_v52 = vadd.f32 %v886_v34, %v802_v61  ;;  %v790_v61 = vmul.f32 %v6839_v37, %v766_v60 }
 0x101   : > { %v854_v41 = vpop.permute.xlu1 %853  ;;  %1361 = vmatprep.subr.bf16.mxu1 %v5505_v26 }
 0x102   : > { %v962_v45 = vmax.f32 %v946_v39, 0.0  ;;  %v925_v47 = vmul.f32 %v6898_v11, %v902_v52  ;;  %v887_v48 = vmul.f32 %v6856_v44, %v854_v41  ;;  %v5521_v39 = vcombine.high %v1693_v28, %v1694_v29 }
 0x103   : > { %v5504_v52 = vcombine.low %v1265_v23, %v1266_v24 }
 0x104   : > { %v903_v49 = vadd.f32 %v887_v48, %v803_v42  ;;  %v974_v50 = vpack.c.bf16 %v963_v40, %v962_v45  ;;  %v948_v51 = vadd.f32 %v6913_v25, %v925_v47  ;;  %1789 = vmatprep.subr.bf16.mxu0 %v5521_v39  ;;  %v1267_v45 = vld [vmem:[%s9397_s7 + $0x1c0] sm:$0xff]  ;;  %v1695_v47 = vld [vmem:[%s9397_s7 + $0x1c8] sm:$0xff]  ;;  %v2076_v39 = vld [vmem:[%s9397_s7 + $0x70] sm:$0xff] }
 0x105   : > { %1362 = vmatpush1.bf16.msra.mxu1 %v5504_v52  ;;  %1790 = vmatpush1.bf16.msra.mxu0 %v5520_v35  ;;  %v2467_v52 = vld [vmem:[%s9397_s7 + $0x58] sm:$0xff] }
 0x106   : > { %v926_v0 = vmul.f32 %v6898_v11, %v903_v49  ;;  %v676_v53 = vpop.permute.xlu1 %675  ;;  %5942 = vmatprep.mubr.msk.bf16.mxu0 %vm1010_vm0, %v974_v50  ;;  %v964_v56 = vmax.f32 %v948_v51, 0.0  ;;  %v1696_v50 = vld [vmem:[%s9397_s7 + $0x1e8] sm:$0xff] }
 0x107   : > { %v705_v19 = vmul.f32 %v6842_v38, %v676_v53  ;;  %v5522_v53 = vcombine.low %v1695_v47, %v1696_v50 }
 0x108   : > { %v949_v54 = vadd.f32 %v6913_v25, %v926_v0 }
 0x109   : > { %v805_v40 = vadd.f32 %v789_v18, %v705_v19 }
 0x10a   : > { %v965_v57 = vmax.f32 %v949_v54, 0.0  ;;  %v5523_v54 = vcombine.high %v1695_v47, %v1696_v50  ;;  %v2470_v50 = vld [vmem:[%s9397_s7 + $0xb8] sm:$0xff] }
 0x10b   : > { %v758_v58 = vpop.permute.xlu1 %757 }
 0x10c   : > { %v975_v59 = vpack.c.bf16 %v965_v57, %v964_v56  ;;  %v788_v63 = vmul.f32 %v6839_v37, %v758_v58  ;;  %1791 = vmatprep.subr.bf16.mxu0 %v5523_v54  ;;  %v2079_v54 = vld [vmem:[%s9397_s7 + $0xd0] sm:$0xff] }
 0x10d   : > { %1792 = vmatpush1.bf16.msra.mxu0 %v5522_v53 }
 0x10e   : > { %5943 = vmatmul.mubr.msk.bf16.gmra.mrb[8].mxu0 %vm1010_vm0, %v975_v59  ;;  %v804_v5 = vadd.f32 %v788_v63, %v704_v3 }
 0x110   : > { %v681_v62 = vpop.permute.xlu1 %680  ;;  %v904_v20 = vadd.f32 %v888_v43, %v804_v5 }
 0x111   : > { %v706_v31 = vmul.f32 %v6842_v38, %v681_v62 }
 0x112   : > { %v927_v41 = vmul.f32 %v6898_v11, %v904_v20 }
 0x113   : > { %v806_v51 = vadd.f32 %v790_v61, %v706_v31  ;;  %v2075_v31 = vld [vmem:[%s9397_s7 + $0x50] sm:$0xff] }
 0x114   : > { %v686_v2 = vpop.permute.xlu1 %685  ;;  %v950_v56 = vadd.f32 %v6913_v25, %v927_v41 }
 0x115   : > { %v707_v10 = vmul.f32 %v6842_v38, %v686_v2  ;;  %v1268_v38 = vld [vmem:[%s9397_s7 + $0x1e0] sm:$0xff] }
 0x116   : > { %v5507_v49 = vcombine.high %v1267_v45, %v1268_v38  ;;  %v5506_v55 = vcombine.low %v1267_v45, %v1268_v38  ;;  %v966_v63 = vmax.f32 %v950_v56, 0.0  ;;  %v5527_v45 = vcombine.high %v2075_v31, %v2076_v39  ;;  %v2077_v38 = vld [vmem:[%s9397_s7 + $0x90] sm:$0xff] }
 0x117   : > { %v2080_v56 = vld [vmem:[%s9397_s7 + $0xf0] sm:$0xff] }
 0x118   : > { %1363 = vmatprep.subr.bf16.mxu1 %v5507_v49  ;;  %v2469_v49 = vld [vmem:[%s9397_s7 + $0x98] sm:$0xff] }
 0x119   : > { %v770_v12 = vpop.permute.xlu1 %769  ;;  %1364 = vmatpush1.bf16.msra.mxu1 %v5506_v55  ;;  %v7135_v55 = vcombine.high %v2469_v49, %v2470_v50 }
 0x11a   : > { %v791_v14 = vmul.f32 %v6839_v37, %v770_v12  ;;  %v2466_v12 = vld [vmem:[%s9397_s7 + $0x38] sm:$0xff] }
 0x11c   : > { %v807_v22 = vadd.f32 %v791_v14, %v707_v10  ;;  %v2465_v10 = vld [vmem:[%s9397_s7 + $0x18] sm:$0xff] }
 0x11d   : > { %v7071_v9 = vcombine.high %v2465_v10, %v2466_v12 }
 0x11e   : > { %v862_v34 = vpop.permute.xlu1 %861  ;;  %v907_v37 = vadd.f32 %v891_v21, %v807_v22 }
 0x11f   : > { %v889_v42 = vmul.f32 %v6856_v44, %v862_v34  ;;  %2561 = vmatprep.subr.bf16.mxu0 %v7071_v9 }
 0x120   : > { %v930_v57 = vmul.f32 %v6898_v11, %v907_v37 }
 0x121   : > { %v905_v48 = vadd.f32 %v889_v42, %v805_v40  ;;  %v2468_v40 = vld [vmem:[%s9397_s7 + $0x78] sm:$0xff]  ;;  %v7108_v42 = vcombine.low %v2465_v10, %v2466_v12 }
 0x122   : > { %v866_v0 = vpop.permute.xlu1 %865  ;;  %v953_v1 = vadd.f32 %v6913_v25, %v930_v57  ;;  %v7113_v47 = vcombine.high %v2467_v52, %v2468_v40  ;;  %v2471_v57 = vld [vmem:[%s9397_s7 + $0xd8] sm:$0xff] }
 0x123   : > { %v928_v58 = vmul.f32 %v6898_v11, %v905_v48  ;;  %v890_v59 = vmul.f32 %v6856_v44, %v866_v0  ;;  %v2078_v48 = vld [vmem:[%s9397_s7 + $0xb0] sm:$0xff]  ;;  %v7129_v0 = vcombine.low %v2467_v52, %v2468_v40 }
 0x124   : > { %v969_v46 = vmax.f32 %v953_v1, 0.0  ;;  %v5529_v53 = vcombine.high %v2077_v38, %v2078_v48 }
 0x125   : > { %v951_v60 = vadd.f32 %v6913_v25, %v928_v58  ;;  %v906_v62 = vadd.f32 %v890_v59, %v806_v51  ;;  %v5526_v51 = vcombine.low %v2075_v31, %v2076_v39  ;;  %v2472_v58 = vld [vmem:[%s9397_s7 + $0xf8] sm:$0xff]  ;;  %v5528_v59 = vcombine.low %v2077_v38, %v2078_v48 }
 0x126   : > { %v7153_v1 = vcombine.high %v2471_v57, %v2472_v58 }
 0x127   : > { %v967_v2 = vmax.f32 %v951_v60, 0.0  ;;  %v929_v3 = vmul.f32 %v6898_v11, %v906_v62  ;;  %v2074_v11 = vld [vmem:[%s9397_s7 + $0x30] sm:$0xff]  ;;  %v7147_v60 = vcombine.low %v2469_v49, %v2470_v50  ;;  %v5531_v62 = vcombine.high %v2079_v54, %v2080_v56 }
 0x128   : > { %v5524_v8 = vcombine.low %v2073_v7, %v2074_v11 }
 0x129   : > { %v952_v5 = vadd.f32 %v6913_v25, %v929_v3  ;;  %v976_v43 = vpack.c.bf16 %v967_v2, %v966_v63  ;;  %v5525_v25 = vcombine.high %v2073_v7, %v2074_v11  ;;  %v2081_v63 = vld [vmem:[%s9397_s7 + $0x110] sm:$0xff]  ;;  %v2473_v3 = vld [vmem:[%s9397_s7 + $0x118] sm:$0xff] }
 0x12a   : > { %v2082_v2 = vld [vmem:[%s9397_s7 + $0x130] sm:$0xff] }
 0x12b   : > { %v968_v6 = vmax.f32 %v952_v5, 0.0  ;;  %5946 = vmatprep.mubr.msk.bf16.mxu0 %vm1010_vm0, %v976_v43  ;;  %2169 = vmatprep.subr.bf16.mxu1 %v5525_v25  ;;  %v2474_v5 = vld [vmem:[%s9397_s7 + $0x138] sm:$0xff]  ;;  %v5530_v43 = vcombine.low %v2079_v54, %v2080_v56  ;;  %v2084_v11 = vld [vmem:[%s9397_s7 + $0x170] sm:$0xff]  ;;  %v5532_v10 = vcombine.low %v2081_v63, %v2082_v2 }
 0x12c   : > { %v7175_v7 = vcombine.high %v2473_v3, %v2474_v5  ;;  %v2476_v25 = vld [vmem:[%s9397_s7 + $0x178] sm:$0xff]  ;;  %v7187_v12 = vcombine.low %v2473_v3, %v2474_v5 }
 0x12d   : > { %v977_v44 = vpack.c.bf16 %v969_v46, %v968_v6  ;;  %v7169_v46 = vcombine.low %v2471_v57, %v2472_v58  ;;  %v5533_v6 = vcombine.high %v2081_v63, %v2082_v2 }
 0x12f   : > { %5947 = vmatmul.mubr.msk.bf16.gmra.mrb[12].mxu0 %vm1010_vm0, %v977_v44  ;;  %v2083_v44 = vld [vmem:[%s9397_s7 + $0x150] sm:$0xff] }
 0x130   : > { %1809 = vmatprep.mubr.bf16.mxu0 %v6628_v4 }
 0x19b   : > { %v5936_v14 = vpop.f32.mrb[0].mxu0 }
 0x19c   : > { %v1141_v16 = vmul.f32 %v5936_v14, %v7077_v13  ;;  %v1069_v17 = vpop.f32.mrb[1].mxu0  ;;  %v5535_v14 = vcombine.high %v2083_v44, %v2084_v11 }
 0x19d   : > { %v1139_v18 = vmul.f32 %v7077_v13, %v1069_v17  ;;  %v5937_v19 = vpop.f32.mrb[2].mxu0 }
 0x19e   : > { %v1164_v20 = vadd.f32 %v7082_v15, %v1141_v16  ;;  %v1142_v21 = vmul.f32 %v5937_v19, %v7077_v13  ;;  %v1072_v22 = vpop.f32.mrb[3].mxu0  ;;  %v2085_v16 = vld [vmem:[%s9397_s7 + $0x190] sm:$0xff]  ;;  %v2477_v19 = vld [vmem:[%s9397_s7 + $0x198] sm:$0xff] }
 0x19f   : > { %v1162_v23 = vadd.f32 %v7082_v15, %v1139_v18  ;;  %v1140_v24 = vmul.f32 %v7077_v13, %v1072_v22  ;;  %v2086_v18 = vld [vmem:[%s9397_s7 + $0x1b0] sm:$0xff] }
 0x1a0   : > { %v1165_v61 = vadd.f32 %v7082_v15, %v1142_v21  ;;  %v1180_v28 = vmax.f32 %v1164_v20, 0.0  ;;  %v2478_v20 = vld [vmem:[%s9397_s7 + $0x1b8] sm:$0xff]  ;;  %v5534_v21 = vcombine.low %v2083_v44, %v2084_v11  ;;  %v5536_v39 = vcombine.low %v2085_v16, %v2086_v18 }
 0x1a1   : > { %v1163_v26 = vadd.f32 %v7082_v15, %v1140_v24  ;;  %v1178_v34 = vmax.f32 %v1162_v23, 0.0  ;;  %v5537_v23 = vcombine.high %v2085_v16, %v2086_v18  ;;  %v2087_v24 = vld [vmem:[%s9397_s7 + $0x1d0] sm:$0xff]  ;;  %v7224_v52 = vcombine.low %v2477_v19, %v2478_v20 }
 0x1a2   : > { %v1181_v29 = vmax.f32 %v1165_v61, 0.0  ;;  %v7211_v61 = vcombine.high %v2477_v19, %v2478_v20 }
 0x1a3   : > { %v1179_v35 = vmax.f32 %v1163_v26, 0.0  ;;  %v2088_v26 = vld [vmem:[%s9397_s7 + $0x1f0] sm:$0xff] }
 0x1a4   : > { %v7104_v41 = vpack.c.bf16 %v1181_v29, %v1180_v28  ;;  %v2479_v28 = vld [vmem:[%s9397_s7 + $0x1d8] sm:$0xff]  ;;  %v5539_v38 = vcombine.high %v2087_v24, %v2088_v26  ;;  %v5538_v57 = vcombine.low %v2087_v24, %v2088_v26 }
 0x1a5   : > { %v7106_v37 = vpack.c.bf16 %v1179_v35, %v1178_v34  ;;  %v2480_v29 = vld [vmem:[%s9397_s7 + $0x1f8] sm:$0xff] }
 0x1a6   : > { %v7228_v48 = vcombine.high %v2479_v28, %v2480_v29  ;;  %v7236_v58 = vcombine.low %v2479_v28, %v2480_v29 }
 0x1a7   : > { %1382 = vmatmul.mubr.bf16.vlgmr.msra.gmra.mrb[0].mxu1 %v7106_v37  ;;  %1810 = vmatmul.mubr.bf16.vlgmr.msra.gmra.mrb[16].mxu0 %v7106_v37 }
 0x1a8   : > { %1391 = vmatprep.mubr.bf16.mxu1 %v6628_v4  ;;  %1819 = vmatprep.mubr.bf16.mxu0 %v6628_v4 }
 0x1a9   : > { %2170 = vmatpush1.bf16.msra.mxu1 %v5524_v8  ;;  %2562 = vmatpush1.bf16.msra.mxu0 %v7108_v42  ;;  %v2475_v8 = vld [vmem:[%s9397_s7 + $0x158] sm:$0xff] }
 0x1aa   : > { %2171 = vmatprep.subr.bf16.mxu1 %v5527_v45  ;;  %2563 = vmatprep.subr.bf16.mxu0 %v7113_v47  ;;  %v7193_v17 = vcombine.high %v2475_v8, %v2476_v25  ;;  %v7205_v22 = vcombine.low %v2475_v8, %v2476_v25 }
 0x1ad   : > { %2172 = vmatpush1.bf16.msra.mxu1 %v5526_v51  ;;  %2564 = vmatpush1.bf16.msra.mxu0 %v7129_v0 }
 0x1ae   : > { %2173 = vmatprep.subr.bf16.mxu1 %v5529_v53  ;;  %2565 = vmatprep.subr.bf16.mxu0 %v7135_v55 }
 0x1af   : > { %1392 = vmatmul.mubr.bf16.gmra.mrb[4].mxu1 %v7104_v41  ;;  %1820 = vmatmul.mubr.bf16.gmra.mrb[20].mxu0 %v7104_v41 }
 0x1b0   : > { %1401 = vmatprep.mubr.bf16.mxu1 %v6628_v4  ;;  %1829 = vmatprep.mubr.bf16.mxu0 %v6628_v4 }
 0x1b1   : > { %2174 = vmatpush1.bf16.msra.mxu1 %v5528_v59  ;;  %2566 = vmatpush1.bf16.msra.mxu0 %v7147_v60 }
 0x1b2   : > { %2175 = vmatprep.subr.bf16.mxu1 %v5531_v62  ;;  %2567 = vmatprep.subr.bf16.mxu0 %v7153_v1 }
 0x1b5   : > { %2176 = vmatpush1.bf16.msra.mxu1 %v5530_v43  ;;  %2568 = vmatpush1.bf16.msra.mxu0 %v7169_v46 }
 0x1b6   : > { %2177 = vmatprep.subr.bf16.mxu1 %v5533_v6  ;;  %2569 = vmatprep.subr.bf16.mxu0 %v7175_v7 }
 0x1b9   : > { %2178 = vmatpush1.bf16.msra.mxu1 %v5532_v10  ;;  %2570 = vmatpush1.bf16.msra.mxu0 %v7187_v12 }
 0x1ba   : > { %2179 = vmatprep.subr.bf16.mxu1 %v5535_v14  ;;  %2571 = vmatprep.subr.bf16.mxu0 %v7193_v17 }
 0x1bc   : > { %v5940_v31 = vpop.f32.mrb[4].mxu0 }
 0x1bd   : > { %v1145_v34 = vmul.f32 %v5940_v31, %v7077_v13  ;;  %v1085_v35 = vpop.f32.mrb[5].mxu0  ;;  %2180 = vmatpush1.bf16.msra.mxu1 %v5534_v21  ;;  %2572 = vmatpush1.bf16.msra.mxu0 %v7205_v22 }
 0x1be   : > { %v1143_v40 = vmul.f32 %v7077_v13, %v1085_v35  ;;  %v5941_v45 = vpop.f32.mrb[6].mxu0  ;;  %2181 = vmatprep.subr.bf16.mxu1 %v5537_v23  ;;  %2573 = vmatprep.subr.bf16.mxu0 %v7211_v61 }
 0x1bf   : > { %v1168_v49 = vadd.f32 %v7082_v15, %v1145_v34  ;;  %v1146_v50 = vmul.f32 %v5941_v45, %v7077_v13  ;;  %v1088_v51 = vpop.f32.mrb[7].mxu0 }
 0x1c0   : > { %v1166_v53 = vadd.f32 %v7082_v15, %v1143_v40  ;;  %v1144_v54 = vmul.f32 %v7077_v13, %v1088_v51 }
 0x1c1   : > { %v1169_v56 = vadd.f32 %v7082_v15, %v1146_v50  ;;  %2182 = vmatpush1.bf16.msra.mxu1 %v5536_v39  ;;  %2574 = vmatpush1.bf16.msra.mxu0 %v7224_v52  ;;  %v1184_v62 = vmax.f32 %v1168_v49, 0.0 }
 0x1c2   : > { %v1167_v59 = vadd.f32 %v7082_v15, %v1144_v54  ;;  %2183 = vmatprep.subr.bf16.mxu1 %v5539_v38  ;;  %2575 = vmatprep.subr.bf16.mxu0 %v7228_v48  ;;  %v1182_v2 = vmax.f32 %v1166_v53, 0.0 }
 0x1c3   : > { %v1185_v63 = vmax.f32 %v1169_v56, 0.0 }
 0x1c4   : > { %v1183_v3 = vmax.f32 %v1167_v59, 0.0 }
 0x1c5   : > { %v7240_v5 = vpack.c.bf16 %v1185_v63, %v1184_v62  ;;  %2184 = vmatpush1.bf16.msra.mxu1 %v5538_v57  ;;  %2576 = vmatpush1.bf16.msra.mxu0 %v7236_v58 }
 0x1c6   : > { %v7243_v43 = vpack.c.bf16 %v1183_v3, %v1182_v2  ;;  %5982 = vmatprep.subr.bf16.mxu1 %v7071_v9 }
 0x1c8   : > { %1402 = vmatmul.mubr.bf16.gmra.mrb[8].mxu1 %v7243_v43  ;;  %1830 = vmatmul.mubr.bf16.gmra.mrb[24].mxu0 %v7243_v43 }
 0x1c9   : > { %1411 = vmatprep.mubr.bf16.mxu1 %v6628_v4  ;;  %1839 = vmatprep.mubr.bf16.mxu0 %v6628_v4 }
 0x1d0   : > { %1412 = vmatmul.mubr.bf16.gmra.mrb[12].mxu1 %v7240_v5  ;;  %1840 = vmatmul.mubr.bf16.gmra.mrb[28].mxu0 %v7240_v5 }
 0x1d1   : > { %1421 = vmatprep.mubr.bf16.mxu1 %v6628_v4  ;;  %1849 = vmatprep.mubr.bf16.mxu0 %v6628_v4 }
 0x1e1   : > { %v5944_v6 = vpop.f32.mrb[8].mxu0 }
 0x1e2   : > { %v1149_v44 = vmul.f32 %v5944_v6, %v7077_v13  ;;  %v1101_v9 = vpop.f32.mrb[9].mxu0 }
 0x1e3   : > { %v1147_v11 = vmul.f32 %v7077_v13, %v1101_v9  ;;  %v5945_v8 = vpop.f32.mrb[10].mxu0 }
 0x1e4   : > { %v1172_v25 = vadd.f32 %v7082_v15, %v1149_v44  ;;  %v1150_v10 = vmul.f32 %v5945_v8, %v7077_v13  ;;  %v1104_v14 = vpop.f32.mrb[11].mxu0 }
 0x1e5   : > { %v1170_v16 = vadd.f32 %v7082_v15, %v1147_v11  ;;  %v1148_v18 = vmul.f32 %v7077_v13, %v1104_v14 }
 0x1e6   : > { %v1173_v19 = vadd.f32 %v7082_v15, %v1150_v10  ;;  %v1188_v21 = vmax.f32 %v1172_v25, 0.0 }
 0x1e7   : > { %v1171_v20 = vadd.f32 %v7082_v15, %v1148_v18  ;;  %v1186_v24 = vmax.f32 %v1170_v16, 0.0 }
 0x1e8   : > { %v1189_v23 = vmax.f32 %v1173_v19, 0.0 }
 0x1e9   : > { %v1187_v26 = vmax.f32 %v1171_v20, 0.0 }
 0x1ea   : > { %v7262_v28 = vpack.c.bf16 %v1189_v23, %v1188_v21 }
 0x1eb   : > { %v7264_v29 = vpack.c.bf16 %v1187_v26, %v1186_v24 }
 0x1ed   : > { %1422 = vmatmul.mubr.bf16.gmra.mrb[16].mxu1 %v7264_v29  ;;  %1850 = vmatmul.mubr.bf16.gmra.mrb[32].mxu0 %v7264_v29 }
 0x1ee   : > { %1431 = vmatprep.mubr.bf16.mxu1 %v6628_v4  ;;  %1859 = vmatprep.mubr.bf16.mxu0 %v6628_v4 }
 0x1f5   : > { %1432 = vmatmul.mubr.bf16.gmra.mrb[20].mxu1 %v7262_v28  ;;  %1860 = vmatmul.mubr.bf16.gmra.mrb[36].mxu0 %v7262_v28 }
 0x1f6   : > { %1441 = vmatprep.mubr.bf16.mxu1 %v6628_v4  ;;  %1869 = vmatprep.mubr.bf16.mxu0 %v6628_v4 }
 0x202   : > { %v5948_v31 = vpop.f32.mrb[12].mxu0 }
 0x203   : > { %v1153_v34 = vmul.f32 %v5948_v31, %v7077_v13  ;;  %v1117_v35 = vpop.f32.mrb[13].mxu0 }
 0x204   : > { %v1151_v39 = vmul.f32 %v7077_v13, %v1117_v35  ;;  %v5949_v40 = vpop.f32.mrb[14].mxu0 }
 0x205   : > { %v1176_v45 = vadd.f32 %v7082_v15, %v1153_v34  ;;  %v1154_v38 = vmul.f32 %v5949_v40, %v7077_v13  ;;  %v1120_v49 = vpop.f32.mrb[15].mxu0 }
 0x206   : > { %v1174_v50 = vadd.f32 %v7082_v15, %v1151_v39  ;;  %v1152_v51 = vmul.f32 %v7077_v13, %v1120_v49  ;;  %v1462_v13 = vld [vmem:[%s9398_s8] sm:$0x3] }
 0x207   : > { %v1177_v53 = vadd.f32 %v7082_v15, %v1154_v38  ;;  %v1192_v56 = vmax.f32 %v1176_v45, 0.0 }
 0x208   : > { %v1175_v54 = vadd.f32 %v7082_v15, %v1152_v51  ;;  %v1190_v59 = vmax.f32 %v1174_v50, 0.0  ;;  %v1890_v15 = vld [vmem:[%s9398_s8 + $0x2] sm:$0x3] }
 0x209   : > { %v1193_v57 = vmax.f32 %v1177_v53, 0.0 }
 0x20a   : > { %v1191_v62 = vmax.f32 %v1175_v54, 0.0 }
 0x20b   : > { %v1201_v63 = vpack.c.bf16 %v1193_v57, %v1192_v56 }
 0x20c   : > { %v1200_v2 = vpack.c.bf16 %v1191_v62, %v1190_v59 }
 0x20e   : > { %1442 = vmatmul.mubr.bf16.gmra.mrb[24].mxu1 %v1200_v2  ;;  %1870 = vmatmul.mubr.bf16.gmra.mrb[40].mxu0 %v1200_v2 }
 0x20f   : > { %1451 = vmatprep.mubr.bf16.mxu1 %v6628_v4  ;;  %1879 = vmatprep.mubr.bf16.mxu0 %v6628_v4 }
 0x216   : > { %1452 = vmatmul.mubr.bf16.gmra.mrb[28].mxu1 %v1201_v63  ;;  %1880 = vmatmul.mubr.bf16.gmra.mrb[44].mxu0 %v1201_v63 }
 0x217   : > { %2201 = vmatprep.mubr.bf16.mxu1 %v6628_v4  ;;  %2593 = vmatprep.mubr.bf16.mxu0 %v6628_v4 }
 0x21e   : > { %2202 = vmatmul.mubr.bf16.vlgmr.msra.gmra.mrb[32].mxu1 %v7106_v37  ;;  %2594 = vmatmul.mubr.bf16.vlgmr.msra.gmra.mrb[48].mxu0 %v7106_v37  ;;  %v1506_v37 = vld [vmem:[%s9399_s9] sm:$0x3] }
 0x21f   : > { %5990 = vmatpush1.bf16.msra.mxu1 %v7108_v42  ;;  %2211 = vmatprep.mubr.bf16.mxu1 %v6628_v4  ;;  %v7341_v42 = vrot.slane %v1890_v15, %v6832_v33 }
 0x220   : > { %5983 = vmatprep.subr.bf16.mxu1 %v7113_v47  ;;  %2603 = vmatprep.mubr.bf16.mxu0 %v6628_v4  ;;  %v7346_v47 = vstv %s5491_s13 }
 0x223   : > { %5991 = vmatpush1.bf16.msra.mxu1 %v7129_v0  ;;  %v7349_v0 = vrot.slane %v1462_v13, %v6829_v32 }
 0x224   : > { %5984 = vmatprep.subr.bf16.mxu1 %v7135_v55  ;;  %v7352_v55 = vrot.slane %v1890_v15, %v6829_v32 }
 0x226   : > { %2212 = vmatmul.mubr.bf16.gmra.mrb[36].mxu1 %v7104_v41  ;;  %2604 = vmatmul.mubr.bf16.gmra.mrb[52].mxu0 %v7104_v41  ;;  %v7335_v41 = vrot.slane %v1462_v13, %v6832_v33 }
 0x227   : > { %2221 = vmatprep.mubr.bf16.mxu1 %v6628_v4  ;;  %2613 = vmatprep.mubr.bf16.mxu0 %v6628_v4 }
 0x228   : > { %5992 = vmatpush1.bf16.msra.mxu1 %v7147_v60  ;;  %v1205_v60 = vadd.s32 8, %v6826_v30 }
 0x229   : > { %5985 = vmatprep.subr.bf16.mxu1 %v7153_v1  ;;  %v1206_v1 = vadd.s32 16, %v6826_v30 }
 0x22a   : > { %v7378_v9 = vadd.s32 %v7346_v47, %v1205_v60 }
 0x22b   : > { %v7383_v18 = vadd.s32 %v7346_v47, %v1206_v1 }
 0x22c   : > { %5993 = vmatpush1.bf16.msra.mxu1 %v7169_v46  ;;  %v1207_v46 = vadd.s32 24, %v6826_v30  ;;  %vm1238_vm2 = vcmp.lt.s32.totalorder %v7378_v9, 200 }
 0x22d   : > { %5986 = vmatprep.subr.bf16.mxu1 %v7175_v7  ;;  %vm1239_vm3 = vcmp.lt.s32.totalorder %v7383_v18, 200 }
 0x22e   : > { %2222 = vmatmul.mubr.bf16.gmra.mrb[40].mxu1 %v7243_v43  ;;  %2614 = vmatmul.mubr.bf16.gmra.mrb[56].mxu0 %v7243_v43  ;;  %v7386_v19 = vadd.s32 %v7346_v47, %v1207_v46 }
 0x22f   : > { %2231 = vmatprep.mubr.bf16.mxu1 %v6628_v4  ;;  %2623 = vmatprep.mubr.bf16.mxu0 %v6628_v4 }
 0x230   : > { %5994 = vmatpush1.bf16.msra.mxu1 %v7187_v12  ;;  %v7358_v12 = vrot.slane %v1506_v37, %v6832_v33  ;;  %vm1240_vm4 = vcmp.lt.s32.totalorder %v7386_v19, 200 }
 0x231   : > { %5987 = vmatprep.subr.bf16.mxu1 %v7193_v17 }
 0x234   : > { %5995 = vmatpush1.bf16.msra.mxu1 %v7205_v22 }
 0x235   : > { %5988 = vmatprep.subr.bf16.mxu1 %v7211_v61  ;;  %v7364_v61 = vrot.slane %v1506_v37, %v6829_v32 }
 0x236   : > { %2232 = vmatmul.mubr.bf16.gmra.mrb[44].mxu1 %v7240_v5  ;;  %2624 = vmatmul.mubr.bf16.gmra.mrb[60].mxu0 %v7240_v5 }
 0x237   : > { %2241 = vmatprep.mubr.bf16.mxu1 %v6628_v4  ;;  %2633 = vmatprep.mubr.bf16.mxu0 %v6628_v4 }
 0x238   : > { %5996 = vmatpush1.bf16.msra.mxu1 %v7224_v52 }
 0x239   : > { %5989 = vmatprep.subr.bf16.mxu1 %v7228_v48  ;;  %v7371_v48 = vadd.s32 %v7346_v47, %v6826_v30 }
 0x23b   : > { %vm1237_vm1 = vcmp.lt.s32.totalorder %v7371_v48, 200 }
 0x23c   : > { %5997 = vmatpush1.bf16.msra.mxu1 %v7236_v58 }
 0x23e   : > { %2242 = vmatmul.mubr.bf16.gmra.mrb[48].mxu1 %v7264_v29  ;;  %2634 = vmatmul.mubr.bf16.gmra.mrb[64].mxu0 %v7264_v29 }
 0x23f   : > { %2251 = vmatprep.mubr.bf16.mxu1 %v6628_v4  ;;  %2643 = vmatprep.mubr.bf16.mxu0 %v6628_v4 }
 0x246   : > { %2252 = vmatmul.mubr.bf16.gmra.mrb[52].mxu1 %v7262_v28  ;;  %2644 = vmatmul.mubr.bf16.gmra.mrb[68].mxu0 %v7262_v28 }
 0x247   : > { %2261 = vmatprep.mubr.bf16.mxu1 %v6628_v4  ;;  %2653 = vmatprep.mubr.bf16.mxu0 %v6628_v4 }
 0x24e   : > { %2262 = vmatmul.mubr.bf16.gmra.mrb[56].mxu1 %v1200_v2  ;;  %2654 = vmatmul.mubr.bf16.gmra.mrb[72].mxu0 %v1200_v2 }
 0x24f   : > { %2271 = vmatprep.mubr.bf16.mxu1 %v6628_v4 }
 0x256   : > { %2272 = vmatmul.mubr.bf16.gmra.mrb[60].mxu1 %v1201_v63 }
 0x257   : > { %2663 = vmatprep.mubr.bf16.mxu1 %v6628_v4  ;;  %v1934_v4 = vld [vmem:[%s9399_s9 + $0x2] sm:$0x3] }
 0x258   : > { %v7361_v22 = vrot.slane %v1934_v4, %v6832_v33  ;;  %v7367_v52 = vrot.slane %v1934_v4, %v6829_v32 }
 0x25e   : > { %2664 = vmatmul.mubr.bf16.vlgmr.msra.gmra.mrb[64].mxu1 %v1201_v63 }
 0x27a   : > { %v1383_v7 = vpop.f32.mrb[0].mxu1  ;;  %v1811_v17 = vpop.f32.mrb[16].mxu0 }
 0x27b   : > { %v1474_v58 = vmul.f32 %v7335_v41, %v1383_v7  ;;  %v1902_v3 = vmul.f32 %v7341_v42, %v1811_v17  ;;  %v1385_v5 = vpop.f32.mrb[1].mxu1  ;;  %v1813_v43 = vpop.f32.mrb[17].mxu0 }
 0x27c   : > { %v1475_v6 = vmul.f32 %v7349_v0, %v1385_v5  ;;  %v1903_v44 = vmul.f32 %v7352_v55, %v1813_v43  ;;  %v1387_v11 = vpop.f32.mrb[2].mxu1  ;;  %v1815_v8 = vpop.f32.mrb[18].mxu0 }
 0x27d   : > { %v1476_v25 = vmul.f32 %v7335_v41, %v1387_v11  ;;  %v1904_v10 = vmul.f32 %v7341_v42, %v1815_v8  ;;  %v1389_v14 = vpop.f32.mrb[3].mxu1  ;;  %v1817_v16 = vpop.f32.mrb[19].mxu0  ;;  %v1518_v20 = vadd.f32 %v7358_v12, %v1474_v58  ;;  %v1946_v21 = vadd.f32 %v7361_v22, %v1902_v3 }
 0x27e   : > { %v1519_v23 = vadd.f32 %v7364_v61, %v1475_v6  ;;  %v1947_v24 = vadd.f32 %v7367_v52, %v1903_v44  ;;  %v1477_v26 = vmul.f32 %v7349_v0, %v1389_v14  ;;  %v1905_v28 = vmul.f32 %v7352_v55, %v1817_v16 }
 0x27f   : > { %v1520_v29 = vadd.f32 %v7358_v12, %v1476_v25  ;;  %v1948_v31 = vadd.f32 %v7361_v22, %v1904_v10  ;;  %v7402_v34 = vsel %vm1237_vm1, %v1518_v20, -inf  ;;  %v7406_v35 = vsel %vm1237_vm1, %v1946_v21, -inf }
 0x280   : > { %v7410_v39 = vsel %vm1237_vm1, %v1519_v23, -inf  ;;  %v7414_v40 = vsel %vm1237_vm1, %v1947_v24, -inf  ;;  %v1521_v49 = vadd.f32 %v7364_v61, %v1477_v26  ;;  %v1949_v50 = vadd.f32 %v7367_v52, %v1905_v28 }
 0x281   : > { %v7422_v57 = vsel %vm1238_vm2, %v1520_v29, -inf  ;;  %v7426_v59 = vsel %vm1238_vm2, %v1948_v31, -inf }
 0x282   : > { %v1393_v45 = vpop.f32.mrb[4].mxu1  ;;  %v1821_v38 = vpop.f32.mrb[20].mxu0  ;;  %v7462_v29 = vsel %vm1238_vm2, %v1521_v49, -inf  ;;  %v7466_v31 = vsel %vm1238_vm2, %v1949_v50, -inf }
 0x283   : > { %v1478_v51 = vmul.f32 %v7335_v41, %v1393_v45  ;;  %v1906_v53 = vmul.f32 %v7341_v42, %v1821_v38  ;;  %v1395_v54 = vpop.f32.mrb[5].mxu1  ;;  %v1823_v56 = vpop.f32.mrb[21].mxu0  ;;  %v1208_v45 = vadd.s32 32, %v6826_v30  ;;  %v1209_v38 = vadd.s32 40, %v6826_v30 }
 0x284   : > { %v1479_v62 = vmul.f32 %v7349_v0, %v1395_v54  ;;  %v1907_v63 = vmul.f32 %v7352_v55, %v1823_v56  ;;  %v1397_v2 = vpop.f32.mrb[6].mxu1  ;;  %v1825_v13 = vpop.f32.mrb[22].mxu0 }
 0x285   : > { %v1522_v15 = vadd.f32 %v7358_v12, %v1478_v51  ;;  %v1950_v37 = vadd.f32 %v7361_v22, %v1906_v53  ;;  %v1480_v4 = vmul.f32 %v7335_v41, %v1397_v2  ;;  %v1908_v60 = vmul.f32 %v7341_v42, %v1825_v13  ;;  %v1399_v1 = vpop.f32.mrb[7].mxu1  ;;  %v1827_v46 = vpop.f32.mrb[23].mxu0 }
 0x286   : > { %v1523_v7 = vadd.f32 %v7364_v61, %v1479_v62  ;;  %v1951_v17 = vadd.f32 %v7367_v52, %v1907_v63  ;;  %v1481_v58 = vmul.f32 %v7349_v0, %v1399_v1  ;;  %v1909_v3 = vmul.f32 %v7352_v55, %v1827_v46 }
 0x287   : > { %v1586_v5 = vsel %vm1239_vm3, %v1522_v15, -inf  ;;  %v1982_v43 = vsel %vm1239_vm3, %v1950_v37, -inf  ;;  %v1524_v6 = vadd.f32 %v7358_v12, %v1480_v4  ;;  %v1952_v44 = vadd.f32 %v7361_v22, %v1908_v60 }
 0x288   : > { %v1614_v11 = vmax.f32 %v7402_v34, %v1586_v5  ;;  %v2010_v8 = vmax.f32 %v7406_v35, %v1982_v43  ;;  %v1587_v25 = vsel %vm1239_vm3, %v1523_v7, -inf  ;;  %v1983_v10 = vsel %vm1239_vm3, %v1951_v17, -inf }
 0x289   : > { %v1635_v14 = vmax.f32 %v7410_v39, %v1587_v25  ;;  %v2031_v16 = vmax.f32 %v7414_v40, %v1983_v10  ;;  %v1588_v20 = vsel %vm1240_vm4, %v1524_v6, -inf  ;;  %v1984_v21 = vsel %vm1240_vm4, %v1952_v44, -inf }
 0x28a   : > { %v1615_v23 = vmax.f32 %v7422_v57, %v1588_v20  ;;  %v2011_v24 = vmax.f32 %v7426_v59, %v1984_v21  ;;  %v1525_v26 = vadd.f32 %v7364_v61, %v1481_v58  ;;  %v1953_v28 = vadd.f32 %v7367_v52, %v1909_v3 }
 0x28b   : > { %v7483_v49 = vadd.s32 %v7346_v47, %v1208_v45  ;;  %v7486_v50 = vadd.s32 %v7346_v47, %v1209_v38  ;;  %v1210_v51 = vadd.s32 48, %v6826_v30  ;;  %v1211_v53 = vadd.s32 56, %v6826_v30 }
 0x28c   : > { %v7470_v34 = vsel %vm1240_vm4, %v1525_v26, -inf  ;;  %v7474_v35 = vsel %vm1240_vm4, %v1953_v28, -inf }
 0x28d   : > { %v1636_v39 = vmax.f32 %v7462_v29, %v7470_v34  ;;  %v2032_v40 = vmax.f32 %v7466_v31, %v7474_v35  ;;  %vm1241_vm5 = vcmp.lt.s32.totalorder %v7483_v49, 200  ;;  %vm1242_vm6 = vcmp.lt.s32.totalorder %v7486_v50, 200 }
 0x28e   : > { %v7497_v4 = vadd.s32 %v7346_v47, %v1210_v51  ;;  %v7500_v60 = vadd.s32 %v7346_v47, %v1211_v53 }
 0x290   : > { %vm1243_vm7 = vcmp.lt.s32.totalorder %v7497_v4, 200  ;;  %vm1244_vm8 = vcmp.lt.s32.totalorder %v7500_v60, 200 }
 0x29b   : > { %v1403_v54 = vpop.f32.mrb[8].mxu1  ;;  %v1831_v56 = vpop.f32.mrb[24].mxu0 }
 0x29c   : > { %v1482_v57 = vmul.f32 %v7335_v41, %v1403_v54  ;;  %v1910_v59 = vmul.f32 %v7341_v42, %v1831_v56  ;;  %v1405_v62 = vpop.f32.mrb[9].mxu1  ;;  %v1833_v63 = vpop.f32.mrb[25].mxu0 }
 0x29d   : > { %v1483_v2 = vmul.f32 %v7349_v0, %v1405_v62  ;;  %v1911_v13 = vmul.f32 %v7352_v55, %v1833_v63  ;;  %v1407_v15 = vpop.f32.mrb[10].mxu1  ;;  %v1835_v37 = vpop.f32.mrb[26].mxu0 }
 0x29e   : > { %v1526_v1 = vadd.f32 %v7358_v12, %v1482_v57  ;;  %v1954_v46 = vadd.f32 %v7361_v22, %v1910_v59  ;;  %v1484_v7 = vmul.f32 %v7335_v41, %v1407_v15  ;;  %v1912_v17 = vmul.f32 %v7341_v42, %v1835_v37  ;;  %v1409_v58 = vpop.f32.mrb[11].mxu1  ;;  %v1837_v3 = vpop.f32.mrb[27].mxu0 }
 0x29f   : > { %v1527_v5 = vadd.f32 %v7364_v61, %v1483_v2  ;;  %v1955_v43 = vadd.f32 %v7367_v52, %v1911_v13  ;;  %v1485_v6 = vmul.f32 %v7349_v0, %v1409_v58  ;;  %v1913_v44 = vmul.f32 %v7352_v55, %v1837_v3 }
 0x2a0   : > { %v1590_v25 = vsel %vm1241_vm5, %v1526_v1, -inf  ;;  %v1986_v10 = vsel %vm1241_vm5, %v1954_v46, -inf  ;;  %v1528_v20 = vadd.f32 %v7358_v12, %v1484_v7  ;;  %v1956_v21 = vadd.f32 %v7361_v22, %v1912_v17 }
 0x2a1   : > { %v7516_v26 = vmax.f32 %v1614_v11, %v1590_v25  ;;  %v7518_v28 = vmax.f32 %v2010_v8, %v1986_v10  ;;  %v1591_v29 = vsel %vm1241_vm5, %v1527_v5, -inf  ;;  %v1987_v31 = vsel %vm1241_vm5, %v1955_v43, -inf }
 0x2a2   : > { %v7524_v34 = vmax.f32 %v1635_v14, %v1591_v29  ;;  %v7526_v35 = vmax.f32 %v2031_v16, %v1987_v31  ;;  %v1592_v45 = vsel %vm1242_vm6, %v1528_v20, -inf  ;;  %v1988_v38 = vsel %vm1242_vm6, %v1956_v21, -inf }
 0x2a3   : > { %v7532_v11 = vmax.f32 %v1615_v23, %v1592_v45  ;;  %v7534_v8 = vmax.f32 %v2011_v24, %v1988_v38  ;;  %v1529_v51 = vadd.f32 %v7364_v61, %v1485_v6  ;;  %v1957_v53 = vadd.f32 %v7367_v52, %v1913_v44  ;;  %v1413_v54 = vpop.f32.mrb[12].mxu1  ;;  %v1841_v56 = vpop.f32.mrb[28].mxu0 }
 0x2a4   : > { %v1486_v14 = vmul.f32 %v7335_v41, %v1413_v54  ;;  %v1914_v16 = vmul.f32 %v7341_v42, %v1841_v56  ;;  %v1415_v57 = vpop.f32.mrb[13].mxu1  ;;  %v1843_v59 = vpop.f32.mrb[29].mxu0 }
 0x2a5   : > { %v1593_v23 = vsel %vm1242_vm6, %v1529_v51, -inf  ;;  %v1989_v24 = vsel %vm1242_vm6, %v1957_v53, -inf  ;;  %v1487_v62 = vmul.f32 %v7349_v0, %v1415_v57  ;;  %v1915_v63 = vmul.f32 %v7352_v55, %v1843_v59  ;;  %v1417_v2 = vpop.f32.mrb[14].mxu1  ;;  %v1845_v13 = vpop.f32.mrb[30].mxu0 }
 0x2a6   : > { %v7548_v15 = vmax.f32 %v1636_v39, %v1593_v23  ;;  %v7550_v37 = vmax.f32 %v2032_v40, %v1989_v24  ;;  %v1530_v1 = vadd.f32 %v7358_v12, %v1486_v14  ;;  %v1958_v46 = vadd.f32 %v7361_v22, %v1914_v16  ;;  %v1419_v7 = vpop.f32.mrb[15].mxu1  ;;  %v1847_v17 = vpop.f32.mrb[31].mxu0 }
 0x2a7   : > { %v1531_v58 = vadd.f32 %v7364_v61, %v1487_v62  ;;  %v1959_v3 = vadd.f32 %v7367_v52, %v1915_v63  ;;  %v1488_v5 = vmul.f32 %v7335_v41, %v1417_v2  ;;  %v1916_v43 = vmul.f32 %v7341_v42, %v1845_v13 }
 0x2a8   : > { %v1594_v39 = vsel %vm1243_vm7, %v1530_v1, -inf  ;;  %v1990_v40 = vsel %vm1243_vm7, %v1958_v46, -inf  ;;  %v1489_v6 = vmul.f32 %v7349_v0, %v1419_v7  ;;  %v1917_v44 = vmul.f32 %v7352_v55, %v1847_v17 }
 0x2a9   : > { %v1618_v25 = vmax.f32 %v7516_v26, %v1594_v39  ;;  %v2014_v10 = vmax.f32 %v7518_v28, %v1990_v40  ;;  %v1595_v20 = vsel %vm1243_vm7, %v1531_v58, -inf  ;;  %v1991_v21 = vsel %vm1243_vm7, %v1959_v3, -inf }
 0x2aa   : > { %v1639_v29 = vmax.f32 %v7524_v34, %v1595_v20  ;;  %v2035_v31 = vmax.f32 %v7526_v35, %v1991_v21  ;;  %v1532_v45 = vadd.f32 %v7358_v12, %v1488_v5  ;;  %v1960_v38 = vadd.f32 %v7361_v22, %v1916_v43 }
 0x2ab   : > { %v1533_v51 = vadd.f32 %v7364_v61, %v1489_v6  ;;  %v1961_v26 = vadd.f32 %v7367_v52, %v1917_v44  ;;  %v1212_v57 = vadd.s32 64, %v6826_v30  ;;  %v1214_v23 = vadd.s32 80, %v6826_v30 }
 0x2ac   : > { %v1596_v28 = vsel %vm1244_vm8, %v1532_v45, -inf  ;;  %v1992_v53 = vsel %vm1244_vm8, %v1960_v38, -inf  ;;  %v1215_v24 = vadd.s32 88, %v6826_v30 }
 0x2ad   : > { %v1619_v54 = vmax.f32 %v7532_v11, %v1596_v28  ;;  %v2015_v34 = vmax.f32 %v7534_v8, %v1992_v53  ;;  %v7584_v35 = vsel %vm1244_vm8, %v1533_v51, -inf  ;;  %v7588_v56 = vsel %vm1244_vm8, %v1961_v26, -inf }
 0x2ae   : > { %v1640_v14 = vmax.f32 %v7548_v15, %v7584_v35  ;;  %v2036_v16 = vmax.f32 %v7550_v37, %v7588_v56  ;;  %v1213_v11 = vadd.s32 72, %v6826_v30  ;;  %v7597_v8 = vadd.s32 %v7346_v47, %v1212_v57 }
 0x2af   : > { %v7611_v58 = vadd.s32 %v7346_v47, %v1214_v23  ;;  %v7614_v3 = vadd.s32 %v7346_v47, %v1215_v24 }
 0x2b0   : > { %v7600_v59 = vadd.s32 %v7346_v47, %v1213_v11  ;;  %vm1245_vm9 = vcmp.lt.s32.totalorder %v7597_v8, 200 }
 0x2b1   : > { %9429 = vst [vmem:[#allocation11_spill] sm:$0xff] %v7611_v58  ;;  %9430 = vst [vmem:[#allocation12_spill] sm:$0xff] %v7614_v3  ;;  %vm1247_vm11 = vcmp.lt.s32.totalorder %v7611_v58, 200  ;;  %vm1248_vm12 = vcmp.lt.s32.totalorder %v7614_v3, 200 }
 0x2b2   : > { %vm1246_vm10 = vcmp.lt.s32.totalorder %v7600_v59, 200 }
 0x2c0   : > { %v1423_v62 = vpop.f32.mrb[16].mxu1  ;;  %v1851_v63 = vpop.f32.mrb[32].mxu0 }
 0x2c1   : > { %v1490_v2 = vmul.f32 %v7335_v41, %v1423_v62  ;;  %v1918_v13 = vmul.f32 %v7341_v42, %v1851_v63  ;;  %v1425_v15 = vpop.f32.mrb[17].mxu1  ;;  %v1853_v37 = vpop.f32.mrb[33].mxu0 }
 0x2c2   : > { %v1491_v1 = vmul.f32 %v7349_v0, %v1425_v15  ;;  %v1919_v46 = vmul.f32 %v7352_v55, %v1853_v37  ;;  %v1427_v7 = vpop.f32.mrb[18].mxu1  ;;  %v1855_v17 = vpop.f32.mrb[34].mxu0 }
 0x2c3   : > { %v1534_v5 = vadd.f32 %v7358_v12, %v1490_v2  ;;  %v1962_v43 = vadd.f32 %v7361_v22, %v1918_v13  ;;  %v1492_v39 = vmul.f32 %v7335_v41, %v1427_v7  ;;  %v1920_v40 = vmul.f32 %v7341_v42, %v1855_v17  ;;  %v1429_v6 = vpop.f32.mrb[19].mxu1  ;;  %v1857_v44 = vpop.f32.mrb[35].mxu0 }
 0x2c4   : > { %v1535_v20 = vadd.f32 %v7364_v61, %v1491_v1  ;;  %v1963_v21 = vadd.f32 %v7367_v52, %v1919_v46  ;;  %v1493_v45 = vmul.f32 %v7349_v0, %v1429_v6  ;;  %v1921_v38 = vmul.f32 %v7352_v55, %v1857_v44 }
 0x2c5   : > { %v1598_v51 = vsel %vm1245_vm9, %v1534_v5, -inf  ;;  %v1994_v26 = vsel %vm1245_vm9, %v1962_v43, -inf  ;;  %v1536_v28 = vadd.f32 %v7358_v12, %v1492_v39  ;;  %v1964_v53 = vadd.f32 %v7361_v22, %v1920_v40 }
 0x2c6   : > { %v7630_v35 = vmax.f32 %v1618_v25, %v1598_v51  ;;  %v7632_v56 = vmax.f32 %v2014_v10, %v1994_v26  ;;  %v1599_v57 = vsel %vm1245_vm9, %v1535_v20, -inf  ;;  %v1995_v11 = vsel %vm1245_vm9, %v1963_v21, -inf }
 0x2c7   : > { %v7638_v23 = vmax.f32 %v1639_v29, %v1599_v57  ;;  %v7640_v24 = vmax.f32 %v2035_v31, %v1995_v11  ;;  %v1600_v62 = vsel %vm1246_vm10, %v1536_v28, -inf  ;;  %v1996_v63 = vsel %vm1246_vm10, %v1964_v53, -inf }
 0x2c8   : > { %v7646_v25 = vmax.f32 %v1619_v54, %v1600_v62  ;;  %v7648_v10 = vmax.f32 %v2015_v34, %v1996_v63  ;;  %v1537_v2 = vadd.f32 %v7364_v61, %v1493_v45  ;;  %v1965_v13 = vadd.f32 %v7367_v52, %v1921_v38  ;;  %v1433_v15 = vpop.f32.mrb[20].mxu1  ;;  %v1861_v37 = vpop.f32.mrb[36].mxu0 }
 0x2c9   : > { %v1494_v29 = vmul.f32 %v7335_v41, %v1433_v15  ;;  %v1922_v31 = vmul.f32 %v7341_v42, %v1861_v37  ;;  %v1435_v1 = vpop.f32.mrb[21].mxu1  ;;  %v1863_v46 = vpop.f32.mrb[37].mxu0 }
 0x2ca   : > { %v1601_v54 = vsel %vm1246_vm10, %v1537_v2, -inf  ;;  %v1997_v34 = vsel %vm1246_vm10, %v1965_v13, -inf  ;;  %v1495_v7 = vmul.f32 %v7349_v0, %v1435_v1  ;;  %v1923_v17 = vmul.f32 %v7352_v55, %v1863_v46  ;;  %v1437_v5 = vpop.f32.mrb[22].mxu1  ;;  %v1865_v43 = vpop.f32.mrb[38].mxu0 }
 0x2cb   : > { %v7662_v39 = vmax.f32 %v1640_v14, %v1601_v54  ;;  %v7664_v40 = vmax.f32 %v2036_v16, %v1997_v34  ;;  %v1538_v6 = vadd.f32 %v7358_v12, %v1494_v29  ;;  %v1966_v44 = vadd.f32 %v7361_v22, %v1922_v31  ;;  %v1439_v20 = vpop.f32.mrb[23].mxu1  ;;  %v1867_v21 = vpop.f32.mrb[39].mxu0 }
 0x2cc   : > { %v1539_v45 = vadd.f32 %v7364_v61, %v1495_v7  ;;  %v1967_v38 = vadd.f32 %v7367_v52, %v1923_v17  ;;  %v1496_v51 = vmul.f32 %v7335_v41, %v1437_v5  ;;  %v1924_v26 = vmul.f32 %v7341_v42, %v1865_v43 }
 0x2cd   : > { %v7674_v14 = vsel %vm1247_vm11, %v1538_v6, -inf  ;;  %v7678_v16 = vsel %vm1247_vm11, %v1966_v44, -inf  ;;  %v1497_v28 = vmul.f32 %v7349_v0, %v1439_v20  ;;  %v1925_v53 = vmul.f32 %v7352_v55, %v1867_v21 }
 0x2ce   : > { %v7688_v62 = vsel %vm1247_vm11, %v1539_v45, -inf  ;;  %v7692_v63 = vsel %vm1247_vm11, %v1967_v38, -inf  ;;  %v1540_v15 = vadd.f32 %v7358_v12, %v1496_v51  ;;  %v1968_v37 = vadd.f32 %v7361_v22, %v1924_v26  ;;  %v2282_v45 = vld [vmem:[%s9398_s8 + $0x4] sm:$0x3]  ;;  %v2674_v38 = vld [vmem:[%s9398_s8 + $0x6] sm:$0x3] }
 0x2cf   : > { %v1541_v29 = vadd.f32 %v7364_v61, %v1497_v28  ;;  %v1969_v31 = vadd.f32 %v7367_v52, %v1925_v53  ;;  %v1216_v6 = vadd.s32 96, %v6826_v30  ;;  %v1219_v21 = vadd.s32 120, %v6826_v30  ;;  %v2326_v26 = vld [vmem:[%s9399_s9 + $0x4] sm:$0x3]  ;;  %v7753_v28 = vld [vmem:[%s9399_s9 + $0x6] sm:$0x3] }
 0x2d0   : > { %v7704_v1 = vsel %vm1248_vm12, %v1540_v15, -inf  ;;  %v7708_v46 = vsel %vm1248_vm12, %v1968_v37, -inf  ;;  %v7770_v27 = vrot.slane %v2326_v26, %v6832_v33 }
 0x2d1   : > { %v1623_v54 = vmax.f32 %v7646_v25, %v7704_v1  ;;  %v2019_v34 = vmax.f32 %v7648_v10, %v7708_v46  ;;  %v7716_v7 = vsel %vm1248_vm12, %v1541_v29, -inf  ;;  %v7720_v17 = vsel %vm1248_vm12, %v1969_v31, -inf }
 0x2d2   : > { %v1217_v25 = vadd.s32 104, %v6826_v30  ;;  %v1218_v10 = vadd.s32 112, %v6826_v30  ;;  %v7730_v44 = vadd.s32 %v7346_v47, %v1216_v6  ;;  %v7756_v37 = vadd.s32 %v7346_v47, %v1219_v21 }
 0x2d3   : > { %v7759_v29 = vrot.slane %v2282_v45, %v6832_v33  ;;  %v7762_v31 = vrot.slane %v2674_v38, %v6832_v33  ;;  %v7765_v1 = vrot.slane %v2282_v45, %v6829_v32  ;;  %v6630_v45 = vmov 1966171168  }
 0x2d4   : > { %v7733_v20 = vadd.s32 %v7346_v47, %v1217_v25  ;;  %v7743_v51 = vadd.s32 %v7346_v47, %v1218_v10  ;;  %vm1249_vm13 = vcmp.lt.s32.totalorder %v7730_v44, 200  ;;  %v7773_v47 = vrot.slane %v2674_v38, %v6829_v32 }
 0x2d5   : > { %vm1252_vm0 = vcmp.lt.s32.totalorder %v7756_v37, 200 }
 0x2d6   : > { %vm1250_vm14 = vcmp.lt.s32.totalorder %v7733_v20, 200  ;;  %vm1251_vm15 = vcmp.lt.s32.totalorder %v7743_v51, 200 }
 0x2e1   : > { %v1443_v53 = vpop.f32.mrb[24].mxu1  ;;  %v1871_v15 = vpop.f32.mrb[40].mxu0 }
 0x2e2   : > { %v1498_v46 = vmul.f32 %v7335_v41, %v1443_v53  ;;  %v1926_v6 = vmul.f32 %v7341_v42, %v1871_v15  ;;  %v1445_v25 = vpop.f32.mrb[25].mxu1  ;;  %v1873_v10 = vpop.f32.mrb[41].mxu0  ;;  %v7778_v53 = vunpack.c.l.s4 %v6630_v45  ;;  %v7782_v15 = vrot.slane %v7753_v28, %v6832_v33 }
 0x2e3   : > { %v1499_v21 = vmul.f32 %v7349_v0, %v1445_v25  ;;  %v1927_v43 = vmul.f32 %v7352_v55, %v1873_v10  ;;  %v1447_v5 = vpop.f32.mrb[26].mxu1  ;;  %v1875_v13 = vpop.f32.mrb[42].mxu0 }
 0x2e4   : > { %v1542_v2 = vadd.f32 %v7358_v12, %v1498_v46  ;;  %v1970_v38 = vadd.f32 %v7361_v22, %v1926_v6  ;;  %v1500_v11 = vmul.f32 %v7335_v41, %v1447_v5  ;;  %v1928_v25 = vmul.f32 %v7341_v42, %v1875_v13  ;;  %v1449_v10 = vpop.f32.mrb[27].mxu1  ;;  %v1877_v57 = vpop.f32.mrb[43].mxu0 }
 0x2e5   : > { %v1543_v36 = vadd.f32 %v7364_v61, %v1499_v21  ;;  %v1971_v3 = vadd.f32 %v7367_v52, %v1927_v43  ;;  %v1501_v45 = vmul.f32 %v7349_v0, %v1449_v10  ;;  %v1929_v58 = vmul.f32 %v7352_v55, %v1877_v57 }
 0x2e6   : > { %v1606_v33 = vsel %vm1249_vm13, %v1542_v2, -inf  ;;  %v2002_v46 = vsel %vm1249_vm13, %v1970_v38, -inf  ;;  %v1544_v5 = vadd.f32 %v7358_v12, %v1500_v11  ;;  %v1972_v13 = vadd.f32 %v7361_v22, %v1928_v25 }
 0x2e7   : > { %v9431_v6 = vmax.f32 %v7630_v35, %v7674_v14  ;;  %v9432_v43 = vmax.f32 %v7632_v56, %v7678_v16  ;;  %v1607_v57 = vsel %vm1249_vm13, %v1543_v36, -inf  ;;  %v2003_v2 = vsel %vm1249_vm13, %v1971_v3, -inf }
 0x2e8   : > { %v9433_v11 = vmax.f32 %v7638_v23, %v7688_v62  ;;  %v1608_v56 = vsel %vm1250_vm14, %v1544_v5, -inf  ;;  %v2004_v36 = vsel %vm1250_vm14, %v1972_v13, -inf  ;;  %v1545_v16 = vadd.f32 %v7364_v61, %v1501_v45 }
 0x2e9   : > { %v7801_v21 = vmax.f32 %v9431_v6, %v1606_v33  ;;  %v7806_v10 = vmax.f32 %v9432_v43, %v2002_v46  ;;  %v9434_v33 = vmax.f32 %v7640_v24, %v7692_v63  ;;  %v7827_v14 = vmax.f32 %v1623_v54, %v1608_v56  ;;  %v1453_v62 = vpop.f32.mrb[28].mxu1  ;;  %v1881_v25 = vpop.f32.mrb[44].mxu0 }
 0x2ea   : > { %v7816_v38 = vmax.f32 %v9433_v11, %v1607_v57  ;;  %v7829_v3 = vmax.f32 %v2019_v34, %v2004_v36  ;;  %v1973_v23 = vadd.f32 %v7367_v52, %v1929_v58  ;;  %v1502_v24 = vmul.f32 %v7335_v41, %v1453_v62  ;;  %v1455_v46 = vpop.f32.mrb[29].mxu1  ;;  %v1883_v6 = vpop.f32.mrb[45].mxu0 }
 0x2eb   : > { %v7821_v35 = vmax.f32 %v9434_v33, %v2003_v2  ;;  %v1930_v63 = vmul.f32 %v7341_v42, %v1881_v25  ;;  %v1662_v5 = vunpack.c.0.s8 %v7778_v53  ;;  %v7837_v13 = vrot.slane %v2326_v26, %v6829_v32  ;;  %v1457_v43 = vpop.f32.mrb[30].mxu1  ;;  %v1885_v57 = vpop.f32.mrb[46].mxu0 }
 0x2ec   : > { %v1609_v54 = vsel %vm1250_vm14, %v1545_v16, -inf  ;;  %v2005_v34 = vsel %vm1250_vm14, %v1973_v23, -inf  ;;  %v1503_v58 = vmul.f32 %v7349_v0, %v1455_v46  ;;  %v1931_v45 = vmul.f32 %v7352_v55, %v1883_v6  ;;  %v1459_v36 = vpop.f32.mrb[31].mxu1  ;;  %v1887_v16 = vpop.f32.mrb[47].mxu0 }
 0x2ed   : > { %v9435_v2 = vmax.f32 %v7662_v39, %v7716_v7  ;;  %v9436_v26 = vmax.f32 %v7664_v40, %v7720_v17  ;;  %v1546_v33 = vadd.f32 %v7358_v12, %v1502_v24  ;;  %v1974_v56 = vadd.f32 %v7361_v22, %v1930_v63 }
 0x2ee   : > { %v1547_v23 = vadd.f32 %v7364_v61, %v1503_v58  ;;  %v1975_v62 = vadd.f32 %v7367_v52, %v1931_v45  ;;  %v1504_v25 = vmul.f32 %v7335_v41, %v1457_v43  ;;  %v1932_v46 = vmul.f32 %v7341_v42, %v1885_v57 }
 0x2ef   : > { %v1646_v11 = vmax.f32 %v9435_v2, %v1609_v54  ;;  %v2042_v53 = vmax.f32 %v9436_v26, %v2005_v34  ;;  %v1610_v39 = vsel %vm1251_vm15, %v1546_v33, -inf  ;;  %v2006_v40 = vsel %vm1251_vm15, %v1974_v56, -inf }
 0x2f0   : > { %v1505_v7 = vmul.f32 %v7349_v0, %v1459_v36  ;;  %v1933_v17 = vmul.f32 %v7352_v55, %v1887_v16  ;;  %v1626_v24 = vmax.f32 %v7801_v21, %v1610_v39  ;;  %v2022_v63 = vmax.f32 %v7806_v10, %v2006_v40 }
 0x2f1   : > { %v1611_v6 = vsel %vm1251_vm15, %v1547_v23, -inf  ;;  %v2007_v41 = vsel %vm1251_vm15, %v1975_v62, -inf  ;;  %v1548_v34 = vadd.f32 %v7358_v12, %v1504_v25  ;;  %v1976_v0 = vadd.f32 %v7361_v22, %v1932_v46  ;;  %v2203_v58 = vpop.f32.mrb[32].mxu1  ;;  %v2595_v45 = vpop.f32.mrb[48].mxu0 }
 0x2f2   : > { %v1647_v42 = vmax.f32 %v7816_v38, %v1611_v6  ;;  %v2043_v54 = vmax.f32 %v7821_v35, %v2007_v41  ;;  %v1549_v55 = vadd.f32 %v7364_v61, %v1505_v7  ;;  %v7875_v21 = vsub.s32 %v1662_v5, %v6826_v30  ;;  %v2205_v35 = vpop.f32.mrb[33].mxu1  ;;  %v2597_v5 = vpop.f32.mrb[49].mxu0 }
 0x2f3   : > { %v1977_v10 = vadd.f32 %v7367_v52, %v1933_v17  ;;  %v7880_v43 = vrot.slane %v7753_v28, %v6829_v32  ;;  %v1612_v38 = vsel %vm1252_vm0, %v1548_v34, -inf  ;;  %v2008_v12 = vsel %vm1252_vm0, %v1976_v0, -inf  ;;  %v2207_v26 = vpop.f32.mrb[34].mxu1  ;;  %v2599_v33 = vpop.f32.mrb[50].mxu0 }
 0x2f4   : > { %v2294_v22 = vmul.f32 %v7759_v29, %v2203_v58  ;;  %v2686_v61 = vmul.f32 %v7762_v31, %v2595_v45  ;;  %v1627_v52 = vmax.f32 %v7827_v14, %v1612_v38  ;;  %v2023_v57 = vmax.f32 %v7829_v3, %v2008_v12  ;;  %v2209_v62 = vpop.f32.mrb[35].mxu1  ;;  %v2601_v25 = vpop.f32.mrb[51].mxu0 }
 0x2f5   : > { %v1613_v28 = vsel %vm1252_vm0, %v1549_v55, -inf  ;;  %v2009_v2 = vsel %vm1252_vm0, %v1977_v10, -inf  ;;  %v2295_v3 = vmul.f32 %v7765_v1, %v2205_v35  ;;  %v2687_v39 = vmul.f32 %v7773_v47, %v2597_v5 }
 0x2f6   : > { %v1648_v56 = vmax.f32 %v1646_v11, %v1613_v28  ;;  %v2044_v36 = vmax.f32 %v2042_v53, %v2009_v2  ;;  %v2338_v16 = vadd.f32 %v7770_v27, %v2294_v22  ;;  %v2730_v23 = vadd.f32 %v7782_v15, %v2686_v61 }
 0x2f7   : > { %v1628_v46 = vmax.f32 %v1626_v24, %v1627_v52  ;;  %v2024_v14 = vmax.f32 %v2022_v63, %v2023_v57  ;;  %v2339_v41 = vadd.f32 %v7837_v13, %v2295_v3  ;;  %v2731_v24 = vadd.f32 %v7880_v43, %v2687_v39 }
 0x2f8   : > { %v1649_v40 = vmax.f32 %v1647_v42, %v1648_v56  ;;  %v2045_v7 = vmax.f32 %v2043_v54, %v2044_v36  ;;  %v7900_v17 = vsel %vm1237_vm1, %v2338_v16, -inf  ;;  %v7904_v11 = vsel %vm1237_vm1, %v2730_v23, -inf }
 0x2f9   : > { %v1629_v53 = vrot.slane %v1628_v46, 4  ;;  %v2025_v6 = vrot.slane %v2024_v14, 4  ;;  %v2296_v0 = vmul.f32 %v7759_v29, %v2207_v26  ;;  %v2688_v42 = vmul.f32 %v7762_v31, %v2599_v33  ;;  %v2213_v45 = vpop.f32.mrb[36].mxu1  ;;  %v2605_v38 = vpop.f32.mrb[52].mxu0 }
 0x2fa   : > { %v1650_v63 = vrot.slane %v1649_v40, 4  ;;  %v2046_v34 = vrot.slane %v2045_v7, 4  ;;  %v7912_v10 = vsel %vm1237_vm1, %v2339_v41, -inf  ;;  %v7916_v58 = vsel %vm1237_vm1, %v2731_v24, -inf  ;;  %v2215_v5 = vpop.f32.mrb[37].mxu1  ;;  %v2607_v52 = vpop.f32.mrb[53].mxu0 }
 0x2fb   : > { %v1630_v54 = vmax.f32 %v1628_v46, %v1629_v53  ;;  %v2026_v55 = vmax.f32 %v2024_v14, %v2025_v6  ;;  %v2340_v61 = vadd.f32 %v7770_v27, %v2296_v0  ;;  %v2732_v35 = vadd.f32 %v7782_v15, %v2688_v42  ;;  %v2217_v33 = vpop.f32.mrb[38].mxu1  ;;  %v2609_v48 = vpop.f32.mrb[54].mxu0 }
 0x2fc   : > { %v1651_v12 = vmax.f32 %v1649_v40, %v1650_v63  ;;  %v2047_v22 = vmax.f32 %v2045_v7, %v2046_v34  ;;  %v2297_v2 = vmul.f32 %v7765_v1, %v2209_v62  ;;  %v2689_v26 = vmul.f32 %v7773_v47, %v2601_v25  ;;  %v2219_v46 = vpop.f32.mrb[39].mxu1  ;;  %v2611_v14 = vpop.f32.mrb[55].mxu0 }
 0x2fd   : > { %v1631_v57 = vrot.slane %v1630_v54, 2  ;;  %v2027_v28 = vrot.slane %v2026_v55, 2  ;;  %v7924_v16 = vsel %vm1238_vm2, %v2340_v61, -inf  ;;  %v7928_v23 = vsel %vm1238_vm2, %v2732_v35, -inf }
 0x2fe   : > { %v1652_v56 = vrot.slane %v1651_v12, 2  ;;  %v2048_v36 = vrot.slane %v2047_v22, 2  ;;  %v2341_v62 = vadd.f32 %v7837_v13, %v2297_v2  ;;  %v2733_v25 = vadd.f32 %v7880_v43, %v2689_v26 }
 0x2ff   : > { %v1632_v3 = vmax.f32 %v1630_v54, %v1631_v57  ;;  %v2028_v39 = vmax.f32 %v2026_v55, %v2027_v28  ;;  %v2298_v53 = vmul.f32 %v7759_v29, %v2213_v45  ;;  %v2690_v6 = vmul.f32 %v7762_v31, %v2605_v38  ;;  %v6110_v38 = vld [vmem:[%s9400_s10 + $0x200] ss:$16 sps:$4 sm:$0xff] (!%p5556_p8)  }
 0x300   : > { %v1653_v40 = vmax.f32 %v1651_v12, %v1652_v56  ;;  %v2049_v7 = vmax.f32 %v2047_v22, %v2048_v36  ;;  %v7936_v63 = vsel %vm1238_vm2, %v2341_v62, -inf  ;;  %v7940_v34 = vsel %vm1238_vm2, %v2733_v25, -inf }
 0x301   : > { %v1633_v41 = vrot.slane %v1632_v3, 1  ;;  %v2029_v24 = vrot.slane %v2028_v39, 1  ;;  %v2342_v54 = vadd.f32 %v7770_v27, %v2298_v53  ;;  %v2734_v55 = vadd.f32 %v7782_v15, %v2690_v6  ;;  %v2223_v9 = vpop.f32.mrb[40].mxu1  ;;  %v2615_v57 = vpop.f32.mrb[56].mxu0 }
 0x302   : > { %v1654_v0 = vrot.slane %v1653_v40, 1  ;;  %v2050_v42 = vrot.slane %v2049_v7, 1  ;;  %v9437_v22 = vlaneseq  ;;  %v2299_v61 = vmul.f32 %v7765_v1, %v2215_v5  ;;  %v2225_v36 = vpop.f32.mrb[41].mxu1 }
 0x303   : > { %v1634_v12 = vmax.f32 %v1632_v3, %v1633_v41  ;;  %v2030_v45 = vmax.f32 %v2028_v39, %v2029_v24  ;;  %v2691_v35 = vmul.f32 %v7773_v47, %v2607_v52  ;;  %v7953_v26 = vsel %vm1239_vm3, %v2342_v54, -inf  ;;  %v2617_v3 = vpop.f32.mrb[57].mxu0  ;;  %v2227_v25 = vpop.f32.mrb[42].mxu1 }
 0x304   : > { %vm7945_vm1 = vcmp.lt.s32.totalorder %v9437_v22, 256  ;;  %v1655_v28 = vmax.f32 %v1653_v40, %v1654_v0  ;;  %v2051_v2 = vmax.f32 %v2049_v7, %v2050_v42  ;;  %v7957_v56 = vsel %vm1239_vm3, %v2734_v55, -inf  ;;  %v2619_v40 = vpop.f32.mrb[58].mxu0  ;;  %v2229_v24 = vpop.f32.mrb[43].mxu1  ;;  %v2052_v22 = vld [vmem:[#allocation2 + $0x2] sm:$0x3] }
 0x305   : > { %v2402_v39 = vmax.f32 %v7900_v17, %v7953_v26  ;;  %v2794_v5 = vmax.f32 %v7904_v11, %v7957_v56  ;;  %v2343_v52 = vadd.f32 %v7837_v13, %v2299_v61  ;;  %v2735_v62 = vadd.f32 %v7880_v43, %v2691_v35  ;;  %v2621_v0 = vpop.f32.mrb[59].mxu0 }
 0x306   : > { %v1659_v7 = vcombine.low %v1634_v12, %v1655_v28  ;;  %v2055_v53 = vcombine.low %v2030_v45, %v2051_v2  ;;  %v2300_v6 = vmul.f32 %v7759_v29, %v2217_v33  ;;  %v2692_v41 = vmul.f32 %v7762_v31, %v2609_v48  ;;  %v1656_v45 = vld [vmem:[#allocation2] sm:$0x3] }
 0x307   : > { %v2375_v17 = vsel %vm1239_vm3, %v2343_v52, -inf  ;;  %v2767_v11 = vsel %vm1239_vm3, %v2735_v62, -inf  ;;  %v2301_v42 = vmul.f32 %v7765_v1, %v2219_v46  ;;  %v2693_v54 = vmul.f32 %v7773_v47, %v2611_v14 }
 0x308   : > { %v1666_v55 = vrot.slane %v1659_v7, %v7875_v21  ;;  %v2062_v12 = vrot.slane %v2055_v53, %v7875_v21  ;;  %v2423_v33 = vmax.f32 %v7912_v10, %v2375_v17  ;;  %v2815_v48 = vmax.f32 %v7916_v58, %v2767_v11 }
 0x309   : > { %v2344_v61 = vadd.f32 %v7770_v27, %v2300_v6  ;;  %v2736_v35 = vadd.f32 %v7782_v15, %v2692_v41  ;;  %v2345_v18 = vadd.f32 %v7837_v13, %v2301_v42  ;;  %v2737_v46 = vadd.f32 %v7880_v43, %v2693_v54  ;;  %v2233_v62 = vpop.f32.mrb[44].mxu1  ;;  %v2625_v7 = vpop.f32.mrb[60].mxu0 }
 0x30a   : > { %v1673_v14 = vrot.slane %v1666_v55, %v7875_v21  ;;  %v2069_v28 = vrot.slane %v2062_v12, %v7875_v21  ;;  %v2302_v2 = vmul.f32 %v7759_v29, %v2223_v9  ;;  %v2694_v10 = vmul.f32 %v7762_v31, %v2615_v57  ;;  %v2235_v41 = vpop.f32.mrb[45].mxu1  ;;  %v2627_v17 = vpop.f32.mrb[61].mxu0 }
 0x30b   : > { %v2376_v58 = vsel %vm1240_vm4, %v2344_v61, -inf  ;;  %v2768_v26 = vsel %vm1240_vm4, %v2736_v35, -inf  ;;  %v2377_v56 = vsel %vm1240_vm4, %v2345_v18, -inf  ;;  %v2769_v52 = vsel %vm1240_vm4, %v2737_v46, -inf  ;;  %v2237_v19 = vpop.f32.mrb[46].mxu1  ;;  %v2629_v12 = vpop.f32.mrb[62].mxu0 }
 0x30c   : > { %v1675_v53 = vmax.f32 %v1656_v45, %v1673_v14  ;;  %v2071_v6 = vmax.f32 %v2052_v22, %v2069_v28  ;;  %v2403_v9 = vmax.f32 %v7924_v16, %v2376_v58  ;;  %v2795_v57 = vmax.f32 %v7928_v23, %v2768_v26  ;;  %v2239_v45 = vpop.f32.mrb[47].mxu1  ;;  %v2631_v22 = vpop.f32.mrb[63].mxu0 }
 0x30d   : > { %v2424_v11 = vmax.f32 %v7936_v63, %v2377_v56  ;;  %v2816_v42 = vmax.f32 %v7940_v34, %v2769_v52  ;;  %v2346_v54 = vadd.f32 %v7770_v27, %v2302_v2  ;;  %v2738_v55 = vadd.f32 %v7782_v15, %v2694_v10 }
 0x30e   : > { %1680 = vst.msk [vmem:[#allocation2] sm:$0x3] %vm7945_vm1, %v1675_v53  ;;  %2072 = vst.msk [vmem:[#allocation2 + $0x2] sm:$0x3] %vm7945_vm1, %v2071_v6  ;;  %v2303_v16 = vmul.f32 %v7765_v1, %v2225_v36  ;;  %v2695_v23 = vmul.f32 %v7773_v47, %v2617_v3  ;;  %v2304_v63 = vmul.f32 %v7759_v29, %v2227_v25  ;;  %vm5388_vm2 = vcmask (!%p5556_p8), 0  }
 0x30f   : > { %v2696_v34 = vmul.f32 %v7762_v31, %v2619_v40  ;;  %v2378_v61 = vsel %vm1241_vm5, %v2346_v54, -inf  ;;  %v2770_v35 = vsel %vm1241_vm5, %v2738_v55, -inf  ;;  %v2305_v18 = vmul.f32 %v7765_v1, %v2229_v24 }
 0x310   : > { %v2697_v46 = vmul.f32 %v7773_v47, %v2621_v0  ;;  %v8013_v14 = vmax.f32 %v2402_v39, %v2378_v61  ;;  %v8015_v36 = vmax.f32 %v2794_v5, %v2770_v35  ;;  %v2347_v3 = vadd.f32 %v7837_v13, %v2303_v16 }
 0x311   : > { %v2739_v25 = vadd.f32 %v7880_v43, %v2695_v23  ;;  %v2348_v40 = vadd.f32 %v7770_v27, %v2304_v63  ;;  %v2740_v28 = vadd.f32 %v7782_v15, %v2696_v34  ;;  %v2349_v2 = vadd.f32 %v7837_v13, %v2305_v18  ;;  %v2243_v53 = vpop.f32.mrb[48].mxu1  ;;  %v2635_v6 = vpop.f32.mrb[64].mxu0 }
 0x312   : > { %v2741_v10 = vadd.f32 %v7880_v43, %v2697_v46  ;;  %v2379_v24 = vsel %vm1241_vm5, %v2347_v3, -inf  ;;  %v2306_v5 = vmul.f32 %v7759_v29, %v2233_v62  ;;  %v2698_v0 = vmul.f32 %v7762_v31, %v2625_v7  ;;  %v2637_v7 = vpop.f32.mrb[65].mxu0 }
 0x313   : > { %v2771_v39 = vsel %vm1241_vm5, %v2739_v25, -inf  ;;  %v8029_v58 = vmax.f32 %v2423_v33, %v2379_v24  ;;  %v2380_v56 = vsel %vm1242_vm6, %v2348_v40, -inf  ;;  %v2772_v52 = vsel %vm1242_vm6, %v2740_v28, -inf  ;;  %v2639_v34 = vpop.f32.mrb[66].mxu0 }
 0x314   : > { %v8031_v26 = vmax.f32 %v2815_v48, %v2771_v39  ;;  %v8037_v54 = vmax.f32 %v2403_v9, %v2380_v56  ;;  %v8039_v49 = vmax.f32 %v2795_v57, %v2772_v52  ;;  %v2381_v62 = vsel %vm1242_vm6, %v2349_v2, -inf  ;;  %v2245_v48 = vpop.f32.mrb[49].mxu1  ;;  %v2641_v46 = vpop.f32.mrb[67].mxu0 }
 0x315   : > { %v2773_v33 = vsel %vm1242_vm6, %v2741_v10, -inf  ;;  %v8045_v55 = vmax.f32 %v2424_v11, %v2381_v62  ;;  %v2350_v23 = vadd.f32 %v7770_v27, %v2306_v5  ;;  %v2742_v63 = vadd.f32 %v7782_v15, %v2698_v0  ;;  %v2247_v9 = vpop.f32.mrb[50].mxu1 }
 0x316   : > { %v8047_v16 = vmax.f32 %v2816_v42, %v2773_v33  ;;  %v2307_v57 = vmul.f32 %v7765_v1, %v2235_v41  ;;  %v2699_v61 = vmul.f32 %v7773_v47, %v2627_v17  ;;  %v2308_v35 = vmul.f32 %v7759_v29, %v2237_v19  ;;  %v2249_v18 = vpop.f32.mrb[51].mxu1 }
 0x317   : > { %v2700_v50 = vmul.f32 %v7762_v31, %v2629_v12  ;;  %v2382_v11 = vsel %vm1243_vm7, %v2350_v23, -inf  ;;  %v2774_v42 = vsel %vm1243_vm7, %v2742_v63, -inf  ;;  %v2309_v3 = vmul.f32 %v7765_v1, %v2239_v45 }
 0x318   : > { %v2701_v25 = vmul.f32 %v7773_v47, %v2631_v22  ;;  %v2406_v41 = vmax.f32 %v8013_v14, %v2382_v11  ;;  %v2798_v17 = vmax.f32 %v8015_v36, %v2774_v42  ;;  %v2351_v19 = vadd.f32 %v7837_v13, %v2307_v57 }
 0x319   : > { %v2743_v12 = vadd.f32 %v7880_v43, %v2699_v61  ;;  %v2352_v40 = vadd.f32 %v7770_v27, %v2308_v35  ;;  %v2744_v28 = vadd.f32 %v7782_v15, %v2700_v50  ;;  %v2353_v2 = vadd.f32 %v7837_v13, %v2309_v3  ;;  %v2253_v56 = vpop.f32.mrb[52].mxu1  ;;  %v2645_v52 = vpop.f32.mrb[68].mxu0 }
 0x31a   : > { %v2745_v10 = vadd.f32 %v7880_v43, %v2701_v25  ;;  %v2383_v45 = vsel %vm1243_vm7, %v2351_v19, -inf  ;;  %v2310_v14 = vmul.f32 %v7759_v29, %v2243_v53  ;;  %v2702_v36 = vmul.f32 %v7762_v31, %v2635_v6  ;;  %v2255_v6 = vpop.f32.mrb[53].mxu1 }
 0x31b   : > { %v2775_v22 = vsel %vm1243_vm7, %v2743_v12, -inf  ;;  %v2427_v24 = vmax.f32 %v8029_v58, %v2383_v45  ;;  %v2384_v5 = vsel %vm1244_vm8, %v2352_v40, -inf  ;;  %v2776_v0 = vsel %vm1244_vm8, %v2744_v28, -inf  ;;  %v2257_v61 = vpop.f32.mrb[54].mxu1 }
 0x31c   : > { %v2819_v39 = vmax.f32 %v8031_v26, %v2775_v22  ;;  %v2407_v62 = vmax.f32 %v8037_v54, %v2384_v5  ;;  %v2799_v4 = vmax.f32 %v8039_v49, %v2776_v0  ;;  %v2385_v53 = vsel %vm1244_vm8, %v2353_v2, -inf  ;;  %v2647_v26 = vpop.f32.mrb[69].mxu0  ;;  %v2259_v11 = vpop.f32.mrb[55].mxu1 }
 0x31d   : > { %v2777_v58 = vsel %vm1244_vm8, %v2745_v10, -inf  ;;  %v2428_v33 = vmax.f32 %v8045_v55, %v2385_v53  ;;  %v2354_v63 = vadd.f32 %v7770_v27, %v2310_v14  ;;  %v2746_v57 = vadd.f32 %v7782_v15, %v2702_v36  ;;  %v2649_v54 = vpop.f32.mrb[70].mxu0 }
 0x31e   : > { %v2820_v23 = vmax.f32 %v8047_v16, %v2777_v58  ;;  %v2311_v49 = vmul.f32 %v7765_v1, %v2245_v48  ;;  %v2703_v35 = vmul.f32 %v7773_v47, %v2637_v7  ;;  %v2312_v50 = vmul.f32 %v7759_v29, %v2247_v9  ;;  %v2651_v42 = vpop.f32.mrb[71].mxu0 }
 0x31f   : > { %v2704_v60 = vmul.f32 %v7762_v31, %v2639_v34  ;;  %v2386_v55 = vsel %vm1245_vm9, %v2354_v63, -inf  ;;  %v2778_v16 = vsel %vm1245_vm9, %v2746_v57, -inf  ;;  %v2313_v3 = vmul.f32 %v7765_v1, %v2249_v18 }
 0x320   : > { %v2705_v25 = vmul.f32 %v7773_v47, %v2641_v46  ;;  %v8101_v19 = vmax.f32 %v2406_v41, %v2386_v55  ;;  %v8103_v48 = vmax.f32 %v2798_v17, %v2778_v16  ;;  %v2355_v7 = vadd.f32 %v7837_v13, %v2311_v49 }
 0x321   : > { %v2747_v9 = vadd.f32 %v7880_v43, %v2703_v35  ;;  %v2356_v34 = vadd.f32 %v7770_v27, %v2312_v50  ;;  %v2748_v12 = vadd.f32 %v7782_v15, %v2704_v60  ;;  %v2357_v40 = vadd.f32 %v7837_v13, %v2313_v3  ;;  %v2263_v14 = vpop.f32.mrb[56].mxu1  ;;  %v2655_v36 = vpop.f32.mrb[72].mxu0 }
 0x322   : > { %v2749_v28 = vadd.f32 %v7880_v43, %v2705_v25  ;;  %v2387_v18 = vsel %vm1245_vm9, %v2355_v7, -inf  ;;  %v2314_v41 = vmul.f32 %v7759_v29, %v2253_v56  ;;  %v2706_v17 = vmul.f32 %v7762_v31, %v2645_v52  ;;  %v2657_v56 = vpop.f32.mrb[73].mxu0 }
 0x323   : > { %v2779_v46 = vsel %vm1245_vm9, %v2747_v9, -inf  ;;  %v8117_v2 = vmax.f32 %v2427_v24, %v2387_v18  ;;  %v2388_v45 = vsel %vm1246_vm10, %v2356_v34, -inf  ;;  %v2780_v22 = vsel %vm1246_vm10, %v2748_v12, -inf  ;;  %v2659_v57 = vpop.f32.mrb[74].mxu0 }
 0x324   : > { %v8119_v10 = vmax.f32 %v2819_v39, %v2779_v46  ;;  %v8125_v5 = vmax.f32 %v2407_v62, %v2388_v45  ;;  %v8127_v8 = vmax.f32 %v2799_v4, %v2780_v22  ;;  %v2389_v0 = vsel %vm1246_vm10, %v2357_v40, -inf  ;;  %v2265_v39 = vpop.f32.mrb[57].mxu1  ;;  %v2661_v60 = vpop.f32.mrb[75].mxu0 }
 0x325   : > { %v2781_v24 = vsel %vm1246_vm10, %v2749_v28, -inf  ;;  %v8133_v52 = vmax.f32 %v2428_v33, %v2389_v0  ;;  %v2358_v58 = vadd.f32 %v7770_v27, %v2314_v41  ;;  %v2750_v63 = vadd.f32 %v7782_v15, %v2706_v17  ;;  %v2267_v62 = vpop.f32.mrb[58].mxu1 }
 0x326   : > { %v8135_v53 = vmax.f32 %v2820_v23, %v2781_v24  ;;  %v2315_v4 = vmul.f32 %v7765_v1, %v2255_v6  ;;  %v2707_v49 = vmul.f32 %v7773_v47, %v2647_v26  ;;  %v2316_v35 = vmul.f32 %v7759_v29, %v2257_v61  ;;  %v2269_v50 = vpop.f32.mrb[59].mxu1 }
 0x327   : > { %v2708_v59 = vmul.f32 %v7762_v31, %v2649_v54  ;;  %v2390_v23 = vsel %vm1247_vm11, %v2358_v58, -inf  ;;  %v2782_v55 = vsel %vm1247_vm11, %v2750_v63, -inf  ;;  %v2317_v16 = vmul.f32 %v7765_v1, %v2259_v11 }
 0x328   : > { %v2709_v3 = vmul.f32 %v7773_v47, %v2651_v42  ;;  %v2410_v6 = vmax.f32 %v8101_v19, %v2390_v23  ;;  %v2802_v26 = vmax.f32 %v8103_v48, %v2782_v55  ;;  %v2359_v61 = vadd.f32 %v7837_v13, %v2315_v4 }
 0x329   : > { %v2751_v54 = vadd.f32 %v7880_v43, %v2707_v49  ;;  %v2360_v25 = vadd.f32 %v7770_v27, %v2316_v35  ;;  %v2752_v7 = vadd.f32 %v7782_v15, %v2708_v59  ;;  %v2361_v9 = vadd.f32 %v7837_v13, %v2317_v16  ;;  %v2273_v41 = vpop.f32.mrb[60].mxu1 }
 0x32a   : > { %v2753_v34 = vadd.f32 %v7880_v43, %v2709_v3  ;;  %v2391_v11 = vsel %vm1247_vm11, %v2359_v61, -inf  ;;  %v2318_v19 = vmul.f32 %v7759_v29, %v2263_v14  ;;  %v2710_v48 = vmul.f32 %v7762_v31, %v2655_v36 }
 0x32b   : > { %v2783_v42 = vsel %vm1247_vm11, %v2751_v54, -inf  ;;  %v2431_v12 = vmax.f32 %v8117_v2, %v2391_v11  ;;  %v2392_v18 = vsel %vm1248_vm12, %v2360_v25, -inf  ;;  %v2784_v46 = vsel %vm1248_vm12, %v2752_v7, -inf  ;;  %v2275_v2 = vpop.f32.mrb[61].mxu1 }
 0x32c   : > { %v2823_v40 = vmax.f32 %v8119_v10, %v2783_v42  ;;  %v2411_v17 = vmax.f32 %v8125_v5, %v2392_v18  ;;  %v2803_v45 = vmax.f32 %v8127_v8, %v2784_v46  ;;  %v2393_v22 = vsel %vm1248_vm12, %v2361_v9, -inf  ;;  %v2277_v58 = vpop.f32.mrb[62].mxu1 }
 0x32d   : > { %v2785_v14 = vsel %vm1248_vm12, %v2753_v34, -inf  ;;  %v2432_v10 = vmax.f32 %v8133_v52, %v2393_v22  ;;  %v2362_v0 = vadd.f32 %v7770_v27, %v2318_v19  ;;  %v2754_v24 = vadd.f32 %v7782_v15, %v2710_v48  ;;  %v2279_v49 = vpop.f32.mrb[63].mxu1 }
 0x32e   : > { %v2824_v36 = vmax.f32 %v8135_v53, %v2785_v14  ;;  %v2319_v5 = vmul.f32 %v7765_v1, %v2265_v39  ;;  %v2711_v8 = vmul.f32 %v7773_v47, %v2657_v56  ;;  %v2320_v63 = vmul.f32 %v7759_v29, %v2267_v62 }
 0x32f   : > { %v2712_v4 = vmul.f32 %v7762_v31, %v2659_v57  ;;  %v2394_v35 = vsel %vm1249_vm13, %v2362_v0, -inf  ;;  %v2786_v52 = vsel %vm1249_vm13, %v2754_v24, -inf  ;;  %v2321_v53 = vmul.f32 %v7765_v1, %v2269_v50 }
 0x330   : > { %v2713_v59 = vmul.f32 %v7773_v47, %v2661_v60  ;;  %v2412_v33 = vmax.f32 %v2410_v6, %v2394_v35  ;;  %v2804_v23 = vmax.f32 %v2802_v26, %v2786_v52  ;;  %v2363_v39 = vadd.f32 %v7837_v13, %v2319_v5 }
 0x331   : > { %v2755_v56 = vadd.f32 %v7880_v43, %v2711_v8  ;;  %v2364_v62 = vadd.f32 %v7770_v27, %v2320_v63  ;;  %v2756_v57 = vadd.f32 %v7782_v15, %v2712_v4  ;;  %v2365_v55 = vadd.f32 %v7837_v13, %v2321_v53  ;;  %v2665_v7 = vpop.f32.mrb[64].mxu1 }
 0x332   : > { %v2757_v16 = vadd.f32 %v7880_v43, %v2713_v59  ;;  %v2395_v3 = vsel %vm1249_vm13, %v2363_v39, -inf  ;;  %v2322_v60 = vmul.f32 %v7759_v29, %v2273_v41  ;;  %v2323_v6 = vmul.f32 %v7765_v1, %v2275_v2  ;;  %v2667_v42 = vpop.f32.mrb[65].mxu1 }
 0x333   : > { %v2787_v50 = vsel %vm1249_vm13, %v2755_v56, -inf  ;;  %v2433_v26 = vmax.f32 %v2431_v12, %v2395_v3  ;;  %v2396_v54 = vsel %vm1250_vm14, %v2364_v62, -inf  ;;  %v2788_v25 = vsel %vm1250_vm14, %v2756_v57, -inf  ;;  %v2669_v28 = vpop.f32.mrb[66].mxu1 }
 0x334   : > { %v2825_v61 = vmax.f32 %v2823_v40, %v2787_v50  ;;  %v2413_v9 = vmax.f32 %v2411_v17, %v2396_v54  ;;  %v2805_v34 = vmax.f32 %v2803_v45, %v2788_v25  ;;  %v2397_v11 = vsel %vm1250_vm14, %v2365_v55, -inf  ;;  %v2671_v45 = vpop.f32.mrb[67].mxu1 }
 0x335   : > { %v2789_v44 = vsel %vm1250_vm14, %v2757_v16, -inf  ;;  %v2434_v19 = vmax.f32 %v2432_v10, %v2397_v11  ;;  %v2366_v12 = vadd.f32 %v7770_v27, %v2322_v60  ;;  %v2367_v40 = vadd.f32 %v7837_v13, %v2323_v6 }
 0x336   : > { %v2826_v48 = vmax.f32 %v2824_v36, %v2789_v44  ;;  %v2324_v18 = vmul.f32 %v7759_v29, %v2277_v58  ;;  %v2325_v46 = vmul.f32 %v7765_v1, %v2279_v49  ;;  %v2714_v41 = vmul.f32 %v7762_v31, %v2665_v7 }
 0x337   : > { %v2715_v17 = vmul.f32 %v7773_v47, %v2667_v42  ;;  %v2398_v20 = vsel %vm1251_vm15, %v2366_v12, -inf  ;;  %v2399_v22 = vsel %vm1251_vm15, %v2367_v40, -inf  ;;  %v2716_v14 = vmul.f32 %v7762_v31, %v2669_v28 }
 0x338   : > { %v2717_v2 = vmul.f32 %v7773_v47, %v2671_v45  ;;  %v2414_v10 = vmax.f32 %v2412_v33, %v2398_v20  ;;  %v2435_v36 = vmax.f32 %v2433_v26, %v2399_v22  ;;  %v2368_v29 = vadd.f32 %v7770_v27, %v2324_v18  ;;  %v2444_v18 = vld [vmem:[#allocation2 + $0x4] sm:$0x3] }
 0x339   : > { %v2369_v1 = vadd.f32 %v7837_v13, %v2325_v46  ;;  %v2758_v0 = vadd.f32 %v7782_v15, %v2714_v41  ;;  %v2759_v24 = vadd.f32 %v7880_v43, %v2715_v17  ;;  %v2760_v58 = vadd.f32 %v7782_v15, %v2716_v14  ;;  %v2836_v17 = vld [vmem:[#allocation2 + $0x6] sm:$0x3] }
 0x33a   : > { %v2761_v5 = vadd.f32 %v7880_v43, %v2717_v2  ;;  %v2400_v8 = vsel %vm1252_vm0, %v2368_v29, -inf  ;;  %v6105_v14 = vld [vmem:[%s9400_s10 + $0x4] ss:$16 sps:$4 sm:$0xff] (!%p5556_p8)   ;;  %v6115_v29 = vld [vmem:[%s9400_s10 + $0x20] ss:$16 sps:$4 sm:$0xff] (!%p5556_p8)  }
 0x33b   : > { %v2401_v31 = vsel %vm1252_vm0, %v2369_v1, -inf  ;;  %v2415_v47 = vmax.f32 %v2413_v9, %v2400_v8  ;;  %v2790_v27 = vsel %vm1251_vm15, %v2758_v0, -inf  ;;  %v2791_v13 = vsel %vm1251_vm15, %v2759_v24, -inf  ;;  %v6107_v2 = vld [vmem:[%s9400_s10 + $0x204] ss:$16 sps:$4 sm:$0xff] (!%p5556_p8)   ;;  %4469 = vmatprep.subr.bf16.mxu1 (!%p5556_p8), %v6105_v14 }
 0x33c   : > { %v2436_v63 = vmax.f32 %v2434_v19, %v2401_v31  ;;  %v2806_v4 = vmax.f32 %v2804_v23, %v2790_v27  ;;  %v2827_v49 = vmax.f32 %v2825_v61, %v2791_v13  ;;  %v2792_v15 = vsel %vm1252_vm0, %v2760_v58, -inf  ;;  %4510 = vmatprep.subr.bf16.mxu0 (!%p5556_p8), %v6107_v2  ;;  %v6116_v1 = vld [vmem:[%s9400_s10 + $0x220] ss:$16 sps:$4 sm:$0xff] (!%p5556_p8)   ;;  %v6117_v0 = vld [vmem:[%s9400_s10 + $0x44] ss:$16 sps:$4 sm:$0xff] (!%p5556_p8)  }
 0x33d   : > { %v2793_v43 = vsel %vm1252_vm0, %v2761_v5, -inf  ;;  %v2416_v35 = vmax.f32 %v2414_v10, %v2415_v47  ;;  %v2807_v53 = vmax.f32 %v2805_v34, %v2792_v15  ;;  %v6111_v10 = vld [vmem:[%s9400_s10 + $0x24] ss:$16 sps:$4 sm:$0xff] (!%p5556_p8)   ;;  %4511 = vmatpush1.bf16.msra.mxu0 (!%p5556_p8), %v6110_v38  ;;  %v6121_v58 = vld [vmem:[%s9400_s10 + $0x40] ss:$16 sps:$4 sm:$0xff] (!%p5556_p8)  }
 0x33e   : > { %v2437_v52 = vmax.f32 %v2435_v36, %v2436_v63  ;;  %v2828_v59 = vmax.f32 %v2826_v48, %v2793_v43  ;;  %v6113_v36 = vld [vmem:[%s9400_s10 + $0x224] ss:$16 sps:$4 sm:$0xff] (!%p5556_p8)   ;;  %v6122_v5 = vld [vmem:[%s9400_s10 + $0x240] ss:$16 sps:$4 sm:$0xff] (!%p5556_p8)  }
 0x33f   : > { %v2417_v33 = vrot.slane %v2416_v35, 4  ;;  %v2808_v56 = vmax.f32 %v2806_v4, %v2807_v53  ;;  %4512 = vmatprep.subr.bf16.mxu0 (!%p5556_p8), %v6113_v36  ;;  %v6119_v24 = vld [vmem:[%s9400_s10 + $0x244] ss:$16 sps:$4 sm:$0xff] (!%p5556_p8)   ;;  %v6127_v47 = vld [vmem:[%s9400_s10 + $0x60] ss:$16 sps:$4 sm:$0xff] (!%p5556_p8)  }
 0x340   : > { %v2438_v39 = vrot.slane %v2437_v52, 4  ;;  %v2829_v62 = vmax.f32 %v2827_v49, %v2828_v59  ;;  %v6123_v8 = vld [vmem:[%s9400_s10 + $0x64] ss:$16 sps:$4 sm:$0xff] (!%p5556_p8)   ;;  %v6128_v63 = vld [vmem:[%s9400_s10 + $0x260] ss:$16 sps:$4 sm:$0xff] (!%p5556_p8)  }
 0x341   : > { %v2418_v57 = vmax.f32 %v2416_v35, %v2417_v33  ;;  %v2809_v51 = vrot.slane %v2808_v56, 4  ;;  %4513 = vmatpush1.bf16.msra.mxu0 (!%p5556_p8), %v6116_v1  ;;  %v6125_v31 = vld [vmem:[%s9400_s10 + $0x264] ss:$16 sps:$4 sm:$0xff] (!%p5556_p8)   ;;  %v6133_v4 = vld [vmem:[%s9400_s10 + $0x80] ss:$16 sps:$4 sm:$0xff] (!%p5556_p8)  }
 0x342   : > { %v2439_v55 = vmax.f32 %v2437_v52, %v2438_v39  ;;  %v2830_v16 = vrot.slane %v2829_v62, 4  ;;  %4514 = vmatprep.subr.bf16.mxu0 (!%p5556_p8), %v6119_v24  ;;  %v6129_v27 = vld [vmem:[%s9400_s10 + $0x84] ss:$16 sps:$4 sm:$0xff] (!%p5556_p8)   ;;  %v6134_v49 = vld [vmem:[%s9400_s10 + $0x280] ss:$16 sps:$4 sm:$0xff] (!%p5556_p8)  }
 0x343   : > { %v2419_v23 = vrot.slane %v2418_v57, 2  ;;  %v2810_v50 = vmax.f32 %v2808_v56, %v2809_v51  ;;  %v6131_v13 = vld [vmem:[%s9400_s10 + $0x284] ss:$16 sps:$4 sm:$0xff] (!%p5556_p8)   ;;  %v6139_v35 = vld [vmem:[%s9400_s10 + $0xa0] ss:$16 sps:$4 sm:$0xff] (!%p5556_p8)  }
 0x344   : > { %v2440_v3 = vrot.slane %v2439_v55, 2  ;;  %v2831_v60 = vmax.f32 %v2829_v62, %v2830_v16  ;;  %v6135_v15 = vld [vmem:[%s9400_s10 + $0xa4] ss:$16 sps:$4 sm:$0xff] (!%p5556_p8)   ;;  %v6140_v52 = vld [vmem:[%s9400_s10 + $0x2a0] ss:$16 sps:$4 sm:$0xff] (!%p5556_p8)  }
 0x345   : > { %v2420_v6 = vmax.f32 %v2418_v57, %v2419_v23  ;;  %v2811_v37 = vrot.slane %v2810_v50, 2  ;;  %4515 = vmatpush1.bf16.msra.mxu0 (!%p5556_p8), %v6122_v5  ;;  %v6137_v43 = vld [vmem:[%s9400_s10 + $0x2a4] ss:$16 sps:$4 sm:$0xff] (!%p5556_p8)   ;;  %v6145_v33 = vld [vmem:[%s9400_s10 + $0xc0] ss:$16 sps:$4 sm:$0xff] (!%p5556_p8)  }
 0x346   : > { %v2441_v26 = vmax.f32 %v2439_v55, %v2440_v3  ;;  %v2832_v61 = vrot.slane %v2831_v60, 2  ;;  %4516 = vmatprep.subr.bf16.mxu0 (!%p5556_p8), %v6125_v31  ;;  %v6141_v53 = vld [vmem:[%s9400_s10 + $0xc4] ss:$16 sps:$4 sm:$0xff] (!%p5556_p8)   ;;  %v6146_v39 = vld [vmem:[%s9400_s10 + $0x2c0] ss:$16 sps:$4 sm:$0xff] (!%p5556_p8)  }
 0x347   : > { %v2421_v54 = vrot.slane %v2420_v6, 1  ;;  %v2812_v7 = vmax.f32 %v2810_v50, %v2811_v37  ;;  %v6143_v59 = vld [vmem:[%s9400_s10 + $0x2c4] ss:$16 sps:$4 sm:$0xff] (!%p5556_p8)   ;;  %v6151_v57 = vld [vmem:[%s9400_s10 + $0xe0] ss:$16 sps:$4 sm:$0xff] (!%p5556_p8)  }
 0x348   : > { %v2442_v25 = vrot.slane %v2441_v26, 1  ;;  %v2833_v9 = vmax.f32 %v2831_v60, %v2832_v61  ;;  %v6147_v56 = vld [vmem:[%s9400_s10 + $0xe4] ss:$16 sps:$4 sm:$0xff] (!%p5556_p8)   ;;  %v6152_v55 = vld [vmem:[%s9400_s10 + $0x2e0] ss:$16 sps:$4 sm:$0xff] (!%p5556_p8)  }
 0x349   : > { %v2422_v34 = vmax.f32 %v2420_v6, %v2421_v54  ;;  %v2813_v44 = vrot.slane %v2812_v7, 1  ;;  %4517 = vmatpush1.bf16.msra.mxu0 (!%p5556_p8), %v6128_v63  ;;  %v6149_v62 = vld [vmem:[%s9400_s10 + $0x2e4] ss:$16 sps:$4 sm:$0xff] (!%p5556_p8)   ;;  %v6157_v23 = vld [vmem:[%s9400_s10 + $0x100] ss:$16 sps:$4 sm:$0xff] (!%p5556_p8)  }
 0x34a   : > { %v2443_v11 = vmax.f32 %v2441_v26, %v2442_v25  ;;  %v2834_v42 = vrot.slane %v2833_v9, 1  ;;  %4518 = vmatprep.subr.bf16.mxu0 (!%p5556_p8), %v6131_v13  ;;  %v6153_v51 = vld [vmem:[%s9400_s10 + $0x104] ss:$16 sps:$4 sm:$0xff] (!%p5556_p8)   ;;  %v6158_v3 = vld [vmem:[%s9400_s10 + $0x300] ss:$16 sps:$4 sm:$0xff] (!%p5556_p8)  }
 0x34b   : > { %v2814_v48 = vmax.f32 %v2812_v7, %v2813_v44  ;;  %v6155_v16 = vld [vmem:[%s9400_s10 + $0x304] ss:$16 sps:$4 sm:$0xff] (!%p5556_p8)   ;;  %v6163_v6 = vld [vmem:[%s9400_s10 + $0x120] ss:$16 sps:$4 sm:$0xff] (!%p5556_p8)   ;;  %v2877_v7 = vsub.s32 (!%p5556_p8), 3, %v6826_v30 }
 0x34c   : > { %v2447_v19 = vcombine.low %v2422_v34, %v2443_v11  ;;  %v2835_v12 = vmax.f32 %v2833_v9, %v2834_v42  ;;  %v6159_v50 = vld [vmem:[%s9400_s10 + $0x124] ss:$16 sps:$4 sm:$0xff] (!%p5556_p8)   ;;  %v6164_v26 = vld [vmem:[%s9400_s10 + $0x320] ss:$16 sps:$4 sm:$0xff] (!%p5556_p8)  }
 0x34d   : > { %4519 = vmatpush1.bf16.msra.mxu0 (!%p5556_p8), %v6134_v49  ;;  %v6161_v60 = vld [vmem:[%s9400_s10 + $0x324] ss:$16 sps:$4 sm:$0xff] (!%p5556_p8)   ;;  %v6169_v54 = vld [vmem:[%s9400_s10 + $0x140] ss:$16 sps:$4 sm:$0xff] (!%p5556_p8)   ;;  %v6204_v49 = vld [vmem:[%s9400_s10 + $0x8] ss:$16 sps:$4 sm:$0xff] (!%p5556_p8)  }
 0x34e   : > { %v2454_v40 = vrot.slane %v2447_v19, %v7875_v21  ;;  %v2839_v28 = vcombine.low %v2814_v48, %v2835_v12  ;;  %4520 = vmatprep.subr.bf16.mxu0 (!%p5556_p8), %v6137_v43  ;;  %v6165_v37 = vld [vmem:[%s9400_s10 + $0x144] ss:$16 sps:$4 sm:$0xff] (!%p5556_p8)   ;;  %v6170_v25 = vld [vmem:[%s9400_s10 + $0x340] ss:$16 sps:$4 sm:$0xff] (!%p5556_p8)   ;;  %v6212_v43 = vld [vmem:[%s9400_s10 + $0x2c] ss:$16 sps:$4 sm:$0xff] (!%p5556_p8)  }
 0x34f   : > { %v6167_v61 = vld [vmem:[%s9400_s10 + $0x344] ss:$16 sps:$4 sm:$0xff] (!%p5556_p8)   ;;  %v6175_v44 = vld [vmem:[%s9400_s10 + $0x160] ss:$16 sps:$4 sm:$0xff] (!%p5556_p8)  }
 0x350   : > { %v2461_v46 = vrot.slane %v2454_v40, %v7875_v21  ;;  %v2846_v41 = vrot.slane %v2839_v28, %v7875_v21  ;;  %2860 = sbr.rel (%p5556_p8) target bundleno = 1826 (0x722), region = 92  ;;  %v6171_v9 = vld [vmem:[%s9400_s10 + $0x164] ss:$16 sps:$4 sm:$0xff] (!%p5556_p8)   ;;  %v6176_v48 = vld [vmem:[%s9400_s10 + $0x360] ss:$16 sps:$4 sm:$0xff] (!%p5556_p8)  }
 0x351   : > { %4521 = vmatpush1.bf16.msra.mxu0 (!%p5556_p8), %v6140_v52  ;;  %v6173_v34 = vld [vmem:[%s9400_s10 + $0x364] ss:$16 sps:$4 sm:$0xff] (!%p5556_p8)   ;;  %v6194_v38 = vld [vmem:[%s9400_s10 + $0x3c0] ss:$16 sps:$4 sm:$0xff] (!%p5556_p8)  }
 0x352   : > { %v2463_v45 = vmax.f32 %v2444_v18, %v2461_v46  ;;  %v2853_v20 = vrot.slane %v2846_v41, %v7875_v21  ;;  %v6109_v21 = vld [vmem:[%s9400_s10] ss:$16 sps:$4 sm:$0xff] (!%p5556_p8)   ;;  %4522 = vmatprep.subr.bf16.mxu0 (!%p5556_p8), %v6143_v59  ;;  %v6177_v12 = vld [vmem:[%s9400_s10 + $0x184] ss:$16 sps:$4 sm:$0xff] (!%p5556_p8)  }
 0x353   : > { %4470 = vmatpush1.bf16.msra.mxu1 (!%p5556_p8), %v6109_v21  ;;  %v6179_v40 = vld [vmem:[%s9400_s10 + $0x384] ss:$16 sps:$4 sm:$0xff] (!%p5556_p8)   ;;  %v6181_v46 = vld [vmem:[%s9400_s10 + $0x180] ss:$16 sps:$4 sm:$0xff] (!%p5556_p8)  }
 0x354   : > { %2464 = vst.msk [vmem:[#allocation2 + $0x4] sm:$0x3] %vm7945_vm1, %v2463_v45  ;;  %v2855_v22 = vmax.f32 %v2836_v17, %v2853_v20  ;;  %4471 = vmatprep.subr.bf16.mxu1 (!%p5556_p8), %v6111_v10  ;;  %v6182_v41 = vld [vmem:[%s9400_s10 + $0x380] ss:$16 sps:$4 sm:$0xff] (!%p5556_p8)   ;;  %v6183_v17 = vld [vmem:[%s9400_s10 + $0x1a4] ss:$16 sps:$4 sm:$0xff] (!%p5556_p8)  }
 0x355   : > { %4523 = vmatpush1.bf16.msra.mxu0 (!%p5556_p8), %v6146_v39  ;;  %v6185_v45 = vld [vmem:[%s9400_s10 + $0x3a4] ss:$16 sps:$4 sm:$0xff] (!%p5556_p8)   ;;  %v6187_v20 = vld [vmem:[%s9400_s10 + $0x1a0] ss:$16 sps:$4 sm:$0xff] (!%p5556_p8)  }
 0x356   : > { %2856 = vst.msk [vmem:[#allocation2 + $0x6] sm:$0x3] %vm7945_vm1, %v2855_v22  ;;  %4524 = vmatprep.subr.bf16.mxu0 (!%p5556_p8), %v6149_v62  ;;  %v6188_v22 = vld [vmem:[%s9400_s10 + $0x3a0] ss:$16 sps:$4 sm:$0xff] (!%p5556_p8)   ;;  %v6189_v14 = vld [vmem:[%s9400_s10 + $0x1c4] ss:$16 sps:$4 sm:$0xff] (!%p5556_p8)  }
 0x357   : > { %4472 = vmatpush1.bf16.msra.mxu1 %v6115_v29  ;;  %v6191_v2 = vld [vmem:[%s9400_s10 + $0x3c4] ss:$16 sps:$4 sm:$0xff]   ;;  %v6193_v21 = vld [vmem:[%s9400_s10 + $0x1c0] ss:$16 sps:$4 sm:$0xff]   ;;  %v2885_v29 = vsub.s32 5, %v6826_v30 }
 0x358   : > { %4473 = vmatprep.subr.bf16.mxu1 %v6117_v0  ;;  %v6195_v10 = vld [vmem:[%s9400_s10 + $0x1e4] ss:$16 sps:$4 sm:$0xff]   ;;  %v6199_v1 = vld [vmem:[%s9400_s10 + $0x1e0] ss:$16 sps:$4 sm:$0xff]  }
 0x359   : > { %4525 = vmatpush1.bf16.msra.mxu0 %v6152_v55  ;;  %v6197_v36 = vld [vmem:[%s9400_s10 + $0x3e4] ss:$16 sps:$4 sm:$0xff]   ;;  %v9442_v0 = vld [vmem:[#allocation9_spill] sm:$0xff] }
 0x35a   : > { %4526 = vmatprep.subr.bf16.mxu0 %v6155_v16  ;;  %v6203_v31 = vld [vmem:[%s9400_s10 + $0x404] ss:$16 sps:$4 sm:$0xff]   ;;  %v6201_v13 = vld [vmem:[%s9400_s10 + $0x400] ss:$16 sps:$4 sm:$0xff]  }
 0x35b   : > { %4474 = vmatpush1.bf16.msra.mxu1 %v6121_v58  ;;  %v9443_v58 = vld [vmem:[#allocation10_spill] sm:$0xff] }
 0x35c   : > { %4475 = vmatprep.subr.bf16.mxu1 %v6123_v8  ;;  %v6200_v8 = vld [vmem:[%s9400_s10 + $0x3e0] ss:$16 sps:$4 sm:$0xff]   ;;  %v6215_v59 = vld [vmem:[%s9400_s10 + $0x444] ss:$16 sps:$4 sm:$0xff]  }
 0x35d   : > { %4527 = vmatpush1.bf16.msra.mxu0 %v6158_v3  ;;  %v8387_v11 = vld [vmem:[#allocation2] sm:$0xff] }
 0x35e   : > { %4528 = vmatprep.subr.bf16.mxu0 %v6161_v60  ;;  %v2870_v42 = vrot.slane %v8387_v11, %v6829_v32  ;;  %v2878_v19 = vrot.slane %v8387_v11, %v2877_v7  ;;  %v2866_v24 = vrot.slane %v8387_v11, %v9442_v0  ;;  %v2874_v5 = vrot.slane %v8387_v11, %v9443_v58  ;;  %v6207_v52 = vld [vmem:[%s9400_s10 + $0x420] ss:$16 sps:$4 sm:$0xff]   ;;  %v6221_v62 = vld [vmem:[%s9400_s10 + $0x464] ss:$16 sps:$4 sm:$0xff]  }
 0x35f   : > { %4476 = vmatpush1.bf16.msra.mxu1 %v6127_v47  ;;  %v6206_v47 = vld [vmem:[%s9400_s10 + $0xc] ss:$16 sps:$4 sm:$0xff]   ;;  %v2886_v63 = vrot.slane %v8387_v11, %v2885_v29  ;;  %v6213_v39 = vld [vmem:[%s9400_s10 + $0x440] ss:$16 sps:$4 sm:$0xff]   ;;  %v6227_v16 = vld [vmem:[%s9400_s10 + $0x484] ss:$16 sps:$4 sm:$0xff]  }
 0x360   : > { %4477 = vmatprep.subr.bf16.mxu1 %v6129_v27  ;;  %v2904_v28 = vpack.c.bf16 %v2870_v42, %v2870_v42  ;;  %v8406_v18 = vpack.c.bf16 %v2878_v19, %v2878_v19  ;;  %v8463_v27 = vpack.c.bf16 %v2866_v24, %v2866_v24  ;;  %v6219_v55 = vld [vmem:[%s9400_s10 + $0x460] ss:$16 sps:$4 sm:$0xff]   ;;  %v6233_v60 = vld [vmem:[%s9400_s10 + $0x4a4] ss:$16 sps:$4 sm:$0xff]   ;;  %v6246_v19 = vld [vmem:[%s9400_s10 + $0xe8] ss:$16 sps:$4 sm:$0xff]  }
 0x361   : > { %4529 = vmatpush1.bf16.msra.mxu0 %v6164_v26  ;;  %v6225_v3 = vld [vmem:[%s9400_s10 + $0x480] ss:$16 sps:$4 sm:$0xff]   ;;  %v6275_v29 = vld [vmem:[%s9400_s10 + $0x584] ss:$16 sps:$4 sm:$0xff]  }
 0x362   : > { %4530 = vmatprep.subr.bf16.mxu0 %v6167_v61  ;;  %4501 = vmatprep.mubr.bf16.mxu1 %v2904_v28  ;;  %v6231_v26 = vld [vmem:[%s9400_s10 + $0x4a0] ss:$16 sps:$4 sm:$0xff]   ;;  %v6239_v61 = vld [vmem:[%s9400_s10 + $0x4c4] ss:$16 sps:$4 sm:$0xff]  }
 0x363   : > { %4478 = vmatpush1.bf16.msra.mxu1 %v6133_v4  ;;  %4542 = vmatprep.mubr.bf16.mxu0 %v8406_v18  ;;  %v8468_v4 = vpack.c.bf16 %v2874_v5, %v2874_v5  ;;  %v6243_v42 = vld [vmem:[%s9400_s10 + $0x4e0] ss:$16 sps:$4 sm:$0xff]   ;;  %v6276_v5 = vld [vmem:[%s9400_s10 + $0x188] ss:$16 sps:$4 sm:$0xff]  }
 0x364   : > { %4479 = vmatprep.subr.bf16.mxu1 %v6135_v15  ;;  %v6209_v15 = vld [vmem:[%s9400_s10 + $0x424] ss:$16 sps:$4 sm:$0xff]   ;;  %v6273_v24 = vld [vmem:[%s9400_s10 + $0x580] ss:$16 sps:$4 sm:$0xff]  }
 0x365   : > { %4531 = vmatpush1.bf16.msra.mxu0 %v6170_v25  ;;  %v6237_v25 = vld [vmem:[%s9400_s10 + $0x4c0] ss:$16 sps:$4 sm:$0xff]  }
 0x366   : > { %4532 = vmatprep.subr.bf16.mxu0 %v6173_v34  ;;  %v6245_v34 = vld [vmem:[%s9400_s10 + $0x4e4] ss:$16 sps:$4 sm:$0xff]  }
 0x367   : > { %4480 = vmatpush1.bf16.msra.mxu1 %v6139_v35  ;;  %v8479_v35 = vpack.c.bf16 %v2886_v63, %v2886_v63  ;;  %v6282_v63 = vld [vmem:[%s9400_s10 + $0x1a8] ss:$16 sps:$4 sm:$0xff]  }
 0x368   : > { %4481 = vmatprep.subr.bf16.mxu1 %v6141_v53  ;;  %v6210_v53 = vld [vmem:[%s9400_s10 + $0x28] ss:$16 sps:$4 sm:$0xff]  }
 0x369   : > { %4533 = vmatpush1.bf16.msra.mxu0 %v6176_v48  ;;  %v6251_v48 = vld [vmem:[%s9400_s10 + $0x504] ss:$16 sps:$4 sm:$0xff]  }
 0x36a   : > { %4534 = vmatprep.subr.bf16.mxu0 %v6179_v40  ;;  %v6249_v40 = vld [vmem:[%s9400_s10 + $0x500] ss:$16 sps:$4 sm:$0xff]  }
 0x36b   : > { %4482 = vmatpush1.bf16.msra.mxu1 %v6145_v33  ;;  %v6218_v33 = vld [vmem:[%s9400_s10 + $0x4c] ss:$16 sps:$4 sm:$0xff]  }
 0x36c   : > { %4483 = vmatprep.subr.bf16.mxu1 %v6147_v56  ;;  %v6216_v56 = vld [vmem:[%s9400_s10 + $0x48] ss:$16 sps:$4 sm:$0xff]  }
 0x36d   : > { %4535 = vmatpush1.bf16.msra.mxu0 %v6182_v41  ;;  %v6260_v41 = vld [vmem:[%s9400_s10 + $0x12c] ss:$16 sps:$4 sm:$0xff]  }
 0x36e   : > { %4536 = vmatprep.subr.bf16.mxu0 %v6185_v45  ;;  %v6258_v45 = vld [vmem:[%s9400_s10 + $0x128] ss:$16 sps:$4 sm:$0xff]  }
 0x36f   : > { %4484 = vmatpush1.bf16.msra.mxu1 %v6151_v57  ;;  %v6224_v57 = vld [vmem:[%s9400_s10 + $0x6c] ss:$16 sps:$4 sm:$0xff]  }
 0x370   : > { %4485 = vmatprep.subr.bf16.mxu1 %v6153_v51  ;;  %v6222_v51 = vld [vmem:[%s9400_s10 + $0x68] ss:$16 sps:$4 sm:$0xff]  }
 0x371   : > { %4537 = vmatpush1.bf16.msra.mxu0 %v6188_v22  ;;  %v6266_v22 = vld [vmem:[%s9400_s10 + $0x14c] ss:$16 sps:$4 sm:$0xff]  }
 0x372   : > { %4538 = vmatprep.subr.bf16.mxu0 %v6191_v2  ;;  %v6264_v2 = vld [vmem:[%s9400_s10 + $0x148] ss:$16 sps:$4 sm:$0xff]  }
 0x373   : > { %4486 = vmatpush1.bf16.msra.mxu1 %v6157_v23  ;;  %v6230_v23 = vld [vmem:[%s9400_s10 + $0x8c] ss:$16 sps:$4 sm:$0xff]  }
 0x374   : > { %4487 = vmatprep.subr.bf16.mxu1 %v6159_v50  ;;  %v6228_v50 = vld [vmem:[%s9400_s10 + $0x88] ss:$16 sps:$4 sm:$0xff]  }
 0x375   : > { %4539 = vmatpush1.bf16.msra.mxu0 %v6194_v38  ;;  %v6272_v38 = vld [vmem:[%s9400_s10 + $0x16c] ss:$16 sps:$4 sm:$0xff]  }
 0x376   : > { %4540 = vmatprep.subr.bf16.mxu0 %v6197_v36  ;;  %v6270_v36 = vld [vmem:[%s9400_s10 + $0x168] ss:$16 sps:$4 sm:$0xff]  }
 0x377   : > { %4488 = vmatpush1.bf16.msra.mxu1 %v6163_v6  ;;  %v6236_v6 = vld [vmem:[%s9400_s10 + $0xac] ss:$16 sps:$4 sm:$0xff]  }
 0x378   : > { %4489 = vmatprep.subr.bf16.mxu1 %v6165_v37  ;;  %v6234_v37 = vld [vmem:[%s9400_s10 + $0xa8] ss:$16 sps:$4 sm:$0xff]  }
 0x379   : > { %4541 = vmatpush1.bf16.msra.mxu0 %v6200_v8  ;;  %v6281_v8 = vld [vmem:[%s9400_s10 + $0x5a4] ss:$16 sps:$4 sm:$0xff]  }
 0x37a   : > { %4551 = vmatprep.subr.bf16.mxu0 %v6203_v31  ;;  %v6284_v31 = vld [vmem:[%s9400_s10 + $0x1ac] ss:$16 sps:$4 sm:$0xff]  }
 0x37b   : > { %4490 = vmatpush1.bf16.msra.mxu1 %v6169_v54  ;;  %v6242_v54 = vld [vmem:[%s9400_s10 + $0xcc] ss:$16 sps:$4 sm:$0xff]  }
 0x37c   : > { %4491 = vmatprep.subr.bf16.mxu1 %v6171_v9  ;;  %4543 = vmatmul.mubr.bf16.vlgmr.msra.gmra.mrb[0].mxu0 %v8468_v4  ;;  %v6240_v9 = vld [vmem:[%s9400_s10 + $0xc8] ss:$16 sps:$4 sm:$0xff]  }
 0x37d   : > { %4552 = vmatpush1.bf16.msra.mxu0 %v6201_v13  ;;  %4583 = vmatprep.mubr.bf16.mxu0 %v8479_v35  ;;  %v6287_v13 = vld [vmem:[%s9400_s10 + $0x5c4] ss:$16 sps:$4 sm:$0xff]  }
 0x37e   : > { %4553 = vmatprep.subr.bf16.mxu0 %v6209_v15  ;;  %v6285_v15 = vld [vmem:[%s9400_s10 + $0x5c0] ss:$16 sps:$4 sm:$0xff]  }
 0x37f   : > { %4492 = vmatpush1.bf16.msra.mxu1 %v6175_v44  ;;  %v6248_v44 = vld [vmem:[%s9400_s10 + $0xec] ss:$16 sps:$4 sm:$0xff]  }
 0x380   : > { %4493 = vmatprep.subr.bf16.mxu1 %v6177_v12  ;;  %v6254_v12 = vld [vmem:[%s9400_s10 + $0x10c] ss:$16 sps:$4 sm:$0xff]  }
 0x381   : > { %4554 = vmatpush1.bf16.msra.mxu0 %v6207_v52  ;;  %v6288_v52 = vld [vmem:[%s9400_s10 + $0x1c8] ss:$16 sps:$4 sm:$0xff]  }
 0x382   : > { %4555 = vmatprep.subr.bf16.mxu0 %v6215_v59  ;;  %v6296_v59 = vld [vmem:[%s9400_s10 + $0x1ec] ss:$16 sps:$4 sm:$0xff]  }
 0x383   : > { %4494 = vmatpush1.bf16.msra.mxu1 %v6181_v46  ;;  %v6257_v46 = vld [vmem:[%s9400_s10 + $0x524] ss:$16 sps:$4 sm:$0xff]  }
 0x384   : > { %4495 = vmatprep.subr.bf16.mxu1 %v6183_v17  ;;  %v6255_v17 = vld [vmem:[%s9400_s10 + $0x520] ss:$16 sps:$4 sm:$0xff]  }
 0x385   : > { %4556 = vmatpush1.bf16.msra.mxu0 %v6213_v39  ;;  %v6291_v39 = vld [vmem:[%s9400_s10 + $0x5e0] ss:$16 sps:$4 sm:$0xff]  }
 0x386   : > { %4557 = vmatprep.subr.bf16.mxu0 %v6221_v62  ;;  %v6294_v62 = vld [vmem:[%s9400_s10 + $0x1e8] ss:$16 sps:$4 sm:$0xff]  }
 0x387   : > { %4496 = vmatpush1.bf16.msra.mxu1 %v6187_v20  ;;  %v6263_v20 = vld [vmem:[%s9400_s10 + $0x544] ss:$16 sps:$4 sm:$0xff]  }
 0x388   : > { %4497 = vmatprep.subr.bf16.mxu1 %v6189_v14  ;;  %v6261_v14 = vld [vmem:[%s9400_s10 + $0x540] ss:$16 sps:$4 sm:$0xff]  }
 0x389   : > { %4558 = vmatpush1.bf16.msra.mxu0 %v6219_v55  ;;  %v6302_v55 = vld [vmem:[%s9400_s10 + $0x20c] ss:$16 sps:$4 sm:$0xff]  }
 0x38a   : > { %4559 = vmatprep.subr.bf16.mxu0 %v6227_v16  ;;  %v6297_v16 = vld [vmem:[%s9400_s10 + $0x600] ss:$16 sps:$4 sm:$0xff]  }
 0x38b   : > { %4498 = vmatpush1.bf16.msra.mxu1 %v6193_v21  ;;  %v6269_v21 = vld [vmem:[%s9400_s10 + $0x564] ss:$16 sps:$4 sm:$0xff]  }
 0x38c   : > { %4499 = vmatprep.subr.bf16.mxu1 %v6195_v10  ;;  %v6267_v10 = vld [vmem:[%s9400_s10 + $0x560] ss:$16 sps:$4 sm:$0xff]  }
 0x38d   : > { %4560 = vmatpush1.bf16.msra.mxu0 %v6225_v3  ;;  %v6300_v3 = vld [vmem:[%s9400_s10 + $0x208] ss:$16 sps:$4 sm:$0xff]  }
 0x38e   : > { %4561 = vmatprep.subr.bf16.mxu0 %v6233_v60 }
 0x38f   : > { %4500 = vmatpush1.bf16.msra.mxu1 %v6199_v1  ;;  %v6278_v1 = vld [vmem:[%s9400_s10 + $0x18c] ss:$16 sps:$4 sm:$0xff]  }
 0x390   : > { %4633 = vmatprep.subr.bf16.mxu1 %v6206_v47  ;;  %v6279_v47 = vld [vmem:[%s9400_s10 + $0x5a0] ss:$16 sps:$4 sm:$0xff]  }
 0x391   : > { %4562 = vmatpush1.bf16.msra.mxu0 %v6231_v26  ;;  %v6306_v26 = vld [vmem:[%s9400_s10 + $0x228] ss:$16 sps:$4 sm:$0xff]  }
 0x392   : > { %4502 = vmatmul.mubr.bf16.vlgmr.msra.gmra.mrb[0].mxu1 %v8463_v27  ;;  %4563 = vmatprep.subr.bf16.mxu0 %v6239_v61  ;;  %v6309_v61 = vld [vmem:[%s9400_s10 + $0x640] ss:$16 sps:$4 sm:$0xff]  }
 0x393   : > { %4634 = vmatpush1.bf16.msra.mxu1 %v6204_v49  ;;  %4665 = vmatprep.mubr.bf16.mxu1 %v2904_v28  ;;  %v6252_v28 = vld [vmem:[%s9400_s10 + $0x108] ss:$16 sps:$4 sm:$0xff]   ;;  %v6290_v49 = vld [vmem:[%s9400_s10 + $0x1cc] ss:$16 sps:$4 sm:$0xff]  }
 0x394   : > { %4635 = vmatprep.subr.bf16.mxu1 %v6212_v43  ;;  %v2881_v43 = vsub.s32 4, %v6826_v30 }
 0x395   : > { %4564 = vmatpush1.bf16.msra.mxu0 %v6237_v25  ;;  %v6317_v25 = vld [vmem:[%s9400_s10 + $0x664] ss:$16 sps:$4 sm:$0xff]  }
 0x396   : > { %4565 = vmatprep.subr.bf16.mxu0 %v6245_v34  ;;  %v6318_v34 = vld [vmem:[%s9400_s10 + $0x268] ss:$16 sps:$4 sm:$0xff]  }
 0x397   : > { %4636 = vmatpush1.bf16.msra.mxu1 %v6210_v53  ;;  %v6293_v53 = vld [vmem:[%s9400_s10 + $0x5e4] ss:$16 sps:$4 sm:$0xff]  }
 0x398   : > { %4637 = vmatprep.subr.bf16.mxu1 %v6218_v33  ;;  %v2893_v33 = vsub.s32 7, %v6826_v30 }
 0x399   : > { %4566 = vmatpush1.bf16.msra.mxu0 %v6243_v42  ;;  %v6326_v42 = vld [vmem:[%s9400_s10 + $0x28c] ss:$16 sps:$4 sm:$0xff]  }
 0x39a   : > { %4567 = vmatprep.subr.bf16.mxu0 %v6251_v48  ;;  %v6324_v48 = vld [vmem:[%s9400_s10 + $0x288] ss:$16 sps:$4 sm:$0xff]  }
 0x39b   : > { %4638 = vmatpush1.bf16.msra.mxu1 %v6216_v56  ;;  %v2882_v56 = vrot.slane %v8387_v11, %v2881_v43  ;;  %v6363_v43 = vld [vmem:[%s9400_s10 + $0x760] ss:$16 sps:$4 sm:$0xff]  }
 0x39c   : > { %4639 = vmatprep.subr.bf16.mxu1 %v6224_v57  ;;  %v6299_v57 = vld [vmem:[%s9400_s10 + $0x604] ss:$16 sps:$4 sm:$0xff]  }
 0x39d   : > { %4568 = vmatpush1.bf16.msra.mxu0 %v6249_v40  ;;  %v6332_v40 = vld [vmem:[%s9400_s10 + $0x2ac] ss:$16 sps:$4 sm:$0xff]  }
 0x39e   : > { %4569 = vmatprep.subr.bf16.mxu0 %v6257_v46  ;;  %v6330_v46 = vld [vmem:[%s9400_s10 + $0x2a8] ss:$16 sps:$4 sm:$0xff]  }
 0x39f   : > { %4640 = vmatpush1.bf16.msra.mxu1 %v6222_v51  ;;  %v2894_v51 = vrot.slane %v8387_v11, %v2893_v33  ;;  %v6308_v11 = vld [vmem:[%s9400_s10 + $0x22c] ss:$16 sps:$4 sm:$0xff]   ;;  %v6369_v33 = vld [vmem:[%s9400_s10 + $0x780] ss:$16 sps:$4 sm:$0xff]  }
 0x3a0   : > { %4641 = vmatprep.subr.bf16.mxu1 %v6230_v23  ;;  %v8671_v23 = vpack.c.bf16 %v2882_v56, %v2882_v56  ;;  %v6377_v56 = vld [vmem:[%s9400_s10 + $0x7a4] ss:$16 sps:$4 sm:$0xff]  }
 0x3a1   : > { %4570 = vmatpush1.bf16.msra.mxu0 %v6255_v17  ;;  %v8682_v60 = vpack.c.bf16 %v2894_v51, %v2894_v51  ;;  %v6338_v17 = vld [vmem:[%s9400_s10 + $0x2cc] ss:$16 sps:$4 sm:$0xff]   ;;  %v6383_v51 = vld [vmem:[%s9400_s10 + $0x7c4] ss:$16 sps:$4 sm:$0xff]  }
 0x3a2   : > { %4571 = vmatprep.subr.bf16.mxu0 %v6263_v20  ;;  %v6336_v20 = vld [vmem:[%s9400_s10 + $0x2c8] ss:$16 sps:$4 sm:$0xff]  }
 0x3a3   : > { %4642 = vmatpush1.bf16.msra.mxu1 %v6228_v50  ;;  %v6305_v50 = vld [vmem:[%s9400_s10 + $0x624] ss:$16 sps:$4 sm:$0xff]  }
 0x3a4   : > { %4643 = vmatprep.subr.bf16.mxu1 %v6236_v6  ;;  %v6303_v6 = vld [vmem:[%s9400_s10 + $0x620] ss:$16 sps:$4 sm:$0xff]  }
 0x3a5   : > { %4572 = vmatpush1.bf16.msra.mxu0 %v6261_v14  ;;  %v6344_v14 = vld [vmem:[%s9400_s10 + $0x2ec] ss:$16 sps:$4 sm:$0xff]  }
 0x3a6   : > { %4573 = vmatprep.subr.bf16.mxu0 %v6269_v21  ;;  %v6342_v21 = vld [vmem:[%s9400_s10 + $0x2e8] ss:$16 sps:$4 sm:$0xff]  }
 0x3a7   : > { %4644 = vmatpush1.bf16.msra.mxu1 %v6234_v37  ;;  %v6311_v37 = vld [vmem:[%s9400_s10 + $0x644] ss:$16 sps:$4 sm:$0xff]  }
 0x3a8   : > { %4645 = vmatprep.subr.bf16.mxu1 %v6242_v54  ;;  %v6312_v54 = vld [vmem:[%s9400_s10 + $0x248] ss:$16 sps:$4 sm:$0xff]  }
 0x3a9   : > { %4574 = vmatpush1.bf16.msra.mxu0 %v6267_v10  ;;  %v6350_v10 = vld [vmem:[%s9400_s10 + $0x30c] ss:$16 sps:$4 sm:$0xff]  }
 0x3aa   : > { %4575 = vmatprep.subr.bf16.mxu0 %v6275_v29  ;;  %v6348_v29 = vld [vmem:[%s9400_s10 + $0x308] ss:$16 sps:$4 sm:$0xff]  }
 0x3ab   : > { %4646 = vmatpush1.bf16.msra.mxu1 %v6240_v9  ;;  %v6315_v9 = vld [vmem:[%s9400_s10 + $0x660] ss:$16 sps:$4 sm:$0xff]  }
 0x3ac   : > { %4647 = vmatprep.subr.bf16.mxu1 %v6248_v44  ;;  %v6323_v44 = vld [vmem:[%s9400_s10 + $0x684] ss:$16 sps:$4 sm:$0xff]  }
 0x3ad   : > { %4576 = vmatpush1.bf16.msra.mxu0 %v6273_v24  ;;  %v6356_v24 = vld [vmem:[%s9400_s10 + $0x32c] ss:$16 sps:$4 sm:$0xff]  }
 0x3ae   : > { %4577 = vmatprep.subr.bf16.mxu0 %v6281_v8  ;;  %v6354_v8 = vld [vmem:[%s9400_s10 + $0x328] ss:$16 sps:$4 sm:$0xff]  }
 0x3af   : > { %4648 = vmatpush1.bf16.msra.mxu1 %v6246_v19  ;;  %v6321_v19 = vld [vmem:[%s9400_s10 + $0x680] ss:$16 sps:$4 sm:$0xff]  }
 0x3b0   : > { %4649 = vmatprep.subr.bf16.mxu1 %v6254_v12  ;;  %v6329_v12 = vld [vmem:[%s9400_s10 + $0x6a4] ss:$16 sps:$4 sm:$0xff]  }
 0x3b1   : > { %4578 = vmatpush1.bf16.msra.mxu0 %v6279_v47  ;;  %v6362_v47 = vld [vmem:[%s9400_s10 + $0x34c] ss:$16 sps:$4 sm:$0xff]  }
 0x3b2   : > { %4579 = vmatprep.subr.bf16.mxu0 %v6287_v13  ;;  %v6360_v13 = vld [vmem:[%s9400_s10 + $0x348] ss:$16 sps:$4 sm:$0xff]  }
 0x3b3   : > { %4650 = vmatpush1.bf16.msra.mxu1 %v6252_v28  ;;  %v6327_v28 = vld [vmem:[%s9400_s10 + $0x6a0] ss:$16 sps:$4 sm:$0xff]  }
 0x3b4   : > { %4651 = vmatprep.subr.bf16.mxu1 %v6260_v41  ;;  %v6335_v41 = vld [vmem:[%s9400_s10 + $0x6c4] ss:$16 sps:$4 sm:$0xff]  }
 0x3b5   : > { %4580 = vmatpush1.bf16.msra.mxu0 %v6285_v15  ;;  %v6368_v15 = vld [vmem:[%s9400_s10 + $0x36c] ss:$16 sps:$4 sm:$0xff]  }
 0x3b6   : > { %4581 = vmatprep.subr.bf16.mxu0 %v6293_v53  ;;  %v6371_v53 = vld [vmem:[%s9400_s10 + $0x784] ss:$16 sps:$4 sm:$0xff]  }
 0x3b7   : > { %4652 = vmatpush1.bf16.msra.mxu1 %v6258_v45  ;;  %v6333_v45 = vld [vmem:[%s9400_s10 + $0x6c0] ss:$16 sps:$4 sm:$0xff]  }
 0x3b8   : > { %4653 = vmatprep.subr.bf16.mxu1 %v6266_v22  ;;  %v6341_v22 = vld [vmem:[%s9400_s10 + $0x6e4] ss:$16 sps:$4 sm:$0xff]  }
 0x3b9   : > { %4582 = vmatpush1.bf16.msra.mxu0 %v6291_v39  ;;  %v6372_v39 = vld [vmem:[%s9400_s10 + $0x388] ss:$16 sps:$4 sm:$0xff]  }
 0x3ba   : > { %4592 = vmatprep.subr.bf16.mxu0 %v6299_v57  ;;  %v6375_v57 = vld [vmem:[%s9400_s10 + $0x7a0] ss:$16 sps:$4 sm:$0xff]  }
 0x3bb   : > { %4654 = vmatpush1.bf16.msra.mxu1 %v6264_v2  ;;  %v6339_v2 = vld [vmem:[%s9400_s10 + $0x6e0] ss:$16 sps:$4 sm:$0xff]  }
 0x3bc   : > { %4655 = vmatprep.subr.bf16.mxu1 %v6272_v38  ;;  %4584 = vmatmul.mubr.bf16.vlgmr.msra.gmra.mrb[0].mxu0 %v8671_v23  ;;  %v6347_v38 = vld [vmem:[%s9400_s10 + $0x704] ss:$16 sps:$4 sm:$0xff]  }
 0x3bd   : > { %4593 = vmatpush1.bf16.msra.mxu0 %v6297_v16  ;;  %4624 = vmatprep.mubr.bf16.mxu0 %v8682_v60  ;;  %v6386_v16 = vld [vmem:[%s9400_s10 + $0x3cc] ss:$16 sps:$4 sm:$0xff]  }
 0x3be   : > { %4594 = vmatprep.subr.bf16.mxu0 %v6305_v50  ;;  %v6384_v50 = vld [vmem:[%s9400_s10 + $0x3c8] ss:$16 sps:$4 sm:$0xff]  }
 0x3bf   : > { %4656 = vmatpush1.bf16.msra.mxu1 %v6270_v36  ;;  %v6345_v36 = vld [vmem:[%s9400_s10 + $0x700] ss:$16 sps:$4 sm:$0xff]  }
 0x3c0   : > { %4657 = vmatprep.subr.bf16.mxu1 %v6278_v1  ;;  %v6353_v1 = vld [vmem:[%s9400_s10 + $0x724] ss:$16 sps:$4 sm:$0xff]  }
 0x3c1   : > { %4595 = vmatpush1.bf16.msra.mxu0 %v6303_v6  ;;  %v6389_v6 = vld [vmem:[%s9400_s10 + $0x7e4] ss:$16 sps:$4 sm:$0xff]  }
 0x3c2   : > { %4596 = vmatprep.subr.bf16.mxu0 %v6311_v37  ;;  %v6387_v37 = vld [vmem:[%s9400_s10 + $0x7e0] ss:$16 sps:$4 sm:$0xff]  }
 0x3c3   : > { %4658 = vmatpush1.bf16.msra.mxu1 %v6276_v5  ;;  %v6351_v5 = vld [vmem:[%s9400_s10 + $0x720] ss:$16 sps:$4 sm:$0xff]  }
 0x3c4   : > { %4659 = vmatprep.subr.bf16.mxu1 %v6284_v31  ;;  %v6359_v31 = vld [vmem:[%s9400_s10 + $0x744] ss:$16 sps:$4 sm:$0xff]  }
 0x3c5   : > { %4597 = vmatpush1.bf16.msra.mxu0 %v6309_v61 }
 0x3c6   : > { %4598 = vmatprep.subr.bf16.mxu0 %v6317_v25  ;;  %v6395_v25 = vld [vmem:[%s9400_s10 + $0x40c] ss:$16 sps:$4 sm:$0xff]  }
 0x3c7   : > { %4660 = vmatpush1.bf16.msra.mxu1 %v6282_v63  ;;  %v6357_v63 = vld [vmem:[%s9400_s10 + $0x740] ss:$16 sps:$4 sm:$0xff]  }
 0x3c8   : > { %4661 = vmatprep.subr.bf16.mxu1 %v6290_v49  ;;  %v6365_v49 = vld [vmem:[%s9400_s10 + $0x764] ss:$16 sps:$4 sm:$0xff]  }
 0x3c9   : > { %4599 = vmatpush1.bf16.msra.mxu0 %v6315_v9  ;;  %v6393_v9 = vld [vmem:[%s9400_s10 + $0x408] ss:$16 sps:$4 sm:$0xff]  }
 0x3ca   : > { %4600 = vmatprep.subr.bf16.mxu0 %v6323_v44  ;;  %v6489_v44 = vld [vmem:[%s9402_s12] ss:$8 sps:$4 sm:$0xff]  }
 0x3cb   : > { %4662 = vmatpush1.bf16.msra.mxu1 %v6288_v52  ;;  %v6366_v52 = vld [vmem:[%s9400_s10 + $0x368] ss:$16 sps:$4 sm:$0xff]  }
 0x3cc   : > { %4663 = vmatprep.subr.bf16.mxu1 %v6296_v59  ;;  %v6374_v59 = vld [vmem:[%s9400_s10 + $0x38c] ss:$16 sps:$4 sm:$0xff]  }
 0x3cd   : > { %4601 = vmatpush1.bf16.msra.mxu0 %v6321_v19  ;;  %v6396_v19 = vld [vmem:[%s9400_s10 + $0x428] ss:$16 sps:$4 sm:$0xff]  }
 0x3ce   : > { %4602 = vmatprep.subr.bf16.mxu0 %v6329_v12  ;;  %v6492_v12 = vld [vmem:[%s9402_s12 + $0x10] ss:$8 sps:$4 sm:$0xff]  }
 0x3cf   : > { %4664 = vmatpush1.bf16.msra.mxu1 %v6294_v62  ;;  %v6380_v62 = vld [vmem:[%s9400_s10 + $0x3ac] ss:$16 sps:$4 sm:$0xff]  }
 0x3d0   : > { %4674 = vmatprep.subr.bf16.mxu1 %v6302_v55  ;;  %v6378_v55 = vld [vmem:[%s9400_s10 + $0x3a8] ss:$16 sps:$4 sm:$0xff]  }
 0x3d1   : > { %4603 = vmatpush1.bf16.msra.mxu0 %v6327_v28  ;;  %v6404_v28 = vld [vmem:[%s9400_s10 + $0x46c] ss:$16 sps:$4 sm:$0xff]  }
 0x3d2   : > { %4666 = vmatmul.mubr.bf16.vlgmr.msra.gmra.mrb[4].mxu1 %v8463_v27  ;;  %v6314_v27 = vld [vmem:[%s9400_s10 + $0x24c] ss:$16 sps:$4 sm:$0xff]   ;;  %4604 = vmatprep.subr.bf16.mxu0 %v6335_v41 }
 0x3d3   : > { %4675 = vmatpush1.bf16.msra.mxu1 %v6300_v3  ;;  %4706 = vmatprep.mubr.bf16.mxu1 %v8406_v18  ;;  %v6320_v18 = vld [vmem:[%s9400_s10 + $0x26c] ss:$16 sps:$4 sm:$0xff]   ;;  %v6381_v3 = vld [vmem:[%s9400_s10 + $0x7c0] ss:$16 sps:$4 sm:$0xff]  }
 0x3d4   : > { %4676 = vmatprep.subr.bf16.mxu1 %v6308_v11  ;;  %v2889_v11 = vsub.s32 6, %v6826_v30  ;;  %v6500_v41 = vld [vmem:[%s9402_s12 + $0x34] ss:$8 sps:$4 sm:$0xff]   ;;  %v5298_v30 = vld [vmem:[%s9404_s14 + $0x68] sm:$0xff] }
 0x3d5   : > { %4605 = vmatpush1.bf16.msra.mxu0 %v6333_v45  ;;  %v6407_v45 = vld [vmem:[%s9400_s10 + $0x48c] ss:$16 sps:$4 sm:$0xff]  }
 0x3d6   : > { %4606 = vmatprep.subr.bf16.mxu0 %v6341_v22  ;;  %v6503_v22 = vld [vmem:[%s9402_s12 + $0x44] ss:$8 sps:$4 sm:$0xff]  }
 0x3d7   : > { %4677 = vmatpush1.bf16.msra.mxu1 %v6306_v26  ;;  %v6392_v26 = vld [vmem:[%s9400_s10 + $0x3ec] ss:$16 sps:$4 sm:$0xff]  }
 0x3d8   : > { %4678 = vmatprep.subr.bf16.mxu1 %v6314_v27  ;;  %v6585_v27 = vld [vmem:[#allocation2] sm:$0xff] }
 0x3d9   : > { %4607 = vmatpush1.bf16.msra.mxu0 %v6339_v2  ;;  %v2890_v61 = vrot.slane %v6585_v27, %v2889_v11  ;;  %v6410_v2 = vld [vmem:[%s9400_s10 + $0x4ac] ss:$16 sps:$4 sm:$0xff]  }
 0x3da   : > { %4608 = vmatprep.subr.bf16.mxu0 %v6347_v38  ;;  %v6506_v38 = vld [vmem:[%s9402_s12 + $0x54] ss:$8 sps:$4 sm:$0xff]   ;;  %v6527_v11 = vld [vmem:[%s9402_s12 + $0xc4] ss:$8 sps:$4 sm:$0xff]  }
 0x3db   : > { %4679 = vmatpush1.bf16.msra.mxu1 %v6312_v54  ;;  %v6390_v54 = vld [vmem:[%s9400_s10 + $0x3e8] ss:$16 sps:$4 sm:$0xff]   ;;  %v6530_v27 = vld [vmem:[%s9402_s12 + $0xd4] ss:$8 sps:$4 sm:$0xff]  }
 0x3dc   : > { %4680 = vmatprep.subr.bf16.mxu1 %v6320_v18  ;;  %v8866_v18 = vpack.c.bf16 %v2890_v61, %v2890_v61  ;;  %v6432_v61 = vld [vmem:[%s9400_s10 + $0x5a8] ss:$16 sps:$4 sm:$0xff]  }
 0x3dd   : > { %4609 = vmatpush1.bf16.msra.mxu0 %v6345_v36  ;;  %v6413_v36 = vld [vmem:[%s9400_s10 + $0x4cc] ss:$16 sps:$4 sm:$0xff]  }
 0x3de   : > { %4610 = vmatprep.subr.bf16.mxu0 %v6353_v1  ;;  %v6509_v1 = vld [vmem:[%s9402_s12 + $0x64] ss:$8 sps:$4 sm:$0xff]  }
 0x3df   : > { %4681 = vmatpush1.bf16.msra.mxu1 %v6318_v34  ;;  %v6398_v34 = vld [vmem:[%s9400_s10 + $0x42c] ss:$16 sps:$4 sm:$0xff]  }
 0x3e0   : > { %4682 = vmatprep.subr.bf16.mxu1 %v6326_v42  ;;  %v6491_v42 = vld [vmem:[%s9402_s12 + $0x4] ss:$8 sps:$4 sm:$0xff]  }
 0x3e1   : > { %4611 = vmatpush1.bf16.msra.mxu0 %v6351_v5  ;;  %v6416_v5 = vld [vmem:[%s9400_s10 + $0x4ec] ss:$16 sps:$4 sm:$0xff]  }
 0x3e2   : > { %4612 = vmatprep.subr.bf16.mxu0 %v6359_v31  ;;  %v6512_v31 = vld [vmem:[%s9402_s12 + $0x74] ss:$8 sps:$4 sm:$0xff]  }
 0x3e3   : > { %4683 = vmatpush1.bf16.msra.mxu1 %v6324_v48  ;;  %v6494_v48 = vld [vmem:[%s9402_s12 + $0x14] ss:$8 sps:$4 sm:$0xff]  }
 0x3e4   : > { %4684 = vmatprep.subr.bf16.mxu1 %v6332_v40  ;;  %v6399_v40 = vld [vmem:[%s9400_s10 + $0x448] ss:$16 sps:$4 sm:$0xff]  }
 0x3e5   : > { %4613 = vmatpush1.bf16.msra.mxu0 %v6357_v63  ;;  %v6419_v63 = vld [vmem:[%s9400_s10 + $0x50c] ss:$16 sps:$4 sm:$0xff]  }
 0x3e6   : > { %4614 = vmatprep.subr.bf16.mxu0 %v6365_v49  ;;  %v6515_v49 = vld [vmem:[%s9402_s12 + $0x84] ss:$8 sps:$4 sm:$0xff]  }
 0x3e7   : > { %4685 = vmatpush1.bf16.msra.mxu1 %v6330_v46  ;;  %v6495_v46 = vld [vmem:[%s9402_s12 + $0x20] ss:$8 sps:$4 sm:$0xff]  }
 0x3e8   : > { %4686 = vmatprep.subr.bf16.mxu1 %v6338_v17  ;;  %v6402_v17 = vld [vmem:[%s9400_s10 + $0x468] ss:$16 sps:$4 sm:$0xff]  }
 0x3e9   : > { %4615 = vmatpush1.bf16.msra.mxu0 %v6363_v43  ;;  %v6422_v43 = vld [vmem:[%s9400_s10 + $0x52c] ss:$16 sps:$4 sm:$0xff]  }
 0x3ea   : > { %4616 = vmatprep.subr.bf16.mxu0 %v6371_v53  ;;  %v6518_v53 = vld [vmem:[%s9402_s12 + $0x94] ss:$8 sps:$4 sm:$0xff]  }
 0x3eb   : > { %4687 = vmatpush1.bf16.msra.mxu1 %v6336_v20  ;;  %v6498_v20 = vld [vmem:[%s9402_s12 + $0x30] ss:$8 sps:$4 sm:$0xff]  }
 0x3ec   : > { %4688 = vmatprep.subr.bf16.mxu1 %v6344_v14  ;;  %v6405_v14 = vld [vmem:[%s9400_s10 + $0x488] ss:$16 sps:$4 sm:$0xff]  }
 0x3ed   : > { %4617 = vmatpush1.bf16.msra.mxu0 %v6369_v33  ;;  %v6425_v33 = vld [vmem:[%s9400_s10 + $0x54c] ss:$16 sps:$4 sm:$0xff]  }
 0x3ee   : > { %4618 = vmatprep.subr.bf16.mxu0 %v6377_v56  ;;  %v6521_v56 = vld [vmem:[%s9402_s12 + $0xa4] ss:$8 sps:$4 sm:$0xff]  }
 0x3ef   : > { %4689 = vmatpush1.bf16.msra.mxu1 %v6342_v21  ;;  %v6501_v21 = vld [vmem:[%s9402_s12 + $0x40] ss:$8 sps:$4 sm:$0xff]  }
 0x3f0   : > { %4690 = vmatprep.subr.bf16.mxu1 %v6350_v10  ;;  %v6408_v10 = vld [vmem:[%s9400_s10 + $0x4a8] ss:$16 sps:$4 sm:$0xff]  }
 0x3f1   : > { %4619 = vmatpush1.bf16.msra.mxu0 %v6375_v57  ;;  %v6428_v57 = vld [vmem:[%s9400_s10 + $0x56c] ss:$16 sps:$4 sm:$0xff]  }
 0x3f2   : > { %4620 = vmatprep.subr.bf16.mxu0 %v6383_v51  ;;  %v6524_v51 = vld [vmem:[%s9402_s12 + $0xb4] ss:$8 sps:$4 sm:$0xff]  }
 0x3f3   : > { %4691 = vmatpush1.bf16.msra.mxu1 %v6348_v29  ;;  %v6504_v29 = vld [vmem:[%s9402_s12 + $0x50] ss:$8 sps:$4 sm:$0xff]  }
 0x3f4   : > { %4692 = vmatprep.subr.bf16.mxu1 %v6356_v24  ;;  %v6411_v24 = vld [vmem:[%s9400_s10 + $0x4c8] ss:$16 sps:$4 sm:$0xff]  }
 0x3f5   : > { %4621 = vmatpush1.bf16.msra.mxu0 %v6381_v3  ;;  %v6431_v3 = vld [vmem:[%s9400_s10 + $0x58c] ss:$16 sps:$4 sm:$0xff]  }
 0x3f6   : > { %4622 = vmatprep.subr.bf16.mxu0 %v6389_v6  ;;  %v6429_v6 = vld [vmem:[%s9400_s10 + $0x588] ss:$16 sps:$4 sm:$0xff]  }
 0x3f7   : > { %4693 = vmatpush1.bf16.msra.mxu1 %v6354_v8  ;;  %v6507_v8 = vld [vmem:[%s9402_s12 + $0x60] ss:$8 sps:$4 sm:$0xff]  }
 0x3f8   : > { %4694 = vmatprep.subr.bf16.mxu1 %v6362_v47  ;;  %v6414_v47 = vld [vmem:[%s9400_s10 + $0x4e8] ss:$16 sps:$4 sm:$0xff]  }
 0x3f9   : > { %4623 = vmatpush1.bf16.msra.mxu0 %v6387_v37  ;;  %v6525_v37 = vld [vmem:[%s9402_s12 + $0xc0] ss:$8 sps:$4 sm:$0xff]  }
 0x3fa   : > { %5201 = vmatprep.subr.bf16.mxu0 %v6491_v42  ;;  %v6443_v42 = vld [vmem:[%s9400_s10 + $0x60c] ss:$16 sps:$4 sm:$0xff]  }
 0x3fb   : > { %4695 = vmatpush1.bf16.msra.mxu1 %v6360_v13  ;;  %v6510_v13 = vld [vmem:[%s9402_s12 + $0x70] ss:$8 sps:$4 sm:$0xff]  }
 0x3fc   : > { %4696 = vmatprep.subr.bf16.mxu1 %v6368_v15  ;;  %4625 = vmatmul.mubr.bf16.vlgmr.msra.gmra.mrb[0].mxu0 %v8866_v18  ;;  %v6417_v15 = vld [vmem:[%s9400_s10 + $0x508] ss:$16 sps:$4 sm:$0xff]  }
 0x3fd   : > { %5202 = vmatpush1.bf16.msra.mxu0 %v6489_v44  ;;  %v6438_v44 = vld [vmem:[%s9400_s10 + $0x5e8] ss:$16 sps:$4 sm:$0xff]  }
 0x3fe   : > { %5203 = vmatprep.subr.bf16.mxu0 %v6494_v48  ;;  %v6446_v48 = vld [vmem:[%s9400_s10 + $0x62c] ss:$16 sps:$4 sm:$0xff]  }
 0x3ff   : > { %4697 = vmatpush1.bf16.msra.mxu1 %v6366_v52  ;;  %v6513_v52 = vld [vmem:[%s9402_s12 + $0x80] ss:$8 sps:$4 sm:$0xff]  }
 0x400   : > { %4698 = vmatprep.subr.bf16.mxu1 %v6374_v59  ;;  %v6420_v59 = vld [vmem:[%s9400_s10 + $0x528] ss:$16 sps:$4 sm:$0xff]  }
 0x401   : > { %5204 = vmatpush1.bf16.msra.mxu0 %v6492_v12  ;;  %v6449_v12 = vld [vmem:[%s9400_s10 + $0x64c] ss:$16 sps:$4 sm:$0xff]  }
 0x403   : > { %4699 = vmatpush1.bf16.msra.mxu1 %v6372_v39  ;;  %v6516_v39 = vld [vmem:[%s9402_s12 + $0x90] ss:$8 sps:$4 sm:$0xff]  }
 0x404   : > { %4700 = vmatprep.subr.bf16.mxu1 %v6380_v62  ;;  %v6423_v62 = vld [vmem:[%s9400_s10 + $0x548] ss:$16 sps:$4 sm:$0xff]  }
 0x407   : > { %4701 = vmatpush1.bf16.msra.mxu1 %v6378_v55  ;;  %v6519_v55 = vld [vmem:[%s9402_s12 + $0xa0] ss:$8 sps:$4 sm:$0xff]  }
 0x408   : > { %4702 = vmatprep.subr.bf16.mxu1 %v6386_v16  ;;  %v6426_v16 = vld [vmem:[%s9400_s10 + $0x568] ss:$16 sps:$4 sm:$0xff]  }
 0x40b   : > { %4703 = vmatpush1.bf16.msra.mxu1 %v6384_v50  ;;  %v6522_v50 = vld [vmem:[%s9402_s12 + $0xb0] ss:$8 sps:$4 sm:$0xff]  }
 0x40c   : > { %4704 = vmatprep.subr.bf16.mxu1 %v6392_v26  ;;  %v6434_v26 = vld [vmem:[%s9400_s10 + $0x5ac] ss:$16 sps:$4 sm:$0xff]  }
 0x40f   : > { %4705 = vmatpush1.bf16.msra.mxu1 %v6390_v54  ;;  %v6437_v54 = vld [vmem:[%s9400_s10 + $0x5cc] ss:$16 sps:$4 sm:$0xff]  }
 0x410   : > { %4715 = vmatprep.subr.bf16.mxu1 %v6395_v25  ;;  %v6528_v25 = vld [vmem:[%s9402_s12 + $0xd0] ss:$8 sps:$4 sm:$0xff]  }
 0x412   : > { %4707 = vmatmul.mubr.bf16.vlgmr.msra.gmra.mrb[4].mxu1 %v8468_v4  ;;  %v6401_v4 = vld [vmem:[%s9400_s10 + $0x44c] ss:$16 sps:$4 sm:$0xff]  }
 0x413   : > { %4716 = vmatpush1.bf16.msra.mxu1 %v6393_v9  ;;  %4747 = vmatprep.mubr.bf16.mxu1 %v8479_v35  ;;  %v6497_v35 = vld [vmem:[%s9402_s12 + $0x24] ss:$8 sps:$4 sm:$0xff]   ;;  %v6435_v9 = vld [vmem:[%s9400_s10 + $0x5c8] ss:$16 sps:$4 sm:$0xff]  }
 0x414   : > { %4717 = vmatprep.subr.bf16.mxu1 %v6398_v34  ;;  %5205 = vmatprep.subr.bf16.mxu0 %v6497_v35  ;;  %v6440_v34 = vld [vmem:[%s9400_s10 + $0x5ec] ss:$16 sps:$4 sm:$0xff]   ;;  %v6447_v35 = vld [vmem:[%s9400_s10 + $0x648] ss:$16 sps:$4 sm:$0xff]  }
 0x415   : > { %5206 = vmatpush1.bf16.msra.mxu0 %v6495_v46  ;;  %v6458_v46 = vld [vmem:[%s9400_s10 + $0x6ac] ss:$16 sps:$4 sm:$0xff]  }
 0x416   : > { %5207 = vmatprep.subr.bf16.mxu0 %v6500_v41  ;;  %v6456_v41 = vld [vmem:[%s9400_s10 + $0x6a8] ss:$16 sps:$4 sm:$0xff]  }
 0x417   : > { %4718 = vmatpush1.bf16.msra.mxu1 %v6396_v19  ;;  %v6441_v19 = vld [vmem:[%s9400_s10 + $0x608] ss:$16 sps:$4 sm:$0xff]  }
 0x418   : > { %4719 = vmatprep.subr.bf16.mxu1 %v6401_v4  ;;  %v6444_v4 = vld [vmem:[%s9400_s10 + $0x628] ss:$16 sps:$4 sm:$0xff]  }
 0x419   : > { %5208 = vmatpush1.bf16.msra.mxu0 %v6498_v20 }
 0x41a   : > { %5209 = vmatprep.subr.bf16.mxu0 %v6503_v22  ;;  %v6531_v22 = vld [vmem:[%s9402_s12 + $0xe0] ss:$8 sps:$4 sm:$0xff]  }
 0x41b   : > { %4720 = vmatpush1.bf16.msra.mxu1 %v6399_v40  ;;  %v6455_v40 = vld [vmem:[%s9400_s10 + $0x68c] ss:$16 sps:$4 sm:$0xff]  }
 0x41c   : > { %4721 = vmatprep.subr.bf16.mxu1 %v6404_v28  ;;  %v6453_v28 = vld [vmem:[%s9400_s10 + $0x688] ss:$16 sps:$4 sm:$0xff]  }
 0x41d   : > { %5210 = vmatpush1.bf16.msra.mxu0 %v6501_v21  ;;  %v6459_v21 = vld [vmem:[%s9400_s10 + $0x6c8] ss:$16 sps:$4 sm:$0xff]  }
 0x41e   : > { %5211 = vmatprep.subr.bf16.mxu0 %v6506_v38 }
 0x41f   : > { %4722 = vmatpush1.bf16.msra.mxu1 %v6402_v17  ;;  %v6461_v17 = vld [vmem:[%s9400_s10 + $0x6cc] ss:$16 sps:$4 sm:$0xff]  }
 0x420   : > { %4723 = vmatprep.subr.bf16.mxu1 %v6407_v45  ;;  %v6533_v45 = vld [vmem:[%s9402_s12 + $0xe4] ss:$8 sps:$4 sm:$0xff]  }
 0x421   : > { %5212 = vmatpush1.bf16.msra.mxu0 %v6504_v29  ;;  %v6534_v29 = vld [vmem:[%s9402_s12 + $0xf0] ss:$8 sps:$4 sm:$0xff]  }
 0x422   : > { %5213 = vmatprep.subr.bf16.mxu0 %v6509_v1  ;;  %v6462_v1 = vld [vmem:[%s9400_s10 + $0x6e8] ss:$16 sps:$4 sm:$0xff]  }
 0x423   : > { %4724 = vmatpush1.bf16.msra.mxu1 %v6405_v14 }
 0x424   : > { %4725 = vmatprep.subr.bf16.mxu1 %v6410_v2 }
 0x425   : > { %5214 = vmatpush1.bf16.msra.mxu0 %v6507_v8  ;;  %v6465_v8 = vld [vmem:[%s9400_s10 + $0x708] ss:$16 sps:$4 sm:$0xff]  }
 0x426   : > { %5215 = vmatprep.subr.bf16.mxu0 %v6512_v31  ;;  %v6470_v31 = vld [vmem:[%s9400_s10 + $0x72c] ss:$16 sps:$4 sm:$0xff]  }
 0x427   : > { %4726 = vmatpush1.bf16.msra.mxu1 %v6408_v10  ;;  %v6464_v10 = vld [vmem:[%s9400_s10 + $0x6ec] ss:$16 sps:$4 sm:$0xff]  }
 0x428   : > { %4727 = vmatprep.subr.bf16.mxu1 %v6413_v36  ;;  %v6536_v36 = vld [vmem:[%s9402_s12 + $0xf4] ss:$8 sps:$4 sm:$0xff]  }
 0x429   : > { %5216 = vmatpush1.bf16.msra.mxu0 %v6510_v13  ;;  %v6471_v13 = vld [vmem:[%s9400_s10 + $0x748] ss:$16 sps:$4 sm:$0xff]  }
 0x42a   : > { %5217 = vmatprep.subr.bf16.mxu0 %v6515_v49  ;;  %v6476_v49 = vld [vmem:[%s9400_s10 + $0x76c] ss:$16 sps:$4 sm:$0xff]  }
 0x42b   : > { %4728 = vmatpush1.bf16.msra.mxu1 %v6411_v24  ;;  %v6467_v24 = vld [vmem:[%s9400_s10 + $0x70c] ss:$16 sps:$4 sm:$0xff]  }
 0x42c   : > { %4729 = vmatprep.subr.bf16.mxu1 %v6416_v5  ;;  %v6539_v5 = vld [vmem:[%s9402_s12 + $0x104] ss:$8 sps:$4 sm:$0xff]  }
 0x42d   : > { %5218 = vmatpush1.bf16.msra.mxu0 %v6513_v52  ;;  %v6477_v52 = vld [vmem:[%s9400_s10 + $0x788] ss:$16 sps:$4 sm:$0xff]  }
 0x42e   : > { %5219 = vmatprep.subr.bf16.mxu0 %v6518_v53  ;;  %v6482_v53 = vld [vmem:[%s9400_s10 + $0x7ac] ss:$16 sps:$4 sm:$0xff]  }
 0x42f   : > { %4730 = vmatpush1.bf16.msra.mxu1 %v6414_v47  ;;  %v6468_v47 = vld [vmem:[%s9400_s10 + $0x728] ss:$16 sps:$4 sm:$0xff]  }
 0x430   : > { %4731 = vmatprep.subr.bf16.mxu1 %v6419_v63  ;;  %v6473_v63 = vld [vmem:[%s9400_s10 + $0x74c] ss:$16 sps:$4 sm:$0xff]  }
 0x431   : > { %5220 = vmatpush1.bf16.msra.mxu0 %v6516_v39  ;;  %v6483_v39 = vld [vmem:[%s9400_s10 + $0x7c8] ss:$16 sps:$4 sm:$0xff]  }
 0x432   : > { %5221 = vmatprep.subr.bf16.mxu0 %v6521_v56  ;;  %v6488_v56 = vld [vmem:[%s9400_s10 + $0x7ec] ss:$16 sps:$4 sm:$0xff]  }
 0x433   : > { %4732 = vmatpush1.bf16.msra.mxu1 %v6417_v15  ;;  %v6474_v15 = vld [vmem:[%s9400_s10 + $0x768] ss:$16 sps:$4 sm:$0xff]  }
 0x434   : > { %4733 = vmatprep.subr.bf16.mxu1 %v6422_v43  ;;  %v6479_v43 = vld [vmem:[%s9400_s10 + $0x78c] ss:$16 sps:$4 sm:$0xff]  }
 0x435   : > { %5222 = vmatpush1.bf16.msra.mxu0 %v6519_v55 }
 0x436   : > { %5223 = vmatprep.subr.bf16.mxu0 %v6524_v51 }
 0x437   : > { %4734 = vmatpush1.bf16.msra.mxu1 %v6420_v59  ;;  %v6480_v59 = vld [vmem:[%s9400_s10 + $0x7a8] ss:$16 sps:$4 sm:$0xff]  }
 0x438   : > { %4735 = vmatprep.subr.bf16.mxu1 %v6425_v33  ;;  %v6485_v33 = vld [vmem:[%s9400_s10 + $0x7cc] ss:$16 sps:$4 sm:$0xff]  }
 0x439   : > { %5224 = vmatpush1.bf16.msra.mxu0 %v6522_v50 }
 0x43a   : > { %5225 = vmatprep.subr.bf16.mxu0 %v6527_v11 }
 0x43b   : > { %4736 = vmatpush1.bf16.msra.mxu1 %v6423_v62  ;;  %v6486_v62 = vld [vmem:[%s9400_s10 + $0x7e8] ss:$16 sps:$4 sm:$0xff]  }
 0x43c   : > { %4737 = vmatprep.subr.bf16.mxu1 %v6428_v57  ;;  %v9165_v57 = vld [vmem:[%s9401_s11] sm:$0xf] }
 0x43d   : > { %5226 = vmatpush1.bf16.msra.mxu0 %v6525_v37  ;;  %v4452_v55 = vrot.slane %v9165_v57, %v9442_v0  ;;  %v4456_v51 = vrot.slane %v9165_v57, %v6829_v32 }
 0x43e   : > { %5227 = vmatprep.subr.bf16.mxu0 %v6530_v27 }
 0x43f   : > { %4738 = vmatpush1.bf16.msra.mxu1 %v6426_v16 }
 0x440   : > { %4739 = vmatprep.subr.bf16.mxu1 %v6431_v3 }
 0x441   : > { %5228 = vmatpush1.bf16.msra.mxu0 %v6528_v25  ;;  %v6537_v25 = vld [vmem:[%s9402_s12 + $0x100] ss:$8 sps:$4 sm:$0xff]  }
 0x442   : > { %5229 = vmatprep.subr.bf16.mxu0 %v6533_v45  ;;  %v5306_v45 = vld [vmem:[%s9404_s14 + $0xa8] sm:$0xff] }
 0x443   : > { %4740 = vmatpush1.bf16.msra.mxu1 %v6429_v6 }
 0x444   : > { %4741 = vmatprep.subr.bf16.mxu1 %v6434_v26 }
 0x445   : > { %5230 = vmatpush1.bf16.msra.mxu0 %v6531_v22  ;;  %v6543_v22 = vld [vmem:[%s9402_s12 + $0x120] ss:$8 sps:$4 sm:$0xff]  }
 0x446   : > { %5231 = vmatprep.subr.bf16.mxu0 %v6536_v36  ;;  %v5308_v36 = vld [vmem:[%s9404_s14 + $0xb8] sm:$0xff] }
 0x447   : > { %4742 = vmatpush1.bf16.msra.mxu1 %v6432_v61 }
 0x448   : > { %4743 = vmatprep.subr.bf16.mxu1 %v6437_v54 }
 0x449   : > { %5232 = vmatpush1.bf16.msra.mxu0 %v6534_v29 }
 0x44a   : > { %5242 = vmatprep.subr.bf16.mxu0 %v6539_v5  ;;  %v5291_v5 = vld [vmem:[%s9404_s14 + $0x30] sm:$0xff] }
 0x44b   : > { %4744 = vmatpush1.bf16.msra.mxu1 %v6435_v9 }
 0x44c   : > { %4745 = vmatprep.subr.bf16.mxu1 %v6440_v34  ;;  %v6542_v34 = vld [vmem:[%s9402_s12 + $0x114] ss:$8 sps:$4 sm:$0xff]  }
 0x44f   : > { %4746 = vmatpush1.bf16.msra.mxu1 %v6438_v44  ;;  %v6540_v44 = vld [vmem:[%s9402_s12 + $0x110] ss:$8 sps:$4 sm:$0xff]  }
 0x450   : > { %4756 = vmatprep.subr.bf16.mxu1 %v6443_v42  ;;  %v6545_v42 = vld [vmem:[%s9402_s12 + $0x124] ss:$8 sps:$4 sm:$0xff]  }
 0x452   : > { %4748 = vmatmul.mubr.bf16.vlgmr.msra.gmra.mrb[4].mxu1 %v8671_v23  ;;  %v6452_v23 = vld [vmem:[%s9400_s10 + $0x66c] ss:$16 sps:$4 sm:$0xff]  }
 0x453   : > { %4757 = vmatpush1.bf16.msra.mxu1 %v6441_v19  ;;  %4788 = vmatprep.mubr.bf16.mxu1 %v8682_v60  ;;  %v6450_v60 = vld [vmem:[%s9400_s10 + $0x668] ss:$16 sps:$4 sm:$0xff]   ;;  %v5301_v19 = vld [vmem:[%s9404_s14 + $0x80] sm:$0xff] }
 0x454   : > { %4758 = vmatprep.subr.bf16.mxu1 %v6446_v48  ;;  %v5302_v48 = vld [vmem:[%s9404_s14 + $0x88] sm:$0xff] }
 0x457   : > { %4759 = vmatpush1.bf16.msra.mxu1 %v6444_v4  ;;  %v5285_v4 = vld [vmem:[%s9404_s14] sm:$0xff] }
 0x458   : > { %4760 = vmatprep.subr.bf16.mxu1 %v6449_v12  ;;  %v5950_v12 = vpack.c.bf16 %v5302_v48, %v5301_v19  ;;  %v6575_v19 = vld [vmem:[%s9402_s12 + $0x1c4] ss:$8 sps:$4 sm:$0xff]   ;;  %v6573_v48 = vld [vmem:[%s9402_s12 + $0x1c0] ss:$8 sps:$4 sm:$0xff]  }
 0x45b   : > { %4761 = vmatpush1.bf16.msra.mxu1 %v6447_v35  ;;  %v5286_v35 = vld [vmem:[%s9404_s14 + $0x8] sm:$0xff] }
 0x45c   : > { %4762 = vmatprep.subr.bf16.mxu1 %v6452_v23  ;;  %v5303_v23 = vld [vmem:[%s9404_s14 + $0x90] sm:$0xff] }
 0x45f   : > { %4763 = vmatpush1.bf16.msra.mxu1 %v6450_v60  ;;  %v5304_v60 = vld [vmem:[%s9404_s14 + $0x98] sm:$0xff] }
 0x460   : > { %4764 = vmatprep.subr.bf16.mxu1 %v6455_v40  ;;  %v5952_v40 = vpack.c.bf16 %v5286_v35, %v5285_v4  ;;  %v6578_v4 = vld [vmem:[%s9402_s12 + $0x1d4] ss:$8 sps:$4 sm:$0xff]   ;;  %v6581_v35 = vld [vmem:[%s9402_s12 + $0x1e4] ss:$8 sps:$4 sm:$0xff]  }
 0x463   : > { %4765 = vmatpush1.bf16.msra.mxu1 %v6453_v28  ;;  %v5954_v28 = vpack.c.bf16 %v5304_v60, %v5303_v23  ;;  %v6579_v23 = vld [vmem:[%s9402_s12 + $0x1e0] ss:$8 sps:$4 sm:$0xff]   ;;  %v6584_v60 = vld [vmem:[%s9402_s12 + $0x1f4] ss:$8 sps:$4 sm:$0xff]  }
 0x464   : > { %4766 = vmatprep.subr.bf16.mxu1 %v6458_v46  ;;  %v5287_v46 = vld [vmem:[%s9404_s14 + $0x10] sm:$0xff] }
 0x465   : > { %v4503_v20 = vpop.f32.mrb[0].mxu1 }
 0x466   : > { %v4505_v14 = vpop.f32.mrb[1].mxu1  ;;  %v4504_v16 = vadd.f32 %v4503_v20, %v4452_v55  ;;  %v5295_v55 = vld [vmem:[%s9404_s14 + $0x50] sm:$0xff] }
 0x467   : > { %v4507_v2 = vpop.f32.mrb[2].mxu1  ;;  %4767 = vmatpush1.bf16.msra.mxu1 %v6456_v41  ;;  %v4506_v3 = vadd.f32 %v4505_v14, %v4456_v51  ;;  %v5288_v41 = vld [vmem:[%s9404_s14 + $0x18] sm:$0xff] }
 0x468   : > { %v4508_v38 = vpop.f32.mrb[3].mxu1  ;;  %4768 = vmatprep.subr.bf16.mxu1 %v6461_v17  ;;  %v5305_v17 = vld [vmem:[%s9404_s14 + $0xa0] sm:$0xff]  ;;  %v5956_v20 = vpack.c.bf16 %v5288_v41, %v5287_v46  ;;  %v5296_v51 = vld [vmem:[%s9404_s14 + $0x58] sm:$0xff]  ;;  %v4464_v46 = vrot.slane %v9165_v57, %v2877_v7 }
 0x469   : > { %v5958_v14 = vpack.c.bf16 %v5306_v45, %v5305_v17  ;;  %v5289_v2 = vld [vmem:[%s9404_s14 + $0x20] sm:$0xff]  ;;  %v6548_v38 = vld [vmem:[%s9402_s12 + $0x134] ss:$8 sps:$4 sm:$0xff]  }
 0x46b   : > { %4769 = vmatpush1.bf16.msra.mxu1 %v6459_v21  ;;  %v5290_v21 = vld [vmem:[%s9404_s14 + $0x28] sm:$0xff] }
 0x46c   : > { %4770 = vmatprep.subr.bf16.mxu1 %v6464_v10  ;;  %v5307_v10 = vld [vmem:[%s9404_s14 + $0xb0] sm:$0xff]  ;;  %v5960_v29 = vpack.c.bf16 %v5290_v21, %v5289_v2 }
 0x46f   : > { %4771 = vmatpush1.bf16.msra.mxu1 %v6462_v1  ;;  %v6546_v1 = vld [vmem:[%s9402_s12 + $0x130] ss:$8 sps:$4 sm:$0xff]  }
 0x470   : > { %4772 = vmatprep.subr.bf16.mxu1 %v6467_v24  ;;  %v5962_v24 = vpack.c.bf16 %v5308_v36, %v5307_v10  ;;  %v5316_v36 = vld [vmem:[%s9404_s14 + $0xf8] sm:$0xff] }
 0x473   : > { %4773 = vmatpush1.bf16.msra.mxu1 %v6465_v8  ;;  %v5292_v8 = vld [vmem:[%s9404_s14 + $0x38] sm:$0xff] }
 0x474   : > { %4774 = vmatprep.subr.bf16.mxu1 %v6470_v31  ;;  %v6551_v31 = vld [vmem:[%s9402_s12 + $0x144] ss:$8 sps:$4 sm:$0xff]  }
 0x477   : > { %4775 = vmatpush1.bf16.msra.mxu1 %v6468_v47  ;;  %v5309_v47 = vld [vmem:[%s9404_s14 + $0xc0] sm:$0xff] }
 0x478   : > { %4776 = vmatprep.subr.bf16.mxu1 %v6473_v63  ;;  %v5310_v63 = vld [vmem:[%s9404_s14 + $0xc8] sm:$0xff] }
 0x47b   : > { %4777 = vmatpush1.bf16.msra.mxu1 %v6471_v13  ;;  %v5964_v13 = vpack.c.bf16 %v5292_v8, %v5291_v5  ;;  %v4869_v8 = vld [vmem:[%s9444_s18] sm:$0x3] }
 0x47c   : > { %4778 = vmatprep.subr.bf16.mxu1 %v6476_v49  ;;  %v6549_v49 = vld [vmem:[%s9402_s12 + $0x140] ss:$8 sps:$4 sm:$0xff]  }
 0x47f   : > { %4779 = vmatpush1.bf16.msra.mxu1 %v6474_v15  ;;  %v5966_v15 = vpack.c.bf16 %v5310_v63, %v5309_v47  ;;  %v5198_v47 = vrot.slane %v4869_v8, %v6829_v32 }
 0x480   : > { %4780 = vmatprep.subr.bf16.mxu1 %v6479_v43  ;;  %v5293_v43 = vld [vmem:[%s9404_s14 + $0x40] sm:$0xff] }
 0x483   : > { %4781 = vmatpush1.bf16.msra.mxu1 %v6477_v52  ;;  %v5294_v52 = vld [vmem:[%s9404_s14 + $0x48] sm:$0xff] }
 0x484   : > { %4782 = vmatprep.subr.bf16.mxu1 %v6482_v53  ;;  %v6554_v53 = vld [vmem:[%s9402_s12 + $0x154] ss:$8 sps:$4 sm:$0xff]  }
 0x487   : > { %4783 = vmatpush1.bf16.msra.mxu1 %v6480_v59  ;;  %v5311_v59 = vld [vmem:[%s9404_s14 + $0xd0] sm:$0xff] }
 0x488   : > { %4784 = vmatprep.subr.bf16.mxu1 %v6485_v33  ;;  %v5312_v33 = vld [vmem:[%s9404_s14 + $0xd8] sm:$0xff] }
 0x48b   : > { %4785 = vmatpush1.bf16.msra.mxu1 %v6483_v39  ;;  %v5968_v39 = vpack.c.bf16 %v5294_v52, %v5293_v43 }
 0x48c   : > { %4786 = vmatprep.subr.bf16.mxu1 %v6488_v56  ;;  %v6552_v56 = vld [vmem:[%s9402_s12 + $0x150] ss:$8 sps:$4 sm:$0xff]  }
 0x48f   : > { %4787 = vmatpush1.bf16.msra.mxu1 %v6486_v62  ;;  %v5970_v62 = vpack.c.bf16 %v5312_v33, %v5311_v59 }
 0x490   : > { %5951 = vmatprep.subr.bf16.mxu1 %v5950_v12  ;;  %v6576_v12 = vld [vmem:[%s9402_s12 + $0x1d0] ss:$8 sps:$4 sm:$0xff]  }
 0x492   : > { %4789 = vmatmul.mubr.bf16.vlgmr.msra.gmra.mrb[4].mxu1 %v8866_v18 }
 0x493   : > { %5953 = vmatpush3.bf16.msra.mxu1 %v5952_v40  ;;  %v6582_v40 = vld [vmem:[%s9402_s12 + $0x1f0] ss:$8 sps:$4 sm:$0xff]  }
 0x494   : > { %5955 = vmatprep.subr.bf16.mxu1 %v5954_v28  ;;  %v4460_v28 = vrot.slane %v9165_v57, %v9443_v58  ;;  %v5297_v58 = vld [vmem:[%s9404_s14 + $0x60] sm:$0xff]  ;;  %v5315_v57 = vld [vmem:[%s9404_s14 + $0xf0] sm:$0xff] }
 0x495   : > { %v5976_v7 = vpack.c.bf16 %v5298_v30, %v5297_v58 }
 0x497   : > { %5957 = vmatpush3.bf16.msra.mxu1 %v5956_v20 }
 0x498   : > { %5959 = vmatprep.subr.bf16.mxu1 %v5958_v14 }
 0x49b   : > { %5961 = vmatpush3.bf16.msra.mxu1 %v5960_v29  ;;  %v5978_v29 = vpack.c.bf16 %v5316_v36, %v5315_v57 }
 0x49c   : > { %5963 = vmatprep.subr.bf16.mxu1 %v5962_v24  ;;  %v5300_v24 = vld [vmem:[%s9404_s14 + $0x78] sm:$0xff] }
 0x49f   : > { %5965 = vmatpush3.bf16.msra.mxu1 %v5964_v13 }
 0x4a0   : > { %5967 = vmatprep.subr.bf16.mxu1 %v5966_v15 }
 0x4a3   : > { %5969 = vmatpush3.bf16.msra.mxu1 %v5968_v39  ;;  %v5317_v39 = vld [vmem:[#allocation3] sm:$0x1] }
 0x4a4   : > { %5971 = vmatprep.subr.bf16.mxu1 %v5970_v62 }
 0x4cf   : > { %v4626_v50 = vpop.f32.mrb[0].mxu0 }
 0x4d0   : > { %v5999_v11 = vadd.f32 %v4626_v50, %v4504_v16  ;;  %v4628_v6 = vpop.f32.mrb[1].mxu0  ;;  %v6557_v16 = vld [vmem:[%s9402_s12 + $0x164] ss:$8 sps:$4 sm:$0xff]  }
 0x4d1   : > { %v6001_v26 = vadd.f32 %v4628_v6, %v4506_v3  ;;  %v4630_v37 = vpop.f32.mrb[2].mxu0  ;;  %v5313_v3 = vld [vmem:[%s9404_s14 + $0xe0] sm:$0xff]  ;;  %v5314_v50 = vld [vmem:[%s9404_s14 + $0xe8] sm:$0xff] }
 0x4d2   : > { %v4797_v27 = vmax.f32 %v5999_v11, 0.0  ;;  %v4631_v18 = vpop.f32.mrb[3].mxu0  ;;  %v5972_v11 = vpack.c.bf16 %v5296_v51, %v5295_v55  ;;  %v6555_v6 = vld [vmem:[%s9402_s12 + $0x160] ss:$8 sps:$4 sm:$0xff]   ;;  %v6560_v37 = vld [vmem:[%s9402_s12 + $0x174] ss:$8 sps:$4 sm:$0xff]  }
 0x4d3   : > { %v4798_v61 = vmax.f32 %v6001_v26, 0.0  ;;  %v5974_v26 = vpack.c.bf16 %v5314_v50, %v5313_v3  ;;  %v6563_v18 = vld [vmem:[%s9402_s12 + $0x184] ss:$8 sps:$4 sm:$0xff]  }
 0x4d4   : > { %v4801_v9 = vpack.c.bf16 %v4797_v27, %v4797_v27  ;;  %5973 = vmatpush3.bf16.msra.mxu1 %v5972_v11  ;;  %v6558_v27 = vld [vmem:[%s9402_s12 + $0x170] ss:$8 sps:$4 sm:$0xff]  }
 0x4d5   : > { %v4802_v54 = vpack.c.bf16 %v4798_v61, %v4798_v61  ;;  %5975 = vmatprep.subr.bf16.mxu1 %v5974_v26  ;;  %v6561_v61 = vld [vmem:[%s9402_s12 + $0x180] ss:$8 sps:$4 sm:$0xff]  }
 0x4d7   : > { %5233 = vmatprep.mubr.bf16.mxu0 %v4802_v54  ;;  %v6566_v54 = vld [vmem:[%s9402_s12 + $0x194] ss:$8 sps:$4 sm:$0xff]  }
 0x4d8   : > { %5234 = vmatmul.mubr.bf16.vlgmr.msra.gmra.mrb[4].mxu0 %v4801_v9  ;;  %v6569_v9 = vld [vmem:[%s9402_s12 + $0x1a4] ss:$8 sps:$4 sm:$0xff]   ;;  %5977 = vmatpush3.bf16.msra.mxu1 %v5976_v7 }
 0x4d9   : > { %5243 = vmatpush1.bf16.msra.mxu0 %v6537_v25  ;;  %v6564_v25 = vld [vmem:[%s9402_s12 + $0x190] ss:$8 sps:$4 sm:$0xff]   ;;  %5979 = vmatprep.subr.bf16.mxu1 %v5978_v29 }
 0x4da   : > { %5244 = vmatprep.subr.bf16.mxu0 %v6542_v34  ;;  %v6567_v34 = vld [vmem:[%s9402_s12 + $0x1a0] ss:$8 sps:$4 sm:$0xff]  }
 0x4dd   : > { %5245 = vmatpush1.bf16.msra.mxu0 %v6540_v44  ;;  %v6572_v44 = vld [vmem:[%s9402_s12 + $0x1b4] ss:$8 sps:$4 sm:$0xff]  }
 0x4de   : > { %5246 = vmatprep.subr.bf16.mxu0 %v6545_v42  ;;  %v6570_v42 = vld [vmem:[%s9402_s12 + $0x1b0] ss:$8 sps:$4 sm:$0xff]  }
 0x4e1   : > { %5247 = vmatpush1.bf16.msra.mxu0 %v6543_v22 }
 0x4e2   : > { %5248 = vmatprep.subr.bf16.mxu0 %v6548_v38 }
 0x4e5   : > { %5249 = vmatpush1.bf16.msra.mxu0 %v6546_v1  ;;  %v5299_v1 = vld [vmem:[%s9404_s14 + $0x70] sm:$0xff] }
 0x4e6   : > { %5250 = vmatprep.subr.bf16.mxu0 %v6551_v31  ;;  %v5980_v5 = vpack.c.bf16 %v5300_v24, %v5299_v1  ;;  %v5194_v31 = vrot.slane %v4869_v8, %v9442_v0 }
 0x4e8   : > { %5981 = vmatpush3.bf16.msra.mxu1 %v5980_v5 }
 0x4e9   : > { %5251 = vmatpush1.bf16.msra.mxu0 %v6549_v49 }
 0x4ea   : > { %5252 = vmatprep.subr.bf16.mxu0 %v6554_v53 }
 0x4ed   : > { %5253 = vmatpush1.bf16.msra.mxu0 %v6552_v56 }
 0x4ee   : > { %5254 = vmatprep.subr.bf16.mxu0 %v6557_v16 }
 0x4f1   : > { %5255 = vmatpush1.bf16.msra.mxu0 %v6555_v6 }
 0x4f2   : > { %5256 = vmatprep.subr.bf16.mxu0 %v6560_v37 }
 0x4f5   : > { %5257 = vmatpush1.bf16.msra.mxu0 %v6558_v27 }
 0x4f6   : > { %5258 = vmatprep.subr.bf16.mxu0 %v6563_v18 }
 0x4f9   : > { %5259 = vmatpush1.bf16.msra.mxu0 %v6561_v61 }
 0x4fa   : > { %5260 = vmatprep.subr.bf16.mxu0 %v6566_v54 }
 0x4fd   : > { %5261 = vmatpush1.bf16.msra.mxu0 %v6564_v25 }
 0x4fe   : > { %5262 = vmatprep.subr.bf16.mxu0 %v6569_v9 }
 0x501   : > { %5263 = vmatpush1.bf16.msra.mxu0 %v6567_v34 }
 0x502   : > { %5264 = vmatprep.subr.bf16.mxu0 %v6572_v44 }
 0x505   : > { %5265 = vmatpush1.bf16.msra.mxu0 %v6570_v42 }
 0x506   : > { %5266 = vmatprep.subr.bf16.mxu0 %v6575_v19 }
 0x509   : > { %5267 = vmatpush1.bf16.msra.mxu0 %v6573_v48 }
 0x50a   : > { %5268 = vmatprep.subr.bf16.mxu0 %v6578_v4 }
 0x50d   : > { %5269 = vmatpush1.bf16.msra.mxu0 %v6576_v12 }
 0x50e   : > { %5270 = vmatprep.subr.bf16.mxu0 %v6581_v35 }
 0x511   : > { %5271 = vmatpush1.bf16.msra.mxu0 %v6579_v23 }
 0x512   : > { %5272 = vmatprep.subr.bf16.mxu0 %v6584_v60 }
 0x515   : > { %5273 = vmatpush1.bf16.msra.mxu0 %v6582_v40 }
 0x565   : > { %v4790_v41 = vpop.f32.mrb[4].mxu1 }
 0x566   : > { %v6002_v17 = vadd.f32 %v4790_v41, %v4460_v28  ;;  %v4792_v45 = vpop.f32.mrb[5].mxu1 }
 0x567   : > { %v6003_v20 = vadd.f32 %v4792_v45, %v4464_v46  ;;  %v4794_v22 = vpop.f32.mrb[6].mxu1 }
 0x568   : > { %v4799_v14 = vmax.f32 %v6002_v17, 0.0  ;;  %v4795_v2 = vpop.f32.mrb[7].mxu1 }
 0x569   : > { %v4800_v21 = vmax.f32 %v6003_v20, 0.0 }
 0x56a   : > { %v4803_v10 = vpack.c.bf16 %v4799_v14, %v4799_v14 }
 0x56b   : > { %v4804_v38 = vpack.c.bf16 %v4800_v21, %v4800_v21 }
 0x56d   : > { %5274 = vmatprep.mubr.bf16.mxu0 %v4804_v38 }
 0x56e   : > { %5275 = vmatmul.mubr.bf16.vlgmr.msra.gmra.mrb[4].mxu0 %v4803_v10 }
 0x641   : > { %v5276_v63 = vpop.f32.mrb[4].mxu0 }
 0x642   : > { %v6004_v13 = vadd.f32 %v5276_v63, %v5194_v31  ;;  %v5278_v49 = vpop.f32.mrb[5].mxu0 }
 0x643   : > { %v6005_v15 = vadd.f32 %v5278_v49, %v5198_v47  ;;  %v5280_v43 = vpop.f32.mrb[6].mxu0 }
 0x644   : > { %v5281_v52 = vpop.f32.mrb[7].mxu0  ;;  %v5283_v59 = vmax.f32 %v6004_v13, 0.0 }
 0x645   : > { %v5284_v53 = vmax.f32 %v6005_v15, 0.0 }
 0x647   : > { %5382 = vmatprep.mubr.f32.mxu1 %v5284_v53 }
 0x648   : > { %5383 = vmatmul.mubr.f32.vlgmr.msra.gmra.mrb[8].mxu1 %v5283_v59 }
 0x71b   : > { %v5923_v33 = vpop.f32.mrb[8].mxu1 }
 0x71c   : > { %v5924_v56 = vpop.f32.mrb[9].mxu1 }
 0x71d   : > { %v5925_v62 = vadd.f32 %v5924_v56, %v5923_v33 }
 0x71f   : > { %v5385_v55 = vadd.f32 %v5925_v62, %v5317_v39 }
 0x721   : > { %5389 = vst.msk [vmem:[%s584_s22] sm:$0x1] %vm5388_vm2, %v5385_v55 }
 0x722 PF: > { %s9445_s21 = sld [smem:[#allocation6_spill]]  ;;  %s9446_s23 = sld [smem:[#allocation4_spill]] }
 0x723   : > { %s9447_s24 = sld [smem:[#allocation5_spill]]  ;;  %s9448_s25 = sld [smem:[#allocation7_spill]] }
 0x724   : > { %s9449_s26 = sld [smem:[#allocation8_spill]] }
 0x728   : > { %s28_s27 = sadd.s32 1, %s9445_s21  }
 0x729   : > { %p25_p9 = scmp.ge.s32.totalorder %s28_s27, 6  }
 0x72b   :  { %27 = sbr.rel (!%p25_p9) target bundleno = 4 (0x4), region = 125 }

</bundles_post_ra>
